<compile_context>
chip_gen: v7x
topology: tpu7x:2x2x1
jax: 0.10.0
libtpu: 0.0.40
codegen_flags: <defaults>
</compile_context>

<pallas_src>
import functools

import jax
import jax.numpy as jnp
from jax import lax
from jax.experimental import pallas as pl
from jax.experimental.pallas import tpu as pltpu


_UNROLL_MAX_HN = 8  # statically unroll the per-slab h loop only when short


def _window_partition_kernel(x_ref, o_ref, *, kd, kh, kw):
    """One (batch, depth-slab) tile.

    x_ref: (1, C, kd, H, W)   raw BCDHW slab (channels still in front)
    o_ref: (1, hn*wn, K, C)   K = kd*kh*kw, channels last
    """
    _, C, _, H, W = x_ref.shape
    hn = H // kh
    wn = W // kw

    def emit_window_row(h):
        # For one output window-row h: gather the kd*kh source rows, move
        # channels last with a 2-D transpose, and write each as a single
        # (wn, kw, C) slab (dense along lanes = C, all wn windows at once).
        for kdi in range(kd):
            for khi in range(kh):
                row = x_ref[0, :, kdi, h * kh + khi, :]          # (C, W)
                row_t = jnp.swapaxes(row, 0, 1)                  # (W, C)
                ko = (kdi * kh + khi) * kw
                o_ref[0, pl.ds(h * wn, wn), ko:ko + kw, :] = (
                    row_t.reshape(wn, kw, C))

    if hn <= _UNROLL_MAX_HN:
        for h in range(hn):                 # short: unroll (all-static indices)
            emit_window_row(h)
    else:
        def h_body(h, carry):               # long: keep the traced body small
            emit_window_row(h)
            return carry
        lax.fori_loop(0, hn, h_body, 0)


def window_partition_3d(x_bcdhw, kernel_size):
    """(B, C, D, H, W) -> (B, (D//kd)*(H//kh)*(W//kw), kd*kh*kw, C)."""
    kd, kh, kw = kernel_size
    B, C, D, H, W = x_bcdhw.shape
    assert D % kd == 0 and H % kh == 0 and W % kw == 0, (
        f"Not all dimensions are divisible by kernel: "
        f"volume=({D},{H},{W}) kernel=({kd},{kh},{kw})")
    dn, hn, wn = D // kd, H // kh, W // kw
    nW = dn * hn * wn
    K = kd * kh * kw

    kernel = functools.partial(_window_partition_kernel, kd=kd, kh=kh, kw=kw)

    # One input slab + one output slab per step, double-buffered by Pallas.
    itemsize = x_bcdhw.dtype.itemsize
    block_bytes = (C * kd * H * W + hn * wn * K * C) * itemsize
    vmem_limit = int(min(max(2 * block_bytes + (4 << 20), 32 << 20), 100 << 20))

    return pl.pallas_call(
        kernel,
        out_shape=jax.ShapeDtypeStruct((B, nW, K, C), x_bcdhw.dtype),
        grid_spec=pltpu.PrefetchScalarGridSpec(
            num_scalar_prefetch=0,
            grid=(B, dn),
            in_specs=[
                pl.BlockSpec((1, C, kd, H, W), lambda b, d: (b, 0, d, 0, 0)),
            ],
            out_specs=pl.BlockSpec((1, hn * wn, K, C),
                                   lambda b, d: (b, d, 0, 0)),
        ),
        compiler_params=pltpu.CompilerParams(
            dimension_semantics=("parallel", "parallel"),
            vmem_limit_bytes=vmem_limit),
    )(x_bcdhw)


def _reference_window_partition_3d(x_bcdhw, kernel_size):
    """Pure-JAX reference of the einops rearrange."""
    kd, kh, kw = kernel_size
    B, C, D, H, W = x_bcdhw.shape
    dn, hn, wn = D // kd, H // kh, W // kw
    x = x_bcdhw.reshape(B, C, dn, kd, hn, kh, wn, kw)
    x = jnp.transpose(x, (0, 2, 4, 6, 3, 5, 7, 1))  # b d h w kd kh kw c
    return x.reshape(B, dn * hn * wn, kd * kh * kw, C)


if __name__ == "__main__":
    # Small, deterministic BCDHW example.
    B, C, D, H, W = 2, 128, 4, 8, 8
    kernel_size = (2, 2, 2)  # (kd, kh, kw)

    key = jax.random.PRNGKey(0)
    x = jax.random.normal(key, (B, C, D, H, W), dtype=jnp.float32)

    out = jax.block_until_ready(window_partition_3d(x, kernel_size))
    ref = _reference_window_partition_3d(x, kernel_size)

    assert out.shape == ref.shape, (out.shape, ref.shape)
    assert out.dtype == ref.dtype, (out.dtype, ref.dtype)
    assert bool(jnp.array_equal(out, ref)), "Pallas output != reference rearrange"

    print("KERNEL_OK")
</pallas_src>

<mosaic_0001>
module attributes {stable_mosaic.version = 11 : i64} {
  func.func @_window_partition_kernel(%arg0: i32, %arg1: i32, %arg2: memref<1x128x2x8x8xf32, #tpu.memory_space<vmem>>, %arg3: memref<1x16x8x128xf32, #tpu.memory_space<vmem>>) attributes {dimension_semantics = [#tpu.dimension_semantics<parallel>, #tpu.dimension_semantics<parallel>], iteration_bounds = array<i64: 2, 2>, scalar_prefetch = 0 : i64, scratch_operands = 0 : i64, tpu.core_type = #tpu.core_type<tc>, window_params = [{transform_indices = @transform_0, window_bounds = array<i64: 1, 128, 2, 8, 8>}, {transform_indices = @transform_1, window_bounds = array<i64: 1, 16, 8, 128>}]} {
    %c0 = arith.constant 0 : index
    %c0_0 = arith.constant 0 : index
    %c0_1 = arith.constant 0 : index
    %c0_2 = arith.constant 0 : index
    %c0_3 = arith.constant 0 : index
    %0 = vector.load %arg2[%c0, %c0_0, %c0_1, %c0_2, %c0_3] : memref<1x128x2x8x8xf32, #tpu.memory_space<vmem>>, vector<1x128x1x1x8xf32>
    %1 = vector.shape_cast %0 : vector<1x128x1x1x8xf32> to vector<128x8xf32>
    %2 = tpu.transpose %1, [1, 0] : vector<128x8xf32> -> vector<8x128xf32>
    %3 = vector.shape_cast %2 : vector<8x128xf32> to vector<4x2x128xf32>
    %c0_4 = arith.constant 0 : index
    %c0_5 = arith.constant 0 : index
    %c0_6 = arith.constant 0 : index
    %c0_7 = arith.constant 0 : index
    %4 = vector.load %arg3[%c0_4, %c0_5, %c0_6, %c0_7] : memref<1x16x8x128xf32, #tpu.memory_space<vmem>>, vector<1x4x2x128xf32>
    %5 = vector.shape_cast %4 : vector<1x4x2x128xf32> to vector<4x2x128xf32>
    %6 = vector.shape_cast %3 : vector<4x2x128xf32> to vector<1x4x2x128xf32>
    tpu.vector_store %arg3[%c0_4, %c0_5, %c0_6, %c0_7], %6 {strides = array<i32>} : memref<1x16x8x128xf32, #tpu.memory_space<vmem>>, vector<1x4x2x128xf32>,
    %c0_8 = arith.constant 0 : index
    %c0_9 = arith.constant 0 : index
    %c0_10 = arith.constant 0 : index
    %c1 = arith.constant 1 : index
    %c0_11 = arith.constant 0 : index
    %7 = vector.load %arg2[%c0_8, %c0_9, %c0_10, %c1, %c0_11] : memref<1x128x2x8x8xf32, #tpu.memory_space<vmem>>, vector<1x128x1x1x8xf32>
    %8 = vector.shape_cast %7 : vector<1x128x1x1x8xf32> to vector<128x8xf32>
    %9 = tpu.transpose %8, [1, 0] : vector<128x8xf32> -> vector<8x128xf32>
    %10 = vector.shape_cast %9 : vector<8x128xf32> to vector<4x2x128xf32>
    %c0_12 = arith.constant 0 : index
    %c0_13 = arith.constant 0 : index
    %c2 = arith.constant 2 : index
    %c0_14 = arith.constant 0 : index
    %11 = vector.load %arg3[%c0_12, %c0_13, %c2, %c0_14] : memref<1x16x8x128xf32, #tpu.memory_space<vmem>>, vector<1x4x2x128xf32>
    %12 = vector.shape_cast %11 : vector<1x4x2x128xf32> to vector<4x2x128xf32>
    %13 = vector.shape_cast %10 : vector<4x2x128xf32> to vector<1x4x2x128xf32>
    tpu.vector_store %arg3[%c0_12, %c0_13, %c2, %c0_14], %13 {strides = array<i32>} : memref<1x16x8x128xf32, #tpu.memory_space<vmem>>, vector<1x4x2x128xf32>,
    %c0_15 = arith.constant 0 : index
    %c0_16 = arith.constant 0 : index
    %c1_17 = arith.constant 1 : index
    %c0_18 = arith.constant 0 : index
    %c0_19 = arith.constant 0 : index
    %14 = vector.load %arg2[%c0_15, %c0_16, %c1_17, %c0_18, %c0_19] : memref<1x128x2x8x8xf32, #tpu.memory_space<vmem>>, vector<1x128x1x1x8xf32>
    %15 = vector.shape_cast %14 : vector<1x128x1x1x8xf32> to vector<128x8xf32>
    %16 = tpu.transpose %15, [1, 0] : vector<128x8xf32> -> vector<8x128xf32>
    %17 = vector.shape_cast %16 : vector<8x128xf32> to vector<4x2x128xf32>
    %c0_20 = arith.constant 0 : index
    %c0_21 = arith.constant 0 : index
    %c4 = arith.constant 4 : index
    %c0_22 = arith.constant 0 : index
    %18 = vector.load %arg3[%c0_20, %c0_21, %c4, %c0_22] : memref<1x16x8x128xf32, #tpu.memory_space<vmem>>, vector<1x4x2x128xf32>
    %19 = vector.shape_cast %18 : vector<1x4x2x128xf32> to vector<4x2x128xf32>
    %20 = vector.shape_cast %17 : vector<4x2x128xf32> to vector<1x4x2x128xf32>
    tpu.vector_store %arg3[%c0_20, %c0_21, %c4, %c0_22], %20 {strides = array<i32>} : memref<1x16x8x128xf32, #tpu.memory_space<vmem>>, vector<1x4x2x128xf32>,
    %c0_23 = arith.constant 0 : index
    %c0_24 = arith.constant 0 : index
    %c1_25 = arith.constant 1 : index
    %c1_26 = arith.constant 1 : index
    %c0_27 = arith.constant 0 : index
    %21 = vector.load %arg2[%c0_23, %c0_24, %c1_25, %c1_26, %c0_27] : memref<1x128x2x8x8xf32, #tpu.memory_space<vmem>>, vector<1x128x1x1x8xf32>
    %22 = vector.shape_cast %21 : vector<1x128x1x1x8xf32> to vector<128x8xf32>
    %23 = tpu.transpose %22, [1, 0] : vector<128x8xf32> -> vector<8x128xf32>
    %24 = vector.shape_cast %23 : vector<8x128xf32> to vector<4x2x128xf32>
    %c0_28 = arith.constant 0 : index
    %c0_29 = arith.constant 0 : index
    %c6 = arith.constant 6 : index
    %c0_30 = arith.constant 0 : index
    %25 = vector.load %arg3[%c0_28, %c0_29, %c6, %c0_30] : memref<1x16x8x128xf32, #tpu.memory_space<vmem>>, vector<1x4x2x128xf32>
    %26 = vector.shape_cast %25 : vector<1x4x2x128xf32> to vector<4x2x128xf32>
    %27 = vector.shape_cast %24 : vector<4x2x128xf32> to vector<1x4x2x128xf32>
    tpu.vector_store %arg3[%c0_28, %c0_29, %c6, %c0_30], %27 {strides = array<i32>} : memref<1x16x8x128xf32, #tpu.memory_space<vmem>>, vector<1x4x2x128xf32>,
    %c0_31 = arith.constant 0 : index
    %c0_32 = arith.constant 0 : index
    %c0_33 = arith.constant 0 : index
    %c2_34 = arith.constant 2 : index
    %c0_35 = arith.constant 0 : index
    %28 = vector.load %arg2[%c0_31, %c0_32, %c0_33, %c2_34, %c0_35] : memref<1x128x2x8x8xf32, #tpu.memory_space<vmem>>, vector<1x128x1x1x8xf32>
    %29 = vector.shape_cast %28 : vector<1x128x1x1x8xf32> to vector<128x8xf32>
    %30 = tpu.transpose %29, [1, 0] : vector<128x8xf32> -> vector<8x128xf32>
    %31 = vector.shape_cast %30 : vector<8x128xf32> to vector<4x2x128xf32>
    %c0_36 = arith.constant 0 : index
    %c4_37 = arith.constant 4 : index
    %c0_38 = arith.constant 0 : index
    %c0_39 = arith.constant 0 : index
    %32 = vector.load %arg3[%c0_36, %c4_37, %c0_38, %c0_39] : memref<1x16x8x128xf32, #tpu.memory_space<vmem>>, vector<1x4x2x128xf32>
    %33 = vector.shape_cast %32 : vector<1x4x2x128xf32> to vector<4x2x128xf32>
    %34 = vector.shape_cast %31 : vector<4x2x128xf32> to vector<1x4x2x128xf32>
    tpu.vector_store %arg3[%c0_36, %c4_37, %c0_38, %c0_39], %34 {strides = array<i32>} : memref<1x16x8x128xf32, #tpu.memory_space<vmem>>, vector<1x4x2x128xf32>,
    %c0_40 = arith.constant 0 : index
    %c0_41 = arith.constant 0 : index
    %c0_42 = arith.constant 0 : index
    %c3 = arith.constant 3 : index
    %c0_43 = arith.constant 0 : index
    %35 = vector.load %arg2[%c0_40, %c0_41, %c0_42, %c3, %c0_43] : memref<1x128x2x8x8xf32, #tpu.memory_space<vmem>>, vector<1x128x1x1x8xf32>
    %36 = vector.shape_cast %35 : vector<1x128x1x1x8xf32> to vector<128x8xf32>
    %37 = tpu.transpose %36, [1, 0] : vector<128x8xf32> -> vector<8x128xf32>
    %38 = vector.shape_cast %37 : vector<8x128xf32> to vector<4x2x128xf32>
    %c0_44 = arith.constant 0 : index
    %c4_45 = arith.constant 4 : index
    %c2_46 = arith.constant 2 : index
    %c0_47 = arith.constant 0 : index
    %39 = vector.load %arg3[%c0_44, %c4_45, %c2_46, %c0_47] : memref<1x16x8x128xf32, #tpu.memory_space<vmem>>, vector<1x4x2x128xf32>
    %40 = vector.shape_cast %39 : vector<1x4x2x128xf32> to vector<4x2x128xf32>
    %41 = vector.shape_cast %38 : vector<4x2x128xf32> to vector<1x4x2x128xf32>
    tpu.vector_store %arg3[%c0_44, %c4_45, %c2_46, %c0_47], %41 {strides = array<i32>} : memref<1x16x8x128xf32, #tpu.memory_space<vmem>>, vector<1x4x2x128xf32>,
    %c0_48 = arith.constant 0 : index
    %c0_49 = arith.constant 0 : index
    %c1_50 = arith.constant 1 : index
    %c2_51 = arith.constant 2 : index
    %c0_52 = arith.constant 0 : index
    %42 = vector.load %arg2[%c0_48, %c0_49, %c1_50, %c2_51, %c0_52] : memref<1x128x2x8x8xf32, #tpu.memory_space<vmem>>, vector<1x128x1x1x8xf32>
    %43 = vector.shape_cast %42 : vector<1x128x1x1x8xf32> to vector<128x8xf32>
    %44 = tpu.transpose %43, [1, 0] : vector<128x8xf32> -> vector<8x128xf32>
    %45 = vector.shape_cast %44 : vector<8x128xf32> to vector<4x2x128xf32>
    %c0_53 = arith.constant 0 : index
    %c4_54 = arith.constant 4 : index
    %c4_55 = arith.constant 4 : index
    %c0_56 = arith.constant 0 : index
    %46 = vector.load %arg3[%c0_53, %c4_54, %c4_55, %c0_56] : memref<1x16x8x128xf32, #tpu.memory_space<vmem>>, vector<1x4x2x128xf32>
    %47 = vector.shape_cast %46 : vector<1x4x2x128xf32> to vector<4x2x128xf32>
    %48 = vector.shape_cast %45 : vector<4x2x128xf32> to vector<1x4x2x128xf32>
    tpu.vector_store %arg3[%c0_53, %c4_54, %c4_55, %c0_56], %48 {strides = array<i32>} : memref<1x16x8x128xf32, #tpu.memory_space<vmem>>, vector<1x4x2x128xf32>,
    %c0_57 = arith.constant 0 : index
    %c0_58 = arith.constant 0 : index
    %c1_59 = arith.constant 1 : index
    %c3_60 = arith.constant 3 : index
    %c0_61 = arith.constant 0 : index
    %49 = vector.load %arg2[%c0_57, %c0_58, %c1_59, %c3_60, %c0_61] : memref<1x128x2x8x8xf32, #tpu.memory_space<vmem>>, vector<1x128x1x1x8xf32>
    %50 = vector.shape_cast %49 : vector<1x128x1x1x8xf32> to vector<128x8xf32>
    %51 = tpu.transpose %50, [1, 0] : vector<128x8xf32> -> vector<8x128xf32>
    %52 = vector.shape_cast %51 : vector<8x128xf32> to vector<4x2x128xf32>
    %c0_62 = arith.constant 0 : index
    %c4_63 = arith.constant 4 : index
    %c6_64 = arith.constant 6 : index
    %c0_65 = arith.constant 0 : index
    %53 = vector.load %arg3[%c0_62, %c4_63, %c6_64, %c0_65] : memref<1x16x8x128xf32, #tpu.memory_space<vmem>>, vector<1x4x2x128xf32>
    %54 = vector.shape_cast %53 : vector<1x4x2x128xf32> to vector<4x2x128xf32>
    %55 = vector.shape_cast %52 : vector<4x2x128xf32> to vector<1x4x2x128xf32>
    tpu.vector_store %arg3[%c0_62, %c4_63, %c6_64, %c0_65], %55 {strides = array<i32>} : memref<1x16x8x128xf32, #tpu.memory_space<vmem>>, vector<1x4x2x128xf32>,
    %c0_66 = arith.constant 0 : index
    %c0_67 = arith.constant 0 : index
    %c0_68 = arith.constant 0 : index
    %c4_69 = arith.constant 4 : index
    %c0_70 = arith.constant 0 : index
    %56 = vector.load %arg2[%c0_66, %c0_67, %c0_68, %c4_69, %c0_70] : memref<1x128x2x8x8xf32, #tpu.memory_space<vmem>>, vector<1x128x1x1x8xf32>
    %57 = vector.shape_cast %56 : vector<1x128x1x1x8xf32> to vector<128x8xf32>
    %58 = tpu.transpose %57, [1, 0] : vector<128x8xf32> -> vector<8x128xf32>
    %59 = vector.shape_cast %58 : vector<8x128xf32> to vector<4x2x128xf32>
    %c0_71 = arith.constant 0 : index
    %c8 = arith.constant 8 : index
    %c0_72 = arith.constant 0 : index
    %c0_73 = arith.constant 0 : index
    %60 = vector.load %arg3[%c0_71, %c8, %c0_72, %c0_73] : memref<1x16x8x128xf32, #tpu.memory_space<vmem>>, vector<1x4x2x128xf32>
    %61 = vector.shape_cast %60 : vector<1x4x2x128xf32> to vector<4x2x128xf32>
    %62 = vector.shape_cast %59 : vector<4x2x128xf32> to vector<1x4x2x128xf32>
    tpu.vector_store %arg3[%c0_71, %c8, %c0_72, %c0_73], %62 {strides = array<i32>} : memref<1x16x8x128xf32, #tpu.memory_space<vmem>>, vector<1x4x2x128xf32>,
    %c0_74 = arith.constant 0 : index
    %c0_75 = arith.constant 0 : index
    %c0_76 = arith.constant 0 : index
    %c5 = arith.constant 5 : index
    %c0_77 = arith.constant 0 : index
    %63 = vector.load %arg2[%c0_74, %c0_75, %c0_76, %c5, %c0_77] : memref<1x128x2x8x8xf32, #tpu.memory_space<vmem>>, vector<1x128x1x1x8xf32>
    %64 = vector.shape_cast %63 : vector<1x128x1x1x8xf32> to vector<128x8xf32>
    %65 = tpu.transpose %64, [1, 0] : vector<128x8xf32> -> vector<8x128xf32>
    %66 = vector.shape_cast %65 : vector<8x128xf32> to vector<4x2x128xf32>
    %c0_78 = arith.constant 0 : index
    %c8_79 = arith.constant 8 : index
    %c2_80 = arith.constant 2 : index
    %c0_81 = arith.constant 0 : index
    %67 = vector.load %arg3[%c0_78, %c8_79, %c2_80, %c0_81] : memref<1x16x8x128xf32, #tpu.memory_space<vmem>>, vector<1x4x2x128xf32>
    %68 = vector.shape_cast %67 : vector<1x4x2x128xf32> to vector<4x2x128xf32>
    %69 = vector.shape_cast %66 : vector<4x2x128xf32> to vector<1x4x2x128xf32>
    tpu.vector_store %arg3[%c0_78, %c8_79, %c2_80, %c0_81], %69 {strides = array<i32>} : memref<1x16x8x128xf32, #tpu.memory_space<vmem>>, vector<1x4x2x128xf32>,
    %c0_82 = arith.constant 0 : index
    %c0_83 = arith.constant 0 : index
    %c1_84 = arith.constant 1 : index
    %c4_85 = arith.constant 4 : index
    %c0_86 = arith.constant 0 : index
    %70 = vector.load %arg2[%c0_82, %c0_83, %c1_84, %c4_85, %c0_86] : memref<1x128x2x8x8xf32, #tpu.memory_space<vmem>>, vector<1x128x1x1x8xf32>
    %71 = vector.shape_cast %70 : vector<1x128x1x1x8xf32> to vector<128x8xf32>
    %72 = tpu.transpose %71, [1, 0] : vector<128x8xf32> -> vector<8x128xf32>
    %73 = vector.shape_cast %72 : vector<8x128xf32> to vector<4x2x128xf32>
    %c0_87 = arith.constant 0 : index
    %c8_88 = arith.constant 8 : index
    %c4_89 = arith.constant 4 : index
    %c0_90 = arith.constant 0 : index
    %74 = vector.load %arg3[%c0_87, %c8_88, %c4_89, %c0_90] : memref<1x16x8x128xf32, #tpu.memory_space<vmem>>, vector<1x4x2x128xf32>
    %75 = vector.shape_cast %74 : vector<1x4x2x128xf32> to vector<4x2x128xf32>
    %76 = vector.shape_cast %73 : vector<4x2x128xf32> to vector<1x4x2x128xf32>
    tpu.vector_store %arg3[%c0_87, %c8_88, %c4_89, %c0_90], %76 {strides = array<i32>} : memref<1x16x8x128xf32, #tpu.memory_space<vmem>>, vector<1x4x2x128xf32>,
    %c0_91 = arith.constant 0 : index
    %c0_92 = arith.constant 0 : index
    %c1_93 = arith.constant 1 : index
    %c5_94 = arith.constant 5 : index
    %c0_95 = arith.constant 0 : index
    %77 = vector.load %arg2[%c0_91, %c0_92, %c1_93, %c5_94, %c0_95] : memref<1x128x2x8x8xf32, #tpu.memory_space<vmem>>, vector<1x128x1x1x8xf32>
    %78 = vector.shape_cast %77 : vector<1x128x1x1x8xf32> to vector<128x8xf32>
    %79 = tpu.transpose %78, [1, 0] : vector<128x8xf32> -> vector<8x128xf32>
    %80 = vector.shape_cast %79 : vector<8x128xf32> to vector<4x2x128xf32>
    %c0_96 = arith.constant 0 : index
    %c8_97 = arith.constant 8 : index
    %c6_98 = arith.constant 6 : index
    %c0_99 = arith.constant 0 : index
    %81 = vector.load %arg3[%c0_96, %c8_97, %c6_98, %c0_99] : memref<1x16x8x128xf32, #tpu.memory_space<vmem>>, vector<1x4x2x128xf32>
    %82 = vector.shape_cast %81 : vector<1x4x2x128xf32> to vector<4x2x128xf32>
    %83 = vector.shape_cast %80 : vector<4x2x128xf32> to vector<1x4x2x128xf32>
    tpu.vector_store %arg3[%c0_96, %c8_97, %c6_98, %c0_99], %83 {strides = array<i32>} : memref<1x16x8x128xf32, #tpu.memory_space<vmem>>, vector<1x4x2x128xf32>,
    %c0_100 = arith.constant 0 : index
    %c0_101 = arith.constant 0 : index
    %c0_102 = arith.constant 0 : index
    %c6_103 = arith.constant 6 : index
    %c0_104 = arith.constant 0 : index
    %84 = vector.load %arg2[%c0_100, %c0_101, %c0_102, %c6_103, %c0_104] : memref<1x128x2x8x8xf32, #tpu.memory_space<vmem>>, vector<1x128x1x1x8xf32>
    %85 = vector.shape_cast %84 : vector<1x128x1x1x8xf32> to vector<128x8xf32>
    %86 = tpu.transpose %85, [1, 0] : vector<128x8xf32> -> vector<8x128xf32>
    %87 = vector.shape_cast %86 : vector<8x128xf32> to vector<4x2x128xf32>
    %c0_105 = arith.constant 0 : index
    %c12 = arith.constant 12 : index
    %c0_106 = arith.constant 0 : index
    %c0_107 = arith.constant 0 : index
    %88 = vector.load %arg3[%c0_105, %c12, %c0_106, %c0_107] : memref<1x16x8x128xf32, #tpu.memory_space<vmem>>, vector<1x4x2x128xf32>
    %89 = vector.shape_cast %88 : vector<1x4x2x128xf32> to vector<4x2x128xf32>
    %90 = vector.shape_cast %87 : vector<4x2x128xf32> to vector<1x4x2x128xf32>
    tpu.vector_store %arg3[%c0_105, %c12, %c0_106, %c0_107], %90 {strides = array<i32>} : memref<1x16x8x128xf32, #tpu.memory_space<vmem>>, vector<1x4x2x128xf32>,
    %c0_108 = arith.constant 0 : index
    %c0_109 = arith.constant 0 : index
    %c0_110 = arith.constant 0 : index
    %c7 = arith.constant 7 : index
    %c0_111 = arith.constant 0 : index
    %91 = vector.load %arg2[%c0_108, %c0_109, %c0_110, %c7, %c0_111] : memref<1x128x2x8x8xf32, #tpu.memory_space<vmem>>, vector<1x128x1x1x8xf32>
    %92 = vector.shape_cast %91 : vector<1x128x1x1x8xf32> to vector<128x8xf32>
    %93 = tpu.transpose %92, [1, 0] : vector<128x8xf32> -> vector<8x128xf32>
    %94 = vector.shape_cast %93 : vector<8x128xf32> to vector<4x2x128xf32>
    %c0_112 = arith.constant 0 : index
    %c12_113 = arith.constant 12 : index
    %c2_114 = arith.constant 2 : index
    %c0_115 = arith.constant 0 : index
    %95 = vector.load %arg3[%c0_112, %c12_113, %c2_114, %c0_115] : memref<1x16x8x128xf32, #tpu.memory_space<vmem>>, vector<1x4x2x128xf32>
    %96 = vector.shape_cast %95 : vector<1x4x2x128xf32> to vector<4x2x128xf32>
    %97 = vector.shape_cast %94 : vector<4x2x128xf32> to vector<1x4x2x128xf32>
    tpu.vector_store %arg3[%c0_112, %c12_113, %c2_114, %c0_115], %97 {strides = array<i32>} : memref<1x16x8x128xf32, #tpu.memory_space<vmem>>, vector<1x4x2x128xf32>,
    %c0_116 = arith.constant 0 : index
    %c0_117 = arith.constant 0 : index
    %c1_118 = arith.constant 1 : index
    %c6_119 = arith.constant 6 : index
    %c0_120 = arith.constant 0 : index
    %98 = vector.load %arg2[%c0_116, %c0_117, %c1_118, %c6_119, %c0_120] : memref<1x128x2x8x8xf32, #tpu.memory_space<vmem>>, vector<1x128x1x1x8xf32>
    %99 = vector.shape_cast %98 : vector<1x128x1x1x8xf32> to vector<128x8xf32>
    %100 = tpu.transpose %99, [1, 0] : vector<128x8xf32> -> vector<8x128xf32>
    %101 = vector.shape_cast %100 : vector<8x128xf32> to vector<4x2x128xf32>
    %c0_121 = arith.constant 0 : index
    %c12_122 = arith.constant 12 : index
    %c4_123 = arith.constant 4 : index
    %c0_124 = arith.constant 0 : index
    %102 = vector.load %arg3[%c0_121, %c12_122, %c4_123, %c0_124] : memref<1x16x8x128xf32, #tpu.memory_space<vmem>>, vector<1x4x2x128xf32>
    %103 = vector.shape_cast %102 : vector<1x4x2x128xf32> to vector<4x2x128xf32>
    %104 = vector.shape_cast %101 : vector<4x2x128xf32> to vector<1x4x2x128xf32>
    tpu.vector_store %arg3[%c0_121, %c12_122, %c4_123, %c0_124], %104 {strides = array<i32>} : memref<1x16x8x128xf32, #tpu.memory_space<vmem>>, vector<1x4x2x128xf32>,
    %c0_125 = arith.constant 0 : index
    %c0_126 = arith.constant 0 : index
    %c1_127 = arith.constant 1 : index
    %c7_128 = arith.constant 7 : index
    %c0_129 = arith.constant 0 : index
    %105 = vector.load %arg2[%c0_125, %c0_126, %c1_127, %c7_128, %c0_129] : memref<1x128x2x8x8xf32, #tpu.memory_space<vmem>>, vector<1x128x1x1x8xf32>
    %106 = vector.shape_cast %105 : vector<1x128x1x1x8xf32> to vector<128x8xf32>
    %107 = tpu.transpose %106, [1, 0] : vector<128x8xf32> -> vector<8x128xf32>
    %108 = vector.shape_cast %107 : vector<8x128xf32> to vector<4x2x128xf32>
    %c0_130 = arith.constant 0 : index
    %c12_131 = arith.constant 12 : index
    %c6_132 = arith.constant 6 : index
    %c0_133 = arith.constant 0 : index
    %109 = vector.load %arg3[%c0_130, %c12_131, %c6_132, %c0_133] : memref<1x16x8x128xf32, #tpu.memory_space<vmem>>, vector<1x4x2x128xf32>
    %110 = vector.shape_cast %109 : vector<1x4x2x128xf32> to vector<4x2x128xf32>
    %111 = vector.shape_cast %108 : vector<4x2x128xf32> to vector<1x4x2x128xf32>
    tpu.vector_store %arg3[%c0_130, %c12_131, %c6_132, %c0_133], %111 {strides = array<i32>} : memref<1x16x8x128xf32, #tpu.memory_space<vmem>>, vector<1x4x2x128xf32>,
    return
  }
  func.func @transform_0(%arg0: i32, %arg1: i32) -> (i32, i32, i32, i32, i32) {
    %c0_i32 = arith.constant 0 : i32
    %c0_i32_0 = arith.constant 0 : i32
    %c0_i32_1 = arith.constant 0 : i32
    %c0_i32_2 = arith.constant 0 : i32
    return %arg0, %c0_i32, %arg1, %c0_i32_0, %c0_i32_1 : i32, i32, i32, i32, i32
  }
  func.func @transform_1(%arg0: i32, %arg1: i32) -> (i32, i32, i32, i32) {
    %c0_i32 = arith.constant 0 : i32
    %c0_i32_0 = arith.constant 0 : i32
    %c0_i32_1 = arith.constant 0 : i32
    return %arg0, %arg1, %c0_i32, %c0_i32_0 : i32, i32, i32, i32
  }
}

</mosaic_0001>

<bundles_post_ra>
// kernel: tpu_custom_call.1
= control target key start
LH: loop header
LB: loop body
LE: loop exit
PB: predicated region body
PF: predicated region fallthrough
CT: control target
= control target key end

     0   :  { %6 = vsyncpa [#allocation4], 0  ;;  %s16225_s0 = inlined_call_operand.vmem [shape: f32[2,128,4,8,8], index: 0, kind: input, shape index: {}]   ;;  %s16226_s1 = inlined_call_operand.hbm [shape: f32[2,32,8,128], index: 1, kind: output, shape index: {}]  }
   0x1   :  { %8 = vsyncpa [#allocation4 + $0x1], 0  ;;  %s11471_s6 = smov 0   ;;  %s11473_s7 = smov 0  }
   0x2   :  { %s11475_s8 = smov 0   ;;  %s11477_s9 = smov 0  }
   0x3   :  { %s11479_s10 = smov 0   ;;  %s11481_s11 = smov 0  }
   0x4   :  { %s11483_s12 = smov 0   ;;  %s11485_s13 = smov 0  }
   0x5 LB: > { %s10166_s14 = sadd.s32 4294967295, %s11455_s13   ;;  %s10167_s15 = sadd.s32 4294967294, %s11455_s13   ;;  %s11455_s13 = sphi %s11485_s13, %s14_s13   ;;  %s11451_s12 = sphi %s11483_s12, %s16236_s12   ;;  %s11447_s11 = sphi %s11481_s11, %s16235_s11   ;;  %s11443_s10 = sphi %s11479_s10, %s16234_s10   ;;  %s11439_s9 = sphi %s11477_s9, %s16233_s9   ;;  %s11435_s8 = sphi %s11475_s8, %s16232_s8   ;;  %s11431_s7 = sphi %s11473_s7, %s16231_s7   ;;  %s11427_s6 = sphi %s11471_s6, %s16230_s6  }
   0x6   : > { %s23_s16 = sadd.s32 1, %s11447_s11  ;;  %s26_s17 = sadd.s32 1, %s11451_s12 }
   0x7   : > { %p24_p0 = scmp.ge.s32.totalorder %s23_s16, 2  ;;  %p42_p1 = scmp.ne.s32.totalorder %s11435_s8, %s11431_s7 }
   0x8   : > { %p43_p2 = scmp.eq.s32.totalorder %s11455_s13, 0  ;;  %p74_p5 = scmp.eq.s32.totalorder %s10166_s14, 3 }
   0x9   : > { %s16238_s16 = smov (%p24_p0, %s23_s16), 0  ;;  %s16240_s17 = smov (!%p24_p0, %s26_s17), %s11451_s12 }
   0xa   : > { %s31_s18 = ssub.s32 %s11447_s11, %s16238_s16  ;;  %p11523_p3 = por %p43_p2, %p42_p1 }
   0xb   : > { %p28_p4 = scmp.ge.s32.totalorder %s16240_s17, 2  ;;  %p79_p6 = scmp.ne.s32.totalorder %s11431_s7, %s11427_s6 }
   0xc   : > { %p80_p7 = scmp.eq.s32.totalorder %s10167_s15, 3  ;;  %p11531_p8 = por %p74_p5, %p42_p1 }
   0xd   : > { %s16242_s17 = smov (%p28_p4, %s16240_s17), 0  ;;  %s35_s24 = sadd.s32 1, %s11435_s8 }
   0xe   : > { %p11535_p9 = por %p80_p7, %p79_p6  ;;  %s30_s22 = ssub.s32 %s11451_s12, %s16242_s17 }
   0xf   : > { %s32_s23 = sor.u32 %s31_s18, %s30_s22  ;;  %p10169_p11 = scmp.ge.s32.totalorder %s11455_s13, 4 }
  0x10   : > { %p33_p10 = scmp.eq.s32.totalorder %s32_s23, 0 }
  0x11   : > { %96 = sbr.rel (%p10169_p11) target bundleno = 159 (0x9f), region = 16 }
  0x12   : > { %s11543_s25 = scalar_select %p33_p10, %s11435_s8, %s35_s24  }
  0x18   : > { %99 = sbr.rel (!%p11523_p3) target bundleno = 159 (0x9f), region = 20  ;;  %s101_s26 = sand.u32 (%p11523_p3), 1, %s11435_s8  }
  0x19   : > { %s10171_s27 = sshll.u32 (%p11523_p3), %s11447_s11, 1  ;;  %s10170_s28 = sshll.u32 (%p11523_p3), %s101_s26, 11 }
  0x1a   : > { %s10172_s29 = sshll.u32 (%p11523_p3), %s11451_s12, 9  ;;  %s11559_s14 = scalar_lea.vmem (%p11523_p3), [#allocation2], %s10170_s28 }
  0x1b   : > { %s106_s30 = sadd.s32 (%p11523_p3), %s10172_s29, %s10171_s27 }
  0x1c   : > { %s10173_s2 = sshll.u32 (%p11523_p3), %s106_s30, 3 }
  0x1d   : > { %s11554_s5 = scalar_lea.vmem (%p11523_p3), %s16225_s0, %s10173_s2 }
  0x1e   : > { %v646_v0 = vld [vmem:[%s11554_s5] sm:$0xff] (%p11523_p3)  ;;  %v648_v1 = vld [vmem:[%s11554_s5 + $0x8] sm:$0xff] (%p11523_p3) }
  0x1f   : > { %v650_v2 = vld [vmem:[%s11554_s5 + $0x20] sm:$0xff]  ;;  %647 = vst [vmem:[%s11559_s14] sm:$0xff] %v646_v0  ;;  %649 = vst [vmem:[%s11559_s14 + $0x8] sm:$0xff] %v648_v1  ;;  %v652_v3 = vld [vmem:[%s11554_s5 + $0x28] sm:$0xff] }
  0x20   : > { %651 = vst [vmem:[%s11559_s14 + $0x10] sm:$0xff] %v650_v2  ;;  %v654_v4 = vld [vmem:[%s11554_s5 + $0x40] sm:$0xff]  ;;  %v656_v5 = vld [vmem:[%s11554_s5 + $0x48] sm:$0xff]  ;;  %653 = vst [vmem:[%s11559_s14 + $0x18] sm:$0xff] %v652_v3 }
  0x21   : > { %655 = vst [vmem:[%s11559_s14 + $0x20] sm:$0xff] %v654_v4  ;;  %657 = vst [vmem:[%s11559_s14 + $0x28] sm:$0xff] %v656_v5  ;;  %v658_v6 = vld [vmem:[%s11554_s5 + $0x60] sm:$0xff]  ;;  %v660_v7 = vld [vmem:[%s11554_s5 + $0x68] sm:$0xff] }
  0x22   : > { %v662_v8 = vld [vmem:[%s11554_s5 + $0x80] sm:$0xff]  ;;  %659 = vst [vmem:[%s11559_s14 + $0x30] sm:$0xff] %v658_v6  ;;  %661 = vst [vmem:[%s11559_s14 + $0x38] sm:$0xff] %v660_v7  ;;  %v664_v9 = vld [vmem:[%s11554_s5 + $0x88] sm:$0xff] }
  0x23   : > { %663 = vst [vmem:[%s11559_s14 + $0x40] sm:$0xff] %v662_v8  ;;  %v666_v10 = vld [vmem:[%s11554_s5 + $0xa0] sm:$0xff]  ;;  %v668_v11 = vld [vmem:[%s11554_s5 + $0xa8] sm:$0xff]  ;;  %665 = vst [vmem:[%s11559_s14 + $0x48] sm:$0xff] %v664_v9 }
  0x24   : > { %667 = vst [vmem:[%s11559_s14 + $0x50] sm:$0xff] %v666_v10  ;;  %669 = vst [vmem:[%s11559_s14 + $0x58] sm:$0xff] %v668_v11  ;;  %v670_v12 = vld [vmem:[%s11554_s5 + $0xc0] sm:$0xff]  ;;  %v672_v13 = vld [vmem:[%s11554_s5 + $0xc8] sm:$0xff] }
  0x25   : > { %v674_v14 = vld [vmem:[%s11554_s5 + $0xe0] sm:$0xff]  ;;  %671 = vst [vmem:[%s11559_s14 + $0x60] sm:$0xff] %v670_v12  ;;  %673 = vst [vmem:[%s11559_s14 + $0x68] sm:$0xff] %v672_v13  ;;  %v676_v15 = vld [vmem:[%s11554_s5 + $0xe8] sm:$0xff] }
  0x26   : > { %675 = vst [vmem:[%s11559_s14 + $0x70] sm:$0xff] %v674_v14  ;;  %v678_v16 = vld [vmem:[%s11554_s5 + $0x100] sm:$0xff]  ;;  %v680_v17 = vld [vmem:[%s11554_s5 + $0x108] sm:$0xff]  ;;  %677 = vst [vmem:[%s11559_s14 + $0x78] sm:$0xff] %v676_v15 }
  0x27   : > { %679 = vst [vmem:[%s11559_s14 + $0x80] sm:$0xff] %v678_v16  ;;  %681 = vst [vmem:[%s11559_s14 + $0x88] sm:$0xff] %v680_v17  ;;  %v682_v18 = vld [vmem:[%s11554_s5 + $0x120] sm:$0xff]  ;;  %v684_v19 = vld [vmem:[%s11554_s5 + $0x128] sm:$0xff] }
  0x28   : > { %v686_v20 = vld [vmem:[%s11554_s5 + $0x140] sm:$0xff]  ;;  %683 = vst [vmem:[%s11559_s14 + $0x90] sm:$0xff] %v682_v18  ;;  %685 = vst [vmem:[%s11559_s14 + $0x98] sm:$0xff] %v684_v19  ;;  %v688_v21 = vld [vmem:[%s11554_s5 + $0x148] sm:$0xff] }
  0x29   : > { %687 = vst [vmem:[%s11559_s14 + $0xa0] sm:$0xff] %v686_v20  ;;  %v690_v22 = vld [vmem:[%s11554_s5 + $0x160] sm:$0xff]  ;;  %v692_v23 = vld [vmem:[%s11554_s5 + $0x168] sm:$0xff]  ;;  %689 = vst [vmem:[%s11559_s14 + $0xa8] sm:$0xff] %v688_v21 }
  0x2a   : > { %691 = vst [vmem:[%s11559_s14 + $0xb0] sm:$0xff] %v690_v22  ;;  %693 = vst [vmem:[%s11559_s14 + $0xb8] sm:$0xff] %v692_v23  ;;  %v694_v24 = vld [vmem:[%s11554_s5 + $0x180] sm:$0xff]  ;;  %v696_v25 = vld [vmem:[%s11554_s5 + $0x188] sm:$0xff] }
  0x2b   : > { %v698_v26 = vld [vmem:[%s11554_s5 + $0x1a0] sm:$0xff]  ;;  %695 = vst [vmem:[%s11559_s14 + $0xc0] sm:$0xff] %v694_v24  ;;  %697 = vst [vmem:[%s11559_s14 + $0xc8] sm:$0xff] %v696_v25  ;;  %v700_v27 = vld [vmem:[%s11554_s5 + $0x1a8] sm:$0xff] }
  0x2c   : > { %699 = vst [vmem:[%s11559_s14 + $0xd0] sm:$0xff] %v698_v26  ;;  %v702_v28 = vld [vmem:[%s11554_s5 + $0x1c0] sm:$0xff]  ;;  %v704_v29 = vld [vmem:[%s11554_s5 + $0x1c8] sm:$0xff]  ;;  %701 = vst [vmem:[%s11559_s14 + $0xd8] sm:$0xff] %v700_v27 }
  0x2d   : > { %703 = vst [vmem:[%s11559_s14 + $0xe0] sm:$0xff] %v702_v28  ;;  %705 = vst [vmem:[%s11559_s14 + $0xe8] sm:$0xff] %v704_v29  ;;  %v706_v30 = vld [vmem:[%s11554_s5 + $0x1e0] sm:$0xff]  ;;  %v708_v31 = vld [vmem:[%s11554_s5 + $0x1e8] sm:$0xff] }
  0x2e   : > { %v710_v32 = vld [vmem:[%s11554_s5 + $0x200] sm:$0xff]  ;;  %707 = vst [vmem:[%s11559_s14 + $0xf0] sm:$0xff] %v706_v30  ;;  %709 = vst [vmem:[%s11559_s14 + $0xf8] sm:$0xff] %v708_v31  ;;  %v712_v33 = vld [vmem:[%s11554_s5 + $0x208] sm:$0xff] }
  0x2f   : > { %711 = vst [vmem:[%s11559_s14 + $0x100] sm:$0xff] %v710_v32  ;;  %v714_v34 = vld [vmem:[%s11554_s5 + $0x220] sm:$0xff]  ;;  %v716_v35 = vld [vmem:[%s11554_s5 + $0x228] sm:$0xff]  ;;  %713 = vst [vmem:[%s11559_s14 + $0x108] sm:$0xff] %v712_v33 }
  0x30   : > { %715 = vst [vmem:[%s11559_s14 + $0x110] sm:$0xff] %v714_v34  ;;  %717 = vst [vmem:[%s11559_s14 + $0x118] sm:$0xff] %v716_v35  ;;  %v718_v36 = vld [vmem:[%s11554_s5 + $0x240] sm:$0xff]  ;;  %v720_v37 = vld [vmem:[%s11554_s5 + $0x248] sm:$0xff] }
  0x31   : > { %v722_v38 = vld [vmem:[%s11554_s5 + $0x260] sm:$0xff]  ;;  %719 = vst [vmem:[%s11559_s14 + $0x120] sm:$0xff] %v718_v36  ;;  %721 = vst [vmem:[%s11559_s14 + $0x128] sm:$0xff] %v720_v37  ;;  %v724_v39 = vld [vmem:[%s11554_s5 + $0x268] sm:$0xff] }
  0x32   : > { %723 = vst [vmem:[%s11559_s14 + $0x130] sm:$0xff] %v722_v38  ;;  %v726_v40 = vld [vmem:[%s11554_s5 + $0x280] sm:$0xff]  ;;  %v728_v41 = vld [vmem:[%s11554_s5 + $0x288] sm:$0xff]  ;;  %725 = vst [vmem:[%s11559_s14 + $0x138] sm:$0xff] %v724_v39 }
  0x33   : > { %727 = vst [vmem:[%s11559_s14 + $0x140] sm:$0xff] %v726_v40  ;;  %729 = vst [vmem:[%s11559_s14 + $0x148] sm:$0xff] %v728_v41  ;;  %v730_v42 = vld [vmem:[%s11554_s5 + $0x2a0] sm:$0xff]  ;;  %v732_v43 = vld [vmem:[%s11554_s5 + $0x2a8] sm:$0xff] }
  0x34   : > { %v734_v44 = vld [vmem:[%s11554_s5 + $0x2c0] sm:$0xff]  ;;  %731 = vst [vmem:[%s11559_s14 + $0x150] sm:$0xff] %v730_v42  ;;  %733 = vst [vmem:[%s11559_s14 + $0x158] sm:$0xff] %v732_v43  ;;  %v736_v45 = vld [vmem:[%s11554_s5 + $0x2c8] sm:$0xff] }
  0x35   : > { %735 = vst [vmem:[%s11559_s14 + $0x160] sm:$0xff] %v734_v44  ;;  %v738_v46 = vld [vmem:[%s11554_s5 + $0x2e0] sm:$0xff]  ;;  %v740_v47 = vld [vmem:[%s11554_s5 + $0x2e8] sm:$0xff]  ;;  %737 = vst [vmem:[%s11559_s14 + $0x168] sm:$0xff] %v736_v45 }
  0x36   : > { %739 = vst [vmem:[%s11559_s14 + $0x170] sm:$0xff] %v738_v46  ;;  %741 = vst [vmem:[%s11559_s14 + $0x178] sm:$0xff] %v740_v47  ;;  %v742_v48 = vld [vmem:[%s11554_s5 + $0x300] sm:$0xff]  ;;  %v744_v49 = vld [vmem:[%s11554_s5 + $0x308] sm:$0xff] }
  0x37   : > { %v746_v50 = vld [vmem:[%s11554_s5 + $0x320] sm:$0xff]  ;;  %743 = vst [vmem:[%s11559_s14 + $0x180] sm:$0xff] %v742_v48  ;;  %745 = vst [vmem:[%s11559_s14 + $0x188] sm:$0xff] %v744_v49  ;;  %v748_v51 = vld [vmem:[%s11554_s5 + $0x328] sm:$0xff] }
  0x38   : > { %747 = vst [vmem:[%s11559_s14 + $0x190] sm:$0xff] %v746_v50  ;;  %v750_v52 = vld [vmem:[%s11554_s5 + $0x340] sm:$0xff]  ;;  %v752_v53 = vld [vmem:[%s11554_s5 + $0x348] sm:$0xff]  ;;  %749 = vst [vmem:[%s11559_s14 + $0x198] sm:$0xff] %v748_v51 }
  0x39   : > { %751 = vst [vmem:[%s11559_s14 + $0x1a0] sm:$0xff] %v750_v52  ;;  %753 = vst [vmem:[%s11559_s14 + $0x1a8] sm:$0xff] %v752_v53  ;;  %v754_v54 = vld [vmem:[%s11554_s5 + $0x360] sm:$0xff]  ;;  %v756_v55 = vld [vmem:[%s11554_s5 + $0x368] sm:$0xff] }
  0x3a   : > { %v758_v56 = vld [vmem:[%s11554_s5 + $0x380] sm:$0xff]  ;;  %755 = vst [vmem:[%s11559_s14 + $0x1b0] sm:$0xff] %v754_v54  ;;  %757 = vst [vmem:[%s11559_s14 + $0x1b8] sm:$0xff] %v756_v55  ;;  %v760_v57 = vld [vmem:[%s11554_s5 + $0x388] sm:$0xff] }
  0x3b   : > { %759 = vst [vmem:[%s11559_s14 + $0x1c0] sm:$0xff] %v758_v56  ;;  %v762_v58 = vld [vmem:[%s11554_s5 + $0x3a0] sm:$0xff]  ;;  %v764_v59 = vld [vmem:[%s11554_s5 + $0x3a8] sm:$0xff]  ;;  %761 = vst [vmem:[%s11559_s14 + $0x1c8] sm:$0xff] %v760_v57 }
  0x3c   : > { %763 = vst [vmem:[%s11559_s14 + $0x1d0] sm:$0xff] %v762_v58  ;;  %765 = vst [vmem:[%s11559_s14 + $0x1d8] sm:$0xff] %v764_v59  ;;  %v766_v60 = vld [vmem:[%s11554_s5 + $0x3c0] sm:$0xff]  ;;  %v768_v61 = vld [vmem:[%s11554_s5 + $0x3c8] sm:$0xff] }
  0x3d   : > { %v770_v62 = vld [vmem:[%s11554_s5 + $0x3e0] sm:$0xff]  ;;  %767 = vst [vmem:[%s11559_s14 + $0x1e0] sm:$0xff] %v766_v60  ;;  %769 = vst [vmem:[%s11559_s14 + $0x1e8] sm:$0xff] %v768_v61  ;;  %v772_v63 = vld [vmem:[%s11554_s5 + $0x3e8] sm:$0xff] }
  0x3e   : > { %771 = vst [vmem:[%s11559_s14 + $0x1f0] sm:$0xff] %v770_v62  ;;  %v774_v0 = vld [vmem:[%s11554_s5 + $0x400] sm:$0xff]  ;;  %v776_v1 = vld [vmem:[%s11554_s5 + $0x408] sm:$0xff]  ;;  %773 = vst [vmem:[%s11559_s14 + $0x1f8] sm:$0xff] %v772_v63 }
  0x3f   : > { %775 = vst [vmem:[%s11559_s14 + $0x200] sm:$0xff] %v774_v0  ;;  %777 = vst [vmem:[%s11559_s14 + $0x208] sm:$0xff] %v776_v1  ;;  %v778_v2 = vld [vmem:[%s11554_s5 + $0x420] sm:$0xff]  ;;  %v780_v3 = vld [vmem:[%s11554_s5 + $0x428] sm:$0xff] }
  0x40   : > { %v782_v4 = vld [vmem:[%s11554_s5 + $0x440] sm:$0xff]  ;;  %779 = vst [vmem:[%s11559_s14 + $0x210] sm:$0xff] %v778_v2  ;;  %781 = vst [vmem:[%s11559_s14 + $0x218] sm:$0xff] %v780_v3  ;;  %v784_v5 = vld [vmem:[%s11554_s5 + $0x448] sm:$0xff] }
  0x41   : > { %783 = vst [vmem:[%s11559_s14 + $0x220] sm:$0xff] %v782_v4  ;;  %v786_v6 = vld [vmem:[%s11554_s5 + $0x460] sm:$0xff]  ;;  %v788_v7 = vld [vmem:[%s11554_s5 + $0x468] sm:$0xff]  ;;  %785 = vst [vmem:[%s11559_s14 + $0x228] sm:$0xff] %v784_v5 }
  0x42   : > { %787 = vst [vmem:[%s11559_s14 + $0x230] sm:$0xff] %v786_v6  ;;  %789 = vst [vmem:[%s11559_s14 + $0x238] sm:$0xff] %v788_v7  ;;  %v790_v8 = vld [vmem:[%s11554_s5 + $0x480] sm:$0xff]  ;;  %v792_v9 = vld [vmem:[%s11554_s5 + $0x488] sm:$0xff] }
  0x43   : > { %v794_v10 = vld [vmem:[%s11554_s5 + $0x4a0] sm:$0xff]  ;;  %791 = vst [vmem:[%s11559_s14 + $0x240] sm:$0xff] %v790_v8  ;;  %793 = vst [vmem:[%s11559_s14 + $0x248] sm:$0xff] %v792_v9  ;;  %v796_v11 = vld [vmem:[%s11554_s5 + $0x4a8] sm:$0xff] }
  0x44   : > { %795 = vst [vmem:[%s11559_s14 + $0x250] sm:$0xff] %v794_v10  ;;  %v798_v12 = vld [vmem:[%s11554_s5 + $0x4c0] sm:$0xff]  ;;  %v800_v13 = vld [vmem:[%s11554_s5 + $0x4c8] sm:$0xff]  ;;  %797 = vst [vmem:[%s11559_s14 + $0x258] sm:$0xff] %v796_v11 }
  0x45   : > { %799 = vst [vmem:[%s11559_s14 + $0x260] sm:$0xff] %v798_v12  ;;  %801 = vst [vmem:[%s11559_s14 + $0x268] sm:$0xff] %v800_v13  ;;  %v802_v14 = vld [vmem:[%s11554_s5 + $0x4e0] sm:$0xff]  ;;  %v804_v15 = vld [vmem:[%s11554_s5 + $0x4e8] sm:$0xff] }
  0x46   : > { %v806_v16 = vld [vmem:[%s11554_s5 + $0x500] sm:$0xff]  ;;  %803 = vst [vmem:[%s11559_s14 + $0x270] sm:$0xff] %v802_v14  ;;  %805 = vst [vmem:[%s11559_s14 + $0x278] sm:$0xff] %v804_v15  ;;  %v808_v17 = vld [vmem:[%s11554_s5 + $0x508] sm:$0xff] }
  0x47   : > { %807 = vst [vmem:[%s11559_s14 + $0x280] sm:$0xff] %v806_v16  ;;  %v810_v18 = vld [vmem:[%s11554_s5 + $0x520] sm:$0xff]  ;;  %v812_v19 = vld [vmem:[%s11554_s5 + $0x528] sm:$0xff]  ;;  %809 = vst [vmem:[%s11559_s14 + $0x288] sm:$0xff] %v808_v17 }
  0x48   : > { %811 = vst [vmem:[%s11559_s14 + $0x290] sm:$0xff] %v810_v18  ;;  %813 = vst [vmem:[%s11559_s14 + $0x298] sm:$0xff] %v812_v19  ;;  %v814_v20 = vld [vmem:[%s11554_s5 + $0x540] sm:$0xff]  ;;  %v816_v21 = vld [vmem:[%s11554_s5 + $0x548] sm:$0xff] }
  0x49   : > { %v818_v22 = vld [vmem:[%s11554_s5 + $0x560] sm:$0xff]  ;;  %815 = vst [vmem:[%s11559_s14 + $0x2a0] sm:$0xff] %v814_v20  ;;  %817 = vst [vmem:[%s11559_s14 + $0x2a8] sm:$0xff] %v816_v21  ;;  %v820_v23 = vld [vmem:[%s11554_s5 + $0x568] sm:$0xff] }
  0x4a   : > { %819 = vst [vmem:[%s11559_s14 + $0x2b0] sm:$0xff] %v818_v22  ;;  %v822_v24 = vld [vmem:[%s11554_s5 + $0x580] sm:$0xff]  ;;  %v824_v25 = vld [vmem:[%s11554_s5 + $0x588] sm:$0xff]  ;;  %821 = vst [vmem:[%s11559_s14 + $0x2b8] sm:$0xff] %v820_v23 }
  0x4b   : > { %823 = vst [vmem:[%s11559_s14 + $0x2c0] sm:$0xff] %v822_v24  ;;  %825 = vst [vmem:[%s11559_s14 + $0x2c8] sm:$0xff] %v824_v25  ;;  %v826_v26 = vld [vmem:[%s11554_s5 + $0x5a0] sm:$0xff]  ;;  %v828_v27 = vld [vmem:[%s11554_s5 + $0x5a8] sm:$0xff] }
  0x4c   : > { %v830_v28 = vld [vmem:[%s11554_s5 + $0x5c0] sm:$0xff]  ;;  %827 = vst [vmem:[%s11559_s14 + $0x2d0] sm:$0xff] %v826_v26  ;;  %829 = vst [vmem:[%s11559_s14 + $0x2d8] sm:$0xff] %v828_v27  ;;  %v832_v29 = vld [vmem:[%s11554_s5 + $0x5c8] sm:$0xff] }
  0x4d   : > { %831 = vst [vmem:[%s11559_s14 + $0x2e0] sm:$0xff] %v830_v28  ;;  %v834_v30 = vld [vmem:[%s11554_s5 + $0x5e0] sm:$0xff]  ;;  %v836_v31 = vld [vmem:[%s11554_s5 + $0x5e8] sm:$0xff]  ;;  %833 = vst [vmem:[%s11559_s14 + $0x2e8] sm:$0xff] %v832_v29 }
  0x4e   : > { %835 = vst [vmem:[%s11559_s14 + $0x2f0] sm:$0xff] %v834_v30  ;;  %837 = vst [vmem:[%s11559_s14 + $0x2f8] sm:$0xff] %v836_v31  ;;  %v838_v32 = vld [vmem:[%s11554_s5 + $0x600] sm:$0xff]  ;;  %v840_v33 = vld [vmem:[%s11554_s5 + $0x608] sm:$0xff] }
  0x4f   : > { %v842_v34 = vld [vmem:[%s11554_s5 + $0x620] sm:$0xff]  ;;  %839 = vst [vmem:[%s11559_s14 + $0x300] sm:$0xff] %v838_v32  ;;  %841 = vst [vmem:[%s11559_s14 + $0x308] sm:$0xff] %v840_v33  ;;  %v844_v35 = vld [vmem:[%s11554_s5 + $0x628] sm:$0xff] }
  0x50   : > { %843 = vst [vmem:[%s11559_s14 + $0x310] sm:$0xff] %v842_v34  ;;  %v846_v36 = vld [vmem:[%s11554_s5 + $0x640] sm:$0xff]  ;;  %v848_v37 = vld [vmem:[%s11554_s5 + $0x648] sm:$0xff]  ;;  %845 = vst [vmem:[%s11559_s14 + $0x318] sm:$0xff] %v844_v35 }
  0x51   : > { %847 = vst [vmem:[%s11559_s14 + $0x320] sm:$0xff] %v846_v36  ;;  %849 = vst [vmem:[%s11559_s14 + $0x328] sm:$0xff] %v848_v37  ;;  %v850_v38 = vld [vmem:[%s11554_s5 + $0x660] sm:$0xff]  ;;  %v852_v39 = vld [vmem:[%s11554_s5 + $0x668] sm:$0xff] }
  0x52   : > { %v854_v40 = vld [vmem:[%s11554_s5 + $0x680] sm:$0xff]  ;;  %851 = vst [vmem:[%s11559_s14 + $0x330] sm:$0xff] %v850_v38  ;;  %853 = vst [vmem:[%s11559_s14 + $0x338] sm:$0xff] %v852_v39  ;;  %v856_v41 = vld [vmem:[%s11554_s5 + $0x688] sm:$0xff] }
  0x53   : > { %855 = vst [vmem:[%s11559_s14 + $0x340] sm:$0xff] %v854_v40  ;;  %v858_v42 = vld [vmem:[%s11554_s5 + $0x6a0] sm:$0xff]  ;;  %v860_v43 = vld [vmem:[%s11554_s5 + $0x6a8] sm:$0xff]  ;;  %857 = vst [vmem:[%s11559_s14 + $0x348] sm:$0xff] %v856_v41 }
  0x54   : > { %859 = vst [vmem:[%s11559_s14 + $0x350] sm:$0xff] %v858_v42  ;;  %861 = vst [vmem:[%s11559_s14 + $0x358] sm:$0xff] %v860_v43  ;;  %v862_v44 = vld [vmem:[%s11554_s5 + $0x6c0] sm:$0xff]  ;;  %v864_v45 = vld [vmem:[%s11554_s5 + $0x6c8] sm:$0xff] }
  0x55   : > { %v866_v46 = vld [vmem:[%s11554_s5 + $0x6e0] sm:$0xff]  ;;  %863 = vst [vmem:[%s11559_s14 + $0x360] sm:$0xff] %v862_v44  ;;  %865 = vst [vmem:[%s11559_s14 + $0x368] sm:$0xff] %v864_v45  ;;  %v868_v47 = vld [vmem:[%s11554_s5 + $0x6e8] sm:$0xff] }
  0x56   : > { %867 = vst [vmem:[%s11559_s14 + $0x370] sm:$0xff] %v866_v46  ;;  %v870_v48 = vld [vmem:[%s11554_s5 + $0x700] sm:$0xff]  ;;  %v872_v49 = vld [vmem:[%s11554_s5 + $0x708] sm:$0xff]  ;;  %869 = vst [vmem:[%s11559_s14 + $0x378] sm:$0xff] %v868_v47 }
  0x57   : > { %871 = vst [vmem:[%s11559_s14 + $0x380] sm:$0xff] %v870_v48  ;;  %873 = vst [vmem:[%s11559_s14 + $0x388] sm:$0xff] %v872_v49  ;;  %v874_v50 = vld [vmem:[%s11554_s5 + $0x720] sm:$0xff]  ;;  %v876_v51 = vld [vmem:[%s11554_s5 + $0x728] sm:$0xff] }
  0x58   : > { %v878_v52 = vld [vmem:[%s11554_s5 + $0x740] sm:$0xff]  ;;  %875 = vst [vmem:[%s11559_s14 + $0x390] sm:$0xff] %v874_v50  ;;  %877 = vst [vmem:[%s11559_s14 + $0x398] sm:$0xff] %v876_v51  ;;  %v880_v53 = vld [vmem:[%s11554_s5 + $0x748] sm:$0xff] }
  0x59   : > { %879 = vst [vmem:[%s11559_s14 + $0x3a0] sm:$0xff] %v878_v52  ;;  %v882_v54 = vld [vmem:[%s11554_s5 + $0x760] sm:$0xff]  ;;  %v884_v55 = vld [vmem:[%s11554_s5 + $0x768] sm:$0xff]  ;;  %881 = vst [vmem:[%s11559_s14 + $0x3a8] sm:$0xff] %v880_v53 }
  0x5a   : > { %883 = vst [vmem:[%s11559_s14 + $0x3b0] sm:$0xff] %v882_v54  ;;  %885 = vst [vmem:[%s11559_s14 + $0x3b8] sm:$0xff] %v884_v55  ;;  %v886_v56 = vld [vmem:[%s11554_s5 + $0x780] sm:$0xff]  ;;  %v888_v57 = vld [vmem:[%s11554_s5 + $0x788] sm:$0xff] }
  0x5b   : > { %v890_v58 = vld [vmem:[%s11554_s5 + $0x7a0] sm:$0xff]  ;;  %887 = vst [vmem:[%s11559_s14 + $0x3c0] sm:$0xff] %v886_v56  ;;  %889 = vst [vmem:[%s11559_s14 + $0x3c8] sm:$0xff] %v888_v57  ;;  %v892_v59 = vld [vmem:[%s11554_s5 + $0x7a8] sm:$0xff] }
  0x5c   : > { %891 = vst [vmem:[%s11559_s14 + $0x3d0] sm:$0xff] %v890_v58  ;;  %v894_v60 = vld [vmem:[%s11554_s5 + $0x7c0] sm:$0xff]  ;;  %v896_v61 = vld [vmem:[%s11554_s5 + $0x7c8] sm:$0xff]  ;;  %893 = vst [vmem:[%s11559_s14 + $0x3d8] sm:$0xff] %v892_v59 }
  0x5d   : > { %895 = vst [vmem:[%s11559_s14 + $0x3e0] sm:$0xff] %v894_v60  ;;  %897 = vst [vmem:[%s11559_s14 + $0x3e8] sm:$0xff] %v896_v61  ;;  %v898_v62 = vld [vmem:[%s11554_s5 + $0x7e0] sm:$0xff]  ;;  %v900_v63 = vld [vmem:[%s11554_s5 + $0x7e8] sm:$0xff] }
  0x5e   : > { %v902_v0 = vld [vmem:[%s11554_s5 + $0x800] sm:$0xff]  ;;  %899 = vst [vmem:[%s11559_s14 + $0x3f0] sm:$0xff] %v898_v62  ;;  %901 = vst [vmem:[%s11559_s14 + $0x3f8] sm:$0xff] %v900_v63  ;;  %v904_v1 = vld [vmem:[%s11554_s5 + $0x808] sm:$0xff] }
  0x5f   : > { %903 = vst [vmem:[%s11559_s14 + $0x400] sm:$0xff] %v902_v0  ;;  %v906_v2 = vld [vmem:[%s11554_s5 + $0x820] sm:$0xff]  ;;  %v908_v3 = vld [vmem:[%s11554_s5 + $0x828] sm:$0xff]  ;;  %905 = vst [vmem:[%s11559_s14 + $0x408] sm:$0xff] %v904_v1 }
  0x60   : > { %907 = vst [vmem:[%s11559_s14 + $0x410] sm:$0xff] %v906_v2  ;;  %909 = vst [vmem:[%s11559_s14 + $0x418] sm:$0xff] %v908_v3  ;;  %v910_v4 = vld [vmem:[%s11554_s5 + $0x840] sm:$0xff]  ;;  %v912_v5 = vld [vmem:[%s11554_s5 + $0x848] sm:$0xff] }
  0x61   : > { %v914_v6 = vld [vmem:[%s11554_s5 + $0x860] sm:$0xff]  ;;  %911 = vst [vmem:[%s11559_s14 + $0x420] sm:$0xff] %v910_v4  ;;  %913 = vst [vmem:[%s11559_s14 + $0x428] sm:$0xff] %v912_v5  ;;  %v916_v7 = vld [vmem:[%s11554_s5 + $0x868] sm:$0xff] }
  0x62   : > { %915 = vst [vmem:[%s11559_s14 + $0x430] sm:$0xff] %v914_v6  ;;  %v918_v8 = vld [vmem:[%s11554_s5 + $0x880] sm:$0xff]  ;;  %v920_v9 = vld [vmem:[%s11554_s5 + $0x888] sm:$0xff]  ;;  %917 = vst [vmem:[%s11559_s14 + $0x438] sm:$0xff] %v916_v7 }
  0x63   : > { %919 = vst [vmem:[%s11559_s14 + $0x440] sm:$0xff] %v918_v8  ;;  %921 = vst [vmem:[%s11559_s14 + $0x448] sm:$0xff] %v920_v9  ;;  %v922_v10 = vld [vmem:[%s11554_s5 + $0x8a0] sm:$0xff]  ;;  %v924_v11 = vld [vmem:[%s11554_s5 + $0x8a8] sm:$0xff] }
  0x64   : > { %v926_v12 = vld [vmem:[%s11554_s5 + $0x8c0] sm:$0xff]  ;;  %923 = vst [vmem:[%s11559_s14 + $0x450] sm:$0xff] %v922_v10  ;;  %925 = vst [vmem:[%s11559_s14 + $0x458] sm:$0xff] %v924_v11  ;;  %v928_v13 = vld [vmem:[%s11554_s5 + $0x8c8] sm:$0xff] }
  0x65   : > { %927 = vst [vmem:[%s11559_s14 + $0x460] sm:$0xff] %v926_v12  ;;  %v930_v14 = vld [vmem:[%s11554_s5 + $0x8e0] sm:$0xff]  ;;  %v932_v15 = vld [vmem:[%s11554_s5 + $0x8e8] sm:$0xff]  ;;  %929 = vst [vmem:[%s11559_s14 + $0x468] sm:$0xff] %v928_v13 }
  0x66   : > { %931 = vst [vmem:[%s11559_s14 + $0x470] sm:$0xff] %v930_v14  ;;  %933 = vst [vmem:[%s11559_s14 + $0x478] sm:$0xff] %v932_v15  ;;  %v934_v16 = vld [vmem:[%s11554_s5 + $0x900] sm:$0xff]  ;;  %v936_v17 = vld [vmem:[%s11554_s5 + $0x908] sm:$0xff] }
  0x67   : > { %v938_v18 = vld [vmem:[%s11554_s5 + $0x920] sm:$0xff]  ;;  %935 = vst [vmem:[%s11559_s14 + $0x480] sm:$0xff] %v934_v16  ;;  %937 = vst [vmem:[%s11559_s14 + $0x488] sm:$0xff] %v936_v17  ;;  %v940_v19 = vld [vmem:[%s11554_s5 + $0x928] sm:$0xff] }
  0x68   : > { %939 = vst [vmem:[%s11559_s14 + $0x490] sm:$0xff] %v938_v18  ;;  %v942_v20 = vld [vmem:[%s11554_s5 + $0x940] sm:$0xff]  ;;  %v944_v21 = vld [vmem:[%s11554_s5 + $0x948] sm:$0xff]  ;;  %941 = vst [vmem:[%s11559_s14 + $0x498] sm:$0xff] %v940_v19 }
  0x69   : > { %943 = vst [vmem:[%s11559_s14 + $0x4a0] sm:$0xff] %v942_v20  ;;  %945 = vst [vmem:[%s11559_s14 + $0x4a8] sm:$0xff] %v944_v21  ;;  %v946_v22 = vld [vmem:[%s11554_s5 + $0x960] sm:$0xff]  ;;  %v948_v23 = vld [vmem:[%s11554_s5 + $0x968] sm:$0xff] }
  0x6a   : > { %v950_v24 = vld [vmem:[%s11554_s5 + $0x980] sm:$0xff]  ;;  %947 = vst [vmem:[%s11559_s14 + $0x4b0] sm:$0xff] %v946_v22  ;;  %949 = vst [vmem:[%s11559_s14 + $0x4b8] sm:$0xff] %v948_v23  ;;  %v952_v25 = vld [vmem:[%s11554_s5 + $0x988] sm:$0xff] }
  0x6b   : > { %951 = vst [vmem:[%s11559_s14 + $0x4c0] sm:$0xff] %v950_v24  ;;  %v954_v26 = vld [vmem:[%s11554_s5 + $0x9a0] sm:$0xff]  ;;  %v956_v27 = vld [vmem:[%s11554_s5 + $0x9a8] sm:$0xff]  ;;  %953 = vst [vmem:[%s11559_s14 + $0x4c8] sm:$0xff] %v952_v25 }
  0x6c   : > { %955 = vst [vmem:[%s11559_s14 + $0x4d0] sm:$0xff] %v954_v26  ;;  %957 = vst [vmem:[%s11559_s14 + $0x4d8] sm:$0xff] %v956_v27  ;;  %v958_v28 = vld [vmem:[%s11554_s5 + $0x9c0] sm:$0xff]  ;;  %v960_v29 = vld [vmem:[%s11554_s5 + $0x9c8] sm:$0xff] }
  0x6d   : > { %v962_v30 = vld [vmem:[%s11554_s5 + $0x9e0] sm:$0xff]  ;;  %959 = vst [vmem:[%s11559_s14 + $0x4e0] sm:$0xff] %v958_v28  ;;  %961 = vst [vmem:[%s11559_s14 + $0x4e8] sm:$0xff] %v960_v29  ;;  %v964_v31 = vld [vmem:[%s11554_s5 + $0x9e8] sm:$0xff] }
  0x6e   : > { %963 = vst [vmem:[%s11559_s14 + $0x4f0] sm:$0xff] %v962_v30  ;;  %v966_v32 = vld [vmem:[%s11554_s5 + $0xa00] sm:$0xff]  ;;  %v968_v33 = vld [vmem:[%s11554_s5 + $0xa08] sm:$0xff]  ;;  %965 = vst [vmem:[%s11559_s14 + $0x4f8] sm:$0xff] %v964_v31 }
  0x6f   : > { %967 = vst [vmem:[%s11559_s14 + $0x500] sm:$0xff] %v966_v32  ;;  %969 = vst [vmem:[%s11559_s14 + $0x508] sm:$0xff] %v968_v33  ;;  %v970_v34 = vld [vmem:[%s11554_s5 + $0xa20] sm:$0xff]  ;;  %v972_v35 = vld [vmem:[%s11554_s5 + $0xa28] sm:$0xff] }
  0x70   : > { %v974_v36 = vld [vmem:[%s11554_s5 + $0xa40] sm:$0xff]  ;;  %971 = vst [vmem:[%s11559_s14 + $0x510] sm:$0xff] %v970_v34  ;;  %973 = vst [vmem:[%s11559_s14 + $0x518] sm:$0xff] %v972_v35  ;;  %v976_v37 = vld [vmem:[%s11554_s5 + $0xa48] sm:$0xff] }
  0x71   : > { %975 = vst [vmem:[%s11559_s14 + $0x520] sm:$0xff] %v974_v36  ;;  %v978_v38 = vld [vmem:[%s11554_s5 + $0xa60] sm:$0xff]  ;;  %v980_v39 = vld [vmem:[%s11554_s5 + $0xa68] sm:$0xff]  ;;  %977 = vst [vmem:[%s11559_s14 + $0x528] sm:$0xff] %v976_v37 }
  0x72   : > { %979 = vst [vmem:[%s11559_s14 + $0x530] sm:$0xff] %v978_v38  ;;  %981 = vst [vmem:[%s11559_s14 + $0x538] sm:$0xff] %v980_v39  ;;  %v982_v40 = vld [vmem:[%s11554_s5 + $0xa80] sm:$0xff]  ;;  %v984_v41 = vld [vmem:[%s11554_s5 + $0xa88] sm:$0xff] }
  0x73   : > { %v986_v42 = vld [vmem:[%s11554_s5 + $0xaa0] sm:$0xff]  ;;  %983 = vst [vmem:[%s11559_s14 + $0x540] sm:$0xff] %v982_v40  ;;  %985 = vst [vmem:[%s11559_s14 + $0x548] sm:$0xff] %v984_v41  ;;  %v988_v43 = vld [vmem:[%s11554_s5 + $0xaa8] sm:$0xff] }
  0x74   : > { %987 = vst [vmem:[%s11559_s14 + $0x550] sm:$0xff] %v986_v42  ;;  %v990_v44 = vld [vmem:[%s11554_s5 + $0xac0] sm:$0xff]  ;;  %v992_v45 = vld [vmem:[%s11554_s5 + $0xac8] sm:$0xff]  ;;  %989 = vst [vmem:[%s11559_s14 + $0x558] sm:$0xff] %v988_v43 }
  0x75   : > { %991 = vst [vmem:[%s11559_s14 + $0x560] sm:$0xff] %v990_v44  ;;  %993 = vst [vmem:[%s11559_s14 + $0x568] sm:$0xff] %v992_v45  ;;  %v994_v46 = vld [vmem:[%s11554_s5 + $0xae0] sm:$0xff]  ;;  %v996_v47 = vld [vmem:[%s11554_s5 + $0xae8] sm:$0xff] }
  0x76   : > { %v998_v48 = vld [vmem:[%s11554_s5 + $0xb00] sm:$0xff]  ;;  %995 = vst [vmem:[%s11559_s14 + $0x570] sm:$0xff] %v994_v46  ;;  %997 = vst [vmem:[%s11559_s14 + $0x578] sm:$0xff] %v996_v47  ;;  %v1000_v49 = vld [vmem:[%s11554_s5 + $0xb08] sm:$0xff] }
  0x77   : > { %999 = vst [vmem:[%s11559_s14 + $0x580] sm:$0xff] %v998_v48  ;;  %v1002_v50 = vld [vmem:[%s11554_s5 + $0xb20] sm:$0xff]  ;;  %v1004_v51 = vld [vmem:[%s11554_s5 + $0xb28] sm:$0xff]  ;;  %1001 = vst [vmem:[%s11559_s14 + $0x588] sm:$0xff] %v1000_v49 }
  0x78   : > { %1003 = vst [vmem:[%s11559_s14 + $0x590] sm:$0xff] %v1002_v50  ;;  %1005 = vst [vmem:[%s11559_s14 + $0x598] sm:$0xff] %v1004_v51  ;;  %v1006_v52 = vld [vmem:[%s11554_s5 + $0xb40] sm:$0xff]  ;;  %v1008_v53 = vld [vmem:[%s11554_s5 + $0xb48] sm:$0xff] }
  0x79   : > { %v1010_v54 = vld [vmem:[%s11554_s5 + $0xb60] sm:$0xff]  ;;  %1007 = vst [vmem:[%s11559_s14 + $0x5a0] sm:$0xff] %v1006_v52  ;;  %1009 = vst [vmem:[%s11559_s14 + $0x5a8] sm:$0xff] %v1008_v53  ;;  %v1012_v55 = vld [vmem:[%s11554_s5 + $0xb68] sm:$0xff] }
  0x7a   : > { %1011 = vst [vmem:[%s11559_s14 + $0x5b0] sm:$0xff] %v1010_v54  ;;  %v1014_v56 = vld [vmem:[%s11554_s5 + $0xb80] sm:$0xff]  ;;  %v1016_v57 = vld [vmem:[%s11554_s5 + $0xb88] sm:$0xff]  ;;  %1013 = vst [vmem:[%s11559_s14 + $0x5b8] sm:$0xff] %v1012_v55 }
  0x7b   : > { %1015 = vst [vmem:[%s11559_s14 + $0x5c0] sm:$0xff] %v1014_v56  ;;  %1017 = vst [vmem:[%s11559_s14 + $0x5c8] sm:$0xff] %v1016_v57  ;;  %v1018_v58 = vld [vmem:[%s11554_s5 + $0xba0] sm:$0xff]  ;;  %v1020_v59 = vld [vmem:[%s11554_s5 + $0xba8] sm:$0xff] }
  0x7c   : > { %v1022_v60 = vld [vmem:[%s11554_s5 + $0xbc0] sm:$0xff]  ;;  %1019 = vst [vmem:[%s11559_s14 + $0x5d0] sm:$0xff] %v1018_v58  ;;  %1021 = vst [vmem:[%s11559_s14 + $0x5d8] sm:$0xff] %v1020_v59  ;;  %v1024_v61 = vld [vmem:[%s11554_s5 + $0xbc8] sm:$0xff] }
  0x7d   : > { %1023 = vst [vmem:[%s11559_s14 + $0x5e0] sm:$0xff] %v1022_v60  ;;  %v1026_v62 = vld [vmem:[%s11554_s5 + $0xbe0] sm:$0xff]  ;;  %v1028_v63 = vld [vmem:[%s11554_s5 + $0xbe8] sm:$0xff]  ;;  %1025 = vst [vmem:[%s11559_s14 + $0x5e8] sm:$0xff] %v1024_v61 }
  0x7e   : > { %1027 = vst [vmem:[%s11559_s14 + $0x5f0] sm:$0xff] %v1026_v62  ;;  %1029 = vst [vmem:[%s11559_s14 + $0x5f8] sm:$0xff] %v1028_v63  ;;  %v1030_v0 = vld [vmem:[%s11554_s5 + $0xc00] sm:$0xff]  ;;  %v1032_v1 = vld [vmem:[%s11554_s5 + $0xc08] sm:$0xff] }
  0x7f   : > { %v1034_v2 = vld [vmem:[%s11554_s5 + $0xc20] sm:$0xff]  ;;  %1031 = vst [vmem:[%s11559_s14 + $0x600] sm:$0xff] %v1030_v0  ;;  %1033 = vst [vmem:[%s11559_s14 + $0x608] sm:$0xff] %v1032_v1  ;;  %v1036_v3 = vld [vmem:[%s11554_s5 + $0xc28] sm:$0xff] }
  0x80   : > { %1035 = vst [vmem:[%s11559_s14 + $0x610] sm:$0xff] %v1034_v2  ;;  %v1038_v4 = vld [vmem:[%s11554_s5 + $0xc40] sm:$0xff]  ;;  %v1040_v5 = vld [vmem:[%s11554_s5 + $0xc48] sm:$0xff]  ;;  %1037 = vst [vmem:[%s11559_s14 + $0x618] sm:$0xff] %v1036_v3 }
  0x81   : > { %1039 = vst [vmem:[%s11559_s14 + $0x620] sm:$0xff] %v1038_v4  ;;  %1041 = vst [vmem:[%s11559_s14 + $0x628] sm:$0xff] %v1040_v5  ;;  %v1042_v6 = vld [vmem:[%s11554_s5 + $0xc60] sm:$0xff]  ;;  %v1044_v7 = vld [vmem:[%s11554_s5 + $0xc68] sm:$0xff] }
  0x82   : > { %v1046_v8 = vld [vmem:[%s11554_s5 + $0xc80] sm:$0xff]  ;;  %1043 = vst [vmem:[%s11559_s14 + $0x630] sm:$0xff] %v1042_v6  ;;  %1045 = vst [vmem:[%s11559_s14 + $0x638] sm:$0xff] %v1044_v7  ;;  %v1048_v9 = vld [vmem:[%s11554_s5 + $0xc88] sm:$0xff] }
  0x83   : > { %1047 = vst [vmem:[%s11559_s14 + $0x640] sm:$0xff] %v1046_v8  ;;  %v1050_v10 = vld [vmem:[%s11554_s5 + $0xca0] sm:$0xff]  ;;  %v1052_v11 = vld [vmem:[%s11554_s5 + $0xca8] sm:$0xff]  ;;  %1049 = vst [vmem:[%s11559_s14 + $0x648] sm:$0xff] %v1048_v9 }
  0x84   : > { %1051 = vst [vmem:[%s11559_s14 + $0x650] sm:$0xff] %v1050_v10  ;;  %1053 = vst [vmem:[%s11559_s14 + $0x658] sm:$0xff] %v1052_v11  ;;  %v1054_v12 = vld [vmem:[%s11554_s5 + $0xcc0] sm:$0xff]  ;;  %v1056_v13 = vld [vmem:[%s11554_s5 + $0xcc8] sm:$0xff] }
  0x85   : > { %v1058_v14 = vld [vmem:[%s11554_s5 + $0xce0] sm:$0xff]  ;;  %1055 = vst [vmem:[%s11559_s14 + $0x660] sm:$0xff] %v1054_v12  ;;  %1057 = vst [vmem:[%s11559_s14 + $0x668] sm:$0xff] %v1056_v13  ;;  %v1060_v15 = vld [vmem:[%s11554_s5 + $0xce8] sm:$0xff] }
  0x86   : > { %1059 = vst [vmem:[%s11559_s14 + $0x670] sm:$0xff] %v1058_v14  ;;  %v1062_v16 = vld [vmem:[%s11554_s5 + $0xd00] sm:$0xff]  ;;  %v1064_v17 = vld [vmem:[%s11554_s5 + $0xd08] sm:$0xff]  ;;  %1061 = vst [vmem:[%s11559_s14 + $0x678] sm:$0xff] %v1060_v15 }
  0x87   : > { %1063 = vst [vmem:[%s11559_s14 + $0x680] sm:$0xff] %v1062_v16  ;;  %1065 = vst [vmem:[%s11559_s14 + $0x688] sm:$0xff] %v1064_v17  ;;  %v1066_v18 = vld [vmem:[%s11554_s5 + $0xd20] sm:$0xff]  ;;  %v1068_v19 = vld [vmem:[%s11554_s5 + $0xd28] sm:$0xff] }
  0x88   : > { %v1070_v20 = vld [vmem:[%s11554_s5 + $0xd40] sm:$0xff]  ;;  %1067 = vst [vmem:[%s11559_s14 + $0x690] sm:$0xff] %v1066_v18  ;;  %1069 = vst [vmem:[%s11559_s14 + $0x698] sm:$0xff] %v1068_v19  ;;  %v1072_v21 = vld [vmem:[%s11554_s5 + $0xd48] sm:$0xff] }
  0x89   : > { %1071 = vst [vmem:[%s11559_s14 + $0x6a0] sm:$0xff] %v1070_v20  ;;  %v1074_v22 = vld [vmem:[%s11554_s5 + $0xd60] sm:$0xff]  ;;  %v1076_v23 = vld [vmem:[%s11554_s5 + $0xd68] sm:$0xff]  ;;  %1073 = vst [vmem:[%s11559_s14 + $0x6a8] sm:$0xff] %v1072_v21 }
  0x8a   : > { %1075 = vst [vmem:[%s11559_s14 + $0x6b0] sm:$0xff] %v1074_v22  ;;  %1077 = vst [vmem:[%s11559_s14 + $0x6b8] sm:$0xff] %v1076_v23  ;;  %v1078_v24 = vld [vmem:[%s11554_s5 + $0xd80] sm:$0xff]  ;;  %v1080_v25 = vld [vmem:[%s11554_s5 + $0xd88] sm:$0xff] }
  0x8b   : > { %v1082_v26 = vld [vmem:[%s11554_s5 + $0xda0] sm:$0xff]  ;;  %1079 = vst [vmem:[%s11559_s14 + $0x6c0] sm:$0xff] %v1078_v24  ;;  %1081 = vst [vmem:[%s11559_s14 + $0x6c8] sm:$0xff] %v1080_v25  ;;  %v1084_v27 = vld [vmem:[%s11554_s5 + $0xda8] sm:$0xff] }
  0x8c   : > { %1083 = vst [vmem:[%s11559_s14 + $0x6d0] sm:$0xff] %v1082_v26  ;;  %v1086_v28 = vld [vmem:[%s11554_s5 + $0xdc0] sm:$0xff]  ;;  %v1088_v29 = vld [vmem:[%s11554_s5 + $0xdc8] sm:$0xff]  ;;  %1085 = vst [vmem:[%s11559_s14 + $0x6d8] sm:$0xff] %v1084_v27 }
  0x8d   : > { %1087 = vst [vmem:[%s11559_s14 + $0x6e0] sm:$0xff] %v1086_v28  ;;  %1089 = vst [vmem:[%s11559_s14 + $0x6e8] sm:$0xff] %v1088_v29  ;;  %v1090_v30 = vld [vmem:[%s11554_s5 + $0xde0] sm:$0xff]  ;;  %v1092_v31 = vld [vmem:[%s11554_s5 + $0xde8] sm:$0xff] }
  0x8e   : > { %v1094_v32 = vld [vmem:[%s11554_s5 + $0xe00] sm:$0xff]  ;;  %1091 = vst [vmem:[%s11559_s14 + $0x6f0] sm:$0xff] %v1090_v30  ;;  %1093 = vst [vmem:[%s11559_s14 + $0x6f8] sm:$0xff] %v1092_v31  ;;  %v1096_v33 = vld [vmem:[%s11554_s5 + $0xe08] sm:$0xff] }
  0x8f   : > { %1095 = vst [vmem:[%s11559_s14 + $0x700] sm:$0xff] %v1094_v32  ;;  %v1098_v34 = vld [vmem:[%s11554_s5 + $0xe20] sm:$0xff]  ;;  %v1100_v35 = vld [vmem:[%s11554_s5 + $0xe28] sm:$0xff]  ;;  %1097 = vst [vmem:[%s11559_s14 + $0x708] sm:$0xff] %v1096_v33 }
  0x90   : > { %1099 = vst [vmem:[%s11559_s14 + $0x710] sm:$0xff] %v1098_v34  ;;  %1101 = vst [vmem:[%s11559_s14 + $0x718] sm:$0xff] %v1100_v35  ;;  %v1102_v36 = vld [vmem:[%s11554_s5 + $0xe40] sm:$0xff]  ;;  %v1104_v37 = vld [vmem:[%s11554_s5 + $0xe48] sm:$0xff] }
  0x91   : > { %v1106_v38 = vld [vmem:[%s11554_s5 + $0xe60] sm:$0xff]  ;;  %1103 = vst [vmem:[%s11559_s14 + $0x720] sm:$0xff] %v1102_v36  ;;  %1105 = vst [vmem:[%s11559_s14 + $0x728] sm:$0xff] %v1104_v37  ;;  %v1108_v39 = vld [vmem:[%s11554_s5 + $0xe68] sm:$0xff] }
  0x92   : > { %1107 = vst [vmem:[%s11559_s14 + $0x730] sm:$0xff] %v1106_v38  ;;  %v1110_v40 = vld [vmem:[%s11554_s5 + $0xe80] sm:$0xff]  ;;  %v1112_v41 = vld [vmem:[%s11554_s5 + $0xe88] sm:$0xff]  ;;  %1109 = vst [vmem:[%s11559_s14 + $0x738] sm:$0xff] %v1108_v39 }
  0x93   : > { %1111 = vst [vmem:[%s11559_s14 + $0x740] sm:$0xff] %v1110_v40  ;;  %1113 = vst [vmem:[%s11559_s14 + $0x748] sm:$0xff] %v1112_v41  ;;  %v1114_v42 = vld [vmem:[%s11554_s5 + $0xea0] sm:$0xff]  ;;  %v1116_v43 = vld [vmem:[%s11554_s5 + $0xea8] sm:$0xff] }
  0x94   : > { %v1118_v44 = vld [vmem:[%s11554_s5 + $0xec0] sm:$0xff]  ;;  %1115 = vst [vmem:[%s11559_s14 + $0x750] sm:$0xff] %v1114_v42  ;;  %1117 = vst [vmem:[%s11559_s14 + $0x758] sm:$0xff] %v1116_v43  ;;  %v1120_v45 = vld [vmem:[%s11554_s5 + $0xec8] sm:$0xff] }
  0x95   : > { %1119 = vst [vmem:[%s11559_s14 + $0x760] sm:$0xff] %v1118_v44  ;;  %v1122_v46 = vld [vmem:[%s11554_s5 + $0xee0] sm:$0xff]  ;;  %v1124_v47 = vld [vmem:[%s11554_s5 + $0xee8] sm:$0xff]  ;;  %1121 = vst [vmem:[%s11559_s14 + $0x768] sm:$0xff] %v1120_v45 }
  0x96   : > { %1123 = vst [vmem:[%s11559_s14 + $0x770] sm:$0xff] %v1122_v46  ;;  %1125 = vst [vmem:[%s11559_s14 + $0x778] sm:$0xff] %v1124_v47  ;;  %v1126_v48 = vld [vmem:[%s11554_s5 + $0xf00] sm:$0xff]  ;;  %v1128_v49 = vld [vmem:[%s11554_s5 + $0xf08] sm:$0xff] }
  0x97   : > { %v1130_v50 = vld [vmem:[%s11554_s5 + $0xf20] sm:$0xff]  ;;  %1127 = vst [vmem:[%s11559_s14 + $0x780] sm:$0xff] %v1126_v48  ;;  %1129 = vst [vmem:[%s11559_s14 + $0x788] sm:$0xff] %v1128_v49  ;;  %v1132_v51 = vld [vmem:[%s11554_s5 + $0xf28] sm:$0xff] }
  0x98   : > { %1131 = vst [vmem:[%s11559_s14 + $0x790] sm:$0xff] %v1130_v50  ;;  %v1134_v52 = vld [vmem:[%s11554_s5 + $0xf40] sm:$0xff]  ;;  %v1136_v53 = vld [vmem:[%s11554_s5 + $0xf48] sm:$0xff]  ;;  %1133 = vst [vmem:[%s11559_s14 + $0x798] sm:$0xff] %v1132_v51 }
  0x99   : > { %1135 = vst [vmem:[%s11559_s14 + $0x7a0] sm:$0xff] %v1134_v52  ;;  %1137 = vst [vmem:[%s11559_s14 + $0x7a8] sm:$0xff] %v1136_v53  ;;  %v1138_v54 = vld [vmem:[%s11554_s5 + $0xf60] sm:$0xff]  ;;  %v1140_v55 = vld [vmem:[%s11554_s5 + $0xf68] sm:$0xff] }
  0x9a   : > { %v1142_v56 = vld [vmem:[%s11554_s5 + $0xf80] sm:$0xff]  ;;  %1139 = vst [vmem:[%s11559_s14 + $0x7b0] sm:$0xff] %v1138_v54  ;;  %1141 = vst [vmem:[%s11559_s14 + $0x7b8] sm:$0xff] %v1140_v55  ;;  %v1144_v57 = vld [vmem:[%s11554_s5 + $0xf88] sm:$0xff] }
  0x9b   : > { %1143 = vst [vmem:[%s11559_s14 + $0x7c0] sm:$0xff] %v1142_v56  ;;  %v1146_v58 = vld [vmem:[%s11554_s5 + $0xfa0] sm:$0xff]  ;;  %v1148_v59 = vld [vmem:[%s11554_s5 + $0xfa8] sm:$0xff]  ;;  %1145 = vst [vmem:[%s11559_s14 + $0x7c8] sm:$0xff] %v1144_v57 }
  0x9c   : > { %1147 = vst [vmem:[%s11559_s14 + $0x7d0] sm:$0xff] %v1146_v58  ;;  %1149 = vst [vmem:[%s11559_s14 + $0x7d8] sm:$0xff] %v1148_v59  ;;  %v1150_v60 = vld [vmem:[%s11554_s5 + $0xfc0] sm:$0xff]  ;;  %v1152_v61 = vld [vmem:[%s11554_s5 + $0xfc8] sm:$0xff] }
  0x9d   : > { %v1154_v62 = vld [vmem:[%s11554_s5 + $0xfe0] sm:$0xff]  ;;  %1151 = vst [vmem:[%s11559_s14 + $0x7e0] sm:$0xff] %v1150_v60  ;;  %1153 = vst [vmem:[%s11559_s14 + $0x7e8] sm:$0xff] %v1152_v61  ;;  %v1156_v63 = vld [vmem:[%s11554_s5 + $0xfe8] sm:$0xff] }
  0x9e   : > { %1155 = vst [vmem:[%s11559_s14 + $0x7f0] sm:$0xff] %v1154_v62  ;;  %1157 = vst [vmem:[%s11559_s14 + $0x7f8] sm:$0xff] %v1156_v63 }
  0x9f PF: > { %p10174_p12 = scmp.ge.s32.totalorder %s11455_s13, 1  ;;  %p1162_p13 = scmp.lt.s32.totalorder %s11455_s13, 5 }
  0xa1   : > { %p1163_p0 = pnand %p10174_p12, %p1162_p13 }
  0xa2   : > { %s12073_s15 = sand.u32 (!%p1163_p0), 1, %s11431_s7   ;;  %vm1447_vm0 = vcmask (!%p1163_p0), 1041409   ;;  %vm1450_vm1 = vcmask (!%p1163_p0), 1042434   ;;  %vm1453_vm2 = vcmask (!%p1163_p0), 1043459   ;;  %vm1456_vm3 = vcmask (!%p1163_p0), 1044484   ;;  %s11258_s24 = sshll.u32 (!%p1163_p0), %s11439_s9, 4 }
  0xa3   : > { %1166 = sbr.rel (%p1163_p0) target bundleno = 1285 (0x505), region = 58  ;;  %s10175_s18 = sshll.u32 (!%p1163_p0), %s12073_s15, 11  ;;  %vm1459_vm4 = vcmask (!%p1163_p0), 1045509   ;;  %vm1462_vm5 = vcmask (!%p1163_p0), 1046534   ;;  %vm1465_vm6 = vcmask (!%p1163_p0), 1047559  }
  0xa4   : > { %s12076_s19 = scalar_lea.vmem (!%p1163_p0), [#allocation2], %s10175_s18  ;;  %s10176_s22 = sshll.u32 (!%p1163_p0), %s12073_s15, 7 }
  0xa5   : > { %v1751_v0 = vld [vmem:[%s12076_s19 + $0x1] sm:$0x1] (!%p1163_p0)  ;;  %v1752_v1 = vld [vmem:[%s12076_s19 + $0x11] sm:$0x1] (!%p1163_p0)  ;;  %v1190_v13 = vld [vmem:[%s12076_s19] sm:$0x1] (!%p1163_p0) }
  0xa6   : > { %v1753_v2 = vld [vmem:[%s12076_s19 + $0x21] sm:$0x1] (!%p1163_p0)  ;;  %v1754_v3 = vld [vmem:[%s12076_s19 + $0x31] sm:$0x1] (!%p1163_p0)  ;;  %v2007_v8 = vrot.slane (!%p1163_p0), %v1752_v1, 7  ;;  %s16000_s23 = scalar_lea.vmem (!%p1163_p0), [#allocation3], %s10176_s22 }
  0xa7   : > { %v1755_v4 = vld [vmem:[%s12076_s19 + $0x41] sm:$0x1] (!%p1163_p0)  ;;  %v1756_v5 = vld [vmem:[%s12076_s19 + $0x51] sm:$0x1] (!%p1163_p0)  ;;  %v2009_v9 = vrot.slane (!%p1163_p0), %v1753_v2, 6  ;;  %v2011_v10 = vrot.slane (!%p1163_p0), %v1754_v3, 5 }
  0xa8   : > { %v1757_v6 = vld [vmem:[%s12076_s19 + $0x61] sm:$0x1] (!%p1163_p0)  ;;  %v1758_v7 = vld [vmem:[%s12076_s19 + $0x71] sm:$0x1] (!%p1163_p0)  ;;  %v2013_v11 = vrot.slane (!%p1163_p0), %v1755_v4, 4  ;;  %v2015_v12 = vrot.slane (!%p1163_p0), %v1756_v5, 3  ;;  %v2008_v14 = vsel (!%p1163_p0), %vm1447_vm0, %v2007_v8, %v1751_v0 }
  0xa9   : > { %v2017_v15 = vrot.slane (!%p1163_p0), %v1757_v6, 2  ;;  %v2019_v16 = vrot.slane (!%p1163_p0), %v1758_v7, 1  ;;  %v1191_v17 = vld [vmem:[%s12076_s19 + $0x10] sm:$0x1] (!%p1163_p0)  ;;  %v1192_v18 = vld [vmem:[%s12076_s19 + $0x20] sm:$0x1] (!%p1163_p0)  ;;  %v2010_v19 = vsel (!%p1163_p0), %vm1450_vm1, %v2009_v9, %v2008_v14 }
  0xaa   : > { %v1193_v20 = vld [vmem:[%s12076_s19 + $0x30] sm:$0x1]  ;;  %v1194_v21 = vld [vmem:[%s12076_s19 + $0x40] sm:$0x1]  ;;  %v2012_v23 = vsel %vm1453_vm2, %v2011_v10, %v2010_v19  ;;  %v1446_v26 = vrot.slane %v1191_v17, 7  ;;  %v1449_v27 = vrot.slane %v1192_v18, 6 }
  0xab   : > { %v1195_v22 = vld [vmem:[%s12076_s19 + $0x50] sm:$0x1]  ;;  %v1196_v24 = vld [vmem:[%s12076_s19 + $0x60] sm:$0x1]  ;;  %v2014_v28 = vsel %vm1456_vm3, %v2013_v11, %v2012_v23  ;;  %v1452_v29 = vrot.slane %v1193_v20, 5  ;;  %v1455_v30 = vrot.slane %v1194_v21, 4 }
  0xac   : > { %v1197_v25 = vld [vmem:[%s12076_s19 + $0x70] sm:$0x1]  ;;  %v1458_v31 = vrot.slane %v1195_v22, 3  ;;  %v1759_v32 = vld [vmem:[%s12076_s19 + $0x81] sm:$0x1]  ;;  %v2016_v33 = vsel %vm1459_vm4, %v2015_v12, %v2014_v28  ;;  %v1448_v34 = vsel %vm1447_vm0, %v1446_v26, %v1190_v13  ;;  %v1461_v35 = vrot.slane %v1196_v24, 2 }
  0xad   : > { %v1464_v36 = vrot.slane %v1197_v25, 1  ;;  %v1760_v37 = vld [vmem:[%s12076_s19 + $0x91] sm:$0x1]  ;;  %v1761_v38 = vld [vmem:[%s12076_s19 + $0xa1] sm:$0x1]  ;;  %v2018_v39 = vsel %vm1462_vm5, %v2017_v15, %v2016_v33  ;;  %v1451_v40 = vsel %vm1450_vm1, %v1449_v27, %v1448_v34  ;;  %s11259_s26 = sshll.u32 %s11443_s10, 5 }
  0xae   : > { %v1762_v41 = vld [vmem:[%s12076_s19 + $0xb1] sm:$0x1]  ;;  %v1763_v42 = vld [vmem:[%s12076_s19 + $0xc1] sm:$0x1]  ;;  %v2020_v44 = vsel %vm1465_vm6, %v2019_v16, %v2018_v39  ;;  %v1454_v45 = vsel %vm1453_vm2, %v1452_v29, %v1451_v40  ;;  %v2021_v48 = vrot.slane %v1760_v37, 7  ;;  %v2023_v49 = vrot.slane %v1761_v38, 6  ;;  %s10078_s27 = sadd.s32 %s11259_s26, %s11258_s24 }
  0xaf   : > { %v1764_v43 = vld [vmem:[%s12076_s19 + $0xd1] sm:$0x1]  ;;  %v1765_v46 = vld [vmem:[%s12076_s19 + $0xe1] sm:$0x1]  ;;  %2247 = vxpose.xlu1.b32.start [1/16] (narrow) %v2020_v44, 8  ;;  %v1457_v50 = vsel %vm1456_vm3, %v1455_v30, %v1454_v45  ;;  %v2025_v51 = vrot.slane %v1762_v41, 5 }
  0xb0   : > { %v1766_v47 = vld [vmem:[%s12076_s19 + $0xf1] sm:$0x1]  ;;  %v2027_v52 = vrot.slane %v1763_v42, 4  ;;  %v2029_v53 = vrot.slane %v1764_v43, 3  ;;  %v1198_v54 = vld [vmem:[%s12076_s19 + $0x80] sm:$0x1]  ;;  %v1460_v55 = vsel %vm1459_vm4, %v1458_v31, %v1457_v50  ;;  %v2022_v56 = vsel %vm1447_vm0, %v2021_v48, %v1759_v32 }
  0xb1   : > { %v2031_v57 = vrot.slane %v1765_v46, 2  ;;  %v2033_v58 = vrot.slane %v1766_v47, 1  ;;  %v1199_v59 = vld [vmem:[%s12076_s19 + $0x90] sm:$0x1]  ;;  %v1200_v60 = vld [vmem:[%s12076_s19 + $0xa0] sm:$0x1]  ;;  %v1463_v61 = vsel %vm1462_vm5, %v1461_v35, %v1460_v55  ;;  %v2024_v62 = vsel %vm1450_vm1, %v2023_v49, %v2022_v56 }
  0xb2   : > { %v1201_v63 = vld [vmem:[%s12076_s19 + $0xb0] sm:$0x1]  ;;  %v1202_v0 = vld [vmem:[%s12076_s19 + $0xc0] sm:$0x1]  ;;  %v1466_v2 = vsel %vm1465_vm6, %v1464_v36, %v1463_v61  ;;  %v2026_v3 = vsel %vm1453_vm2, %v2025_v51, %v2024_v62  ;;  %v1467_v6 = vrot.slane %v1199_v59, 7  ;;  %v1469_v7 = vrot.slane %v1200_v60, 6 }
  0xb3   : > { %v1203_v1 = vld [vmem:[%s12076_s19 + $0xd0] sm:$0x1]  ;;  %v1204_v4 = vld [vmem:[%s12076_s19 + $0xe0] sm:$0x1]  ;;  %1693 = vxpose.xlu0.b32.start [1/16] (narrow) %v1466_v2, 8  ;;  %v2028_v8 = vsel %vm1456_vm3, %v2027_v52, %v2026_v3  ;;  %v1471_v9 = vrot.slane %v1201_v63, 5 }
  0xb4   : > { %v1205_v5 = vld [vmem:[%s12076_s19 + $0xf0] sm:$0x1]  ;;  %v1473_v10 = vrot.slane %v1202_v0, 4  ;;  %v1475_v11 = vrot.slane %v1203_v1, 3  ;;  %v1767_v12 = vld [vmem:[%s12076_s19 + $0x101] sm:$0x1]  ;;  %v2030_v13 = vsel %vm1459_vm4, %v2029_v53, %v2028_v8  ;;  %v1468_v14 = vsel %vm1447_vm0, %v1467_v6, %v1198_v54 }
  0xb5   : > { %v1477_v15 = vrot.slane %v1204_v4, 2  ;;  %v1479_v16 = vrot.slane %v1205_v5, 1  ;;  %v1768_v17 = vld [vmem:[%s12076_s19 + $0x111] sm:$0x1]  ;;  %v1769_v18 = vld [vmem:[%s12076_s19 + $0x121] sm:$0x1]  ;;  %v2032_v19 = vsel %vm1462_vm5, %v2031_v57, %v2030_v13  ;;  %v1470_v20 = vsel %vm1450_vm1, %v1469_v7, %v1468_v14 }
  0xb6   : > { %v1770_v21 = vld [vmem:[%s12076_s19 + $0x131] sm:$0x1]  ;;  %v1771_v22 = vld [vmem:[%s12076_s19 + $0x141] sm:$0x1]  ;;  %v2034_v24 = vsel %vm1465_vm6, %v2033_v58, %v2032_v19  ;;  %v1472_v25 = vsel %vm1453_vm2, %v1471_v9, %v1470_v20  ;;  %v2035_v28 = vrot.slane %v1768_v17, 7  ;;  %v2037_v29 = vrot.slane %v1769_v18, 6 }
  0xb7   : > { %v1772_v23 = vld [vmem:[%s12076_s19 + $0x151] sm:$0x1]  ;;  %v1773_v26 = vld [vmem:[%s12076_s19 + $0x161] sm:$0x1]  ;;  %2248 = vxpose.xlu1.b32.cont [2/16] (narrow) %v2034_v24, 8  ;;  %v1474_v30 = vsel %vm1456_vm3, %v1473_v10, %v1472_v25  ;;  %v2039_v31 = vrot.slane %v1770_v21, 5 }
  0xb8   : > { %v1774_v27 = vld [vmem:[%s12076_s19 + $0x171] sm:$0x1]  ;;  %v2041_v32 = vrot.slane %v1771_v22, 4  ;;  %v2043_v33 = vrot.slane %v1772_v23, 3  ;;  %v1206_v34 = vld [vmem:[%s12076_s19 + $0x100] sm:$0x1]  ;;  %v1476_v35 = vsel %vm1459_vm4, %v1475_v11, %v1474_v30  ;;  %v2036_v36 = vsel %vm1447_vm0, %v2035_v28, %v1767_v12 }
  0xb9   : > { %v2045_v37 = vrot.slane %v1773_v26, 2  ;;  %v2047_v38 = vrot.slane %v1774_v27, 1  ;;  %v1207_v39 = vld [vmem:[%s12076_s19 + $0x110] sm:$0x1]  ;;  %v1208_v40 = vld [vmem:[%s12076_s19 + $0x120] sm:$0x1]  ;;  %v1478_v41 = vsel %vm1462_vm5, %v1477_v15, %v1476_v35  ;;  %v2038_v42 = vsel %vm1450_vm1, %v2037_v29, %v2036_v36 }
  0xba   : > { %v1209_v43 = vld [vmem:[%s12076_s19 + $0x130] sm:$0x1]  ;;  %v1210_v44 = vld [vmem:[%s12076_s19 + $0x140] sm:$0x1]  ;;  %v1480_v46 = vsel %vm1465_vm6, %v1479_v16, %v1478_v41  ;;  %v2040_v47 = vsel %vm1453_vm2, %v2039_v31, %v2038_v42  ;;  %v1481_v50 = vrot.slane %v1207_v39, 7  ;;  %v1483_v51 = vrot.slane %v1208_v40, 6 }
  0xbb   : > { %v1211_v45 = vld [vmem:[%s12076_s19 + $0x150] sm:$0x1]  ;;  %v1212_v48 = vld [vmem:[%s12076_s19 + $0x160] sm:$0x1]  ;;  %1694 = vxpose.xlu0.b32.cont [2/16] (narrow) %v1480_v46, 8  ;;  %v2042_v52 = vsel %vm1456_vm3, %v2041_v32, %v2040_v47  ;;  %v1485_v53 = vrot.slane %v1209_v43, 5 }
  0xbc   : > { %v1213_v49 = vld [vmem:[%s12076_s19 + $0x170] sm:$0x1]  ;;  %v1487_v54 = vrot.slane %v1210_v44, 4  ;;  %v1489_v55 = vrot.slane %v1211_v45, 3  ;;  %v1775_v56 = vld [vmem:[%s12076_s19 + $0x181] sm:$0x1]  ;;  %v2044_v57 = vsel %vm1459_vm4, %v2043_v33, %v2042_v52  ;;  %v1482_v58 = vsel %vm1447_vm0, %v1481_v50, %v1206_v34 }
  0xbd   : > { %v1491_v59 = vrot.slane %v1212_v48, 2  ;;  %v1493_v60 = vrot.slane %v1213_v49, 1  ;;  %v1776_v61 = vld [vmem:[%s12076_s19 + $0x191] sm:$0x1]  ;;  %v1777_v62 = vld [vmem:[%s12076_s19 + $0x1a1] sm:$0x1]  ;;  %v2046_v63 = vsel %vm1462_vm5, %v2045_v37, %v2044_v57  ;;  %v1484_v0 = vsel %vm1450_vm1, %v1483_v51, %v1482_v58 }
  0xbe   : > { %v1778_v1 = vld [vmem:[%s12076_s19 + $0x1b1] sm:$0x1]  ;;  %v1779_v2 = vld [vmem:[%s12076_s19 + $0x1c1] sm:$0x1]  ;;  %v2048_v4 = vsel %vm1465_vm6, %v2047_v38, %v2046_v63  ;;  %v1486_v5 = vsel %vm1453_vm2, %v1485_v53, %v1484_v0  ;;  %v2049_v8 = vrot.slane %v1776_v61, 7  ;;  %v2051_v9 = vrot.slane %v1777_v62, 6 }
  0xbf   : > { %v1780_v3 = vld [vmem:[%s12076_s19 + $0x1d1] sm:$0x1]  ;;  %v1781_v6 = vld [vmem:[%s12076_s19 + $0x1e1] sm:$0x1]  ;;  %2249 = vxpose.xlu1.b32.cont [3/16] (narrow) %v2048_v4, 8  ;;  %v1488_v10 = vsel %vm1456_vm3, %v1487_v54, %v1486_v5  ;;  %v2053_v11 = vrot.slane %v1778_v1, 5 }
  0xc0   : > { %v1782_v7 = vld [vmem:[%s12076_s19 + $0x1f1] sm:$0x1]  ;;  %v2055_v12 = vrot.slane %v1779_v2, 4  ;;  %v2057_v13 = vrot.slane %v1780_v3, 3  ;;  %v1214_v14 = vld [vmem:[%s12076_s19 + $0x180] sm:$0x1]  ;;  %v1490_v15 = vsel %vm1459_vm4, %v1489_v55, %v1488_v10  ;;  %v2050_v16 = vsel %vm1447_vm0, %v2049_v8, %v1775_v56 }
  0xc1   : > { %v2059_v17 = vrot.slane %v1781_v6, 2  ;;  %v2061_v18 = vrot.slane %v1782_v7, 1  ;;  %v1215_v19 = vld [vmem:[%s12076_s19 + $0x190] sm:$0x1]  ;;  %v1216_v20 = vld [vmem:[%s12076_s19 + $0x1a0] sm:$0x1]  ;;  %v1492_v21 = vsel %vm1462_vm5, %v1491_v59, %v1490_v15  ;;  %v2052_v22 = vsel %vm1450_vm1, %v2051_v9, %v2050_v16 }
  0xc2   : > { %v1217_v23 = vld [vmem:[%s12076_s19 + $0x1b0] sm:$0x1]  ;;  %v1218_v24 = vld [vmem:[%s12076_s19 + $0x1c0] sm:$0x1]  ;;  %v1494_v26 = vsel %vm1465_vm6, %v1493_v60, %v1492_v21  ;;  %v2054_v27 = vsel %vm1453_vm2, %v2053_v11, %v2052_v22  ;;  %v1495_v30 = vrot.slane %v1215_v19, 7  ;;  %v1497_v31 = vrot.slane %v1216_v20, 6 }
  0xc3   : > { %v1219_v25 = vld [vmem:[%s12076_s19 + $0x1d0] sm:$0x1]  ;;  %v1220_v28 = vld [vmem:[%s12076_s19 + $0x1e0] sm:$0x1]  ;;  %1695 = vxpose.xlu0.b32.cont [3/16] (narrow) %v1494_v26, 8  ;;  %v2056_v32 = vsel %vm1456_vm3, %v2055_v12, %v2054_v27  ;;  %v1499_v33 = vrot.slane %v1217_v23, 5 }
  0xc4   : > { %v1221_v29 = vld [vmem:[%s12076_s19 + $0x1f0] sm:$0x1]  ;;  %v1501_v34 = vrot.slane %v1218_v24, 4  ;;  %v1503_v35 = vrot.slane %v1219_v25, 3  ;;  %v1783_v36 = vld [vmem:[%s12076_s19 + $0x201] sm:$0x1]  ;;  %v2058_v37 = vsel %vm1459_vm4, %v2057_v13, %v2056_v32  ;;  %v1496_v38 = vsel %vm1447_vm0, %v1495_v30, %v1214_v14 }
  0xc5   : > { %v1505_v39 = vrot.slane %v1220_v28, 2  ;;  %v1507_v40 = vrot.slane %v1221_v29, 1  ;;  %v1784_v41 = vld [vmem:[%s12076_s19 + $0x211] sm:$0x1]  ;;  %v1785_v42 = vld [vmem:[%s12076_s19 + $0x221] sm:$0x1]  ;;  %v2060_v43 = vsel %vm1462_vm5, %v2059_v17, %v2058_v37  ;;  %v1498_v44 = vsel %vm1450_vm1, %v1497_v31, %v1496_v38 }
  0xc6   : > { %v1786_v45 = vld [vmem:[%s12076_s19 + $0x231] sm:$0x1]  ;;  %v1787_v46 = vld [vmem:[%s12076_s19 + $0x241] sm:$0x1]  ;;  %v2062_v48 = vsel %vm1465_vm6, %v2061_v18, %v2060_v43  ;;  %v1500_v49 = vsel %vm1453_vm2, %v1499_v33, %v1498_v44  ;;  %v2063_v52 = vrot.slane %v1784_v41, 7  ;;  %v2065_v53 = vrot.slane %v1785_v42, 6 }
  0xc7   : > { %v1788_v47 = vld [vmem:[%s12076_s19 + $0x251] sm:$0x1]  ;;  %v1789_v50 = vld [vmem:[%s12076_s19 + $0x261] sm:$0x1]  ;;  %2250 = vxpose.xlu1.b32.cont [4/16] (narrow) %v2062_v48, 8  ;;  %v1502_v54 = vsel %vm1456_vm3, %v1501_v34, %v1500_v49  ;;  %v2067_v55 = vrot.slane %v1786_v45, 5 }
  0xc8   : > { %v1790_v51 = vld [vmem:[%s12076_s19 + $0x271] sm:$0x1]  ;;  %v2069_v56 = vrot.slane %v1787_v46, 4  ;;  %v2071_v57 = vrot.slane %v1788_v47, 3  ;;  %v1222_v58 = vld [vmem:[%s12076_s19 + $0x200] sm:$0x1]  ;;  %v1504_v59 = vsel %vm1459_vm4, %v1503_v35, %v1502_v54  ;;  %v2064_v60 = vsel %vm1447_vm0, %v2063_v52, %v1783_v36 }
  0xc9   : > { %v2073_v61 = vrot.slane %v1789_v50, 2  ;;  %v2075_v62 = vrot.slane %v1790_v51, 1  ;;  %v1223_v63 = vld [vmem:[%s12076_s19 + $0x210] sm:$0x1]  ;;  %v1224_v0 = vld [vmem:[%s12076_s19 + $0x220] sm:$0x1]  ;;  %v1506_v1 = vsel %vm1462_vm5, %v1505_v39, %v1504_v59  ;;  %v2066_v2 = vsel %vm1450_vm1, %v2065_v53, %v2064_v60 }
  0xca   : > { %v1225_v3 = vld [vmem:[%s12076_s19 + $0x230] sm:$0x1]  ;;  %v1226_v4 = vld [vmem:[%s12076_s19 + $0x240] sm:$0x1]  ;;  %v1508_v6 = vsel %vm1465_vm6, %v1507_v40, %v1506_v1  ;;  %v2068_v7 = vsel %vm1453_vm2, %v2067_v55, %v2066_v2  ;;  %v1509_v10 = vrot.slane %v1223_v63, 7  ;;  %v1511_v11 = vrot.slane %v1224_v0, 6 }
  0xcb   : > { %v1227_v5 = vld [vmem:[%s12076_s19 + $0x250] sm:$0x1]  ;;  %v1228_v8 = vld [vmem:[%s12076_s19 + $0x260] sm:$0x1]  ;;  %1696 = vxpose.xlu0.b32.cont [4/16] (narrow) %v1508_v6, 8  ;;  %v2070_v12 = vsel %vm1456_vm3, %v2069_v56, %v2068_v7  ;;  %v1513_v13 = vrot.slane %v1225_v3, 5 }
  0xcc   : > { %v1229_v9 = vld [vmem:[%s12076_s19 + $0x270] sm:$0x1]  ;;  %v1515_v14 = vrot.slane %v1226_v4, 4  ;;  %v1517_v15 = vrot.slane %v1227_v5, 3  ;;  %v1791_v16 = vld [vmem:[%s12076_s19 + $0x281] sm:$0x1]  ;;  %v2072_v17 = vsel %vm1459_vm4, %v2071_v57, %v2070_v12  ;;  %v1510_v18 = vsel %vm1447_vm0, %v1509_v10, %v1222_v58 }
  0xcd   : > { %v1519_v19 = vrot.slane %v1228_v8, 2  ;;  %v1521_v20 = vrot.slane %v1229_v9, 1  ;;  %v1792_v21 = vld [vmem:[%s12076_s19 + $0x291] sm:$0x1]  ;;  %v1793_v22 = vld [vmem:[%s12076_s19 + $0x2a1] sm:$0x1]  ;;  %v2074_v23 = vsel %vm1462_vm5, %v2073_v61, %v2072_v17  ;;  %v1512_v24 = vsel %vm1450_vm1, %v1511_v11, %v1510_v18 }
  0xce   : > { %v1794_v25 = vld [vmem:[%s12076_s19 + $0x2b1] sm:$0x1]  ;;  %v1795_v26 = vld [vmem:[%s12076_s19 + $0x2c1] sm:$0x1]  ;;  %v2076_v28 = vsel %vm1465_vm6, %v2075_v62, %v2074_v23  ;;  %v1514_v29 = vsel %vm1453_vm2, %v1513_v13, %v1512_v24  ;;  %v2077_v32 = vrot.slane %v1792_v21, 7  ;;  %v2079_v33 = vrot.slane %v1793_v22, 6 }
  0xcf   : > { %v1796_v27 = vld [vmem:[%s12076_s19 + $0x2d1] sm:$0x1]  ;;  %v1797_v30 = vld [vmem:[%s12076_s19 + $0x2e1] sm:$0x1]  ;;  %2251 = vxpose.xlu1.b32.cont [5/16] (narrow) %v2076_v28, 8  ;;  %v1516_v34 = vsel %vm1456_vm3, %v1515_v14, %v1514_v29  ;;  %v2081_v35 = vrot.slane %v1794_v25, 5 }
  0xd0   : > { %v1798_v31 = vld [vmem:[%s12076_s19 + $0x2f1] sm:$0x1]  ;;  %v2083_v36 = vrot.slane %v1795_v26, 4  ;;  %v2085_v37 = vrot.slane %v1796_v27, 3  ;;  %v1230_v38 = vld [vmem:[%s12076_s19 + $0x280] sm:$0x1]  ;;  %v1518_v39 = vsel %vm1459_vm4, %v1517_v15, %v1516_v34  ;;  %v2078_v40 = vsel %vm1447_vm0, %v2077_v32, %v1791_v16 }
  0xd1   : > { %v2087_v41 = vrot.slane %v1797_v30, 2  ;;  %v2089_v42 = vrot.slane %v1798_v31, 1  ;;  %v1231_v43 = vld [vmem:[%s12076_s19 + $0x290] sm:$0x1]  ;;  %v1232_v44 = vld [vmem:[%s12076_s19 + $0x2a0] sm:$0x1]  ;;  %v1520_v45 = vsel %vm1462_vm5, %v1519_v19, %v1518_v39  ;;  %v2080_v46 = vsel %vm1450_vm1, %v2079_v33, %v2078_v40 }
  0xd2   : > { %v1233_v47 = vld [vmem:[%s12076_s19 + $0x2b0] sm:$0x1]  ;;  %v1234_v48 = vld [vmem:[%s12076_s19 + $0x2c0] sm:$0x1]  ;;  %v1522_v50 = vsel %vm1465_vm6, %v1521_v20, %v1520_v45  ;;  %v2082_v51 = vsel %vm1453_vm2, %v2081_v35, %v2080_v46  ;;  %v1523_v54 = vrot.slane %v1231_v43, 7  ;;  %v1525_v55 = vrot.slane %v1232_v44, 6 }
  0xd3   : > { %v1235_v49 = vld [vmem:[%s12076_s19 + $0x2d0] sm:$0x1]  ;;  %v1236_v52 = vld [vmem:[%s12076_s19 + $0x2e0] sm:$0x1]  ;;  %1697 = vxpose.xlu0.b32.cont [5/16] (narrow) %v1522_v50, 8  ;;  %v2084_v56 = vsel %vm1456_vm3, %v2083_v36, %v2082_v51  ;;  %v1527_v57 = vrot.slane %v1233_v47, 5 }
  0xd4   : > { %v1237_v53 = vld [vmem:[%s12076_s19 + $0x2f0] sm:$0x1]  ;;  %v1529_v58 = vrot.slane %v1234_v48, 4  ;;  %v1531_v59 = vrot.slane %v1235_v49, 3  ;;  %v1799_v60 = vld [vmem:[%s12076_s19 + $0x301] sm:$0x1]  ;;  %v2086_v61 = vsel %vm1459_vm4, %v2085_v37, %v2084_v56  ;;  %v1524_v62 = vsel %vm1447_vm0, %v1523_v54, %v1230_v38 }
  0xd5   : > { %v1533_v63 = vrot.slane %v1236_v52, 2  ;;  %v1535_v0 = vrot.slane %v1237_v53, 1  ;;  %v1800_v1 = vld [vmem:[%s12076_s19 + $0x311] sm:$0x1]  ;;  %v1801_v2 = vld [vmem:[%s12076_s19 + $0x321] sm:$0x1]  ;;  %v2088_v3 = vsel %vm1462_vm5, %v2087_v41, %v2086_v61  ;;  %v1526_v4 = vsel %vm1450_vm1, %v1525_v55, %v1524_v62 }
  0xd6   : > { %v1802_v5 = vld [vmem:[%s12076_s19 + $0x331] sm:$0x1]  ;;  %v1803_v6 = vld [vmem:[%s12076_s19 + $0x341] sm:$0x1]  ;;  %v2090_v8 = vsel %vm1465_vm6, %v2089_v42, %v2088_v3  ;;  %v1528_v9 = vsel %vm1453_vm2, %v1527_v57, %v1526_v4  ;;  %v2091_v12 = vrot.slane %v1800_v1, 7  ;;  %v2093_v13 = vrot.slane %v1801_v2, 6 }
  0xd7   : > { %v1804_v7 = vld [vmem:[%s12076_s19 + $0x351] sm:$0x1]  ;;  %v1805_v10 = vld [vmem:[%s12076_s19 + $0x361] sm:$0x1]  ;;  %2252 = vxpose.xlu1.b32.cont [6/16] (narrow) %v2090_v8, 8  ;;  %v1530_v14 = vsel %vm1456_vm3, %v1529_v58, %v1528_v9  ;;  %v2095_v15 = vrot.slane %v1802_v5, 5 }
  0xd8   : > { %v1806_v11 = vld [vmem:[%s12076_s19 + $0x371] sm:$0x1]  ;;  %v2097_v16 = vrot.slane %v1803_v6, 4  ;;  %v2099_v17 = vrot.slane %v1804_v7, 3  ;;  %v1238_v18 = vld [vmem:[%s12076_s19 + $0x300] sm:$0x1]  ;;  %v1532_v19 = vsel %vm1459_vm4, %v1531_v59, %v1530_v14  ;;  %v2092_v20 = vsel %vm1447_vm0, %v2091_v12, %v1799_v60 }
  0xd9   : > { %v2101_v21 = vrot.slane %v1805_v10, 2  ;;  %v2103_v22 = vrot.slane %v1806_v11, 1  ;;  %v1239_v23 = vld [vmem:[%s12076_s19 + $0x310] sm:$0x1]  ;;  %v1240_v24 = vld [vmem:[%s12076_s19 + $0x320] sm:$0x1]  ;;  %v1534_v25 = vsel %vm1462_vm5, %v1533_v63, %v1532_v19  ;;  %v2094_v26 = vsel %vm1450_vm1, %v2093_v13, %v2092_v20 }
  0xda   : > { %v1241_v27 = vld [vmem:[%s12076_s19 + $0x330] sm:$0x1]  ;;  %v1242_v28 = vld [vmem:[%s12076_s19 + $0x340] sm:$0x1]  ;;  %v1536_v30 = vsel %vm1465_vm6, %v1535_v0, %v1534_v25  ;;  %v2096_v31 = vsel %vm1453_vm2, %v2095_v15, %v2094_v26  ;;  %v1537_v34 = vrot.slane %v1239_v23, 7  ;;  %v1539_v35 = vrot.slane %v1240_v24, 6 }
  0xdb   : > { %v1243_v29 = vld [vmem:[%s12076_s19 + $0x350] sm:$0x1]  ;;  %v1244_v32 = vld [vmem:[%s12076_s19 + $0x360] sm:$0x1]  ;;  %1698 = vxpose.xlu0.b32.cont [6/16] (narrow) %v1536_v30, 8  ;;  %v2098_v36 = vsel %vm1456_vm3, %v2097_v16, %v2096_v31  ;;  %v1541_v37 = vrot.slane %v1241_v27, 5 }
  0xdc   : > { %v1245_v33 = vld [vmem:[%s12076_s19 + $0x370] sm:$0x1]  ;;  %v1543_v38 = vrot.slane %v1242_v28, 4  ;;  %v1545_v39 = vrot.slane %v1243_v29, 3  ;;  %v1807_v40 = vld [vmem:[%s12076_s19 + $0x381] sm:$0x1]  ;;  %v2100_v41 = vsel %vm1459_vm4, %v2099_v17, %v2098_v36  ;;  %v1538_v42 = vsel %vm1447_vm0, %v1537_v34, %v1238_v18 }
  0xdd   : > { %v1547_v43 = vrot.slane %v1244_v32, 2  ;;  %v1549_v44 = vrot.slane %v1245_v33, 1  ;;  %v1808_v45 = vld [vmem:[%s12076_s19 + $0x391] sm:$0x1]  ;;  %v1809_v46 = vld [vmem:[%s12076_s19 + $0x3a1] sm:$0x1]  ;;  %v2102_v47 = vsel %vm1462_vm5, %v2101_v21, %v2100_v41  ;;  %v1540_v48 = vsel %vm1450_vm1, %v1539_v35, %v1538_v42 }
  0xde   : > { %v1810_v49 = vld [vmem:[%s12076_s19 + $0x3b1] sm:$0x1]  ;;  %v1811_v50 = vld [vmem:[%s12076_s19 + $0x3c1] sm:$0x1]  ;;  %v2104_v52 = vsel %vm1465_vm6, %v2103_v22, %v2102_v47  ;;  %v1542_v53 = vsel %vm1453_vm2, %v1541_v37, %v1540_v48  ;;  %v2105_v56 = vrot.slane %v1808_v45, 7  ;;  %v2107_v57 = vrot.slane %v1809_v46, 6 }
  0xdf   : > { %v1812_v51 = vld [vmem:[%s12076_s19 + $0x3d1] sm:$0x1]  ;;  %v1813_v54 = vld [vmem:[%s12076_s19 + $0x3e1] sm:$0x1]  ;;  %2253 = vxpose.xlu1.b32.cont [7/16] (narrow) %v2104_v52, 8  ;;  %v1544_v58 = vsel %vm1456_vm3, %v1543_v38, %v1542_v53  ;;  %v2109_v59 = vrot.slane %v1810_v49, 5 }
  0xe0   : > { %v1814_v55 = vld [vmem:[%s12076_s19 + $0x3f1] sm:$0x1]  ;;  %v2111_v60 = vrot.slane %v1811_v50, 4  ;;  %v2113_v61 = vrot.slane %v1812_v51, 3  ;;  %v1246_v62 = vld [vmem:[%s12076_s19 + $0x380] sm:$0x1]  ;;  %v1546_v63 = vsel %vm1459_vm4, %v1545_v39, %v1544_v58  ;;  %v2106_v0 = vsel %vm1447_vm0, %v2105_v56, %v1807_v40 }
  0xe1   : > { %v2115_v1 = vrot.slane %v1813_v54, 2  ;;  %v2117_v2 = vrot.slane %v1814_v55, 1  ;;  %v1247_v3 = vld [vmem:[%s12076_s19 + $0x390] sm:$0x1]  ;;  %v1248_v4 = vld [vmem:[%s12076_s19 + $0x3a0] sm:$0x1]  ;;  %v1548_v5 = vsel %vm1462_vm5, %v1547_v43, %v1546_v63  ;;  %v2108_v6 = vsel %vm1450_vm1, %v2107_v57, %v2106_v0 }
  0xe2   : > { %v1249_v7 = vld [vmem:[%s12076_s19 + $0x3b0] sm:$0x1]  ;;  %v1250_v8 = vld [vmem:[%s12076_s19 + $0x3c0] sm:$0x1]  ;;  %v1550_v10 = vsel %vm1465_vm6, %v1549_v44, %v1548_v5  ;;  %v2110_v11 = vsel %vm1453_vm2, %v2109_v59, %v2108_v6  ;;  %v1551_v14 = vrot.slane %v1247_v3, 7  ;;  %v1553_v15 = vrot.slane %v1248_v4, 6 }
  0xe3   : > { %v1251_v9 = vld [vmem:[%s12076_s19 + $0x3d0] sm:$0x1]  ;;  %v1252_v12 = vld [vmem:[%s12076_s19 + $0x3e0] sm:$0x1]  ;;  %1699 = vxpose.xlu0.b32.cont [7/16] (narrow) %v1550_v10, 8  ;;  %v2112_v16 = vsel %vm1456_vm3, %v2111_v60, %v2110_v11  ;;  %v1555_v17 = vrot.slane %v1249_v7, 5 }
  0xe4   : > { %v1253_v13 = vld [vmem:[%s12076_s19 + $0x3f0] sm:$0x1]  ;;  %v1557_v18 = vrot.slane %v1250_v8, 4  ;;  %v1559_v19 = vrot.slane %v1251_v9, 3  ;;  %v1815_v20 = vld [vmem:[%s12076_s19 + $0x401] sm:$0x1]  ;;  %v2114_v21 = vsel %vm1459_vm4, %v2113_v61, %v2112_v16  ;;  %v1552_v22 = vsel %vm1447_vm0, %v1551_v14, %v1246_v62 }
  0xe5   : > { %v1561_v23 = vrot.slane %v1252_v12, 2  ;;  %v1563_v24 = vrot.slane %v1253_v13, 1  ;;  %v1816_v25 = vld [vmem:[%s12076_s19 + $0x411] sm:$0x1]  ;;  %v1817_v26 = vld [vmem:[%s12076_s19 + $0x421] sm:$0x1]  ;;  %v2116_v27 = vsel %vm1462_vm5, %v2115_v1, %v2114_v21  ;;  %v1554_v28 = vsel %vm1450_vm1, %v1553_v15, %v1552_v22 }
  0xe6   : > { %v1818_v29 = vld [vmem:[%s12076_s19 + $0x431] sm:$0x1]  ;;  %v1819_v30 = vld [vmem:[%s12076_s19 + $0x441] sm:$0x1]  ;;  %v2118_v32 = vsel %vm1465_vm6, %v2117_v2, %v2116_v27  ;;  %v1556_v33 = vsel %vm1453_vm2, %v1555_v17, %v1554_v28  ;;  %v2119_v36 = vrot.slane %v1816_v25, 7  ;;  %v2121_v37 = vrot.slane %v1817_v26, 6 }
  0xe7   : > { %v1820_v31 = vld [vmem:[%s12076_s19 + $0x451] sm:$0x1]  ;;  %v1821_v34 = vld [vmem:[%s12076_s19 + $0x461] sm:$0x1]  ;;  %2254 = vxpose.xlu1.b32.cont [8/16] (narrow) %v2118_v32, 8  ;;  %v1558_v38 = vsel %vm1456_vm3, %v1557_v18, %v1556_v33  ;;  %v2123_v39 = vrot.slane %v1818_v29, 5 }
  0xe8   : > { %v1822_v35 = vld [vmem:[%s12076_s19 + $0x471] sm:$0x1]  ;;  %v2125_v40 = vrot.slane %v1819_v30, 4  ;;  %v2127_v41 = vrot.slane %v1820_v31, 3  ;;  %v1254_v42 = vld [vmem:[%s12076_s19 + $0x400] sm:$0x1]  ;;  %v1560_v43 = vsel %vm1459_vm4, %v1559_v19, %v1558_v38  ;;  %v2120_v44 = vsel %vm1447_vm0, %v2119_v36, %v1815_v20 }
  0xe9   : > { %v2129_v45 = vrot.slane %v1821_v34, 2  ;;  %v2131_v46 = vrot.slane %v1822_v35, 1  ;;  %v1255_v47 = vld [vmem:[%s12076_s19 + $0x410] sm:$0x1]  ;;  %v1256_v48 = vld [vmem:[%s12076_s19 + $0x420] sm:$0x1]  ;;  %v1562_v49 = vsel %vm1462_vm5, %v1561_v23, %v1560_v43  ;;  %v2122_v50 = vsel %vm1450_vm1, %v2121_v37, %v2120_v44 }
  0xea   : > { %v1257_v51 = vld [vmem:[%s12076_s19 + $0x430] sm:$0x1]  ;;  %v1258_v52 = vld [vmem:[%s12076_s19 + $0x440] sm:$0x1]  ;;  %v1564_v54 = vsel %vm1465_vm6, %v1563_v24, %v1562_v49  ;;  %v2124_v55 = vsel %vm1453_vm2, %v2123_v39, %v2122_v50  ;;  %v1565_v58 = vrot.slane %v1255_v47, 7  ;;  %v1567_v59 = vrot.slane %v1256_v48, 6 }
  0xeb   : > { %v1259_v53 = vld [vmem:[%s12076_s19 + $0x450] sm:$0x1]  ;;  %v1260_v56 = vld [vmem:[%s12076_s19 + $0x460] sm:$0x1]  ;;  %1700 = vxpose.xlu0.b32.cont [8/16] (narrow) %v1564_v54, 8  ;;  %v2126_v60 = vsel %vm1456_vm3, %v2125_v40, %v2124_v55  ;;  %v1569_v61 = vrot.slane %v1257_v51, 5 }
  0xec   : > { %v1261_v57 = vld [vmem:[%s12076_s19 + $0x470] sm:$0x1]  ;;  %v1571_v62 = vrot.slane %v1258_v52, 4  ;;  %v1573_v63 = vrot.slane %v1259_v53, 3  ;;  %v1823_v0 = vld [vmem:[%s12076_s19 + $0x481] sm:$0x1]  ;;  %v2128_v1 = vsel %vm1459_vm4, %v2127_v41, %v2126_v60  ;;  %v1566_v2 = vsel %vm1447_vm0, %v1565_v58, %v1254_v42 }
  0xed   : > { %v1575_v3 = vrot.slane %v1260_v56, 2  ;;  %v1577_v4 = vrot.slane %v1261_v57, 1  ;;  %v1824_v5 = vld [vmem:[%s12076_s19 + $0x491] sm:$0x1]  ;;  %v1825_v6 = vld [vmem:[%s12076_s19 + $0x4a1] sm:$0x1]  ;;  %v2130_v7 = vsel %vm1462_vm5, %v2129_v45, %v2128_v1  ;;  %v1568_v8 = vsel %vm1450_vm1, %v1567_v59, %v1566_v2 }
  0xee   : > { %v1826_v9 = vld [vmem:[%s12076_s19 + $0x4b1] sm:$0x1]  ;;  %v1827_v10 = vld [vmem:[%s12076_s19 + $0x4c1] sm:$0x1]  ;;  %v2132_v12 = vsel %vm1465_vm6, %v2131_v46, %v2130_v7  ;;  %v1570_v13 = vsel %vm1453_vm2, %v1569_v61, %v1568_v8  ;;  %v2133_v16 = vrot.slane %v1824_v5, 7  ;;  %v2135_v17 = vrot.slane %v1825_v6, 6 }
  0xef   : > { %v1828_v11 = vld [vmem:[%s12076_s19 + $0x4d1] sm:$0x1]  ;;  %v1829_v14 = vld [vmem:[%s12076_s19 + $0x4e1] sm:$0x1]  ;;  %2255 = vxpose.xlu1.b32.cont [9/16] (narrow) %v2132_v12, 8  ;;  %v1572_v18 = vsel %vm1456_vm3, %v1571_v62, %v1570_v13  ;;  %v2137_v19 = vrot.slane %v1826_v9, 5 }
  0xf0   : > { %v1830_v15 = vld [vmem:[%s12076_s19 + $0x4f1] sm:$0x1]  ;;  %v2139_v20 = vrot.slane %v1827_v10, 4  ;;  %v2141_v21 = vrot.slane %v1828_v11, 3  ;;  %v1262_v22 = vld [vmem:[%s12076_s19 + $0x480] sm:$0x1]  ;;  %v1574_v23 = vsel %vm1459_vm4, %v1573_v63, %v1572_v18  ;;  %v2134_v24 = vsel %vm1447_vm0, %v2133_v16, %v1823_v0 }
  0xf1   : > { %v2143_v25 = vrot.slane %v1829_v14, 2  ;;  %v2145_v26 = vrot.slane %v1830_v15, 1  ;;  %v1263_v27 = vld [vmem:[%s12076_s19 + $0x490] sm:$0x1]  ;;  %v1264_v28 = vld [vmem:[%s12076_s19 + $0x4a0] sm:$0x1]  ;;  %v1576_v29 = vsel %vm1462_vm5, %v1575_v3, %v1574_v23  ;;  %v2136_v30 = vsel %vm1450_vm1, %v2135_v17, %v2134_v24 }
  0xf2   : > { %v1265_v31 = vld [vmem:[%s12076_s19 + $0x4b0] sm:$0x1]  ;;  %v1266_v32 = vld [vmem:[%s12076_s19 + $0x4c0] sm:$0x1]  ;;  %v1578_v34 = vsel %vm1465_vm6, %v1577_v4, %v1576_v29  ;;  %v2138_v35 = vsel %vm1453_vm2, %v2137_v19, %v2136_v30  ;;  %v1579_v38 = vrot.slane %v1263_v27, 7  ;;  %v1581_v39 = vrot.slane %v1264_v28, 6 }
  0xf3   : > { %v1267_v33 = vld [vmem:[%s12076_s19 + $0x4d0] sm:$0x1]  ;;  %v1268_v36 = vld [vmem:[%s12076_s19 + $0x4e0] sm:$0x1]  ;;  %1701 = vxpose.xlu0.b32.cont [9/16] (narrow) %v1578_v34, 8  ;;  %v2140_v40 = vsel %vm1456_vm3, %v2139_v20, %v2138_v35  ;;  %v1583_v41 = vrot.slane %v1265_v31, 5 }
  0xf4   : > { %v1269_v37 = vld [vmem:[%s12076_s19 + $0x4f0] sm:$0x1]  ;;  %v1585_v42 = vrot.slane %v1266_v32, 4  ;;  %v1587_v43 = vrot.slane %v1267_v33, 3  ;;  %v1831_v44 = vld [vmem:[%s12076_s19 + $0x501] sm:$0x1]  ;;  %v2142_v45 = vsel %vm1459_vm4, %v2141_v21, %v2140_v40  ;;  %v1580_v46 = vsel %vm1447_vm0, %v1579_v38, %v1262_v22 }
  0xf5   : > { %v1589_v47 = vrot.slane %v1268_v36, 2  ;;  %v1591_v48 = vrot.slane %v1269_v37, 1  ;;  %v1832_v49 = vld [vmem:[%s12076_s19 + $0x511] sm:$0x1]  ;;  %v1833_v50 = vld [vmem:[%s12076_s19 + $0x521] sm:$0x1]  ;;  %v2144_v51 = vsel %vm1462_vm5, %v2143_v25, %v2142_v45  ;;  %v1582_v52 = vsel %vm1450_vm1, %v1581_v39, %v1580_v46 }
  0xf6   : > { %v1834_v53 = vld [vmem:[%s12076_s19 + $0x531] sm:$0x1]  ;;  %v1835_v54 = vld [vmem:[%s12076_s19 + $0x541] sm:$0x1]  ;;  %v2146_v56 = vsel %vm1465_vm6, %v2145_v26, %v2144_v51  ;;  %v1584_v57 = vsel %vm1453_vm2, %v1583_v41, %v1582_v52  ;;  %v2147_v60 = vrot.slane %v1832_v49, 7  ;;  %v2149_v61 = vrot.slane %v1833_v50, 6 }
  0xf7   : > { %v1836_v55 = vld [vmem:[%s12076_s19 + $0x551] sm:$0x1]  ;;  %v1837_v58 = vld [vmem:[%s12076_s19 + $0x561] sm:$0x1]  ;;  %2256 = vxpose.xlu1.b32.cont [10/16] (narrow) %v2146_v56, 8  ;;  %v1586_v62 = vsel %vm1456_vm3, %v1585_v42, %v1584_v57  ;;  %v2151_v63 = vrot.slane %v1834_v53, 5 }
  0xf8   : > { %v1838_v59 = vld [vmem:[%s12076_s19 + $0x571] sm:$0x1]  ;;  %v2153_v0 = vrot.slane %v1835_v54, 4  ;;  %v2155_v1 = vrot.slane %v1836_v55, 3  ;;  %v1270_v2 = vld [vmem:[%s12076_s19 + $0x500] sm:$0x1]  ;;  %v1588_v3 = vsel %vm1459_vm4, %v1587_v43, %v1586_v62  ;;  %v2148_v4 = vsel %vm1447_vm0, %v2147_v60, %v1831_v44 }
  0xf9   : > { %v2157_v5 = vrot.slane %v1837_v58, 2  ;;  %v2159_v6 = vrot.slane %v1838_v59, 1  ;;  %v1271_v7 = vld [vmem:[%s12076_s19 + $0x510] sm:$0x1]  ;;  %v1272_v8 = vld [vmem:[%s12076_s19 + $0x520] sm:$0x1]  ;;  %v1590_v9 = vsel %vm1462_vm5, %v1589_v47, %v1588_v3  ;;  %v2150_v10 = vsel %vm1450_vm1, %v2149_v61, %v2148_v4 }
  0xfa   : > { %v1273_v11 = vld [vmem:[%s12076_s19 + $0x530] sm:$0x1]  ;;  %v1274_v12 = vld [vmem:[%s12076_s19 + $0x540] sm:$0x1]  ;;  %v1592_v14 = vsel %vm1465_vm6, %v1591_v48, %v1590_v9  ;;  %v2152_v15 = vsel %vm1453_vm2, %v2151_v63, %v2150_v10  ;;  %v1593_v18 = vrot.slane %v1271_v7, 7  ;;  %v1595_v19 = vrot.slane %v1272_v8, 6 }
  0xfb   : > { %v1275_v13 = vld [vmem:[%s12076_s19 + $0x550] sm:$0x1]  ;;  %v1276_v16 = vld [vmem:[%s12076_s19 + $0x560] sm:$0x1]  ;;  %1702 = vxpose.xlu0.b32.cont [10/16] (narrow) %v1592_v14, 8  ;;  %v2154_v20 = vsel %vm1456_vm3, %v2153_v0, %v2152_v15  ;;  %v1597_v21 = vrot.slane %v1273_v11, 5 }
  0xfc   : > { %v1277_v17 = vld [vmem:[%s12076_s19 + $0x570] sm:$0x1]  ;;  %v1599_v22 = vrot.slane %v1274_v12, 4  ;;  %v1601_v23 = vrot.slane %v1275_v13, 3  ;;  %v1839_v24 = vld [vmem:[%s12076_s19 + $0x581] sm:$0x1]  ;;  %v2156_v25 = vsel %vm1459_vm4, %v2155_v1, %v2154_v20  ;;  %v1594_v26 = vsel %vm1447_vm0, %v1593_v18, %v1270_v2 }
  0xfd   : > { %v1603_v27 = vrot.slane %v1276_v16, 2  ;;  %v1605_v28 = vrot.slane %v1277_v17, 1  ;;  %v1840_v29 = vld [vmem:[%s12076_s19 + $0x591] sm:$0x1]  ;;  %v1841_v30 = vld [vmem:[%s12076_s19 + $0x5a1] sm:$0x1]  ;;  %v2158_v31 = vsel %vm1462_vm5, %v2157_v5, %v2156_v25  ;;  %v1596_v32 = vsel %vm1450_vm1, %v1595_v19, %v1594_v26 }
  0xfe   : > { %v1842_v33 = vld [vmem:[%s12076_s19 + $0x5b1] sm:$0x1]  ;;  %v1843_v34 = vld [vmem:[%s12076_s19 + $0x5c1] sm:$0x1]  ;;  %v2160_v36 = vsel %vm1465_vm6, %v2159_v6, %v2158_v31  ;;  %v1598_v37 = vsel %vm1453_vm2, %v1597_v21, %v1596_v32  ;;  %v2161_v40 = vrot.slane %v1840_v29, 7  ;;  %v2163_v41 = vrot.slane %v1841_v30, 6 }
  0xff   : > { %v1844_v35 = vld [vmem:[%s12076_s19 + $0x5d1] sm:$0x1]  ;;  %v1845_v38 = vld [vmem:[%s12076_s19 + $0x5e1] sm:$0x1]  ;;  %2257 = vxpose.xlu1.b32.cont [11/16] (narrow) %v2160_v36, 8  ;;  %v1600_v42 = vsel %vm1456_vm3, %v1599_v22, %v1598_v37  ;;  %v2165_v43 = vrot.slane %v1842_v33, 5 }
 0x100   : > { %v1846_v39 = vld [vmem:[%s12076_s19 + $0x5f1] sm:$0x1]  ;;  %v2167_v44 = vrot.slane %v1843_v34, 4  ;;  %v2169_v45 = vrot.slane %v1844_v35, 3  ;;  %v1278_v46 = vld [vmem:[%s12076_s19 + $0x580] sm:$0x1]  ;;  %v1602_v47 = vsel %vm1459_vm4, %v1601_v23, %v1600_v42  ;;  %v2162_v48 = vsel %vm1447_vm0, %v2161_v40, %v1839_v24 }
 0x101   : > { %v2171_v49 = vrot.slane %v1845_v38, 2  ;;  %v2173_v50 = vrot.slane %v1846_v39, 1  ;;  %v1279_v51 = vld [vmem:[%s12076_s19 + $0x590] sm:$0x1]  ;;  %v1280_v52 = vld [vmem:[%s12076_s19 + $0x5a0] sm:$0x1]  ;;  %v1604_v53 = vsel %vm1462_vm5, %v1603_v27, %v1602_v47  ;;  %v2164_v54 = vsel %vm1450_vm1, %v2163_v41, %v2162_v48 }
 0x102   : > { %v1281_v55 = vld [vmem:[%s12076_s19 + $0x5b0] sm:$0x1]  ;;  %v1282_v56 = vld [vmem:[%s12076_s19 + $0x5c0] sm:$0x1]  ;;  %v1606_v58 = vsel %vm1465_vm6, %v1605_v28, %v1604_v53  ;;  %v2166_v59 = vsel %vm1453_vm2, %v2165_v43, %v2164_v54  ;;  %v1607_v62 = vrot.slane %v1279_v51, 7  ;;  %v1609_v63 = vrot.slane %v1280_v52, 6 }
 0x103   : > { %v1283_v57 = vld [vmem:[%s12076_s19 + $0x5d0] sm:$0x1]  ;;  %v1284_v60 = vld [vmem:[%s12076_s19 + $0x5e0] sm:$0x1]  ;;  %1703 = vxpose.xlu0.b32.cont [11/16] (narrow) %v1606_v58, 8  ;;  %v2168_v0 = vsel %vm1456_vm3, %v2167_v44, %v2166_v59  ;;  %v1611_v1 = vrot.slane %v1281_v55, 5 }
 0x104   : > { %v1285_v61 = vld [vmem:[%s12076_s19 + $0x5f0] sm:$0x1]  ;;  %v1613_v2 = vrot.slane %v1282_v56, 4  ;;  %v1615_v3 = vrot.slane %v1283_v57, 3  ;;  %v1847_v4 = vld [vmem:[%s12076_s19 + $0x601] sm:$0x1]  ;;  %v2170_v5 = vsel %vm1459_vm4, %v2169_v45, %v2168_v0  ;;  %v1608_v6 = vsel %vm1447_vm0, %v1607_v62, %v1278_v46 }
 0x105   : > { %v1617_v7 = vrot.slane %v1284_v60, 2  ;;  %v1619_v8 = vrot.slane %v1285_v61, 1  ;;  %v1848_v9 = vld [vmem:[%s12076_s19 + $0x611] sm:$0x1]  ;;  %v1849_v10 = vld [vmem:[%s12076_s19 + $0x621] sm:$0x1]  ;;  %v2172_v11 = vsel %vm1462_vm5, %v2171_v49, %v2170_v5  ;;  %v1610_v12 = vsel %vm1450_vm1, %v1609_v63, %v1608_v6 }
 0x106   : > { %v1850_v13 = vld [vmem:[%s12076_s19 + $0x631] sm:$0x1]  ;;  %v1851_v14 = vld [vmem:[%s12076_s19 + $0x641] sm:$0x1]  ;;  %v2174_v16 = vsel %vm1465_vm6, %v2173_v50, %v2172_v11  ;;  %v1612_v17 = vsel %vm1453_vm2, %v1611_v1, %v1610_v12  ;;  %v2175_v20 = vrot.slane %v1848_v9, 7  ;;  %v2177_v21 = vrot.slane %v1849_v10, 6 }
 0x107   : > { %v1852_v15 = vld [vmem:[%s12076_s19 + $0x651] sm:$0x1]  ;;  %v1853_v18 = vld [vmem:[%s12076_s19 + $0x661] sm:$0x1]  ;;  %2258 = vxpose.xlu1.b32.cont [12/16] (narrow) %v2174_v16, 8  ;;  %v1614_v22 = vsel %vm1456_vm3, %v1613_v2, %v1612_v17  ;;  %v2179_v23 = vrot.slane %v1850_v13, 5 }
 0x108   : > { %v1854_v19 = vld [vmem:[%s12076_s19 + $0x671] sm:$0x1]  ;;  %v2181_v24 = vrot.slane %v1851_v14, 4  ;;  %v2183_v25 = vrot.slane %v1852_v15, 3  ;;  %v1286_v26 = vld [vmem:[%s12076_s19 + $0x600] sm:$0x1]  ;;  %v1616_v27 = vsel %vm1459_vm4, %v1615_v3, %v1614_v22  ;;  %v2176_v28 = vsel %vm1447_vm0, %v2175_v20, %v1847_v4 }
 0x109   : > { %v2185_v29 = vrot.slane %v1853_v18, 2  ;;  %v2187_v30 = vrot.slane %v1854_v19, 1  ;;  %v1287_v31 = vld [vmem:[%s12076_s19 + $0x610] sm:$0x1]  ;;  %v1288_v32 = vld [vmem:[%s12076_s19 + $0x620] sm:$0x1]  ;;  %v1618_v33 = vsel %vm1462_vm5, %v1617_v7, %v1616_v27  ;;  %v2178_v34 = vsel %vm1450_vm1, %v2177_v21, %v2176_v28 }
 0x10a   : > { %v1289_v35 = vld [vmem:[%s12076_s19 + $0x630] sm:$0x1]  ;;  %v1290_v36 = vld [vmem:[%s12076_s19 + $0x640] sm:$0x1]  ;;  %v1620_v38 = vsel %vm1465_vm6, %v1619_v8, %v1618_v33  ;;  %v2180_v39 = vsel %vm1453_vm2, %v2179_v23, %v2178_v34  ;;  %v1621_v42 = vrot.slane %v1287_v31, 7  ;;  %v1623_v43 = vrot.slane %v1288_v32, 6 }
 0x10b   : > { %v1291_v37 = vld [vmem:[%s12076_s19 + $0x650] sm:$0x1]  ;;  %v1292_v40 = vld [vmem:[%s12076_s19 + $0x660] sm:$0x1]  ;;  %1704 = vxpose.xlu0.b32.cont [12/16] (narrow) %v1620_v38, 8  ;;  %v2182_v44 = vsel %vm1456_vm3, %v2181_v24, %v2180_v39  ;;  %v1625_v45 = vrot.slane %v1289_v35, 5 }
 0x10c   : > { %v1293_v41 = vld [vmem:[%s12076_s19 + $0x670] sm:$0x1]  ;;  %v1627_v46 = vrot.slane %v1290_v36, 4  ;;  %v1629_v47 = vrot.slane %v1291_v37, 3  ;;  %v1855_v48 = vld [vmem:[%s12076_s19 + $0x681] sm:$0x1]  ;;  %v2184_v49 = vsel %vm1459_vm4, %v2183_v25, %v2182_v44  ;;  %v1622_v50 = vsel %vm1447_vm0, %v1621_v42, %v1286_v26 }
 0x10d   : > { %v1631_v51 = vrot.slane %v1292_v40, 2  ;;  %v1633_v52 = vrot.slane %v1293_v41, 1  ;;  %v1856_v53 = vld [vmem:[%s12076_s19 + $0x691] sm:$0x1]  ;;  %v1857_v54 = vld [vmem:[%s12076_s19 + $0x6a1] sm:$0x1]  ;;  %v2186_v55 = vsel %vm1462_vm5, %v2185_v29, %v2184_v49  ;;  %v1624_v56 = vsel %vm1450_vm1, %v1623_v43, %v1622_v50 }
 0x10e   : > { %v1858_v57 = vld [vmem:[%s12076_s19 + $0x6b1] sm:$0x1]  ;;  %v1859_v58 = vld [vmem:[%s12076_s19 + $0x6c1] sm:$0x1]  ;;  %v2188_v60 = vsel %vm1465_vm6, %v2187_v30, %v2186_v55  ;;  %v1626_v61 = vsel %vm1453_vm2, %v1625_v45, %v1624_v56  ;;  %v2189_v0 = vrot.slane %v1856_v53, 7  ;;  %v2191_v1 = vrot.slane %v1857_v54, 6 }
 0x10f   : > { %v1860_v59 = vld [vmem:[%s12076_s19 + $0x6d1] sm:$0x1]  ;;  %v1861_v62 = vld [vmem:[%s12076_s19 + $0x6e1] sm:$0x1]  ;;  %2259 = vxpose.xlu1.b32.cont [13/16] (narrow) %v2188_v60, 8  ;;  %v1628_v2 = vsel %vm1456_vm3, %v1627_v46, %v1626_v61  ;;  %v2193_v3 = vrot.slane %v1858_v57, 5 }
 0x110   : > { %v1862_v63 = vld [vmem:[%s12076_s19 + $0x6f1] sm:$0x1]  ;;  %v2195_v4 = vrot.slane %v1859_v58, 4  ;;  %v2197_v5 = vrot.slane %v1860_v59, 3  ;;  %v1294_v6 = vld [vmem:[%s12076_s19 + $0x680] sm:$0x1]  ;;  %v1630_v7 = vsel %vm1459_vm4, %v1629_v47, %v1628_v2  ;;  %v2190_v8 = vsel %vm1447_vm0, %v2189_v0, %v1855_v48 }
 0x111   : > { %v2199_v9 = vrot.slane %v1861_v62, 2  ;;  %v2201_v10 = vrot.slane %v1862_v63, 1  ;;  %v1295_v11 = vld [vmem:[%s12076_s19 + $0x690] sm:$0x1]  ;;  %v1296_v12 = vld [vmem:[%s12076_s19 + $0x6a0] sm:$0x1]  ;;  %v1632_v13 = vsel %vm1462_vm5, %v1631_v51, %v1630_v7  ;;  %v2192_v14 = vsel %vm1450_vm1, %v2191_v1, %v2190_v8 }
 0x112   : > { %v1297_v15 = vld [vmem:[%s12076_s19 + $0x6b0] sm:$0x1]  ;;  %v1298_v16 = vld [vmem:[%s12076_s19 + $0x6c0] sm:$0x1]  ;;  %v1634_v18 = vsel %vm1465_vm6, %v1633_v52, %v1632_v13  ;;  %v2194_v19 = vsel %vm1453_vm2, %v2193_v3, %v2192_v14  ;;  %v1635_v22 = vrot.slane %v1295_v11, 7  ;;  %v1637_v23 = vrot.slane %v1296_v12, 6 }
 0x113   : > { %v1299_v17 = vld [vmem:[%s12076_s19 + $0x6d0] sm:$0x1]  ;;  %v1300_v20 = vld [vmem:[%s12076_s19 + $0x6e0] sm:$0x1]  ;;  %1705 = vxpose.xlu0.b32.cont [13/16] (narrow) %v1634_v18, 8  ;;  %v2196_v24 = vsel %vm1456_vm3, %v2195_v4, %v2194_v19  ;;  %v1639_v25 = vrot.slane %v1297_v15, 5 }
 0x114   : > { %v1301_v21 = vld [vmem:[%s12076_s19 + $0x6f0] sm:$0x1]  ;;  %v1641_v26 = vrot.slane %v1298_v16, 4  ;;  %v1643_v27 = vrot.slane %v1299_v17, 3  ;;  %v1863_v28 = vld [vmem:[%s12076_s19 + $0x701] sm:$0x1]  ;;  %v2198_v29 = vsel %vm1459_vm4, %v2197_v5, %v2196_v24  ;;  %v1636_v30 = vsel %vm1447_vm0, %v1635_v22, %v1294_v6 }
 0x115   : > { %v1645_v31 = vrot.slane %v1300_v20, 2  ;;  %v1647_v32 = vrot.slane %v1301_v21, 1  ;;  %v1864_v33 = vld [vmem:[%s12076_s19 + $0x711] sm:$0x1]  ;;  %v1865_v34 = vld [vmem:[%s12076_s19 + $0x721] sm:$0x1]  ;;  %v2200_v35 = vsel %vm1462_vm5, %v2199_v9, %v2198_v29  ;;  %v1638_v36 = vsel %vm1450_vm1, %v1637_v23, %v1636_v30 }
 0x116   : > { %v1866_v37 = vld [vmem:[%s12076_s19 + $0x731] sm:$0x1]  ;;  %v1867_v38 = vld [vmem:[%s12076_s19 + $0x741] sm:$0x1]  ;;  %v2202_v40 = vsel %vm1465_vm6, %v2201_v10, %v2200_v35  ;;  %v1640_v41 = vsel %vm1453_vm2, %v1639_v25, %v1638_v36  ;;  %v2203_v44 = vrot.slane %v1864_v33, 7  ;;  %v2205_v45 = vrot.slane %v1865_v34, 6 }
 0x117   : > { %v1868_v39 = vld [vmem:[%s12076_s19 + $0x751] sm:$0x1]  ;;  %v1869_v42 = vld [vmem:[%s12076_s19 + $0x761] sm:$0x1]  ;;  %2260 = vxpose.xlu1.b32.cont [14/16] (narrow) %v2202_v40, 8  ;;  %v1642_v46 = vsel %vm1456_vm3, %v1641_v26, %v1640_v41  ;;  %v2207_v47 = vrot.slane %v1866_v37, 5 }
 0x118   : > { %v1870_v43 = vld [vmem:[%s12076_s19 + $0x771] sm:$0x1]  ;;  %v2209_v48 = vrot.slane %v1867_v38, 4  ;;  %v2211_v49 = vrot.slane %v1868_v39, 3  ;;  %v1302_v50 = vld [vmem:[%s12076_s19 + $0x700] sm:$0x1]  ;;  %v1644_v51 = vsel %vm1459_vm4, %v1643_v27, %v1642_v46  ;;  %v2204_v52 = vsel %vm1447_vm0, %v2203_v44, %v1863_v28 }
 0x119   : > { %v2213_v53 = vrot.slane %v1869_v42, 2  ;;  %v2215_v54 = vrot.slane %v1870_v43, 1  ;;  %v1303_v55 = vld [vmem:[%s12076_s19 + $0x710] sm:$0x1]  ;;  %v1304_v56 = vld [vmem:[%s12076_s19 + $0x720] sm:$0x1]  ;;  %v1646_v57 = vsel %vm1462_vm5, %v1645_v31, %v1644_v51  ;;  %v2206_v58 = vsel %vm1450_vm1, %v2205_v45, %v2204_v52 }
 0x11a   : > { %v1305_v59 = vld [vmem:[%s12076_s19 + $0x730] sm:$0x1]  ;;  %v1306_v60 = vld [vmem:[%s12076_s19 + $0x740] sm:$0x1]  ;;  %v1648_v62 = vsel %vm1465_vm6, %v1647_v32, %v1646_v57  ;;  %v2208_v63 = vsel %vm1453_vm2, %v2207_v47, %v2206_v58  ;;  %v1649_v2 = vrot.slane %v1303_v55, 7  ;;  %v1651_v3 = vrot.slane %v1304_v56, 6 }
 0x11b   : > { %v1307_v61 = vld [vmem:[%s12076_s19 + $0x750] sm:$0x1]  ;;  %v1308_v0 = vld [vmem:[%s12076_s19 + $0x760] sm:$0x1]  ;;  %1706 = vxpose.xlu0.b32.cont [14/16] (narrow) %v1648_v62, 8  ;;  %v2210_v4 = vsel %vm1456_vm3, %v2209_v48, %v2208_v63  ;;  %v1653_v5 = vrot.slane %v1305_v59, 5 }
 0x11c   : > { %v1309_v1 = vld [vmem:[%s12076_s19 + $0x770] sm:$0x1]  ;;  %v1655_v6 = vrot.slane %v1306_v60, 4  ;;  %v1657_v7 = vrot.slane %v1307_v61, 3  ;;  %v1871_v8 = vld [vmem:[%s12076_s19 + $0x781] sm:$0x1]  ;;  %v2212_v9 = vsel %vm1459_vm4, %v2211_v49, %v2210_v4  ;;  %v1650_v10 = vsel %vm1447_vm0, %v1649_v2, %v1302_v50 }
 0x11d   : > { %v1659_v11 = vrot.slane %v1308_v0, 2  ;;  %v1661_v12 = vrot.slane %v1309_v1, 1  ;;  %v1872_v13 = vld [vmem:[%s12076_s19 + $0x791] sm:$0x1]  ;;  %v1873_v14 = vld [vmem:[%s12076_s19 + $0x7a1] sm:$0x1]  ;;  %v2214_v15 = vsel %vm1462_vm5, %v2213_v53, %v2212_v9  ;;  %v1652_v16 = vsel %vm1450_vm1, %v1651_v3, %v1650_v10 }
 0x11e   : > { %v1874_v17 = vld [vmem:[%s12076_s19 + $0x7b1] sm:$0x1]  ;;  %v1875_v18 = vld [vmem:[%s12076_s19 + $0x7c1] sm:$0x1]  ;;  %v2216_v20 = vsel %vm1465_vm6, %v2215_v54, %v2214_v15  ;;  %v1654_v21 = vsel %vm1453_vm2, %v1653_v5, %v1652_v16  ;;  %v2217_v24 = vrot.slane %v1872_v13, 7  ;;  %v2219_v25 = vrot.slane %v1873_v14, 6 }
 0x11f   : > { %v1876_v19 = vld [vmem:[%s12076_s19 + $0x7d1] sm:$0x1]  ;;  %v1877_v22 = vld [vmem:[%s12076_s19 + $0x7e1] sm:$0x1]  ;;  %2261 = vxpose.xlu1.b32.cont [15/16] (narrow) %v2216_v20, 8  ;;  %v1656_v26 = vsel %vm1456_vm3, %v1655_v6, %v1654_v21  ;;  %v2221_v27 = vrot.slane %v1874_v17, 5 }
 0x120   : > { %v1878_v23 = vld [vmem:[%s12076_s19 + $0x7f1] sm:$0x1]  ;;  %v2223_v28 = vrot.slane %v1875_v18, 4  ;;  %v2225_v29 = vrot.slane %v1876_v19, 3  ;;  %v1310_v30 = vld [vmem:[%s12076_s19 + $0x780] sm:$0x1]  ;;  %v1658_v31 = vsel %vm1459_vm4, %v1657_v7, %v1656_v26  ;;  %v2218_v32 = vsel %vm1447_vm0, %v2217_v24, %v1871_v8 }
 0x121   : > { %v2227_v33 = vrot.slane %v1877_v22, 2  ;;  %v2229_v34 = vrot.slane %v1878_v23, 1  ;;  %v1311_v35 = vld [vmem:[%s12076_s19 + $0x790] sm:$0x1]  ;;  %v1312_v36 = vld [vmem:[%s12076_s19 + $0x7a0] sm:$0x1]  ;;  %v1660_v37 = vsel %vm1462_vm5, %v1659_v11, %v1658_v31  ;;  %v2220_v38 = vsel %vm1450_vm1, %v2219_v25, %v2218_v32 }
 0x122   : > { %v1313_v39 = vld [vmem:[%s12076_s19 + $0x7b0] sm:$0x1]  ;;  %v1314_v40 = vld [vmem:[%s12076_s19 + $0x7c0] sm:$0x1]  ;;  %v1662_v42 = vsel %vm1465_vm6, %v1661_v12, %v1660_v37  ;;  %v2222_v43 = vsel %vm1453_vm2, %v2221_v27, %v2220_v38  ;;  %v1663_v46 = vrot.slane %v1311_v35, 7  ;;  %v1665_v47 = vrot.slane %v1312_v36, 6 }
 0x123   : > { %v1315_v41 = vld [vmem:[%s12076_s19 + $0x7d0] sm:$0x1]  ;;  %v1316_v44 = vld [vmem:[%s12076_s19 + $0x7e0] sm:$0x1]  ;;  %1707 = vxpose.xlu0.b32.cont [15/16] (narrow) %v1662_v42, 8  ;;  %v2224_v48 = vsel %vm1456_vm3, %v2223_v28, %v2222_v43  ;;  %v1667_v49 = vrot.slane %v1313_v39, 5 }
 0x124   : > { %v1317_v45 = vld [vmem:[%s12076_s19 + $0x7f0] sm:$0x1]  ;;  %v1669_v50 = vrot.slane %v1314_v40, 4  ;;  %v1671_v51 = vrot.slane %v1315_v41, 3  ;;  %v10311_v52 = vld [vmem:[%s12076_s19 + $0x9] sm:$0x1]  ;;  %v2226_v53 = vsel %vm1459_vm4, %v2225_v29, %v2224_v48  ;;  %v1664_v54 = vsel %vm1447_vm0, %v1663_v46, %v1310_v30 }
 0x125   : > { %v1673_v55 = vrot.slane %v1316_v44, 2  ;;  %v1675_v56 = vrot.slane %v1317_v45, 1  ;;  %v10312_v57 = vld [vmem:[%s12076_s19 + $0x19] sm:$0x1]  ;;  %v10313_v58 = vld [vmem:[%s12076_s19 + $0x29] sm:$0x1]  ;;  %v2228_v59 = vsel %vm1462_vm5, %v2227_v33, %v2226_v53  ;;  %v1666_v60 = vsel %vm1450_vm1, %v1665_v47, %v1664_v54 }
 0x126   : > { %v10314_v61 = vld [vmem:[%s12076_s19 + $0x39] sm:$0x1]  ;;  %v10315_v62 = vld [vmem:[%s12076_s19 + $0x49] sm:$0x1]  ;;  %v2230_v0 = vsel %vm1465_vm6, %v2229_v34, %v2228_v59  ;;  %v1668_v1 = vsel %vm1453_vm2, %v1667_v49, %v1666_v60  ;;  %v3116_v4 = vrot.slane %v10312_v57, 7  ;;  %v3118_v5 = vrot.slane %v10313_v58, 6 }
 0x127   : > { %v10316_v63 = vld [vmem:[%s12076_s19 + $0x59] sm:$0x1]  ;;  %v10317_v2 = vld [vmem:[%s12076_s19 + $0x69] sm:$0x1]  ;;  %2262 = vxpose.xlu1.b32.end [16/16] (narrow) %v2230_v0, 8  ;;  %v1670_v6 = vsel %vm1456_vm3, %v1669_v50, %v1668_v1  ;;  %v3120_v7 = vrot.slane %v10314_v61, 5 }
 0x128   : > { %v10318_v3 = vld [vmem:[%s12076_s19 + $0x79] sm:$0x1]  ;;  %v3122_v8 = vrot.slane %v10315_v62, 4  ;;  %v3124_v9 = vrot.slane %v10316_v63, 3  ;;  %v10181_v10 = vld [vmem:[%s12076_s19 + $0x8] sm:$0x1]  ;;  %v1672_v11 = vsel %vm1459_vm4, %v1671_v51, %v1670_v6  ;;  %v3117_v12 = vsel %vm1447_vm0, %v3116_v4, %v10311_v52 }
 0x129   : > { %v3126_v13 = vrot.slane %v10317_v2, 2  ;;  %v3128_v14 = vrot.slane %v10318_v3, 1  ;;  %v10182_v15 = vld [vmem:[%s12076_s19 + $0x18] sm:$0x1]  ;;  %v10183_v16 = vld [vmem:[%s12076_s19 + $0x28] sm:$0x1]  ;;  %v1674_v17 = vsel %vm1462_vm5, %v1673_v55, %v1672_v11  ;;  %v3119_v18 = vsel %vm1450_vm1, %v3118_v5, %v3117_v12 }
 0x12a   : > { %v10184_v19 = vld [vmem:[%s12076_s19 + $0x38] sm:$0x1]  ;;  %v10185_v20 = vld [vmem:[%s12076_s19 + $0x48] sm:$0x1]  ;;  %v1676_v22 = vsel %vm1465_vm6, %v1675_v56, %v1674_v17  ;;  %v3121_v23 = vsel %vm1453_vm2, %v3120_v7, %v3119_v18  ;;  %v2562_v26 = vrot.slane %v10182_v15, 7  ;;  %v2564_v27 = vrot.slane %v10183_v16, 6 }
 0x12b   : > { %v10186_v21 = vld [vmem:[%s12076_s19 + $0x58] sm:$0x1]  ;;  %v10187_v24 = vld [vmem:[%s12076_s19 + $0x68] sm:$0x1]  ;;  %1708 = vxpose.xlu0.b32.end [16/16] (narrow) %v1676_v22, 8  ;;  %v3123_v28 = vsel %vm1456_vm3, %v3122_v8, %v3121_v23  ;;  %v2566_v29 = vrot.slane %v10184_v19, 5 }
 0x12c   : > { %v10188_v25 = vld [vmem:[%s12076_s19 + $0x78] sm:$0x1]  ;;  %v2568_v30 = vrot.slane %v10185_v20, 4  ;;  %v2570_v31 = vrot.slane %v10186_v21, 3  ;;  %v10319_v32 = vld [vmem:[%s12076_s19 + $0x89] sm:$0x1]  ;;  %v3125_v33 = vsel %vm1459_vm4, %v3124_v9, %v3123_v28  ;;  %v2563_v34 = vsel %vm1447_vm0, %v2562_v26, %v10181_v10 }
 0x12d   : > { %v2572_v35 = vrot.slane %v10187_v24, 2  ;;  %v2574_v36 = vrot.slane %v10188_v25, 1  ;;  %v10320_v37 = vld [vmem:[%s12076_s19 + $0x99] sm:$0x1]  ;;  %v10321_v38 = vld [vmem:[%s12076_s19 + $0xa9] sm:$0x1]  ;;  %v3127_v39 = vsel %vm1462_vm5, %v3126_v13, %v3125_v33  ;;  %v2565_v40 = vsel %vm1450_vm1, %v2564_v27, %v2563_v34 }
 0x12e   : > { %v10322_v41 = vld [vmem:[%s12076_s19 + $0xb9] sm:$0x1]  ;;  %v10323_v42 = vld [vmem:[%s12076_s19 + $0xc9] sm:$0x1]  ;;  %v3129_v44 = vsel %vm1465_vm6, %v3128_v14, %v3127_v39  ;;  %v2567_v45 = vsel %vm1453_vm2, %v2566_v29, %v2565_v40  ;;  %v3130_v48 = vrot.slane %v10320_v37, 7  ;;  %v3132_v49 = vrot.slane %v10321_v38, 6 }
 0x12f   : > { %v10324_v43 = vld [vmem:[%s12076_s19 + $0xd9] sm:$0x1]  ;;  %v10325_v46 = vld [vmem:[%s12076_s19 + $0xe9] sm:$0x1]  ;;  %3356 = vxpose.xlu1.b32.start [1/16] (narrow) %v3129_v44, 8  ;;  %v2569_v50 = vsel %vm1456_vm3, %v2568_v30, %v2567_v45  ;;  %v3134_v51 = vrot.slane %v10322_v41, 5 }
 0x130   : > { %v10326_v47 = vld [vmem:[%s12076_s19 + $0xf9] sm:$0x1]  ;;  %v3136_v52 = vrot.slane %v10323_v42, 4  ;;  %v3138_v53 = vrot.slane %v10324_v43, 3  ;;  %v10189_v54 = vld [vmem:[%s12076_s19 + $0x88] sm:$0x1]  ;;  %v2571_v55 = vsel %vm1459_vm4, %v2570_v31, %v2569_v50  ;;  %v3131_v56 = vsel %vm1447_vm0, %v3130_v48, %v10319_v32 }
 0x131   : > { %v3140_v57 = vrot.slane %v10325_v46, 2  ;;  %v3142_v58 = vrot.slane %v10326_v47, 1  ;;  %v10190_v59 = vld [vmem:[%s12076_s19 + $0x98] sm:$0x1]  ;;  %v10191_v60 = vld [vmem:[%s12076_s19 + $0xa8] sm:$0x1]  ;;  %v2573_v61 = vsel %vm1462_vm5, %v2572_v35, %v2571_v55  ;;  %v3133_v62 = vsel %vm1450_vm1, %v3132_v49, %v3131_v56 }
 0x132   : > { %v10192_v63 = vld [vmem:[%s12076_s19 + $0xb8] sm:$0x1]  ;;  %v10193_v0 = vld [vmem:[%s12076_s19 + $0xc8] sm:$0x1]  ;;  %v2575_v2 = vsel %vm1465_vm6, %v2574_v36, %v2573_v61  ;;  %v3135_v3 = vsel %vm1453_vm2, %v3134_v51, %v3133_v62  ;;  %v2576_v6 = vrot.slane %v10190_v59, 7  ;;  %v2578_v7 = vrot.slane %v10191_v60, 6 }
 0x133   : > { %v10194_v1 = vld [vmem:[%s12076_s19 + $0xd8] sm:$0x1]  ;;  %v10195_v4 = vld [vmem:[%s12076_s19 + $0xe8] sm:$0x1]  ;;  %2802 = vxpose.xlu0.b32.start [1/16] (narrow) %v2575_v2, 8  ;;  %v3137_v8 = vsel %vm1456_vm3, %v3136_v52, %v3135_v3  ;;  %v2580_v9 = vrot.slane %v10192_v63, 5 }
 0x134   : > { %v10196_v5 = vld [vmem:[%s12076_s19 + $0xf8] sm:$0x1]  ;;  %v2582_v10 = vrot.slane %v10193_v0, 4  ;;  %v2584_v11 = vrot.slane %v10194_v1, 3  ;;  %v10327_v12 = vld [vmem:[%s12076_s19 + $0x109] sm:$0x1]  ;;  %v3139_v13 = vsel %vm1459_vm4, %v3138_v53, %v3137_v8  ;;  %v2577_v14 = vsel %vm1447_vm0, %v2576_v6, %v10189_v54 }
 0x135   : > { %v2586_v15 = vrot.slane %v10195_v4, 2  ;;  %v2588_v16 = vrot.slane %v10196_v5, 1  ;;  %v10328_v17 = vld [vmem:[%s12076_s19 + $0x119] sm:$0x1]  ;;  %v10329_v18 = vld [vmem:[%s12076_s19 + $0x129] sm:$0x1]  ;;  %v3141_v19 = vsel %vm1462_vm5, %v3140_v57, %v3139_v13  ;;  %v2579_v20 = vsel %vm1450_vm1, %v2578_v7, %v2577_v14 }
 0x136   : > { %v10330_v21 = vld [vmem:[%s12076_s19 + $0x139] sm:$0x1]  ;;  %v10331_v22 = vld [vmem:[%s12076_s19 + $0x149] sm:$0x1]  ;;  %v3143_v24 = vsel %vm1465_vm6, %v3142_v58, %v3141_v19  ;;  %v2581_v25 = vsel %vm1453_vm2, %v2580_v9, %v2579_v20  ;;  %v3144_v28 = vrot.slane %v10328_v17, 7  ;;  %v3146_v29 = vrot.slane %v10329_v18, 6 }
 0x137   : > { %v10332_v23 = vld [vmem:[%s12076_s19 + $0x159] sm:$0x1]  ;;  %v10333_v26 = vld [vmem:[%s12076_s19 + $0x169] sm:$0x1]  ;;  %3357 = vxpose.xlu1.b32.cont [2/16] (narrow) %v3143_v24, 8  ;;  %v2583_v30 = vsel %vm1456_vm3, %v2582_v10, %v2581_v25  ;;  %v3148_v31 = vrot.slane %v10330_v21, 5 }
 0x138   : > { %v10334_v27 = vld [vmem:[%s12076_s19 + $0x179] sm:$0x1]  ;;  %v3150_v32 = vrot.slane %v10331_v22, 4  ;;  %v3152_v33 = vrot.slane %v10332_v23, 3  ;;  %v10197_v34 = vld [vmem:[%s12076_s19 + $0x108] sm:$0x1]  ;;  %v2585_v35 = vsel %vm1459_vm4, %v2584_v11, %v2583_v30  ;;  %v3145_v36 = vsel %vm1447_vm0, %v3144_v28, %v10327_v12 }
 0x139   : > { %v3154_v37 = vrot.slane %v10333_v26, 2  ;;  %v3156_v38 = vrot.slane %v10334_v27, 1  ;;  %v10198_v39 = vld [vmem:[%s12076_s19 + $0x118] sm:$0x1]  ;;  %v10199_v40 = vld [vmem:[%s12076_s19 + $0x128] sm:$0x1]  ;;  %v2587_v41 = vsel %vm1462_vm5, %v2586_v15, %v2585_v35  ;;  %v3147_v42 = vsel %vm1450_vm1, %v3146_v29, %v3145_v36 }
 0x13a   : > { %v10200_v43 = vld [vmem:[%s12076_s19 + $0x138] sm:$0x1]  ;;  %v10201_v44 = vld [vmem:[%s12076_s19 + $0x148] sm:$0x1]  ;;  %v2589_v46 = vsel %vm1465_vm6, %v2588_v16, %v2587_v41  ;;  %v3149_v47 = vsel %vm1453_vm2, %v3148_v31, %v3147_v42  ;;  %v2590_v50 = vrot.slane %v10198_v39, 7  ;;  %v2592_v51 = vrot.slane %v10199_v40, 6 }
 0x13b   : > { %v10202_v45 = vld [vmem:[%s12076_s19 + $0x158] sm:$0x1]  ;;  %v10203_v48 = vld [vmem:[%s12076_s19 + $0x168] sm:$0x1]  ;;  %2803 = vxpose.xlu0.b32.cont [2/16] (narrow) %v2589_v46, 8  ;;  %v3151_v52 = vsel %vm1456_vm3, %v3150_v32, %v3149_v47  ;;  %v2594_v53 = vrot.slane %v10200_v43, 5 }
 0x13c   : > { %v10204_v49 = vld [vmem:[%s12076_s19 + $0x178] sm:$0x1]  ;;  %v2596_v54 = vrot.slane %v10201_v44, 4  ;;  %v2598_v55 = vrot.slane %v10202_v45, 3  ;;  %v10335_v56 = vld [vmem:[%s12076_s19 + $0x189] sm:$0x1]  ;;  %v3153_v57 = vsel %vm1459_vm4, %v3152_v33, %v3151_v52  ;;  %v2591_v58 = vsel %vm1447_vm0, %v2590_v50, %v10197_v34 }
 0x13d   : > { %v2600_v59 = vrot.slane %v10203_v48, 2  ;;  %v2602_v60 = vrot.slane %v10204_v49, 1  ;;  %v10336_v61 = vld [vmem:[%s12076_s19 + $0x199] sm:$0x1]  ;;  %v10337_v62 = vld [vmem:[%s12076_s19 + $0x1a9] sm:$0x1]  ;;  %v3155_v63 = vsel %vm1462_vm5, %v3154_v37, %v3153_v57  ;;  %v2593_v0 = vsel %vm1450_vm1, %v2592_v51, %v2591_v58 }
 0x13e   : > { %v10338_v1 = vld [vmem:[%s12076_s19 + $0x1b9] sm:$0x1]  ;;  %v10339_v2 = vld [vmem:[%s12076_s19 + $0x1c9] sm:$0x1]  ;;  %v3157_v4 = vsel %vm1465_vm6, %v3156_v38, %v3155_v63  ;;  %v2595_v5 = vsel %vm1453_vm2, %v2594_v53, %v2593_v0  ;;  %v3158_v8 = vrot.slane %v10336_v61, 7  ;;  %v3160_v9 = vrot.slane %v10337_v62, 6 }
 0x13f   : > { %v10340_v3 = vld [vmem:[%s12076_s19 + $0x1d9] sm:$0x1]  ;;  %v10341_v6 = vld [vmem:[%s12076_s19 + $0x1e9] sm:$0x1]  ;;  %3358 = vxpose.xlu1.b32.cont [3/16] (narrow) %v3157_v4, 8  ;;  %v2597_v10 = vsel %vm1456_vm3, %v2596_v54, %v2595_v5  ;;  %v3162_v11 = vrot.slane %v10338_v1, 5 }
 0x140   : > { %v10342_v7 = vld [vmem:[%s12076_s19 + $0x1f9] sm:$0x1]  ;;  %v3164_v12 = vrot.slane %v10339_v2, 4  ;;  %v3166_v13 = vrot.slane %v10340_v3, 3  ;;  %v10205_v14 = vld [vmem:[%s12076_s19 + $0x188] sm:$0x1]  ;;  %v2599_v15 = vsel %vm1459_vm4, %v2598_v55, %v2597_v10  ;;  %v3159_v16 = vsel %vm1447_vm0, %v3158_v8, %v10335_v56 }
 0x141   : > { %v3168_v17 = vrot.slane %v10341_v6, 2  ;;  %v3170_v18 = vrot.slane %v10342_v7, 1  ;;  %v10206_v19 = vld [vmem:[%s12076_s19 + $0x198] sm:$0x1]  ;;  %v10207_v20 = vld [vmem:[%s12076_s19 + $0x1a8] sm:$0x1]  ;;  %v2601_v21 = vsel %vm1462_vm5, %v2600_v59, %v2599_v15  ;;  %v3161_v22 = vsel %vm1450_vm1, %v3160_v9, %v3159_v16 }
 0x142   : > { %v10208_v23 = vld [vmem:[%s12076_s19 + $0x1b8] sm:$0x1]  ;;  %v10209_v24 = vld [vmem:[%s12076_s19 + $0x1c8] sm:$0x1]  ;;  %v2603_v26 = vsel %vm1465_vm6, %v2602_v60, %v2601_v21  ;;  %v3163_v27 = vsel %vm1453_vm2, %v3162_v11, %v3161_v22  ;;  %v2604_v30 = vrot.slane %v10206_v19, 7  ;;  %v2606_v31 = vrot.slane %v10207_v20, 6 }
 0x143   : > { %v10210_v25 = vld [vmem:[%s12076_s19 + $0x1d8] sm:$0x1]  ;;  %v10211_v28 = vld [vmem:[%s12076_s19 + $0x1e8] sm:$0x1]  ;;  %2804 = vxpose.xlu0.b32.cont [3/16] (narrow) %v2603_v26, 8  ;;  %v3165_v32 = vsel %vm1456_vm3, %v3164_v12, %v3163_v27  ;;  %v2608_v33 = vrot.slane %v10208_v23, 5 }
 0x144   : > { %v10212_v29 = vld [vmem:[%s12076_s19 + $0x1f8] sm:$0x1]  ;;  %v2610_v34 = vrot.slane %v10209_v24, 4  ;;  %v2612_v35 = vrot.slane %v10210_v25, 3  ;;  %v10343_v36 = vld [vmem:[%s12076_s19 + $0x209] sm:$0x1]  ;;  %v3167_v37 = vsel %vm1459_vm4, %v3166_v13, %v3165_v32  ;;  %v2605_v38 = vsel %vm1447_vm0, %v2604_v30, %v10205_v14 }
 0x145   : > { %v2614_v39 = vrot.slane %v10211_v28, 2  ;;  %v2616_v40 = vrot.slane %v10212_v29, 1  ;;  %v10344_v41 = vld [vmem:[%s12076_s19 + $0x219] sm:$0x1]  ;;  %v10345_v42 = vld [vmem:[%s12076_s19 + $0x229] sm:$0x1]  ;;  %v3169_v43 = vsel %vm1462_vm5, %v3168_v17, %v3167_v37  ;;  %v2607_v44 = vsel %vm1450_vm1, %v2606_v31, %v2605_v38 }
 0x146   : > { %v10346_v45 = vld [vmem:[%s12076_s19 + $0x239] sm:$0x1]  ;;  %v10347_v46 = vld [vmem:[%s12076_s19 + $0x249] sm:$0x1]  ;;  %v3171_v48 = vsel %vm1465_vm6, %v3170_v18, %v3169_v43  ;;  %v2609_v49 = vsel %vm1453_vm2, %v2608_v33, %v2607_v44  ;;  %v3172_v52 = vrot.slane %v10344_v41, 7  ;;  %v3174_v53 = vrot.slane %v10345_v42, 6 }
 0x147   : > { %v10348_v47 = vld [vmem:[%s12076_s19 + $0x259] sm:$0x1]  ;;  %v10349_v50 = vld [vmem:[%s12076_s19 + $0x269] sm:$0x1]  ;;  %3359 = vxpose.xlu1.b32.cont [4/16] (narrow) %v3171_v48, 8  ;;  %v2611_v54 = vsel %vm1456_vm3, %v2610_v34, %v2609_v49  ;;  %v3176_v55 = vrot.slane %v10346_v45, 5 }
 0x148   : > { %v10350_v51 = vld [vmem:[%s12076_s19 + $0x279] sm:$0x1]  ;;  %v3178_v56 = vrot.slane %v10347_v46, 4  ;;  %v3180_v57 = vrot.slane %v10348_v47, 3  ;;  %v10213_v58 = vld [vmem:[%s12076_s19 + $0x208] sm:$0x1]  ;;  %v2613_v59 = vsel %vm1459_vm4, %v2612_v35, %v2611_v54  ;;  %v3173_v60 = vsel %vm1447_vm0, %v3172_v52, %v10343_v36 }
 0x149   : > { %v3182_v61 = vrot.slane %v10349_v50, 2  ;;  %v3184_v62 = vrot.slane %v10350_v51, 1  ;;  %v10214_v63 = vld [vmem:[%s12076_s19 + $0x218] sm:$0x1]  ;;  %v10215_v0 = vld [vmem:[%s12076_s19 + $0x228] sm:$0x1]  ;;  %v2615_v1 = vsel %vm1462_vm5, %v2614_v39, %v2613_v59  ;;  %v3175_v2 = vsel %vm1450_vm1, %v3174_v53, %v3173_v60 }
 0x14a   : > { %v10216_v3 = vld [vmem:[%s12076_s19 + $0x238] sm:$0x1]  ;;  %v10217_v4 = vld [vmem:[%s12076_s19 + $0x248] sm:$0x1]  ;;  %v2617_v6 = vsel %vm1465_vm6, %v2616_v40, %v2615_v1  ;;  %v3177_v7 = vsel %vm1453_vm2, %v3176_v55, %v3175_v2  ;;  %v2618_v10 = vrot.slane %v10214_v63, 7  ;;  %v2620_v11 = vrot.slane %v10215_v0, 6 }
 0x14b   : > { %v10218_v5 = vld [vmem:[%s12076_s19 + $0x258] sm:$0x1]  ;;  %v10219_v8 = vld [vmem:[%s12076_s19 + $0x268] sm:$0x1]  ;;  %2805 = vxpose.xlu0.b32.cont [4/16] (narrow) %v2617_v6, 8  ;;  %v3179_v12 = vsel %vm1456_vm3, %v3178_v56, %v3177_v7  ;;  %v2622_v13 = vrot.slane %v10216_v3, 5 }
 0x14c   : > { %v10220_v9 = vld [vmem:[%s12076_s19 + $0x278] sm:$0x1]  ;;  %v2624_v14 = vrot.slane %v10217_v4, 4  ;;  %v2626_v15 = vrot.slane %v10218_v5, 3  ;;  %v10351_v16 = vld [vmem:[%s12076_s19 + $0x289] sm:$0x1]  ;;  %v3181_v17 = vsel %vm1459_vm4, %v3180_v57, %v3179_v12  ;;  %v2619_v18 = vsel %vm1447_vm0, %v2618_v10, %v10213_v58 }
 0x14d   : > { %v2628_v19 = vrot.slane %v10219_v8, 2  ;;  %v2630_v20 = vrot.slane %v10220_v9, 1  ;;  %v10352_v21 = vld [vmem:[%s12076_s19 + $0x299] sm:$0x1]  ;;  %v10353_v22 = vld [vmem:[%s12076_s19 + $0x2a9] sm:$0x1]  ;;  %v3183_v23 = vsel %vm1462_vm5, %v3182_v61, %v3181_v17  ;;  %v2621_v24 = vsel %vm1450_vm1, %v2620_v11, %v2619_v18 }
 0x14e   : > { %v10354_v25 = vld [vmem:[%s12076_s19 + $0x2b9] sm:$0x1]  ;;  %v10355_v26 = vld [vmem:[%s12076_s19 + $0x2c9] sm:$0x1]  ;;  %v3185_v28 = vsel %vm1465_vm6, %v3184_v62, %v3183_v23  ;;  %v2623_v29 = vsel %vm1453_vm2, %v2622_v13, %v2621_v24  ;;  %v3186_v32 = vrot.slane %v10352_v21, 7  ;;  %v3188_v33 = vrot.slane %v10353_v22, 6 }
 0x14f   : > { %v10356_v27 = vld [vmem:[%s12076_s19 + $0x2d9] sm:$0x1]  ;;  %v10357_v30 = vld [vmem:[%s12076_s19 + $0x2e9] sm:$0x1]  ;;  %3360 = vxpose.xlu1.b32.cont [5/16] (narrow) %v3185_v28, 8  ;;  %v2625_v34 = vsel %vm1456_vm3, %v2624_v14, %v2623_v29  ;;  %v3190_v35 = vrot.slane %v10354_v25, 5 }
 0x150   : > { %v10358_v31 = vld [vmem:[%s12076_s19 + $0x2f9] sm:$0x1]  ;;  %v3192_v36 = vrot.slane %v10355_v26, 4  ;;  %v3194_v37 = vrot.slane %v10356_v27, 3  ;;  %v10221_v38 = vld [vmem:[%s12076_s19 + $0x288] sm:$0x1]  ;;  %v2627_v39 = vsel %vm1459_vm4, %v2626_v15, %v2625_v34  ;;  %v3187_v40 = vsel %vm1447_vm0, %v3186_v32, %v10351_v16 }
 0x151   : > { %v3196_v41 = vrot.slane %v10357_v30, 2  ;;  %v3198_v42 = vrot.slane %v10358_v31, 1  ;;  %v10222_v43 = vld [vmem:[%s12076_s19 + $0x298] sm:$0x1]  ;;  %v10223_v44 = vld [vmem:[%s12076_s19 + $0x2a8] sm:$0x1]  ;;  %v2629_v45 = vsel %vm1462_vm5, %v2628_v19, %v2627_v39  ;;  %v3189_v46 = vsel %vm1450_vm1, %v3188_v33, %v3187_v40 }
 0x152   : > { %v10224_v47 = vld [vmem:[%s12076_s19 + $0x2b8] sm:$0x1]  ;;  %v10225_v48 = vld [vmem:[%s12076_s19 + $0x2c8] sm:$0x1]  ;;  %v2631_v50 = vsel %vm1465_vm6, %v2630_v20, %v2629_v45  ;;  %v3191_v51 = vsel %vm1453_vm2, %v3190_v35, %v3189_v46  ;;  %v2632_v54 = vrot.slane %v10222_v43, 7  ;;  %v2634_v55 = vrot.slane %v10223_v44, 6 }
 0x153   : > { %v10226_v49 = vld [vmem:[%s12076_s19 + $0x2d8] sm:$0x1]  ;;  %v10227_v52 = vld [vmem:[%s12076_s19 + $0x2e8] sm:$0x1]  ;;  %2806 = vxpose.xlu0.b32.cont [5/16] (narrow) %v2631_v50, 8  ;;  %v3193_v56 = vsel %vm1456_vm3, %v3192_v36, %v3191_v51  ;;  %v2636_v57 = vrot.slane %v10224_v47, 5 }
 0x154   : > { %v10228_v53 = vld [vmem:[%s12076_s19 + $0x2f8] sm:$0x1]  ;;  %v2638_v58 = vrot.slane %v10225_v48, 4  ;;  %v2640_v59 = vrot.slane %v10226_v49, 3  ;;  %v10359_v60 = vld [vmem:[%s12076_s19 + $0x309] sm:$0x1]  ;;  %v3195_v61 = vsel %vm1459_vm4, %v3194_v37, %v3193_v56  ;;  %v2633_v62 = vsel %vm1447_vm0, %v2632_v54, %v10221_v38 }
 0x155   : > { %v2642_v63 = vrot.slane %v10227_v52, 2  ;;  %v2644_v0 = vrot.slane %v10228_v53, 1  ;;  %v10360_v1 = vld [vmem:[%s12076_s19 + $0x319] sm:$0x1]  ;;  %v10361_v2 = vld [vmem:[%s12076_s19 + $0x329] sm:$0x1]  ;;  %v3197_v3 = vsel %vm1462_vm5, %v3196_v41, %v3195_v61  ;;  %v2635_v4 = vsel %vm1450_vm1, %v2634_v55, %v2633_v62 }
 0x156   : > { %v10362_v5 = vld [vmem:[%s12076_s19 + $0x339] sm:$0x1]  ;;  %v10363_v6 = vld [vmem:[%s12076_s19 + $0x349] sm:$0x1]  ;;  %v3199_v8 = vsel %vm1465_vm6, %v3198_v42, %v3197_v3  ;;  %v2637_v9 = vsel %vm1453_vm2, %v2636_v57, %v2635_v4  ;;  %v3200_v12 = vrot.slane %v10360_v1, 7  ;;  %v3202_v13 = vrot.slane %v10361_v2, 6 }
 0x157   : > { %v10364_v7 = vld [vmem:[%s12076_s19 + $0x359] sm:$0x1]  ;;  %v10365_v10 = vld [vmem:[%s12076_s19 + $0x369] sm:$0x1]  ;;  %3361 = vxpose.xlu1.b32.cont [6/16] (narrow) %v3199_v8, 8  ;;  %v2639_v14 = vsel %vm1456_vm3, %v2638_v58, %v2637_v9  ;;  %v3204_v15 = vrot.slane %v10362_v5, 5 }
 0x158   : > { %v10366_v11 = vld [vmem:[%s12076_s19 + $0x379] sm:$0x1]  ;;  %v3206_v16 = vrot.slane %v10363_v6, 4  ;;  %v3208_v17 = vrot.slane %v10364_v7, 3  ;;  %v10229_v18 = vld [vmem:[%s12076_s19 + $0x308] sm:$0x1]  ;;  %v2641_v19 = vsel %vm1459_vm4, %v2640_v59, %v2639_v14  ;;  %v3201_v20 = vsel %vm1447_vm0, %v3200_v12, %v10359_v60 }
 0x159   : > { %v3210_v21 = vrot.slane %v10365_v10, 2  ;;  %v3212_v22 = vrot.slane %v10366_v11, 1  ;;  %v10230_v23 = vld [vmem:[%s12076_s19 + $0x318] sm:$0x1]  ;;  %v10231_v24 = vld [vmem:[%s12076_s19 + $0x328] sm:$0x1]  ;;  %v2643_v25 = vsel %vm1462_vm5, %v2642_v63, %v2641_v19  ;;  %v3203_v26 = vsel %vm1450_vm1, %v3202_v13, %v3201_v20 }
 0x15a   : > { %v10232_v27 = vld [vmem:[%s12076_s19 + $0x338] sm:$0x1]  ;;  %v10233_v28 = vld [vmem:[%s12076_s19 + $0x348] sm:$0x1]  ;;  %v2645_v30 = vsel %vm1465_vm6, %v2644_v0, %v2643_v25  ;;  %v3205_v31 = vsel %vm1453_vm2, %v3204_v15, %v3203_v26  ;;  %v2646_v34 = vrot.slane %v10230_v23, 7  ;;  %v2648_v35 = vrot.slane %v10231_v24, 6 }
 0x15b   : > { %v10234_v29 = vld [vmem:[%s12076_s19 + $0x358] sm:$0x1]  ;;  %v10235_v32 = vld [vmem:[%s12076_s19 + $0x368] sm:$0x1]  ;;  %2807 = vxpose.xlu0.b32.cont [6/16] (narrow) %v2645_v30, 8  ;;  %v3207_v36 = vsel %vm1456_vm3, %v3206_v16, %v3205_v31  ;;  %v2650_v37 = vrot.slane %v10232_v27, 5 }
 0x15c   : > { %v10236_v33 = vld [vmem:[%s12076_s19 + $0x378] sm:$0x1]  ;;  %v2652_v38 = vrot.slane %v10233_v28, 4  ;;  %v2654_v39 = vrot.slane %v10234_v29, 3  ;;  %v10367_v40 = vld [vmem:[%s12076_s19 + $0x389] sm:$0x1]  ;;  %v3209_v41 = vsel %vm1459_vm4, %v3208_v17, %v3207_v36  ;;  %v2647_v42 = vsel %vm1447_vm0, %v2646_v34, %v10229_v18 }
 0x15d   : > { %v2656_v43 = vrot.slane %v10235_v32, 2  ;;  %v2658_v44 = vrot.slane %v10236_v33, 1  ;;  %v10368_v45 = vld [vmem:[%s12076_s19 + $0x399] sm:$0x1]  ;;  %v10369_v46 = vld [vmem:[%s12076_s19 + $0x3a9] sm:$0x1]  ;;  %v3211_v47 = vsel %vm1462_vm5, %v3210_v21, %v3209_v41  ;;  %v2649_v48 = vsel %vm1450_vm1, %v2648_v35, %v2647_v42 }
 0x15e   : > { %v10370_v49 = vld [vmem:[%s12076_s19 + $0x3b9] sm:$0x1]  ;;  %v10371_v50 = vld [vmem:[%s12076_s19 + $0x3c9] sm:$0x1]  ;;  %v3213_v52 = vsel %vm1465_vm6, %v3212_v22, %v3211_v47  ;;  %v2651_v53 = vsel %vm1453_vm2, %v2650_v37, %v2649_v48  ;;  %v3214_v56 = vrot.slane %v10368_v45, 7  ;;  %v3216_v57 = vrot.slane %v10369_v46, 6 }
 0x15f   : > { %v10372_v51 = vld [vmem:[%s12076_s19 + $0x3d9] sm:$0x1]  ;;  %v10373_v54 = vld [vmem:[%s12076_s19 + $0x3e9] sm:$0x1]  ;;  %3362 = vxpose.xlu1.b32.cont [7/16] (narrow) %v3213_v52, 8  ;;  %v2653_v58 = vsel %vm1456_vm3, %v2652_v38, %v2651_v53  ;;  %v3218_v59 = vrot.slane %v10370_v49, 5 }
 0x160   : > { %v10374_v55 = vld [vmem:[%s12076_s19 + $0x3f9] sm:$0x1]  ;;  %v3220_v60 = vrot.slane %v10371_v50, 4  ;;  %v3222_v61 = vrot.slane %v10372_v51, 3  ;;  %v10237_v62 = vld [vmem:[%s12076_s19 + $0x388] sm:$0x1]  ;;  %v2655_v63 = vsel %vm1459_vm4, %v2654_v39, %v2653_v58  ;;  %v3215_v0 = vsel %vm1447_vm0, %v3214_v56, %v10367_v40 }
 0x161   : > { %v3224_v1 = vrot.slane %v10373_v54, 2  ;;  %v3226_v2 = vrot.slane %v10374_v55, 1  ;;  %v10238_v3 = vld [vmem:[%s12076_s19 + $0x398] sm:$0x1]  ;;  %v10239_v4 = vld [vmem:[%s12076_s19 + $0x3a8] sm:$0x1]  ;;  %v2657_v5 = vsel %vm1462_vm5, %v2656_v43, %v2655_v63  ;;  %v3217_v6 = vsel %vm1450_vm1, %v3216_v57, %v3215_v0 }
 0x162   : > { %v10240_v7 = vld [vmem:[%s12076_s19 + $0x3b8] sm:$0x1]  ;;  %v10241_v8 = vld [vmem:[%s12076_s19 + $0x3c8] sm:$0x1]  ;;  %v2659_v10 = vsel %vm1465_vm6, %v2658_v44, %v2657_v5  ;;  %v3219_v11 = vsel %vm1453_vm2, %v3218_v59, %v3217_v6  ;;  %v2660_v14 = vrot.slane %v10238_v3, 7  ;;  %v2662_v15 = vrot.slane %v10239_v4, 6 }
 0x163   : > { %v10242_v9 = vld [vmem:[%s12076_s19 + $0x3d8] sm:$0x1]  ;;  %v10243_v12 = vld [vmem:[%s12076_s19 + $0x3e8] sm:$0x1]  ;;  %2808 = vxpose.xlu0.b32.cont [7/16] (narrow) %v2659_v10, 8  ;;  %v3221_v16 = vsel %vm1456_vm3, %v3220_v60, %v3219_v11  ;;  %v2664_v17 = vrot.slane %v10240_v7, 5 }
 0x164   : > { %v10244_v13 = vld [vmem:[%s12076_s19 + $0x3f8] sm:$0x1]  ;;  %v2666_v18 = vrot.slane %v10241_v8, 4  ;;  %v2668_v19 = vrot.slane %v10242_v9, 3  ;;  %v10375_v20 = vld [vmem:[%s12076_s19 + $0x409] sm:$0x1]  ;;  %v3223_v21 = vsel %vm1459_vm4, %v3222_v61, %v3221_v16  ;;  %v2661_v22 = vsel %vm1447_vm0, %v2660_v14, %v10237_v62 }
 0x165   : > { %v2670_v23 = vrot.slane %v10243_v12, 2  ;;  %v2672_v24 = vrot.slane %v10244_v13, 1  ;;  %v10376_v25 = vld [vmem:[%s12076_s19 + $0x419] sm:$0x1]  ;;  %v10377_v26 = vld [vmem:[%s12076_s19 + $0x429] sm:$0x1]  ;;  %v3225_v27 = vsel %vm1462_vm5, %v3224_v1, %v3223_v21  ;;  %v2663_v28 = vsel %vm1450_vm1, %v2662_v15, %v2661_v22 }
 0x166   : > { %v10378_v29 = vld [vmem:[%s12076_s19 + $0x439] sm:$0x1]  ;;  %v10379_v30 = vld [vmem:[%s12076_s19 + $0x449] sm:$0x1]  ;;  %v3227_v32 = vsel %vm1465_vm6, %v3226_v2, %v3225_v27  ;;  %v2665_v33 = vsel %vm1453_vm2, %v2664_v17, %v2663_v28  ;;  %v3228_v36 = vrot.slane %v10376_v25, 7  ;;  %v3230_v37 = vrot.slane %v10377_v26, 6 }
 0x167   : > { %v10380_v31 = vld [vmem:[%s12076_s19 + $0x459] sm:$0x1]  ;;  %v10381_v34 = vld [vmem:[%s12076_s19 + $0x469] sm:$0x1]  ;;  %3363 = vxpose.xlu1.b32.cont [8/16] (narrow) %v3227_v32, 8  ;;  %v2667_v38 = vsel %vm1456_vm3, %v2666_v18, %v2665_v33  ;;  %v3232_v39 = vrot.slane %v10378_v29, 5 }
 0x168   : > { %v10382_v35 = vld [vmem:[%s12076_s19 + $0x479] sm:$0x1]  ;;  %v3234_v40 = vrot.slane %v10379_v30, 4  ;;  %v3236_v41 = vrot.slane %v10380_v31, 3  ;;  %v10245_v42 = vld [vmem:[%s12076_s19 + $0x408] sm:$0x1]  ;;  %v2669_v43 = vsel %vm1459_vm4, %v2668_v19, %v2667_v38  ;;  %v3229_v44 = vsel %vm1447_vm0, %v3228_v36, %v10375_v20 }
 0x169   : > { %v3238_v45 = vrot.slane %v10381_v34, 2  ;;  %v3240_v46 = vrot.slane %v10382_v35, 1  ;;  %v10246_v47 = vld [vmem:[%s12076_s19 + $0x418] sm:$0x1]  ;;  %v10247_v48 = vld [vmem:[%s12076_s19 + $0x428] sm:$0x1]  ;;  %v2671_v49 = vsel %vm1462_vm5, %v2670_v23, %v2669_v43  ;;  %v3231_v50 = vsel %vm1450_vm1, %v3230_v37, %v3229_v44 }
 0x16a   : > { %v10248_v51 = vld [vmem:[%s12076_s19 + $0x438] sm:$0x1]  ;;  %v10249_v52 = vld [vmem:[%s12076_s19 + $0x448] sm:$0x1]  ;;  %v2673_v54 = vsel %vm1465_vm6, %v2672_v24, %v2671_v49  ;;  %v3233_v55 = vsel %vm1453_vm2, %v3232_v39, %v3231_v50  ;;  %v2674_v58 = vrot.slane %v10246_v47, 7  ;;  %v2676_v59 = vrot.slane %v10247_v48, 6 }
 0x16b   : > { %v10250_v53 = vld [vmem:[%s12076_s19 + $0x458] sm:$0x1]  ;;  %v10251_v56 = vld [vmem:[%s12076_s19 + $0x468] sm:$0x1]  ;;  %2809 = vxpose.xlu0.b32.cont [8/16] (narrow) %v2673_v54, 8  ;;  %v3235_v60 = vsel %vm1456_vm3, %v3234_v40, %v3233_v55  ;;  %v2678_v61 = vrot.slane %v10248_v51, 5 }
 0x16c   : > { %v10252_v57 = vld [vmem:[%s12076_s19 + $0x478] sm:$0x1]  ;;  %v2680_v62 = vrot.slane %v10249_v52, 4  ;;  %v2682_v63 = vrot.slane %v10250_v53, 3  ;;  %v10383_v0 = vld [vmem:[%s12076_s19 + $0x489] sm:$0x1]  ;;  %v3237_v1 = vsel %vm1459_vm4, %v3236_v41, %v3235_v60  ;;  %v2675_v2 = vsel %vm1447_vm0, %v2674_v58, %v10245_v42 }
 0x16d   : > { %v2684_v3 = vrot.slane %v10251_v56, 2  ;;  %v2686_v4 = vrot.slane %v10252_v57, 1  ;;  %v10384_v5 = vld [vmem:[%s12076_s19 + $0x499] sm:$0x1]  ;;  %v10385_v6 = vld [vmem:[%s12076_s19 + $0x4a9] sm:$0x1]  ;;  %v3239_v7 = vsel %vm1462_vm5, %v3238_v45, %v3237_v1  ;;  %v2677_v8 = vsel %vm1450_vm1, %v2676_v59, %v2675_v2 }
 0x16e   : > { %v10386_v9 = vld [vmem:[%s12076_s19 + $0x4b9] sm:$0x1]  ;;  %v10387_v10 = vld [vmem:[%s12076_s19 + $0x4c9] sm:$0x1]  ;;  %v3241_v12 = vsel %vm1465_vm6, %v3240_v46, %v3239_v7  ;;  %v2679_v13 = vsel %vm1453_vm2, %v2678_v61, %v2677_v8  ;;  %v3242_v16 = vrot.slane %v10384_v5, 7  ;;  %v3244_v17 = vrot.slane %v10385_v6, 6 }
 0x16f   : > { %v10388_v11 = vld [vmem:[%s12076_s19 + $0x4d9] sm:$0x1]  ;;  %v10389_v14 = vld [vmem:[%s12076_s19 + $0x4e9] sm:$0x1]  ;;  %3364 = vxpose.xlu1.b32.cont [9/16] (narrow) %v3241_v12, 8  ;;  %v2681_v18 = vsel %vm1456_vm3, %v2680_v62, %v2679_v13  ;;  %v3246_v19 = vrot.slane %v10386_v9, 5 }
 0x170   : > { %v10390_v15 = vld [vmem:[%s12076_s19 + $0x4f9] sm:$0x1]  ;;  %v3248_v20 = vrot.slane %v10387_v10, 4  ;;  %v3250_v21 = vrot.slane %v10388_v11, 3  ;;  %v10253_v22 = vld [vmem:[%s12076_s19 + $0x488] sm:$0x1]  ;;  %v2683_v23 = vsel %vm1459_vm4, %v2682_v63, %v2681_v18  ;;  %v3243_v24 = vsel %vm1447_vm0, %v3242_v16, %v10383_v0 }
 0x171   : > { %v3252_v25 = vrot.slane %v10389_v14, 2  ;;  %v3254_v26 = vrot.slane %v10390_v15, 1  ;;  %v10254_v27 = vld [vmem:[%s12076_s19 + $0x498] sm:$0x1]  ;;  %v10255_v28 = vld [vmem:[%s12076_s19 + $0x4a8] sm:$0x1]  ;;  %v2685_v29 = vsel %vm1462_vm5, %v2684_v3, %v2683_v23  ;;  %v3245_v30 = vsel %vm1450_vm1, %v3244_v17, %v3243_v24 }
 0x172   : > { %v10256_v31 = vld [vmem:[%s12076_s19 + $0x4b8] sm:$0x1]  ;;  %v10257_v32 = vld [vmem:[%s12076_s19 + $0x4c8] sm:$0x1]  ;;  %v2687_v34 = vsel %vm1465_vm6, %v2686_v4, %v2685_v29  ;;  %v3247_v35 = vsel %vm1453_vm2, %v3246_v19, %v3245_v30  ;;  %v2688_v38 = vrot.slane %v10254_v27, 7  ;;  %v2690_v39 = vrot.slane %v10255_v28, 6 }
 0x173   : > { %v10258_v33 = vld [vmem:[%s12076_s19 + $0x4d8] sm:$0x1]  ;;  %v10259_v36 = vld [vmem:[%s12076_s19 + $0x4e8] sm:$0x1]  ;;  %2810 = vxpose.xlu0.b32.cont [9/16] (narrow) %v2687_v34, 8  ;;  %v3249_v40 = vsel %vm1456_vm3, %v3248_v20, %v3247_v35  ;;  %v2692_v41 = vrot.slane %v10256_v31, 5 }
 0x174   : > { %v10260_v37 = vld [vmem:[%s12076_s19 + $0x4f8] sm:$0x1]  ;;  %v2694_v42 = vrot.slane %v10257_v32, 4  ;;  %v2696_v43 = vrot.slane %v10258_v33, 3  ;;  %v10391_v44 = vld [vmem:[%s12076_s19 + $0x509] sm:$0x1]  ;;  %v3251_v45 = vsel %vm1459_vm4, %v3250_v21, %v3249_v40  ;;  %v2689_v46 = vsel %vm1447_vm0, %v2688_v38, %v10253_v22 }
 0x175   : > { %v2698_v47 = vrot.slane %v10259_v36, 2  ;;  %v2700_v48 = vrot.slane %v10260_v37, 1  ;;  %v10392_v49 = vld [vmem:[%s12076_s19 + $0x519] sm:$0x1]  ;;  %v10393_v50 = vld [vmem:[%s12076_s19 + $0x529] sm:$0x1]  ;;  %v3253_v51 = vsel %vm1462_vm5, %v3252_v25, %v3251_v45  ;;  %v2691_v52 = vsel %vm1450_vm1, %v2690_v39, %v2689_v46 }
 0x176   : > { %v10394_v53 = vld [vmem:[%s12076_s19 + $0x539] sm:$0x1]  ;;  %v10395_v54 = vld [vmem:[%s12076_s19 + $0x549] sm:$0x1]  ;;  %v3255_v56 = vsel %vm1465_vm6, %v3254_v26, %v3253_v51  ;;  %v2693_v57 = vsel %vm1453_vm2, %v2692_v41, %v2691_v52  ;;  %v3256_v60 = vrot.slane %v10392_v49, 7  ;;  %v3258_v61 = vrot.slane %v10393_v50, 6 }
 0x177   : > { %v10396_v55 = vld [vmem:[%s12076_s19 + $0x559] sm:$0x1]  ;;  %v10397_v58 = vld [vmem:[%s12076_s19 + $0x569] sm:$0x1]  ;;  %3365 = vxpose.xlu1.b32.cont [10/16] (narrow) %v3255_v56, 8  ;;  %v2695_v62 = vsel %vm1456_vm3, %v2694_v42, %v2693_v57  ;;  %v3260_v63 = vrot.slane %v10394_v53, 5 }
 0x178   : > { %v10398_v59 = vld [vmem:[%s12076_s19 + $0x579] sm:$0x1]  ;;  %v3262_v0 = vrot.slane %v10395_v54, 4  ;;  %v3264_v1 = vrot.slane %v10396_v55, 3  ;;  %v10261_v2 = vld [vmem:[%s12076_s19 + $0x508] sm:$0x1]  ;;  %v2697_v3 = vsel %vm1459_vm4, %v2696_v43, %v2695_v62  ;;  %v3257_v4 = vsel %vm1447_vm0, %v3256_v60, %v10391_v44 }
 0x179   : > { %v3266_v5 = vrot.slane %v10397_v58, 2  ;;  %v3268_v6 = vrot.slane %v10398_v59, 1  ;;  %v10262_v7 = vld [vmem:[%s12076_s19 + $0x518] sm:$0x1]  ;;  %v10263_v8 = vld [vmem:[%s12076_s19 + $0x528] sm:$0x1]  ;;  %v2699_v9 = vsel %vm1462_vm5, %v2698_v47, %v2697_v3  ;;  %v3259_v10 = vsel %vm1450_vm1, %v3258_v61, %v3257_v4 }
 0x17a   : > { %v10264_v11 = vld [vmem:[%s12076_s19 + $0x538] sm:$0x1]  ;;  %v10265_v12 = vld [vmem:[%s12076_s19 + $0x548] sm:$0x1]  ;;  %v2701_v14 = vsel %vm1465_vm6, %v2700_v48, %v2699_v9  ;;  %v3261_v15 = vsel %vm1453_vm2, %v3260_v63, %v3259_v10  ;;  %v2702_v18 = vrot.slane %v10262_v7, 7  ;;  %v2704_v19 = vrot.slane %v10263_v8, 6 }
 0x17b   : > { %v10266_v13 = vld [vmem:[%s12076_s19 + $0x558] sm:$0x1]  ;;  %v10267_v16 = vld [vmem:[%s12076_s19 + $0x568] sm:$0x1]  ;;  %2811 = vxpose.xlu0.b32.cont [10/16] (narrow) %v2701_v14, 8  ;;  %v3263_v20 = vsel %vm1456_vm3, %v3262_v0, %v3261_v15  ;;  %v2706_v21 = vrot.slane %v10264_v11, 5 }
 0x17c   : > { %v10268_v17 = vld [vmem:[%s12076_s19 + $0x578] sm:$0x1]  ;;  %v2708_v22 = vrot.slane %v10265_v12, 4  ;;  %v2710_v23 = vrot.slane %v10266_v13, 3  ;;  %v10399_v24 = vld [vmem:[%s12076_s19 + $0x589] sm:$0x1]  ;;  %v3265_v25 = vsel %vm1459_vm4, %v3264_v1, %v3263_v20  ;;  %v2703_v26 = vsel %vm1447_vm0, %v2702_v18, %v10261_v2 }
 0x17d   : > { %v2712_v27 = vrot.slane %v10267_v16, 2  ;;  %v2714_v28 = vrot.slane %v10268_v17, 1  ;;  %v10400_v29 = vld [vmem:[%s12076_s19 + $0x599] sm:$0x1]  ;;  %v10401_v30 = vld [vmem:[%s12076_s19 + $0x5a9] sm:$0x1]  ;;  %v3267_v31 = vsel %vm1462_vm5, %v3266_v5, %v3265_v25  ;;  %v2705_v32 = vsel %vm1450_vm1, %v2704_v19, %v2703_v26 }
 0x17e   : > { %v10402_v33 = vld [vmem:[%s12076_s19 + $0x5b9] sm:$0x1]  ;;  %v10403_v34 = vld [vmem:[%s12076_s19 + $0x5c9] sm:$0x1]  ;;  %v3269_v36 = vsel %vm1465_vm6, %v3268_v6, %v3267_v31  ;;  %v2707_v37 = vsel %vm1453_vm2, %v2706_v21, %v2705_v32  ;;  %v3270_v40 = vrot.slane %v10400_v29, 7  ;;  %v3272_v41 = vrot.slane %v10401_v30, 6 }
 0x17f   : > { %v10404_v35 = vld [vmem:[%s12076_s19 + $0x5d9] sm:$0x1]  ;;  %v10405_v38 = vld [vmem:[%s12076_s19 + $0x5e9] sm:$0x1]  ;;  %3366 = vxpose.xlu1.b32.cont [11/16] (narrow) %v3269_v36, 8  ;;  %v2709_v42 = vsel %vm1456_vm3, %v2708_v22, %v2707_v37  ;;  %v3274_v43 = vrot.slane %v10402_v33, 5 }
 0x180   : > { %v10406_v39 = vld [vmem:[%s12076_s19 + $0x5f9] sm:$0x1]  ;;  %v3276_v44 = vrot.slane %v10403_v34, 4  ;;  %v3278_v45 = vrot.slane %v10404_v35, 3  ;;  %v10269_v46 = vld [vmem:[%s12076_s19 + $0x588] sm:$0x1]  ;;  %v2711_v47 = vsel %vm1459_vm4, %v2710_v23, %v2709_v42  ;;  %v3271_v48 = vsel %vm1447_vm0, %v3270_v40, %v10399_v24 }
 0x181   : > { %v3280_v49 = vrot.slane %v10405_v38, 2  ;;  %v3282_v50 = vrot.slane %v10406_v39, 1  ;;  %v10270_v51 = vld [vmem:[%s12076_s19 + $0x598] sm:$0x1]  ;;  %v10271_v52 = vld [vmem:[%s12076_s19 + $0x5a8] sm:$0x1]  ;;  %v2713_v53 = vsel %vm1462_vm5, %v2712_v27, %v2711_v47  ;;  %v3273_v54 = vsel %vm1450_vm1, %v3272_v41, %v3271_v48 }
 0x182   : > { %v10272_v55 = vld [vmem:[%s12076_s19 + $0x5b8] sm:$0x1]  ;;  %v10273_v56 = vld [vmem:[%s12076_s19 + $0x5c8] sm:$0x1]  ;;  %v2715_v58 = vsel %vm1465_vm6, %v2714_v28, %v2713_v53  ;;  %v3275_v59 = vsel %vm1453_vm2, %v3274_v43, %v3273_v54  ;;  %v2716_v62 = vrot.slane %v10270_v51, 7  ;;  %v2718_v63 = vrot.slane %v10271_v52, 6 }
 0x183   : > { %v10274_v57 = vld [vmem:[%s12076_s19 + $0x5d8] sm:$0x1]  ;;  %v10275_v60 = vld [vmem:[%s12076_s19 + $0x5e8] sm:$0x1]  ;;  %2812 = vxpose.xlu0.b32.cont [11/16] (narrow) %v2715_v58, 8  ;;  %v3277_v0 = vsel %vm1456_vm3, %v3276_v44, %v3275_v59  ;;  %v2720_v1 = vrot.slane %v10272_v55, 5 }
 0x184   : > { %v10276_v61 = vld [vmem:[%s12076_s19 + $0x5f8] sm:$0x1]  ;;  %v2722_v2 = vrot.slane %v10273_v56, 4  ;;  %v2724_v3 = vrot.slane %v10274_v57, 3  ;;  %v10407_v4 = vld [vmem:[%s12076_s19 + $0x609] sm:$0x1]  ;;  %v3279_v5 = vsel %vm1459_vm4, %v3278_v45, %v3277_v0  ;;  %v2717_v6 = vsel %vm1447_vm0, %v2716_v62, %v10269_v46 }
 0x185   : > { %v2726_v7 = vrot.slane %v10275_v60, 2  ;;  %v2728_v8 = vrot.slane %v10276_v61, 1  ;;  %v10408_v9 = vld [vmem:[%s12076_s19 + $0x619] sm:$0x1]  ;;  %v10409_v10 = vld [vmem:[%s12076_s19 + $0x629] sm:$0x1]  ;;  %v3281_v11 = vsel %vm1462_vm5, %v3280_v49, %v3279_v5  ;;  %v2719_v12 = vsel %vm1450_vm1, %v2718_v63, %v2717_v6 }
 0x186   : > { %v10410_v13 = vld [vmem:[%s12076_s19 + $0x639] sm:$0x1]  ;;  %v10411_v14 = vld [vmem:[%s12076_s19 + $0x649] sm:$0x1]  ;;  %v3283_v16 = vsel %vm1465_vm6, %v3282_v50, %v3281_v11  ;;  %v2721_v17 = vsel %vm1453_vm2, %v2720_v1, %v2719_v12  ;;  %v3284_v20 = vrot.slane %v10408_v9, 7  ;;  %v3286_v21 = vrot.slane %v10409_v10, 6 }
 0x187   : > { %v10412_v15 = vld [vmem:[%s12076_s19 + $0x659] sm:$0x1]  ;;  %v10413_v18 = vld [vmem:[%s12076_s19 + $0x669] sm:$0x1]  ;;  %3367 = vxpose.xlu1.b32.cont [12/16] (narrow) %v3283_v16, 8  ;;  %v2723_v22 = vsel %vm1456_vm3, %v2722_v2, %v2721_v17  ;;  %v3288_v23 = vrot.slane %v10410_v13, 5 }
 0x188   : > { %v10414_v19 = vld [vmem:[%s12076_s19 + $0x679] sm:$0x1]  ;;  %v3290_v24 = vrot.slane %v10411_v14, 4  ;;  %v3292_v25 = vrot.slane %v10412_v15, 3  ;;  %v10277_v26 = vld [vmem:[%s12076_s19 + $0x608] sm:$0x1]  ;;  %v2725_v27 = vsel %vm1459_vm4, %v2724_v3, %v2723_v22  ;;  %v3285_v28 = vsel %vm1447_vm0, %v3284_v20, %v10407_v4 }
 0x189   : > { %v3294_v29 = vrot.slane %v10413_v18, 2  ;;  %v3296_v30 = vrot.slane %v10414_v19, 1  ;;  %v10278_v31 = vld [vmem:[%s12076_s19 + $0x618] sm:$0x1]  ;;  %v10279_v32 = vld [vmem:[%s12076_s19 + $0x628] sm:$0x1]  ;;  %v2727_v33 = vsel %vm1462_vm5, %v2726_v7, %v2725_v27  ;;  %v3287_v34 = vsel %vm1450_vm1, %v3286_v21, %v3285_v28 }
 0x18a   : > { %v10280_v35 = vld [vmem:[%s12076_s19 + $0x638] sm:$0x1]  ;;  %v10281_v36 = vld [vmem:[%s12076_s19 + $0x648] sm:$0x1]  ;;  %v2729_v38 = vsel %vm1465_vm6, %v2728_v8, %v2727_v33  ;;  %v3289_v39 = vsel %vm1453_vm2, %v3288_v23, %v3287_v34  ;;  %v2730_v42 = vrot.slane %v10278_v31, 7  ;;  %v2732_v43 = vrot.slane %v10279_v32, 6 }
 0x18b   : > { %v10282_v37 = vld [vmem:[%s12076_s19 + $0x658] sm:$0x1]  ;;  %v10283_v40 = vld [vmem:[%s12076_s19 + $0x668] sm:$0x1]  ;;  %2813 = vxpose.xlu0.b32.cont [12/16] (narrow) %v2729_v38, 8  ;;  %v3291_v44 = vsel %vm1456_vm3, %v3290_v24, %v3289_v39  ;;  %v2734_v45 = vrot.slane %v10280_v35, 5 }
 0x18c   : > { %v10284_v41 = vld [vmem:[%s12076_s19 + $0x678] sm:$0x1]  ;;  %v2736_v46 = vrot.slane %v10281_v36, 4  ;;  %v2738_v47 = vrot.slane %v10282_v37, 3  ;;  %v10415_v48 = vld [vmem:[%s12076_s19 + $0x689] sm:$0x1]  ;;  %v3293_v49 = vsel %vm1459_vm4, %v3292_v25, %v3291_v44  ;;  %v2731_v50 = vsel %vm1447_vm0, %v2730_v42, %v10277_v26 }
 0x18d   : > { %v2740_v51 = vrot.slane %v10283_v40, 2  ;;  %v2742_v52 = vrot.slane %v10284_v41, 1  ;;  %v10416_v53 = vld [vmem:[%s12076_s19 + $0x699] sm:$0x1]  ;;  %v10417_v54 = vld [vmem:[%s12076_s19 + $0x6a9] sm:$0x1]  ;;  %v3295_v55 = vsel %vm1462_vm5, %v3294_v29, %v3293_v49  ;;  %v2733_v56 = vsel %vm1450_vm1, %v2732_v43, %v2731_v50 }
 0x18e   : > { %v10418_v57 = vld [vmem:[%s12076_s19 + $0x6b9] sm:$0x1]  ;;  %v10419_v58 = vld [vmem:[%s12076_s19 + $0x6c9] sm:$0x1]  ;;  %v3297_v60 = vsel %vm1465_vm6, %v3296_v30, %v3295_v55  ;;  %v2735_v61 = vsel %vm1453_vm2, %v2734_v45, %v2733_v56  ;;  %v3298_v0 = vrot.slane %v10416_v53, 7  ;;  %v3300_v1 = vrot.slane %v10417_v54, 6 }
 0x18f   : > { %v10420_v59 = vld [vmem:[%s12076_s19 + $0x6d9] sm:$0x1]  ;;  %v10421_v62 = vld [vmem:[%s12076_s19 + $0x6e9] sm:$0x1]  ;;  %3368 = vxpose.xlu1.b32.cont [13/16] (narrow) %v3297_v60, 8  ;;  %v2737_v2 = vsel %vm1456_vm3, %v2736_v46, %v2735_v61  ;;  %v3302_v3 = vrot.slane %v10418_v57, 5 }
 0x190   : > { %v10422_v63 = vld [vmem:[%s12076_s19 + $0x6f9] sm:$0x1]  ;;  %v3304_v4 = vrot.slane %v10419_v58, 4  ;;  %v3306_v5 = vrot.slane %v10420_v59, 3  ;;  %v10285_v6 = vld [vmem:[%s12076_s19 + $0x688] sm:$0x1]  ;;  %v2739_v7 = vsel %vm1459_vm4, %v2738_v47, %v2737_v2  ;;  %v3299_v8 = vsel %vm1447_vm0, %v3298_v0, %v10415_v48 }
 0x191   : > { %v3308_v9 = vrot.slane %v10421_v62, 2  ;;  %v3310_v10 = vrot.slane %v10422_v63, 1  ;;  %v10286_v11 = vld [vmem:[%s12076_s19 + $0x698] sm:$0x1]  ;;  %v10287_v12 = vld [vmem:[%s12076_s19 + $0x6a8] sm:$0x1]  ;;  %v2741_v13 = vsel %vm1462_vm5, %v2740_v51, %v2739_v7  ;;  %v3301_v14 = vsel %vm1450_vm1, %v3300_v1, %v3299_v8 }
 0x192   : > { %v10288_v15 = vld [vmem:[%s12076_s19 + $0x6b8] sm:$0x1]  ;;  %v10289_v16 = vld [vmem:[%s12076_s19 + $0x6c8] sm:$0x1]  ;;  %v2743_v18 = vsel %vm1465_vm6, %v2742_v52, %v2741_v13  ;;  %v3303_v19 = vsel %vm1453_vm2, %v3302_v3, %v3301_v14  ;;  %v2744_v22 = vrot.slane %v10286_v11, 7  ;;  %v2746_v23 = vrot.slane %v10287_v12, 6 }
 0x193   : > { %v10290_v17 = vld [vmem:[%s12076_s19 + $0x6d8] sm:$0x1]  ;;  %v10291_v20 = vld [vmem:[%s12076_s19 + $0x6e8] sm:$0x1]  ;;  %2814 = vxpose.xlu0.b32.cont [13/16] (narrow) %v2743_v18, 8  ;;  %v3305_v24 = vsel %vm1456_vm3, %v3304_v4, %v3303_v19  ;;  %v2748_v25 = vrot.slane %v10288_v15, 5 }
 0x194   : > { %v10292_v21 = vld [vmem:[%s12076_s19 + $0x6f8] sm:$0x1]  ;;  %v2750_v26 = vrot.slane %v10289_v16, 4  ;;  %v2752_v27 = vrot.slane %v10290_v17, 3  ;;  %v10423_v28 = vld [vmem:[%s12076_s19 + $0x709] sm:$0x1]  ;;  %v3307_v29 = vsel %vm1459_vm4, %v3306_v5, %v3305_v24  ;;  %v2745_v30 = vsel %vm1447_vm0, %v2744_v22, %v10285_v6 }
 0x195   : > { %v2754_v31 = vrot.slane %v10291_v20, 2  ;;  %v2756_v32 = vrot.slane %v10292_v21, 1  ;;  %v10424_v33 = vld [vmem:[%s12076_s19 + $0x719] sm:$0x1]  ;;  %v10425_v34 = vld [vmem:[%s12076_s19 + $0x729] sm:$0x1]  ;;  %v3309_v35 = vsel %vm1462_vm5, %v3308_v9, %v3307_v29  ;;  %v2747_v36 = vsel %vm1450_vm1, %v2746_v23, %v2745_v30 }
 0x196   : > { %v10426_v37 = vld [vmem:[%s12076_s19 + $0x739] sm:$0x1]  ;;  %v10427_v38 = vld [vmem:[%s12076_s19 + $0x749] sm:$0x1]  ;;  %v3311_v40 = vsel %vm1465_vm6, %v3310_v10, %v3309_v35  ;;  %v2749_v41 = vsel %vm1453_vm2, %v2748_v25, %v2747_v36  ;;  %v3312_v44 = vrot.slane %v10424_v33, 7  ;;  %v3314_v45 = vrot.slane %v10425_v34, 6 }
 0x197   : > { %v10428_v39 = vld [vmem:[%s12076_s19 + $0x759] sm:$0x1]  ;;  %v10429_v42 = vld [vmem:[%s12076_s19 + $0x769] sm:$0x1]  ;;  %3369 = vxpose.xlu1.b32.cont [14/16] (narrow) %v3311_v40, 8  ;;  %v2751_v46 = vsel %vm1456_vm3, %v2750_v26, %v2749_v41  ;;  %v3316_v47 = vrot.slane %v10426_v37, 5 }
 0x198   : > { %v10430_v43 = vld [vmem:[%s12076_s19 + $0x779] sm:$0x1]  ;;  %v3318_v48 = vrot.slane %v10427_v38, 4  ;;  %v3320_v49 = vrot.slane %v10428_v39, 3  ;;  %v10293_v50 = vld [vmem:[%s12076_s19 + $0x708] sm:$0x1]  ;;  %v2753_v51 = vsel %vm1459_vm4, %v2752_v27, %v2751_v46  ;;  %v3313_v52 = vsel %vm1447_vm0, %v3312_v44, %v10423_v28 }
 0x199   : > { %v3322_v53 = vrot.slane %v10429_v42, 2  ;;  %v3324_v54 = vrot.slane %v10430_v43, 1  ;;  %v10294_v55 = vld [vmem:[%s12076_s19 + $0x718] sm:$0x1]  ;;  %v10295_v56 = vld [vmem:[%s12076_s19 + $0x728] sm:$0x1]  ;;  %v2755_v57 = vsel %vm1462_vm5, %v2754_v31, %v2753_v51  ;;  %v3315_v58 = vsel %vm1450_vm1, %v3314_v45, %v3313_v52 }
 0x19a   : > { %v10296_v59 = vld [vmem:[%s12076_s19 + $0x738] sm:$0x1]  ;;  %v10297_v60 = vld [vmem:[%s12076_s19 + $0x748] sm:$0x1]  ;;  %v2757_v62 = vsel %vm1465_vm6, %v2756_v32, %v2755_v57  ;;  %v3317_v63 = vsel %vm1453_vm2, %v3316_v47, %v3315_v58  ;;  %v2758_v2 = vrot.slane %v10294_v55, 7  ;;  %v2760_v3 = vrot.slane %v10295_v56, 6 }
 0x19b   : > { %v10298_v61 = vld [vmem:[%s12076_s19 + $0x758] sm:$0x1]  ;;  %v10299_v0 = vld [vmem:[%s12076_s19 + $0x768] sm:$0x1]  ;;  %2815 = vxpose.xlu0.b32.cont [14/16] (narrow) %v2757_v62, 8  ;;  %v3319_v4 = vsel %vm1456_vm3, %v3318_v48, %v3317_v63  ;;  %v2762_v5 = vrot.slane %v10296_v59, 5 }
 0x19c   : > { %v10300_v1 = vld [vmem:[%s12076_s19 + $0x778] sm:$0x1]  ;;  %v2764_v6 = vrot.slane %v10297_v60, 4  ;;  %v2766_v7 = vrot.slane %v10298_v61, 3  ;;  %v10431_v8 = vld [vmem:[%s12076_s19 + $0x789] sm:$0x1]  ;;  %v3321_v9 = vsel %vm1459_vm4, %v3320_v49, %v3319_v4  ;;  %v2759_v10 = vsel %vm1447_vm0, %v2758_v2, %v10293_v50 }
 0x19d   : > { %v2768_v11 = vrot.slane %v10299_v0, 2  ;;  %v2770_v12 = vrot.slane %v10300_v1, 1  ;;  %v10432_v13 = vld [vmem:[%s12076_s19 + $0x799] sm:$0x1]  ;;  %v10433_v14 = vld [vmem:[%s12076_s19 + $0x7a9] sm:$0x1]  ;;  %v3323_v15 = vsel %vm1462_vm5, %v3322_v53, %v3321_v9  ;;  %v2761_v16 = vsel %vm1450_vm1, %v2760_v3, %v2759_v10 }
 0x19e   : > { %v10434_v17 = vld [vmem:[%s12076_s19 + $0x7b9] sm:$0x1]  ;;  %v10435_v18 = vld [vmem:[%s12076_s19 + $0x7c9] sm:$0x1]  ;;  %v3325_v20 = vsel %vm1465_vm6, %v3324_v54, %v3323_v15  ;;  %v2763_v21 = vsel %vm1453_vm2, %v2762_v5, %v2761_v16  ;;  %v3326_v24 = vrot.slane %v10432_v13, 7  ;;  %v3328_v25 = vrot.slane %v10433_v14, 6 }
 0x19f   : > { %v10436_v19 = vld [vmem:[%s12076_s19 + $0x7d9] sm:$0x1]  ;;  %v10437_v22 = vld [vmem:[%s12076_s19 + $0x7e9] sm:$0x1]  ;;  %3370 = vxpose.xlu1.b32.cont [15/16] (narrow) %v3325_v20, 8  ;;  %v2765_v26 = vsel %vm1456_vm3, %v2764_v6, %v2763_v21  ;;  %v3330_v27 = vrot.slane %v10434_v17, 5 }
 0x1a0   : > { %v10438_v23 = vld [vmem:[%s12076_s19 + $0x7f9] sm:$0x1]  ;;  %v3332_v28 = vrot.slane %v10435_v18, 4  ;;  %v3334_v29 = vrot.slane %v10436_v19, 3  ;;  %v10301_v30 = vld [vmem:[%s12076_s19 + $0x788] sm:$0x1]  ;;  %v2767_v31 = vsel %vm1459_vm4, %v2766_v7, %v2765_v26  ;;  %v3327_v32 = vsel %vm1447_vm0, %v3326_v24, %v10431_v8 }
 0x1a1   : > { %v3336_v33 = vrot.slane %v10437_v22, 2  ;;  %v3338_v34 = vrot.slane %v10438_v23, 1  ;;  %v10302_v35 = vld [vmem:[%s12076_s19 + $0x798] sm:$0x1]  ;;  %v10303_v36 = vld [vmem:[%s12076_s19 + $0x7a8] sm:$0x1]  ;;  %v2769_v37 = vsel %vm1462_vm5, %v2768_v11, %v2767_v31  ;;  %v3329_v38 = vsel %vm1450_vm1, %v3328_v25, %v3327_v32 }
 0x1a2   : > { %v10304_v39 = vld [vmem:[%s12076_s19 + $0x7b8] sm:$0x1]  ;;  %v10305_v40 = vld [vmem:[%s12076_s19 + $0x7c8] sm:$0x1]  ;;  %v2771_v42 = vsel %vm1465_vm6, %v2770_v12, %v2769_v37  ;;  %v3331_v43 = vsel %vm1453_vm2, %v3330_v27, %v3329_v38  ;;  %v2772_v46 = vrot.slane %v10302_v35, 7  ;;  %v2774_v47 = vrot.slane %v10303_v36, 6 }
 0x1a3   : > { %v10306_v41 = vld [vmem:[%s12076_s19 + $0x7d8] sm:$0x1]  ;;  %v10307_v44 = vld [vmem:[%s12076_s19 + $0x7e8] sm:$0x1]  ;;  %2816 = vxpose.xlu0.b32.cont [15/16] (narrow) %v2771_v42, 8  ;;  %v3333_v48 = vsel %vm1456_vm3, %v3332_v28, %v3331_v43  ;;  %v2776_v49 = vrot.slane %v10304_v39, 5 }
 0x1a4   : > { %v10308_v45 = vld [vmem:[%s12076_s19 + $0x7f8] sm:$0x1]  ;;  %v2778_v50 = vrot.slane %v10305_v40, 4  ;;  %v2780_v51 = vrot.slane %v10306_v41, 3  ;;  %v3969_v52 = vld [vmem:[%s12076_s19 + $0x3] sm:$0x1]  ;;  %v3335_v53 = vsel %vm1459_vm4, %v3334_v29, %v3333_v48  ;;  %v2773_v54 = vsel %vm1447_vm0, %v2772_v46, %v10301_v30 }
 0x1a5   : > { %v2782_v55 = vrot.slane %v10307_v44, 2  ;;  %v2784_v56 = vrot.slane %v10308_v45, 1  ;;  %v3970_v57 = vld [vmem:[%s12076_s19 + $0x13] sm:$0x1]  ;;  %v3971_v58 = vld [vmem:[%s12076_s19 + $0x23] sm:$0x1]  ;;  %v3337_v59 = vsel %vm1462_vm5, %v3336_v33, %v3335_v53  ;;  %v2775_v60 = vsel %vm1450_vm1, %v2774_v47, %v2773_v54 }
 0x1a6   : > { %v3972_v61 = vld [vmem:[%s12076_s19 + $0x33] sm:$0x1]  ;;  %v3973_v62 = vld [vmem:[%s12076_s19 + $0x43] sm:$0x1]  ;;  %v3339_v0 = vsel %vm1465_vm6, %v3338_v34, %v3337_v59  ;;  %v2777_v1 = vsel %vm1453_vm2, %v2776_v49, %v2775_v60  ;;  %v4225_v4 = vrot.slane %v3970_v57, 7  ;;  %v4227_v5 = vrot.slane %v3971_v58, 6 }
 0x1a7   : > { %v3974_v63 = vld [vmem:[%s12076_s19 + $0x53] sm:$0x1]  ;;  %v3975_v2 = vld [vmem:[%s12076_s19 + $0x63] sm:$0x1]  ;;  %3371 = vxpose.xlu1.b32.end [16/16] (narrow) %v3339_v0, 8  ;;  %v2779_v6 = vsel %vm1456_vm3, %v2778_v50, %v2777_v1  ;;  %v4229_v7 = vrot.slane %v3972_v61, 5 }
 0x1a8   : > { %v3976_v3 = vld [vmem:[%s12076_s19 + $0x73] sm:$0x1]  ;;  %v4231_v8 = vrot.slane %v3973_v62, 4  ;;  %v4233_v9 = vrot.slane %v3974_v63, 3  ;;  %v3414_v10 = vld [vmem:[%s12076_s19 + $0x2] sm:$0x1]  ;;  %v2781_v11 = vsel %vm1459_vm4, %v2780_v51, %v2779_v6  ;;  %v4226_v12 = vsel %vm1447_vm0, %v4225_v4, %v3969_v52 }
 0x1a9   : > { %v4235_v13 = vrot.slane %v3975_v2, 2  ;;  %v4237_v14 = vrot.slane %v3976_v3, 1  ;;  %v3415_v15 = vld [vmem:[%s12076_s19 + $0x12] sm:$0x1]  ;;  %v3416_v16 = vld [vmem:[%s12076_s19 + $0x22] sm:$0x1]  ;;  %v2783_v17 = vsel %vm1462_vm5, %v2782_v55, %v2781_v11  ;;  %v4228_v18 = vsel %vm1450_vm1, %v4227_v5, %v4226_v12 }
 0x1aa   : > { %v3417_v19 = vld [vmem:[%s12076_s19 + $0x32] sm:$0x1]  ;;  %v3418_v20 = vld [vmem:[%s12076_s19 + $0x42] sm:$0x1]  ;;  %v2785_v22 = vsel %vm1465_vm6, %v2784_v56, %v2783_v17  ;;  %v4230_v23 = vsel %vm1453_vm2, %v4229_v7, %v4228_v18  ;;  %v3670_v26 = vrot.slane %v3415_v15, 7  ;;  %v3672_v27 = vrot.slane %v3416_v16, 6 }
 0x1ab   : > { %v3419_v21 = vld [vmem:[%s12076_s19 + $0x52] sm:$0x1]  ;;  %v3420_v24 = vld [vmem:[%s12076_s19 + $0x62] sm:$0x1]  ;;  %2817 = vxpose.xlu0.b32.end [16/16] (narrow) %v2785_v22, 8  ;;  %v4232_v28 = vsel %vm1456_vm3, %v4231_v8, %v4230_v23  ;;  %v3674_v29 = vrot.slane %v3417_v19, 5 }
 0x1ac   : > { %v3421_v25 = vld [vmem:[%s12076_s19 + $0x72] sm:$0x1]  ;;  %v3676_v30 = vrot.slane %v3418_v20, 4  ;;  %v3678_v31 = vrot.slane %v3419_v21, 3  ;;  %v3977_v32 = vld [vmem:[%s12076_s19 + $0x83] sm:$0x1]  ;;  %v4234_v33 = vsel %vm1459_vm4, %v4233_v9, %v4232_v28  ;;  %v3671_v34 = vsel %vm1447_vm0, %v3670_v26, %v3414_v10 }
 0x1ad   : > { %v3680_v35 = vrot.slane %v3420_v24, 2  ;;  %v3682_v36 = vrot.slane %v3421_v25, 1  ;;  %v3978_v37 = vld [vmem:[%s12076_s19 + $0x93] sm:$0x1]  ;;  %v3979_v38 = vld [vmem:[%s12076_s19 + $0xa3] sm:$0x1]  ;;  %v4236_v39 = vsel %vm1462_vm5, %v4235_v13, %v4234_v33  ;;  %v3673_v40 = vsel %vm1450_vm1, %v3672_v27, %v3671_v34 }
 0x1ae   : > { %v3980_v41 = vld [vmem:[%s12076_s19 + $0xb3] sm:$0x1]  ;;  %v3981_v42 = vld [vmem:[%s12076_s19 + $0xc3] sm:$0x1]  ;;  %v4238_v44 = vsel %vm1465_vm6, %v4237_v14, %v4236_v39  ;;  %v3675_v45 = vsel %vm1453_vm2, %v3674_v29, %v3673_v40  ;;  %v4239_v48 = vrot.slane %v3978_v37, 7  ;;  %v4241_v49 = vrot.slane %v3979_v38, 6 }
 0x1af   : > { %v3982_v43 = vld [vmem:[%s12076_s19 + $0xd3] sm:$0x1]  ;;  %v3983_v46 = vld [vmem:[%s12076_s19 + $0xe3] sm:$0x1]  ;;  %4465 = vxpose.xlu1.b32.start [1/16] (narrow) %v4238_v44, 8  ;;  %v3677_v50 = vsel %vm1456_vm3, %v3676_v30, %v3675_v45  ;;  %v4243_v51 = vrot.slane %v3980_v41, 5 }
 0x1b0   : > { %v3984_v47 = vld [vmem:[%s12076_s19 + $0xf3] sm:$0x1]  ;;  %v4245_v52 = vrot.slane %v3981_v42, 4  ;;  %v4247_v53 = vrot.slane %v3982_v43, 3  ;;  %v3422_v54 = vld [vmem:[%s12076_s19 + $0x82] sm:$0x1]  ;;  %v3679_v55 = vsel %vm1459_vm4, %v3678_v31, %v3677_v50  ;;  %v4240_v56 = vsel %vm1447_vm0, %v4239_v48, %v3977_v32 }
 0x1b1   : > { %v4249_v57 = vrot.slane %v3983_v46, 2  ;;  %v4251_v58 = vrot.slane %v3984_v47, 1  ;;  %v3423_v59 = vld [vmem:[%s12076_s19 + $0x92] sm:$0x1]  ;;  %v3424_v60 = vld [vmem:[%s12076_s19 + $0xa2] sm:$0x1]  ;;  %v3681_v61 = vsel %vm1462_vm5, %v3680_v35, %v3679_v55  ;;  %v4242_v62 = vsel %vm1450_vm1, %v4241_v49, %v4240_v56 }
 0x1b2   : > { %v3425_v63 = vld [vmem:[%s12076_s19 + $0xb2] sm:$0x1]  ;;  %v3426_v0 = vld [vmem:[%s12076_s19 + $0xc2] sm:$0x1]  ;;  %v3683_v2 = vsel %vm1465_vm6, %v3682_v36, %v3681_v61  ;;  %v4244_v3 = vsel %vm1453_vm2, %v4243_v51, %v4242_v62  ;;  %v3684_v6 = vrot.slane %v3423_v59, 7  ;;  %v3686_v7 = vrot.slane %v3424_v60, 6 }
 0x1b3   : > { %v3427_v1 = vld [vmem:[%s12076_s19 + $0xd2] sm:$0x1]  ;;  %v3428_v4 = vld [vmem:[%s12076_s19 + $0xe2] sm:$0x1]  ;;  %3910 = vxpose.xlu0.b32.start [1/16] (narrow) %v3683_v2, 8  ;;  %v4246_v8 = vsel %vm1456_vm3, %v4245_v52, %v4244_v3  ;;  %v3688_v9 = vrot.slane %v3425_v63, 5 }
 0x1b4   : > { %v3429_v5 = vld [vmem:[%s12076_s19 + $0xf2] sm:$0x1]  ;;  %v3690_v10 = vrot.slane %v3426_v0, 4  ;;  %v3692_v11 = vrot.slane %v3427_v1, 3  ;;  %v3985_v12 = vld [vmem:[%s12076_s19 + $0x103] sm:$0x1]  ;;  %v4248_v13 = vsel %vm1459_vm4, %v4247_v53, %v4246_v8  ;;  %v3685_v14 = vsel %vm1447_vm0, %v3684_v6, %v3422_v54 }
 0x1b5   : > { %v3694_v15 = vrot.slane %v3428_v4, 2  ;;  %v3696_v16 = vrot.slane %v3429_v5, 1  ;;  %v3986_v17 = vld [vmem:[%s12076_s19 + $0x113] sm:$0x1]  ;;  %v3987_v18 = vld [vmem:[%s12076_s19 + $0x123] sm:$0x1]  ;;  %v4250_v19 = vsel %vm1462_vm5, %v4249_v57, %v4248_v13  ;;  %v3687_v20 = vsel %vm1450_vm1, %v3686_v7, %v3685_v14 }
 0x1b6   : > { %v3988_v21 = vld [vmem:[%s12076_s19 + $0x133] sm:$0x1]  ;;  %v3989_v22 = vld [vmem:[%s12076_s19 + $0x143] sm:$0x1]  ;;  %v4252_v24 = vsel %vm1465_vm6, %v4251_v58, %v4250_v19  ;;  %v3689_v25 = vsel %vm1453_vm2, %v3688_v9, %v3687_v20  ;;  %v4253_v28 = vrot.slane %v3986_v17, 7  ;;  %v4255_v29 = vrot.slane %v3987_v18, 6 }
 0x1b7   : > { %v3990_v23 = vld [vmem:[%s12076_s19 + $0x153] sm:$0x1]  ;;  %v3991_v26 = vld [vmem:[%s12076_s19 + $0x163] sm:$0x1]  ;;  %4466 = vxpose.xlu1.b32.cont [2/16] (narrow) %v4252_v24, 8  ;;  %v3691_v30 = vsel %vm1456_vm3, %v3690_v10, %v3689_v25  ;;  %v4257_v31 = vrot.slane %v3988_v21, 5 }
 0x1b8   : > { %v3992_v27 = vld [vmem:[%s12076_s19 + $0x173] sm:$0x1]  ;;  %v4259_v32 = vrot.slane %v3989_v22, 4  ;;  %v4261_v33 = vrot.slane %v3990_v23, 3  ;;  %v3430_v34 = vld [vmem:[%s12076_s19 + $0x102] sm:$0x1]  ;;  %v3693_v35 = vsel %vm1459_vm4, %v3692_v11, %v3691_v30  ;;  %v4254_v36 = vsel %vm1447_vm0, %v4253_v28, %v3985_v12 }
 0x1b9   : > { %v4263_v37 = vrot.slane %v3991_v26, 2  ;;  %v4265_v38 = vrot.slane %v3992_v27, 1  ;;  %v3431_v39 = vld [vmem:[%s12076_s19 + $0x112] sm:$0x1]  ;;  %v3432_v40 = vld [vmem:[%s12076_s19 + $0x122] sm:$0x1]  ;;  %v3695_v41 = vsel %vm1462_vm5, %v3694_v15, %v3693_v35  ;;  %v4256_v42 = vsel %vm1450_vm1, %v4255_v29, %v4254_v36 }
 0x1ba   : > { %v3433_v43 = vld [vmem:[%s12076_s19 + $0x132] sm:$0x1]  ;;  %v3434_v44 = vld [vmem:[%s12076_s19 + $0x142] sm:$0x1]  ;;  %v3697_v46 = vsel %vm1465_vm6, %v3696_v16, %v3695_v41  ;;  %v4258_v47 = vsel %vm1453_vm2, %v4257_v31, %v4256_v42  ;;  %v3698_v50 = vrot.slane %v3431_v39, 7  ;;  %v3700_v51 = vrot.slane %v3432_v40, 6 }
 0x1bb   : > { %v3435_v45 = vld [vmem:[%s12076_s19 + $0x152] sm:$0x1]  ;;  %v3436_v48 = vld [vmem:[%s12076_s19 + $0x162] sm:$0x1]  ;;  %3911 = vxpose.xlu0.b32.cont [2/16] (narrow) %v3697_v46, 8  ;;  %v4260_v52 = vsel %vm1456_vm3, %v4259_v32, %v4258_v47  ;;  %v3702_v53 = vrot.slane %v3433_v43, 5 }
 0x1bc   : > { %v3437_v49 = vld [vmem:[%s12076_s19 + $0x172] sm:$0x1]  ;;  %v3704_v54 = vrot.slane %v3434_v44, 4  ;;  %v3706_v55 = vrot.slane %v3435_v45, 3  ;;  %v3993_v56 = vld [vmem:[%s12076_s19 + $0x183] sm:$0x1]  ;;  %v4262_v57 = vsel %vm1459_vm4, %v4261_v33, %v4260_v52  ;;  %v3699_v58 = vsel %vm1447_vm0, %v3698_v50, %v3430_v34 }
 0x1bd   : > { %v3708_v59 = vrot.slane %v3436_v48, 2  ;;  %v3710_v60 = vrot.slane %v3437_v49, 1  ;;  %v3994_v61 = vld [vmem:[%s12076_s19 + $0x193] sm:$0x1]  ;;  %v3995_v62 = vld [vmem:[%s12076_s19 + $0x1a3] sm:$0x1]  ;;  %v4264_v63 = vsel %vm1462_vm5, %v4263_v37, %v4262_v57  ;;  %v3701_v0 = vsel %vm1450_vm1, %v3700_v51, %v3699_v58 }
 0x1be   : > { %v3996_v1 = vld [vmem:[%s12076_s19 + $0x1b3] sm:$0x1]  ;;  %v3997_v2 = vld [vmem:[%s12076_s19 + $0x1c3] sm:$0x1]  ;;  %v4266_v4 = vsel %vm1465_vm6, %v4265_v38, %v4264_v63  ;;  %v3703_v5 = vsel %vm1453_vm2, %v3702_v53, %v3701_v0  ;;  %v4267_v8 = vrot.slane %v3994_v61, 7  ;;  %v4269_v9 = vrot.slane %v3995_v62, 6 }
 0x1bf   : > { %v3998_v3 = vld [vmem:[%s12076_s19 + $0x1d3] sm:$0x1]  ;;  %v3999_v6 = vld [vmem:[%s12076_s19 + $0x1e3] sm:$0x1]  ;;  %4467 = vxpose.xlu1.b32.cont [3/16] (narrow) %v4266_v4, 8  ;;  %v3705_v10 = vsel %vm1456_vm3, %v3704_v54, %v3703_v5  ;;  %v4271_v11 = vrot.slane %v3996_v1, 5 }
 0x1c0   : > { %v4000_v7 = vld [vmem:[%s12076_s19 + $0x1f3] sm:$0x1]  ;;  %v4273_v12 = vrot.slane %v3997_v2, 4  ;;  %v4275_v13 = vrot.slane %v3998_v3, 3  ;;  %v3438_v14 = vld [vmem:[%s12076_s19 + $0x182] sm:$0x1]  ;;  %v3707_v15 = vsel %vm1459_vm4, %v3706_v55, %v3705_v10  ;;  %v4268_v16 = vsel %vm1447_vm0, %v4267_v8, %v3993_v56 }
 0x1c1   : > { %v4277_v17 = vrot.slane %v3999_v6, 2  ;;  %v4279_v18 = vrot.slane %v4000_v7, 1  ;;  %v3439_v19 = vld [vmem:[%s12076_s19 + $0x192] sm:$0x1]  ;;  %v3440_v20 = vld [vmem:[%s12076_s19 + $0x1a2] sm:$0x1]  ;;  %v3709_v21 = vsel %vm1462_vm5, %v3708_v59, %v3707_v15  ;;  %v4270_v22 = vsel %vm1450_vm1, %v4269_v9, %v4268_v16 }
 0x1c2   : > { %v3441_v23 = vld [vmem:[%s12076_s19 + $0x1b2] sm:$0x1]  ;;  %v3442_v24 = vld [vmem:[%s12076_s19 + $0x1c2] sm:$0x1]  ;;  %v3711_v26 = vsel %vm1465_vm6, %v3710_v60, %v3709_v21  ;;  %v4272_v27 = vsel %vm1453_vm2, %v4271_v11, %v4270_v22  ;;  %v3712_v30 = vrot.slane %v3439_v19, 7  ;;  %v3714_v31 = vrot.slane %v3440_v20, 6 }
 0x1c3   : > { %v3443_v25 = vld [vmem:[%s12076_s19 + $0x1d2] sm:$0x1]  ;;  %v3444_v28 = vld [vmem:[%s12076_s19 + $0x1e2] sm:$0x1]  ;;  %3912 = vxpose.xlu0.b32.cont [3/16] (narrow) %v3711_v26, 8  ;;  %v4274_v32 = vsel %vm1456_vm3, %v4273_v12, %v4272_v27  ;;  %v3716_v33 = vrot.slane %v3441_v23, 5 }
 0x1c4   : > { %v3445_v29 = vld [vmem:[%s12076_s19 + $0x1f2] sm:$0x1]  ;;  %v3718_v34 = vrot.slane %v3442_v24, 4  ;;  %v3720_v35 = vrot.slane %v3443_v25, 3  ;;  %v4001_v36 = vld [vmem:[%s12076_s19 + $0x203] sm:$0x1]  ;;  %v4276_v37 = vsel %vm1459_vm4, %v4275_v13, %v4274_v32  ;;  %v3713_v38 = vsel %vm1447_vm0, %v3712_v30, %v3438_v14 }
 0x1c5   : > { %v3722_v39 = vrot.slane %v3444_v28, 2  ;;  %v3724_v40 = vrot.slane %v3445_v29, 1  ;;  %v4002_v41 = vld [vmem:[%s12076_s19 + $0x213] sm:$0x1]  ;;  %v4003_v42 = vld [vmem:[%s12076_s19 + $0x223] sm:$0x1]  ;;  %v4278_v43 = vsel %vm1462_vm5, %v4277_v17, %v4276_v37  ;;  %v3715_v44 = vsel %vm1450_vm1, %v3714_v31, %v3713_v38 }
 0x1c6   : > { %v4004_v45 = vld [vmem:[%s12076_s19 + $0x233] sm:$0x1]  ;;  %v4005_v46 = vld [vmem:[%s12076_s19 + $0x243] sm:$0x1]  ;;  %v4280_v48 = vsel %vm1465_vm6, %v4279_v18, %v4278_v43  ;;  %v3717_v49 = vsel %vm1453_vm2, %v3716_v33, %v3715_v44  ;;  %v4281_v52 = vrot.slane %v4002_v41, 7  ;;  %v4283_v53 = vrot.slane %v4003_v42, 6 }
 0x1c7   : > { %v4006_v47 = vld [vmem:[%s12076_s19 + $0x253] sm:$0x1]  ;;  %v4007_v50 = vld [vmem:[%s12076_s19 + $0x263] sm:$0x1]  ;;  %4468 = vxpose.xlu1.b32.cont [4/16] (narrow) %v4280_v48, 8  ;;  %v3719_v54 = vsel %vm1456_vm3, %v3718_v34, %v3717_v49  ;;  %v4285_v55 = vrot.slane %v4004_v45, 5 }
 0x1c8   : > { %v4008_v51 = vld [vmem:[%s12076_s19 + $0x273] sm:$0x1]  ;;  %v4287_v56 = vrot.slane %v4005_v46, 4  ;;  %v4289_v57 = vrot.slane %v4006_v47, 3  ;;  %v3446_v58 = vld [vmem:[%s12076_s19 + $0x202] sm:$0x1]  ;;  %v3721_v59 = vsel %vm1459_vm4, %v3720_v35, %v3719_v54  ;;  %v4282_v60 = vsel %vm1447_vm0, %v4281_v52, %v4001_v36 }
 0x1c9   : > { %v4291_v61 = vrot.slane %v4007_v50, 2  ;;  %v4293_v62 = vrot.slane %v4008_v51, 1  ;;  %v3447_v63 = vld [vmem:[%s12076_s19 + $0x212] sm:$0x1]  ;;  %v3448_v0 = vld [vmem:[%s12076_s19 + $0x222] sm:$0x1]  ;;  %v3723_v1 = vsel %vm1462_vm5, %v3722_v39, %v3721_v59  ;;  %v4284_v2 = vsel %vm1450_vm1, %v4283_v53, %v4282_v60 }
 0x1ca   : > { %v3449_v3 = vld [vmem:[%s12076_s19 + $0x232] sm:$0x1]  ;;  %v3450_v4 = vld [vmem:[%s12076_s19 + $0x242] sm:$0x1]  ;;  %v3725_v6 = vsel %vm1465_vm6, %v3724_v40, %v3723_v1  ;;  %v4286_v7 = vsel %vm1453_vm2, %v4285_v55, %v4284_v2  ;;  %v3726_v10 = vrot.slane %v3447_v63, 7  ;;  %v3728_v11 = vrot.slane %v3448_v0, 6 }
 0x1cb   : > { %v3451_v5 = vld [vmem:[%s12076_s19 + $0x252] sm:$0x1]  ;;  %v3452_v8 = vld [vmem:[%s12076_s19 + $0x262] sm:$0x1]  ;;  %3913 = vxpose.xlu0.b32.cont [4/16] (narrow) %v3725_v6, 8  ;;  %v4288_v12 = vsel %vm1456_vm3, %v4287_v56, %v4286_v7  ;;  %v3730_v13 = vrot.slane %v3449_v3, 5 }
 0x1cc   : > { %v3453_v9 = vld [vmem:[%s12076_s19 + $0x272] sm:$0x1]  ;;  %v3732_v14 = vrot.slane %v3450_v4, 4  ;;  %v3734_v15 = vrot.slane %v3451_v5, 3  ;;  %v4009_v16 = vld [vmem:[%s12076_s19 + $0x283] sm:$0x1]  ;;  %v4290_v17 = vsel %vm1459_vm4, %v4289_v57, %v4288_v12  ;;  %v3727_v18 = vsel %vm1447_vm0, %v3726_v10, %v3446_v58 }
 0x1cd   : > { %v3736_v19 = vrot.slane %v3452_v8, 2  ;;  %v3738_v20 = vrot.slane %v3453_v9, 1  ;;  %v4010_v21 = vld [vmem:[%s12076_s19 + $0x293] sm:$0x1]  ;;  %v4011_v22 = vld [vmem:[%s12076_s19 + $0x2a3] sm:$0x1]  ;;  %v4292_v23 = vsel %vm1462_vm5, %v4291_v61, %v4290_v17  ;;  %v3729_v24 = vsel %vm1450_vm1, %v3728_v11, %v3727_v18 }
 0x1ce   : > { %v4012_v25 = vld [vmem:[%s12076_s19 + $0x2b3] sm:$0x1]  ;;  %v4013_v26 = vld [vmem:[%s12076_s19 + $0x2c3] sm:$0x1]  ;;  %v4294_v28 = vsel %vm1465_vm6, %v4293_v62, %v4292_v23  ;;  %v3731_v29 = vsel %vm1453_vm2, %v3730_v13, %v3729_v24  ;;  %v4295_v32 = vrot.slane %v4010_v21, 7  ;;  %v4297_v33 = vrot.slane %v4011_v22, 6 }
 0x1cf   : > { %v4014_v27 = vld [vmem:[%s12076_s19 + $0x2d3] sm:$0x1]  ;;  %v4015_v30 = vld [vmem:[%s12076_s19 + $0x2e3] sm:$0x1]  ;;  %4469 = vxpose.xlu1.b32.cont [5/16] (narrow) %v4294_v28, 8  ;;  %v3733_v34 = vsel %vm1456_vm3, %v3732_v14, %v3731_v29  ;;  %v4299_v35 = vrot.slane %v4012_v25, 5 }
 0x1d0   : > { %v4016_v31 = vld [vmem:[%s12076_s19 + $0x2f3] sm:$0x1]  ;;  %v4301_v36 = vrot.slane %v4013_v26, 4  ;;  %v4303_v37 = vrot.slane %v4014_v27, 3  ;;  %v3454_v38 = vld [vmem:[%s12076_s19 + $0x282] sm:$0x1]  ;;  %v3735_v39 = vsel %vm1459_vm4, %v3734_v15, %v3733_v34  ;;  %v4296_v40 = vsel %vm1447_vm0, %v4295_v32, %v4009_v16 }
 0x1d1   : > { %v4305_v41 = vrot.slane %v4015_v30, 2  ;;  %v4307_v42 = vrot.slane %v4016_v31, 1  ;;  %v3455_v43 = vld [vmem:[%s12076_s19 + $0x292] sm:$0x1]  ;;  %v3456_v44 = vld [vmem:[%s12076_s19 + $0x2a2] sm:$0x1]  ;;  %v3737_v45 = vsel %vm1462_vm5, %v3736_v19, %v3735_v39  ;;  %v4298_v46 = vsel %vm1450_vm1, %v4297_v33, %v4296_v40 }
 0x1d2   : > { %v3457_v47 = vld [vmem:[%s12076_s19 + $0x2b2] sm:$0x1]  ;;  %v3458_v48 = vld [vmem:[%s12076_s19 + $0x2c2] sm:$0x1]  ;;  %v3739_v50 = vsel %vm1465_vm6, %v3738_v20, %v3737_v45  ;;  %v4300_v51 = vsel %vm1453_vm2, %v4299_v35, %v4298_v46  ;;  %v3740_v54 = vrot.slane %v3455_v43, 7  ;;  %v3742_v55 = vrot.slane %v3456_v44, 6 }
 0x1d3   : > { %v3459_v49 = vld [vmem:[%s12076_s19 + $0x2d2] sm:$0x1]  ;;  %v3460_v52 = vld [vmem:[%s12076_s19 + $0x2e2] sm:$0x1]  ;;  %3914 = vxpose.xlu0.b32.cont [5/16] (narrow) %v3739_v50, 8  ;;  %v4302_v56 = vsel %vm1456_vm3, %v4301_v36, %v4300_v51  ;;  %v3744_v57 = vrot.slane %v3457_v47, 5 }
 0x1d4   : > { %v3461_v53 = vld [vmem:[%s12076_s19 + $0x2f2] sm:$0x1]  ;;  %v3746_v58 = vrot.slane %v3458_v48, 4  ;;  %v3748_v59 = vrot.slane %v3459_v49, 3  ;;  %v4017_v60 = vld [vmem:[%s12076_s19 + $0x303] sm:$0x1]  ;;  %v4304_v61 = vsel %vm1459_vm4, %v4303_v37, %v4302_v56  ;;  %v3741_v62 = vsel %vm1447_vm0, %v3740_v54, %v3454_v38 }
 0x1d5   : > { %v3750_v63 = vrot.slane %v3460_v52, 2  ;;  %v3752_v0 = vrot.slane %v3461_v53, 1  ;;  %v4018_v1 = vld [vmem:[%s12076_s19 + $0x313] sm:$0x1]  ;;  %v4019_v2 = vld [vmem:[%s12076_s19 + $0x323] sm:$0x1]  ;;  %v4306_v3 = vsel %vm1462_vm5, %v4305_v41, %v4304_v61  ;;  %v3743_v4 = vsel %vm1450_vm1, %v3742_v55, %v3741_v62 }
 0x1d6   : > { %v4020_v5 = vld [vmem:[%s12076_s19 + $0x333] sm:$0x1]  ;;  %v4021_v6 = vld [vmem:[%s12076_s19 + $0x343] sm:$0x1]  ;;  %v4308_v8 = vsel %vm1465_vm6, %v4307_v42, %v4306_v3  ;;  %v3745_v9 = vsel %vm1453_vm2, %v3744_v57, %v3743_v4  ;;  %v4309_v12 = vrot.slane %v4018_v1, 7  ;;  %v4311_v13 = vrot.slane %v4019_v2, 6 }
 0x1d7   : > { %v4022_v7 = vld [vmem:[%s12076_s19 + $0x353] sm:$0x1]  ;;  %v4023_v10 = vld [vmem:[%s12076_s19 + $0x363] sm:$0x1]  ;;  %4470 = vxpose.xlu1.b32.cont [6/16] (narrow) %v4308_v8, 8  ;;  %v3747_v14 = vsel %vm1456_vm3, %v3746_v58, %v3745_v9  ;;  %v4313_v15 = vrot.slane %v4020_v5, 5 }
 0x1d8   : > { %v4024_v11 = vld [vmem:[%s12076_s19 + $0x373] sm:$0x1]  ;;  %v4315_v16 = vrot.slane %v4021_v6, 4  ;;  %v4317_v17 = vrot.slane %v4022_v7, 3  ;;  %v3462_v18 = vld [vmem:[%s12076_s19 + $0x302] sm:$0x1]  ;;  %v3749_v19 = vsel %vm1459_vm4, %v3748_v59, %v3747_v14  ;;  %v4310_v20 = vsel %vm1447_vm0, %v4309_v12, %v4017_v60 }
 0x1d9   : > { %v4319_v21 = vrot.slane %v4023_v10, 2  ;;  %v4321_v22 = vrot.slane %v4024_v11, 1  ;;  %v3463_v23 = vld [vmem:[%s12076_s19 + $0x312] sm:$0x1]  ;;  %v3464_v24 = vld [vmem:[%s12076_s19 + $0x322] sm:$0x1]  ;;  %v3751_v25 = vsel %vm1462_vm5, %v3750_v63, %v3749_v19  ;;  %v4312_v26 = vsel %vm1450_vm1, %v4311_v13, %v4310_v20 }
 0x1da   : > { %v3465_v27 = vld [vmem:[%s12076_s19 + $0x332] sm:$0x1]  ;;  %v3466_v28 = vld [vmem:[%s12076_s19 + $0x342] sm:$0x1]  ;;  %v3753_v30 = vsel %vm1465_vm6, %v3752_v0, %v3751_v25  ;;  %v4314_v31 = vsel %vm1453_vm2, %v4313_v15, %v4312_v26  ;;  %v3754_v34 = vrot.slane %v3463_v23, 7  ;;  %v3756_v35 = vrot.slane %v3464_v24, 6 }
 0x1db   : > { %v3467_v29 = vld [vmem:[%s12076_s19 + $0x352] sm:$0x1]  ;;  %v3468_v32 = vld [vmem:[%s12076_s19 + $0x362] sm:$0x1]  ;;  %3915 = vxpose.xlu0.b32.cont [6/16] (narrow) %v3753_v30, 8  ;;  %v4316_v36 = vsel %vm1456_vm3, %v4315_v16, %v4314_v31  ;;  %v3758_v37 = vrot.slane %v3465_v27, 5 }
 0x1dc   : > { %v3469_v33 = vld [vmem:[%s12076_s19 + $0x372] sm:$0x1]  ;;  %v3760_v38 = vrot.slane %v3466_v28, 4  ;;  %v3762_v39 = vrot.slane %v3467_v29, 3  ;;  %v4025_v40 = vld [vmem:[%s12076_s19 + $0x383] sm:$0x1]  ;;  %v4318_v41 = vsel %vm1459_vm4, %v4317_v17, %v4316_v36  ;;  %v3755_v42 = vsel %vm1447_vm0, %v3754_v34, %v3462_v18 }
 0x1dd   : > { %v3764_v43 = vrot.slane %v3468_v32, 2  ;;  %v3766_v44 = vrot.slane %v3469_v33, 1  ;;  %v4026_v45 = vld [vmem:[%s12076_s19 + $0x393] sm:$0x1]  ;;  %v4027_v46 = vld [vmem:[%s12076_s19 + $0x3a3] sm:$0x1]  ;;  %v4320_v47 = vsel %vm1462_vm5, %v4319_v21, %v4318_v41  ;;  %v3757_v48 = vsel %vm1450_vm1, %v3756_v35, %v3755_v42 }
 0x1de   : > { %v4028_v49 = vld [vmem:[%s12076_s19 + $0x3b3] sm:$0x1]  ;;  %v4029_v50 = vld [vmem:[%s12076_s19 + $0x3c3] sm:$0x1]  ;;  %v4322_v52 = vsel %vm1465_vm6, %v4321_v22, %v4320_v47  ;;  %v3759_v53 = vsel %vm1453_vm2, %v3758_v37, %v3757_v48  ;;  %v4323_v56 = vrot.slane %v4026_v45, 7  ;;  %v4325_v57 = vrot.slane %v4027_v46, 6 }
 0x1df   : > { %v4030_v51 = vld [vmem:[%s12076_s19 + $0x3d3] sm:$0x1]  ;;  %v4031_v54 = vld [vmem:[%s12076_s19 + $0x3e3] sm:$0x1]  ;;  %4471 = vxpose.xlu1.b32.cont [7/16] (narrow) %v4322_v52, 8  ;;  %v3761_v58 = vsel %vm1456_vm3, %v3760_v38, %v3759_v53  ;;  %v4327_v59 = vrot.slane %v4028_v49, 5 }
 0x1e0   : > { %v4032_v55 = vld [vmem:[%s12076_s19 + $0x3f3] sm:$0x1]  ;;  %v4329_v60 = vrot.slane %v4029_v50, 4  ;;  %v4331_v61 = vrot.slane %v4030_v51, 3  ;;  %v3470_v62 = vld [vmem:[%s12076_s19 + $0x382] sm:$0x1]  ;;  %v3763_v63 = vsel %vm1459_vm4, %v3762_v39, %v3761_v58  ;;  %v4324_v0 = vsel %vm1447_vm0, %v4323_v56, %v4025_v40 }
 0x1e1   : > { %v4333_v1 = vrot.slane %v4031_v54, 2  ;;  %v4335_v2 = vrot.slane %v4032_v55, 1  ;;  %v3471_v3 = vld [vmem:[%s12076_s19 + $0x392] sm:$0x1]  ;;  %v3472_v4 = vld [vmem:[%s12076_s19 + $0x3a2] sm:$0x1]  ;;  %v3765_v5 = vsel %vm1462_vm5, %v3764_v43, %v3763_v63  ;;  %v4326_v6 = vsel %vm1450_vm1, %v4325_v57, %v4324_v0 }
 0x1e2   : > { %v3473_v7 = vld [vmem:[%s12076_s19 + $0x3b2] sm:$0x1]  ;;  %v3474_v8 = vld [vmem:[%s12076_s19 + $0x3c2] sm:$0x1]  ;;  %v3767_v10 = vsel %vm1465_vm6, %v3766_v44, %v3765_v5  ;;  %v4328_v11 = vsel %vm1453_vm2, %v4327_v59, %v4326_v6  ;;  %v3768_v14 = vrot.slane %v3471_v3, 7  ;;  %v3770_v15 = vrot.slane %v3472_v4, 6 }
 0x1e3   : > { %v3475_v9 = vld [vmem:[%s12076_s19 + $0x3d2] sm:$0x1]  ;;  %v3476_v12 = vld [vmem:[%s12076_s19 + $0x3e2] sm:$0x1]  ;;  %3916 = vxpose.xlu0.b32.cont [7/16] (narrow) %v3767_v10, 8  ;;  %v4330_v16 = vsel %vm1456_vm3, %v4329_v60, %v4328_v11  ;;  %v3772_v17 = vrot.slane %v3473_v7, 5 }
 0x1e4   : > { %v3477_v13 = vld [vmem:[%s12076_s19 + $0x3f2] sm:$0x1]  ;;  %v3774_v18 = vrot.slane %v3474_v8, 4  ;;  %v3776_v19 = vrot.slane %v3475_v9, 3  ;;  %v4033_v20 = vld [vmem:[%s12076_s19 + $0x403] sm:$0x1]  ;;  %v4332_v21 = vsel %vm1459_vm4, %v4331_v61, %v4330_v16  ;;  %v3769_v22 = vsel %vm1447_vm0, %v3768_v14, %v3470_v62 }
 0x1e5   : > { %v3778_v23 = vrot.slane %v3476_v12, 2  ;;  %v3780_v24 = vrot.slane %v3477_v13, 1  ;;  %v4034_v25 = vld [vmem:[%s12076_s19 + $0x413] sm:$0x1]  ;;  %v4035_v26 = vld [vmem:[%s12076_s19 + $0x423] sm:$0x1]  ;;  %v4334_v27 = vsel %vm1462_vm5, %v4333_v1, %v4332_v21  ;;  %v3771_v28 = vsel %vm1450_vm1, %v3770_v15, %v3769_v22 }
 0x1e6   : > { %v4036_v29 = vld [vmem:[%s12076_s19 + $0x433] sm:$0x1]  ;;  %v4037_v30 = vld [vmem:[%s12076_s19 + $0x443] sm:$0x1]  ;;  %v4336_v32 = vsel %vm1465_vm6, %v4335_v2, %v4334_v27  ;;  %v3773_v33 = vsel %vm1453_vm2, %v3772_v17, %v3771_v28  ;;  %v4337_v36 = vrot.slane %v4034_v25, 7  ;;  %v4339_v37 = vrot.slane %v4035_v26, 6 }
 0x1e7   : > { %v4038_v31 = vld [vmem:[%s12076_s19 + $0x453] sm:$0x1]  ;;  %v4039_v34 = vld [vmem:[%s12076_s19 + $0x463] sm:$0x1]  ;;  %4472 = vxpose.xlu1.b32.cont [8/16] (narrow) %v4336_v32, 8  ;;  %v3775_v38 = vsel %vm1456_vm3, %v3774_v18, %v3773_v33  ;;  %v4341_v39 = vrot.slane %v4036_v29, 5 }
 0x1e8   : > { %v4040_v35 = vld [vmem:[%s12076_s19 + $0x473] sm:$0x1]  ;;  %v4343_v40 = vrot.slane %v4037_v30, 4  ;;  %v4345_v41 = vrot.slane %v4038_v31, 3  ;;  %v3478_v42 = vld [vmem:[%s12076_s19 + $0x402] sm:$0x1]  ;;  %v3777_v43 = vsel %vm1459_vm4, %v3776_v19, %v3775_v38  ;;  %v4338_v44 = vsel %vm1447_vm0, %v4337_v36, %v4033_v20 }
 0x1e9   : > { %v4347_v45 = vrot.slane %v4039_v34, 2  ;;  %v4349_v46 = vrot.slane %v4040_v35, 1  ;;  %v3479_v47 = vld [vmem:[%s12076_s19 + $0x412] sm:$0x1]  ;;  %v3480_v48 = vld [vmem:[%s12076_s19 + $0x422] sm:$0x1]  ;;  %v3779_v49 = vsel %vm1462_vm5, %v3778_v23, %v3777_v43  ;;  %v4340_v50 = vsel %vm1450_vm1, %v4339_v37, %v4338_v44 }
 0x1ea   : > { %v3481_v51 = vld [vmem:[%s12076_s19 + $0x432] sm:$0x1]  ;;  %v3482_v52 = vld [vmem:[%s12076_s19 + $0x442] sm:$0x1]  ;;  %v3781_v54 = vsel %vm1465_vm6, %v3780_v24, %v3779_v49  ;;  %v4342_v55 = vsel %vm1453_vm2, %v4341_v39, %v4340_v50  ;;  %v3782_v58 = vrot.slane %v3479_v47, 7  ;;  %v3784_v59 = vrot.slane %v3480_v48, 6 }
 0x1eb   : > { %v3483_v53 = vld [vmem:[%s12076_s19 + $0x452] sm:$0x1]  ;;  %v3484_v56 = vld [vmem:[%s12076_s19 + $0x462] sm:$0x1]  ;;  %3917 = vxpose.xlu0.b32.cont [8/16] (narrow) %v3781_v54, 8  ;;  %v4344_v60 = vsel %vm1456_vm3, %v4343_v40, %v4342_v55  ;;  %v3786_v61 = vrot.slane %v3481_v51, 5 }
 0x1ec   : > { %v3485_v57 = vld [vmem:[%s12076_s19 + $0x472] sm:$0x1]  ;;  %v3788_v62 = vrot.slane %v3482_v52, 4  ;;  %v3790_v63 = vrot.slane %v3483_v53, 3  ;;  %v4041_v0 = vld [vmem:[%s12076_s19 + $0x483] sm:$0x1]  ;;  %v4346_v1 = vsel %vm1459_vm4, %v4345_v41, %v4344_v60  ;;  %v3783_v2 = vsel %vm1447_vm0, %v3782_v58, %v3478_v42 }
 0x1ed   : > { %v3792_v3 = vrot.slane %v3484_v56, 2  ;;  %v3794_v4 = vrot.slane %v3485_v57, 1  ;;  %v4042_v5 = vld [vmem:[%s12076_s19 + $0x493] sm:$0x1]  ;;  %v4043_v6 = vld [vmem:[%s12076_s19 + $0x4a3] sm:$0x1]  ;;  %v4348_v7 = vsel %vm1462_vm5, %v4347_v45, %v4346_v1  ;;  %v3785_v8 = vsel %vm1450_vm1, %v3784_v59, %v3783_v2 }
 0x1ee   : > { %v4044_v9 = vld [vmem:[%s12076_s19 + $0x4b3] sm:$0x1]  ;;  %v4045_v10 = vld [vmem:[%s12076_s19 + $0x4c3] sm:$0x1]  ;;  %v4350_v12 = vsel %vm1465_vm6, %v4349_v46, %v4348_v7  ;;  %v3787_v13 = vsel %vm1453_vm2, %v3786_v61, %v3785_v8  ;;  %v4351_v16 = vrot.slane %v4042_v5, 7  ;;  %v4353_v17 = vrot.slane %v4043_v6, 6 }
 0x1ef   : > { %v4046_v11 = vld [vmem:[%s12076_s19 + $0x4d3] sm:$0x1]  ;;  %v4047_v14 = vld [vmem:[%s12076_s19 + $0x4e3] sm:$0x1]  ;;  %4473 = vxpose.xlu1.b32.cont [9/16] (narrow) %v4350_v12, 8  ;;  %v3789_v18 = vsel %vm1456_vm3, %v3788_v62, %v3787_v13  ;;  %v4355_v19 = vrot.slane %v4044_v9, 5 }
 0x1f0   : > { %v4048_v15 = vld [vmem:[%s12076_s19 + $0x4f3] sm:$0x1]  ;;  %v4357_v20 = vrot.slane %v4045_v10, 4  ;;  %v4359_v21 = vrot.slane %v4046_v11, 3  ;;  %v3486_v22 = vld [vmem:[%s12076_s19 + $0x482] sm:$0x1]  ;;  %v3791_v23 = vsel %vm1459_vm4, %v3790_v63, %v3789_v18  ;;  %v4352_v24 = vsel %vm1447_vm0, %v4351_v16, %v4041_v0 }
 0x1f1   : > { %v4361_v25 = vrot.slane %v4047_v14, 2  ;;  %v4363_v26 = vrot.slane %v4048_v15, 1  ;;  %v3487_v27 = vld [vmem:[%s12076_s19 + $0x492] sm:$0x1]  ;;  %v3488_v28 = vld [vmem:[%s12076_s19 + $0x4a2] sm:$0x1]  ;;  %v3793_v29 = vsel %vm1462_vm5, %v3792_v3, %v3791_v23  ;;  %v4354_v30 = vsel %vm1450_vm1, %v4353_v17, %v4352_v24 }
 0x1f2   : > { %v3489_v31 = vld [vmem:[%s12076_s19 + $0x4b2] sm:$0x1]  ;;  %v3490_v32 = vld [vmem:[%s12076_s19 + $0x4c2] sm:$0x1]  ;;  %v3795_v34 = vsel %vm1465_vm6, %v3794_v4, %v3793_v29  ;;  %v4356_v35 = vsel %vm1453_vm2, %v4355_v19, %v4354_v30  ;;  %v3796_v38 = vrot.slane %v3487_v27, 7  ;;  %v3798_v39 = vrot.slane %v3488_v28, 6 }
 0x1f3   : > { %v3491_v33 = vld [vmem:[%s12076_s19 + $0x4d2] sm:$0x1]  ;;  %v3492_v36 = vld [vmem:[%s12076_s19 + $0x4e2] sm:$0x1]  ;;  %3918 = vxpose.xlu0.b32.cont [9/16] (narrow) %v3795_v34, 8  ;;  %v4358_v40 = vsel %vm1456_vm3, %v4357_v20, %v4356_v35  ;;  %v3800_v41 = vrot.slane %v3489_v31, 5 }
 0x1f4   : > { %v3493_v37 = vld [vmem:[%s12076_s19 + $0x4f2] sm:$0x1]  ;;  %v3802_v42 = vrot.slane %v3490_v32, 4  ;;  %v3804_v43 = vrot.slane %v3491_v33, 3  ;;  %v4049_v44 = vld [vmem:[%s12076_s19 + $0x503] sm:$0x1]  ;;  %v4360_v45 = vsel %vm1459_vm4, %v4359_v21, %v4358_v40  ;;  %v3797_v46 = vsel %vm1447_vm0, %v3796_v38, %v3486_v22 }
 0x1f5   : > { %v3806_v47 = vrot.slane %v3492_v36, 2  ;;  %v3808_v48 = vrot.slane %v3493_v37, 1  ;;  %v4050_v49 = vld [vmem:[%s12076_s19 + $0x513] sm:$0x1]  ;;  %v4051_v50 = vld [vmem:[%s12076_s19 + $0x523] sm:$0x1]  ;;  %v4362_v51 = vsel %vm1462_vm5, %v4361_v25, %v4360_v45  ;;  %v3799_v52 = vsel %vm1450_vm1, %v3798_v39, %v3797_v46 }
 0x1f6   : > { %v4052_v53 = vld [vmem:[%s12076_s19 + $0x533] sm:$0x1]  ;;  %v4053_v54 = vld [vmem:[%s12076_s19 + $0x543] sm:$0x1]  ;;  %v4364_v56 = vsel %vm1465_vm6, %v4363_v26, %v4362_v51  ;;  %v3801_v57 = vsel %vm1453_vm2, %v3800_v41, %v3799_v52  ;;  %v4365_v60 = vrot.slane %v4050_v49, 7  ;;  %v4367_v61 = vrot.slane %v4051_v50, 6 }
 0x1f7   : > { %v4054_v55 = vld [vmem:[%s12076_s19 + $0x553] sm:$0x1]  ;;  %v4055_v58 = vld [vmem:[%s12076_s19 + $0x563] sm:$0x1]  ;;  %4474 = vxpose.xlu1.b32.cont [10/16] (narrow) %v4364_v56, 8  ;;  %v3803_v62 = vsel %vm1456_vm3, %v3802_v42, %v3801_v57  ;;  %v4369_v63 = vrot.slane %v4052_v53, 5 }
 0x1f8   : > { %v4056_v59 = vld [vmem:[%s12076_s19 + $0x573] sm:$0x1]  ;;  %v4371_v0 = vrot.slane %v4053_v54, 4  ;;  %v4373_v1 = vrot.slane %v4054_v55, 3  ;;  %v3494_v2 = vld [vmem:[%s12076_s19 + $0x502] sm:$0x1]  ;;  %v3805_v3 = vsel %vm1459_vm4, %v3804_v43, %v3803_v62  ;;  %v4366_v4 = vsel %vm1447_vm0, %v4365_v60, %v4049_v44 }
 0x1f9   : > { %v4375_v5 = vrot.slane %v4055_v58, 2  ;;  %v4377_v6 = vrot.slane %v4056_v59, 1  ;;  %v3495_v7 = vld [vmem:[%s12076_s19 + $0x512] sm:$0x1]  ;;  %v3496_v8 = vld [vmem:[%s12076_s19 + $0x522] sm:$0x1]  ;;  %v3807_v9 = vsel %vm1462_vm5, %v3806_v47, %v3805_v3  ;;  %v4368_v10 = vsel %vm1450_vm1, %v4367_v61, %v4366_v4 }
 0x1fa   : > { %v3497_v11 = vld [vmem:[%s12076_s19 + $0x532] sm:$0x1]  ;;  %v3498_v12 = vld [vmem:[%s12076_s19 + $0x542] sm:$0x1]  ;;  %v3809_v14 = vsel %vm1465_vm6, %v3808_v48, %v3807_v9  ;;  %v4370_v15 = vsel %vm1453_vm2, %v4369_v63, %v4368_v10  ;;  %v3810_v18 = vrot.slane %v3495_v7, 7  ;;  %v3812_v19 = vrot.slane %v3496_v8, 6 }
 0x1fb   : > { %v3499_v13 = vld [vmem:[%s12076_s19 + $0x552] sm:$0x1]  ;;  %v3500_v16 = vld [vmem:[%s12076_s19 + $0x562] sm:$0x1]  ;;  %3919 = vxpose.xlu0.b32.cont [10/16] (narrow) %v3809_v14, 8  ;;  %v4372_v20 = vsel %vm1456_vm3, %v4371_v0, %v4370_v15  ;;  %v3814_v21 = vrot.slane %v3497_v11, 5 }
 0x1fc   : > { %v3501_v17 = vld [vmem:[%s12076_s19 + $0x572] sm:$0x1]  ;;  %v3816_v22 = vrot.slane %v3498_v12, 4  ;;  %v3818_v23 = vrot.slane %v3499_v13, 3  ;;  %v4057_v24 = vld [vmem:[%s12076_s19 + $0x583] sm:$0x1]  ;;  %v4374_v25 = vsel %vm1459_vm4, %v4373_v1, %v4372_v20  ;;  %v3811_v26 = vsel %vm1447_vm0, %v3810_v18, %v3494_v2 }
 0x1fd   : > { %v3820_v27 = vrot.slane %v3500_v16, 2  ;;  %v3822_v28 = vrot.slane %v3501_v17, 1  ;;  %v4058_v29 = vld [vmem:[%s12076_s19 + $0x593] sm:$0x1]  ;;  %v4059_v30 = vld [vmem:[%s12076_s19 + $0x5a3] sm:$0x1]  ;;  %v4376_v31 = vsel %vm1462_vm5, %v4375_v5, %v4374_v25  ;;  %v3813_v32 = vsel %vm1450_vm1, %v3812_v19, %v3811_v26 }
 0x1fe   : > { %v4060_v33 = vld [vmem:[%s12076_s19 + $0x5b3] sm:$0x1]  ;;  %v4061_v34 = vld [vmem:[%s12076_s19 + $0x5c3] sm:$0x1]  ;;  %v4378_v36 = vsel %vm1465_vm6, %v4377_v6, %v4376_v31  ;;  %v3815_v37 = vsel %vm1453_vm2, %v3814_v21, %v3813_v32  ;;  %v4379_v40 = vrot.slane %v4058_v29, 7  ;;  %v4381_v41 = vrot.slane %v4059_v30, 6 }
 0x1ff   : > { %v4062_v35 = vld [vmem:[%s12076_s19 + $0x5d3] sm:$0x1]  ;;  %v4063_v38 = vld [vmem:[%s12076_s19 + $0x5e3] sm:$0x1]  ;;  %4475 = vxpose.xlu1.b32.cont [11/16] (narrow) %v4378_v36, 8  ;;  %v3817_v42 = vsel %vm1456_vm3, %v3816_v22, %v3815_v37  ;;  %v4383_v43 = vrot.slane %v4060_v33, 5 }
 0x200   : > { %v4064_v39 = vld [vmem:[%s12076_s19 + $0x5f3] sm:$0x1]  ;;  %v4385_v44 = vrot.slane %v4061_v34, 4  ;;  %v4387_v45 = vrot.slane %v4062_v35, 3  ;;  %v3502_v46 = vld [vmem:[%s12076_s19 + $0x582] sm:$0x1]  ;;  %v3819_v47 = vsel %vm1459_vm4, %v3818_v23, %v3817_v42  ;;  %v4380_v48 = vsel %vm1447_vm0, %v4379_v40, %v4057_v24 }
 0x201   : > { %v4389_v49 = vrot.slane %v4063_v38, 2  ;;  %v4391_v50 = vrot.slane %v4064_v39, 1  ;;  %v3503_v51 = vld [vmem:[%s12076_s19 + $0x592] sm:$0x1]  ;;  %v3504_v52 = vld [vmem:[%s12076_s19 + $0x5a2] sm:$0x1]  ;;  %v3821_v53 = vsel %vm1462_vm5, %v3820_v27, %v3819_v47  ;;  %v4382_v54 = vsel %vm1450_vm1, %v4381_v41, %v4380_v48 }
 0x202   : > { %v3505_v55 = vld [vmem:[%s12076_s19 + $0x5b2] sm:$0x1]  ;;  %v3506_v56 = vld [vmem:[%s12076_s19 + $0x5c2] sm:$0x1]  ;;  %v3823_v58 = vsel %vm1465_vm6, %v3822_v28, %v3821_v53  ;;  %v4384_v59 = vsel %vm1453_vm2, %v4383_v43, %v4382_v54  ;;  %v3824_v62 = vrot.slane %v3503_v51, 7  ;;  %v3826_v63 = vrot.slane %v3504_v52, 6 }
 0x203   : > { %v3507_v57 = vld [vmem:[%s12076_s19 + $0x5d2] sm:$0x1]  ;;  %v3508_v60 = vld [vmem:[%s12076_s19 + $0x5e2] sm:$0x1]  ;;  %3920 = vxpose.xlu0.b32.cont [11/16] (narrow) %v3823_v58, 8  ;;  %v4386_v0 = vsel %vm1456_vm3, %v4385_v44, %v4384_v59  ;;  %v3828_v1 = vrot.slane %v3505_v55, 5 }
 0x204   : > { %v3509_v61 = vld [vmem:[%s12076_s19 + $0x5f2] sm:$0x1]  ;;  %v3830_v2 = vrot.slane %v3506_v56, 4  ;;  %v3832_v3 = vrot.slane %v3507_v57, 3  ;;  %v4065_v4 = vld [vmem:[%s12076_s19 + $0x603] sm:$0x1]  ;;  %v4388_v5 = vsel %vm1459_vm4, %v4387_v45, %v4386_v0  ;;  %v3825_v6 = vsel %vm1447_vm0, %v3824_v62, %v3502_v46 }
 0x205   : > { %v3834_v7 = vrot.slane %v3508_v60, 2  ;;  %v3836_v8 = vrot.slane %v3509_v61, 1  ;;  %v4066_v9 = vld [vmem:[%s12076_s19 + $0x613] sm:$0x1]  ;;  %v4067_v10 = vld [vmem:[%s12076_s19 + $0x623] sm:$0x1]  ;;  %v4390_v11 = vsel %vm1462_vm5, %v4389_v49, %v4388_v5  ;;  %v3827_v12 = vsel %vm1450_vm1, %v3826_v63, %v3825_v6 }
 0x206   : > { %v4068_v13 = vld [vmem:[%s12076_s19 + $0x633] sm:$0x1]  ;;  %v4069_v14 = vld [vmem:[%s12076_s19 + $0x643] sm:$0x1]  ;;  %v4392_v16 = vsel %vm1465_vm6, %v4391_v50, %v4390_v11  ;;  %v3829_v17 = vsel %vm1453_vm2, %v3828_v1, %v3827_v12  ;;  %v4393_v20 = vrot.slane %v4066_v9, 7  ;;  %v4395_v21 = vrot.slane %v4067_v10, 6 }
 0x207   : > { %v4070_v15 = vld [vmem:[%s12076_s19 + $0x653] sm:$0x1]  ;;  %v4071_v18 = vld [vmem:[%s12076_s19 + $0x663] sm:$0x1]  ;;  %4476 = vxpose.xlu1.b32.cont [12/16] (narrow) %v4392_v16, 8  ;;  %v3831_v22 = vsel %vm1456_vm3, %v3830_v2, %v3829_v17  ;;  %v4397_v23 = vrot.slane %v4068_v13, 5 }
 0x208   : > { %v4072_v19 = vld [vmem:[%s12076_s19 + $0x673] sm:$0x1]  ;;  %v4399_v24 = vrot.slane %v4069_v14, 4  ;;  %v4401_v25 = vrot.slane %v4070_v15, 3  ;;  %v3510_v26 = vld [vmem:[%s12076_s19 + $0x602] sm:$0x1]  ;;  %v3833_v27 = vsel %vm1459_vm4, %v3832_v3, %v3831_v22  ;;  %v4394_v28 = vsel %vm1447_vm0, %v4393_v20, %v4065_v4 }
 0x209   : > { %v4403_v29 = vrot.slane %v4071_v18, 2  ;;  %v4405_v30 = vrot.slane %v4072_v19, 1  ;;  %v3511_v31 = vld [vmem:[%s12076_s19 + $0x612] sm:$0x1]  ;;  %v3512_v32 = vld [vmem:[%s12076_s19 + $0x622] sm:$0x1]  ;;  %v3835_v33 = vsel %vm1462_vm5, %v3834_v7, %v3833_v27  ;;  %v4396_v34 = vsel %vm1450_vm1, %v4395_v21, %v4394_v28 }
 0x20a   : > { %v3513_v35 = vld [vmem:[%s12076_s19 + $0x632] sm:$0x1]  ;;  %v3514_v36 = vld [vmem:[%s12076_s19 + $0x642] sm:$0x1]  ;;  %v3837_v38 = vsel %vm1465_vm6, %v3836_v8, %v3835_v33  ;;  %v4398_v39 = vsel %vm1453_vm2, %v4397_v23, %v4396_v34  ;;  %v3838_v42 = vrot.slane %v3511_v31, 7  ;;  %v3840_v43 = vrot.slane %v3512_v32, 6 }
 0x20b   : > { %v3515_v37 = vld [vmem:[%s12076_s19 + $0x652] sm:$0x1]  ;;  %v3516_v40 = vld [vmem:[%s12076_s19 + $0x662] sm:$0x1]  ;;  %3921 = vxpose.xlu0.b32.cont [12/16] (narrow) %v3837_v38, 8  ;;  %v4400_v44 = vsel %vm1456_vm3, %v4399_v24, %v4398_v39  ;;  %v3842_v45 = vrot.slane %v3513_v35, 5 }
 0x20c   : > { %v3517_v41 = vld [vmem:[%s12076_s19 + $0x672] sm:$0x1]  ;;  %v3844_v46 = vrot.slane %v3514_v36, 4  ;;  %v3846_v47 = vrot.slane %v3515_v37, 3  ;;  %v4073_v48 = vld [vmem:[%s12076_s19 + $0x683] sm:$0x1]  ;;  %v4402_v49 = vsel %vm1459_vm4, %v4401_v25, %v4400_v44  ;;  %v3839_v50 = vsel %vm1447_vm0, %v3838_v42, %v3510_v26 }
 0x20d   : > { %v3848_v51 = vrot.slane %v3516_v40, 2  ;;  %v3850_v52 = vrot.slane %v3517_v41, 1  ;;  %v4074_v53 = vld [vmem:[%s12076_s19 + $0x693] sm:$0x1]  ;;  %v4075_v54 = vld [vmem:[%s12076_s19 + $0x6a3] sm:$0x1]  ;;  %v4404_v55 = vsel %vm1462_vm5, %v4403_v29, %v4402_v49  ;;  %v3841_v56 = vsel %vm1450_vm1, %v3840_v43, %v3839_v50 }
 0x20e   : > { %v4076_v57 = vld [vmem:[%s12076_s19 + $0x6b3] sm:$0x1]  ;;  %v4077_v58 = vld [vmem:[%s12076_s19 + $0x6c3] sm:$0x1]  ;;  %v4406_v60 = vsel %vm1465_vm6, %v4405_v30, %v4404_v55  ;;  %v3843_v61 = vsel %vm1453_vm2, %v3842_v45, %v3841_v56  ;;  %v4407_v0 = vrot.slane %v4074_v53, 7  ;;  %v4409_v1 = vrot.slane %v4075_v54, 6 }
 0x20f   : > { %v4078_v59 = vld [vmem:[%s12076_s19 + $0x6d3] sm:$0x1]  ;;  %v4079_v62 = vld [vmem:[%s12076_s19 + $0x6e3] sm:$0x1]  ;;  %4477 = vxpose.xlu1.b32.cont [13/16] (narrow) %v4406_v60, 8  ;;  %v3845_v2 = vsel %vm1456_vm3, %v3844_v46, %v3843_v61  ;;  %v4411_v3 = vrot.slane %v4076_v57, 5 }
 0x210   : > { %v4080_v63 = vld [vmem:[%s12076_s19 + $0x6f3] sm:$0x1]  ;;  %v4413_v4 = vrot.slane %v4077_v58, 4  ;;  %v4415_v5 = vrot.slane %v4078_v59, 3  ;;  %v3518_v6 = vld [vmem:[%s12076_s19 + $0x682] sm:$0x1]  ;;  %v3847_v7 = vsel %vm1459_vm4, %v3846_v47, %v3845_v2  ;;  %v4408_v8 = vsel %vm1447_vm0, %v4407_v0, %v4073_v48 }
 0x211   : > { %v4417_v9 = vrot.slane %v4079_v62, 2  ;;  %v4419_v10 = vrot.slane %v4080_v63, 1  ;;  %v3519_v11 = vld [vmem:[%s12076_s19 + $0x692] sm:$0x1]  ;;  %v3520_v12 = vld [vmem:[%s12076_s19 + $0x6a2] sm:$0x1]  ;;  %v3849_v13 = vsel %vm1462_vm5, %v3848_v51, %v3847_v7  ;;  %v4410_v14 = vsel %vm1450_vm1, %v4409_v1, %v4408_v8 }
 0x212   : > { %v3521_v15 = vld [vmem:[%s12076_s19 + $0x6b2] sm:$0x1]  ;;  %v3522_v16 = vld [vmem:[%s12076_s19 + $0x6c2] sm:$0x1]  ;;  %v3851_v18 = vsel %vm1465_vm6, %v3850_v52, %v3849_v13  ;;  %v4412_v19 = vsel %vm1453_vm2, %v4411_v3, %v4410_v14  ;;  %v3852_v22 = vrot.slane %v3519_v11, 7  ;;  %v3854_v23 = vrot.slane %v3520_v12, 6 }
 0x213   : > { %v3523_v17 = vld [vmem:[%s12076_s19 + $0x6d2] sm:$0x1]  ;;  %v3524_v20 = vld [vmem:[%s12076_s19 + $0x6e2] sm:$0x1]  ;;  %3922 = vxpose.xlu0.b32.cont [13/16] (narrow) %v3851_v18, 8  ;;  %v4414_v24 = vsel %vm1456_vm3, %v4413_v4, %v4412_v19  ;;  %v3856_v25 = vrot.slane %v3521_v15, 5 }
 0x214   : > { %v3525_v21 = vld [vmem:[%s12076_s19 + $0x6f2] sm:$0x1]  ;;  %v3858_v26 = vrot.slane %v3522_v16, 4  ;;  %v3860_v27 = vrot.slane %v3523_v17, 3  ;;  %v4081_v28 = vld [vmem:[%s12076_s19 + $0x703] sm:$0x1]  ;;  %v4416_v29 = vsel %vm1459_vm4, %v4415_v5, %v4414_v24  ;;  %v3853_v30 = vsel %vm1447_vm0, %v3852_v22, %v3518_v6 }
 0x215   : > { %v3862_v31 = vrot.slane %v3524_v20, 2  ;;  %v3864_v32 = vrot.slane %v3525_v21, 1  ;;  %v4082_v33 = vld [vmem:[%s12076_s19 + $0x713] sm:$0x1]  ;;  %v4083_v34 = vld [vmem:[%s12076_s19 + $0x723] sm:$0x1]  ;;  %v4418_v35 = vsel %vm1462_vm5, %v4417_v9, %v4416_v29  ;;  %v3855_v36 = vsel %vm1450_vm1, %v3854_v23, %v3853_v30 }
 0x216   : > { %v4084_v37 = vld [vmem:[%s12076_s19 + $0x733] sm:$0x1]  ;;  %v4085_v38 = vld [vmem:[%s12076_s19 + $0x743] sm:$0x1]  ;;  %v4420_v40 = vsel %vm1465_vm6, %v4419_v10, %v4418_v35  ;;  %v3857_v41 = vsel %vm1453_vm2, %v3856_v25, %v3855_v36  ;;  %v4421_v44 = vrot.slane %v4082_v33, 7  ;;  %v4423_v45 = vrot.slane %v4083_v34, 6 }
 0x217   : > { %v4086_v39 = vld [vmem:[%s12076_s19 + $0x753] sm:$0x1]  ;;  %v4087_v42 = vld [vmem:[%s12076_s19 + $0x763] sm:$0x1]  ;;  %4478 = vxpose.xlu1.b32.cont [14/16] (narrow) %v4420_v40, 8  ;;  %v3859_v46 = vsel %vm1456_vm3, %v3858_v26, %v3857_v41  ;;  %v4425_v47 = vrot.slane %v4084_v37, 5 }
 0x218   : > { %v4088_v43 = vld [vmem:[%s12076_s19 + $0x773] sm:$0x1]  ;;  %v4427_v48 = vrot.slane %v4085_v38, 4  ;;  %v4429_v49 = vrot.slane %v4086_v39, 3  ;;  %v3526_v50 = vld [vmem:[%s12076_s19 + $0x702] sm:$0x1]  ;;  %v3861_v51 = vsel %vm1459_vm4, %v3860_v27, %v3859_v46  ;;  %v4422_v52 = vsel %vm1447_vm0, %v4421_v44, %v4081_v28 }
 0x219   : > { %v4431_v53 = vrot.slane %v4087_v42, 2  ;;  %v4433_v54 = vrot.slane %v4088_v43, 1  ;;  %v3527_v55 = vld [vmem:[%s12076_s19 + $0x712] sm:$0x1]  ;;  %v3528_v56 = vld [vmem:[%s12076_s19 + $0x722] sm:$0x1]  ;;  %v3863_v57 = vsel %vm1462_vm5, %v3862_v31, %v3861_v51  ;;  %v4424_v58 = vsel %vm1450_vm1, %v4423_v45, %v4422_v52 }
 0x21a   : > { %v3529_v59 = vld [vmem:[%s12076_s19 + $0x732] sm:$0x1]  ;;  %v3530_v60 = vld [vmem:[%s12076_s19 + $0x742] sm:$0x1]  ;;  %v3865_v62 = vsel %vm1465_vm6, %v3864_v32, %v3863_v57  ;;  %v4426_v63 = vsel %vm1453_vm2, %v4425_v47, %v4424_v58  ;;  %v3866_v2 = vrot.slane %v3527_v55, 7  ;;  %v3868_v3 = vrot.slane %v3528_v56, 6 }
 0x21b   : > { %v3531_v61 = vld [vmem:[%s12076_s19 + $0x752] sm:$0x1]  ;;  %v3532_v0 = vld [vmem:[%s12076_s19 + $0x762] sm:$0x1]  ;;  %3923 = vxpose.xlu0.b32.cont [14/16] (narrow) %v3865_v62, 8  ;;  %v4428_v4 = vsel %vm1456_vm3, %v4427_v48, %v4426_v63  ;;  %v3870_v5 = vrot.slane %v3529_v59, 5 }
 0x21c   : > { %v3533_v1 = vld [vmem:[%s12076_s19 + $0x772] sm:$0x1]  ;;  %v3872_v6 = vrot.slane %v3530_v60, 4  ;;  %v3874_v7 = vrot.slane %v3531_v61, 3  ;;  %v4089_v8 = vld [vmem:[%s12076_s19 + $0x783] sm:$0x1]  ;;  %v4430_v9 = vsel %vm1459_vm4, %v4429_v49, %v4428_v4  ;;  %v3867_v10 = vsel %vm1447_vm0, %v3866_v2, %v3526_v50 }
 0x21d   : > { %v3876_v11 = vrot.slane %v3532_v0, 2  ;;  %v3878_v12 = vrot.slane %v3533_v1, 1  ;;  %v4090_v13 = vld [vmem:[%s12076_s19 + $0x793] sm:$0x1]  ;;  %v4091_v14 = vld [vmem:[%s12076_s19 + $0x7a3] sm:$0x1]  ;;  %v4432_v15 = vsel %vm1462_vm5, %v4431_v53, %v4430_v9  ;;  %v3869_v16 = vsel %vm1450_vm1, %v3868_v3, %v3867_v10 }
 0x21e   : > { %v4092_v17 = vld [vmem:[%s12076_s19 + $0x7b3] sm:$0x1]  ;;  %v4093_v18 = vld [vmem:[%s12076_s19 + $0x7c3] sm:$0x1]  ;;  %v4434_v20 = vsel %vm1465_vm6, %v4433_v54, %v4432_v15  ;;  %v3871_v21 = vsel %vm1453_vm2, %v3870_v5, %v3869_v16  ;;  %v4435_v24 = vrot.slane %v4090_v13, 7  ;;  %v4437_v25 = vrot.slane %v4091_v14, 6 }
 0x21f   : > { %v4094_v19 = vld [vmem:[%s12076_s19 + $0x7d3] sm:$0x1]  ;;  %v4095_v22 = vld [vmem:[%s12076_s19 + $0x7e3] sm:$0x1]  ;;  %4479 = vxpose.xlu1.b32.cont [15/16] (narrow) %v4434_v20, 8  ;;  %v3873_v26 = vsel %vm1456_vm3, %v3872_v6, %v3871_v21  ;;  %v4439_v27 = vrot.slane %v4092_v17, 5 }
 0x220   : > { %v4096_v23 = vld [vmem:[%s12076_s19 + $0x7f3] sm:$0x1]  ;;  %v4441_v28 = vrot.slane %v4093_v18, 4  ;;  %v4443_v29 = vrot.slane %v4094_v19, 3  ;;  %v3534_v30 = vld [vmem:[%s12076_s19 + $0x782] sm:$0x1]  ;;  %v3875_v31 = vsel %vm1459_vm4, %v3874_v7, %v3873_v26  ;;  %v4436_v32 = vsel %vm1447_vm0, %v4435_v24, %v4089_v8 }
 0x221   : > { %v4445_v33 = vrot.slane %v4095_v22, 2  ;;  %v4447_v34 = vrot.slane %v4096_v23, 1  ;;  %v3535_v35 = vld [vmem:[%s12076_s19 + $0x792] sm:$0x1]  ;;  %v3536_v36 = vld [vmem:[%s12076_s19 + $0x7a2] sm:$0x1]  ;;  %v3877_v37 = vsel %vm1462_vm5, %v3876_v11, %v3875_v31  ;;  %v4438_v38 = vsel %vm1450_vm1, %v4437_v25, %v4436_v32 }
 0x222   : > { %v3537_v39 = vld [vmem:[%s12076_s19 + $0x7b2] sm:$0x1]  ;;  %v3538_v40 = vld [vmem:[%s12076_s19 + $0x7c2] sm:$0x1]  ;;  %v3879_v42 = vsel %vm1465_vm6, %v3878_v12, %v3877_v37  ;;  %v4440_v43 = vsel %vm1453_vm2, %v4439_v27, %v4438_v38  ;;  %v3880_v46 = vrot.slane %v3535_v35, 7  ;;  %v3882_v47 = vrot.slane %v3536_v36, 6 }
 0x223   : > { %v3539_v41 = vld [vmem:[%s12076_s19 + $0x7d2] sm:$0x1]  ;;  %v3540_v44 = vld [vmem:[%s12076_s19 + $0x7e2] sm:$0x1]  ;;  %3924 = vxpose.xlu0.b32.cont [15/16] (narrow) %v3879_v42, 8  ;;  %v4442_v48 = vsel %vm1456_vm3, %v4441_v28, %v4440_v43  ;;  %v3884_v49 = vrot.slane %v3537_v39, 5 }
 0x224   : > { %v3541_v45 = vld [vmem:[%s12076_s19 + $0x7f2] sm:$0x1]  ;;  %v3886_v50 = vrot.slane %v3538_v40, 4  ;;  %v3888_v51 = vrot.slane %v3539_v41, 3  ;;  %v10581_v52 = vld [vmem:[%s12076_s19 + $0xb] sm:$0x1]  ;;  %v4444_v53 = vsel %vm1459_vm4, %v4443_v29, %v4442_v48  ;;  %v3881_v54 = vsel %vm1447_vm0, %v3880_v46, %v3534_v30 }
 0x225   : > { %v3890_v55 = vrot.slane %v3540_v44, 2  ;;  %v3892_v56 = vrot.slane %v3541_v45, 1  ;;  %v10582_v57 = vld [vmem:[%s12076_s19 + $0x1b] sm:$0x1]  ;;  %v10583_v58 = vld [vmem:[%s12076_s19 + $0x2b] sm:$0x1]  ;;  %v4446_v59 = vsel %vm1462_vm5, %v4445_v33, %v4444_v53  ;;  %v3883_v60 = vsel %vm1450_vm1, %v3882_v47, %v3881_v54 }
 0x226   : > { %v10584_v61 = vld [vmem:[%s12076_s19 + $0x3b] sm:$0x1]  ;;  %v10585_v62 = vld [vmem:[%s12076_s19 + $0x4b] sm:$0x1]  ;;  %v4448_v0 = vsel %vm1465_vm6, %v4447_v34, %v4446_v59  ;;  %v3885_v1 = vsel %vm1453_vm2, %v3884_v49, %v3883_v60  ;;  %v5333_v4 = vrot.slane %v10582_v57, 7  ;;  %v5335_v5 = vrot.slane %v10583_v58, 6 }
 0x227   : > { %v10586_v63 = vld [vmem:[%s12076_s19 + $0x5b] sm:$0x1]  ;;  %v10587_v2 = vld [vmem:[%s12076_s19 + $0x6b] sm:$0x1]  ;;  %4480 = vxpose.xlu1.b32.end [16/16] (narrow) %v4448_v0, 8  ;;  %v3887_v6 = vsel %vm1456_vm3, %v3886_v50, %v3885_v1  ;;  %v5337_v7 = vrot.slane %v10584_v61, 5 }
 0x228   : > { %v10588_v3 = vld [vmem:[%s12076_s19 + $0x7b] sm:$0x1]  ;;  %v5339_v8 = vrot.slane %v10585_v62, 4  ;;  %v5341_v9 = vrot.slane %v10586_v63, 3  ;;  %v10449_v10 = vld [vmem:[%s12076_s19 + $0xa] sm:$0x1]  ;;  %v3889_v11 = vsel %vm1459_vm4, %v3888_v51, %v3887_v6  ;;  %v5334_v12 = vsel %vm1447_vm0, %v5333_v4, %v10581_v52 }
 0x229   : > { %v5343_v13 = vrot.slane %v10587_v2, 2  ;;  %v5345_v14 = vrot.slane %v10588_v3, 1  ;;  %v10450_v15 = vld [vmem:[%s12076_s19 + $0x1a] sm:$0x1]  ;;  %v10451_v16 = vld [vmem:[%s12076_s19 + $0x2a] sm:$0x1]  ;;  %v3891_v17 = vsel %vm1462_vm5, %v3890_v55, %v3889_v11  ;;  %v5336_v18 = vsel %vm1450_vm1, %v5335_v5, %v5334_v12 }
 0x22a   : > { %v10452_v19 = vld [vmem:[%s12076_s19 + $0x3a] sm:$0x1]  ;;  %v10453_v20 = vld [vmem:[%s12076_s19 + $0x4a] sm:$0x1]  ;;  %v3893_v22 = vsel %vm1465_vm6, %v3892_v56, %v3891_v17  ;;  %v5338_v23 = vsel %vm1453_vm2, %v5337_v7, %v5336_v18  ;;  %v4779_v26 = vrot.slane %v10450_v15, 7  ;;  %v4781_v27 = vrot.slane %v10451_v16, 6 }
 0x22b   : > { %v10454_v21 = vld [vmem:[%s12076_s19 + $0x5a] sm:$0x1]  ;;  %v10455_v24 = vld [vmem:[%s12076_s19 + $0x6a] sm:$0x1]  ;;  %3925 = vxpose.xlu0.b32.end [16/16] (narrow) %v3893_v22, 8  ;;  %v5340_v28 = vsel %vm1456_vm3, %v5339_v8, %v5338_v23  ;;  %v4783_v29 = vrot.slane %v10452_v19, 5 }
 0x22c   : > { %v10456_v25 = vld [vmem:[%s12076_s19 + $0x7a] sm:$0x1]  ;;  %v4785_v30 = vrot.slane %v10453_v20, 4  ;;  %v4787_v31 = vrot.slane %v10454_v21, 3  ;;  %v10589_v32 = vld [vmem:[%s12076_s19 + $0x8b] sm:$0x1]  ;;  %v5342_v33 = vsel %vm1459_vm4, %v5341_v9, %v5340_v28  ;;  %v4780_v34 = vsel %vm1447_vm0, %v4779_v26, %v10449_v10 }
 0x22d   : > { %v4789_v35 = vrot.slane %v10455_v24, 2  ;;  %v4791_v36 = vrot.slane %v10456_v25, 1  ;;  %v10590_v37 = vld [vmem:[%s12076_s19 + $0x9b] sm:$0x1]  ;;  %v10591_v38 = vld [vmem:[%s12076_s19 + $0xab] sm:$0x1]  ;;  %v5344_v39 = vsel %vm1462_vm5, %v5343_v13, %v5342_v33  ;;  %v4782_v40 = vsel %vm1450_vm1, %v4781_v27, %v4780_v34 }
 0x22e   : > { %v10592_v41 = vld [vmem:[%s12076_s19 + $0xbb] sm:$0x1]  ;;  %v10593_v42 = vld [vmem:[%s12076_s19 + $0xcb] sm:$0x1]  ;;  %v5346_v44 = vsel %vm1465_vm6, %v5345_v14, %v5344_v39  ;;  %v4784_v45 = vsel %vm1453_vm2, %v4783_v29, %v4782_v40  ;;  %v5347_v48 = vrot.slane %v10590_v37, 7  ;;  %v5349_v49 = vrot.slane %v10591_v38, 6 }
 0x22f   : > { %v10594_v43 = vld [vmem:[%s12076_s19 + $0xdb] sm:$0x1]  ;;  %v10595_v46 = vld [vmem:[%s12076_s19 + $0xeb] sm:$0x1]  ;;  %5573 = vxpose.xlu1.b32.start [1/16] (narrow) %v5346_v44, 8  ;;  %v4786_v50 = vsel %vm1456_vm3, %v4785_v30, %v4784_v45  ;;  %v5351_v51 = vrot.slane %v10592_v41, 5 }
 0x230   : > { %v10596_v47 = vld [vmem:[%s12076_s19 + $0xfb] sm:$0x1]  ;;  %v5353_v52 = vrot.slane %v10593_v42, 4  ;;  %v5355_v53 = vrot.slane %v10594_v43, 3  ;;  %v10457_v54 = vld [vmem:[%s12076_s19 + $0x8a] sm:$0x1]  ;;  %v4788_v55 = vsel %vm1459_vm4, %v4787_v31, %v4786_v50  ;;  %v5348_v56 = vsel %vm1447_vm0, %v5347_v48, %v10589_v32 }
 0x231   : > { %v5357_v57 = vrot.slane %v10595_v46, 2  ;;  %v5359_v58 = vrot.slane %v10596_v47, 1  ;;  %v10458_v59 = vld [vmem:[%s12076_s19 + $0x9a] sm:$0x1]  ;;  %v10459_v60 = vld [vmem:[%s12076_s19 + $0xaa] sm:$0x1]  ;;  %v4790_v61 = vsel %vm1462_vm5, %v4789_v35, %v4788_v55  ;;  %v5350_v62 = vsel %vm1450_vm1, %v5349_v49, %v5348_v56 }
 0x232   : > { %v10460_v63 = vld [vmem:[%s12076_s19 + $0xba] sm:$0x1]  ;;  %v10461_v0 = vld [vmem:[%s12076_s19 + $0xca] sm:$0x1]  ;;  %v4792_v2 = vsel %vm1465_vm6, %v4791_v36, %v4790_v61  ;;  %v5352_v3 = vsel %vm1453_vm2, %v5351_v51, %v5350_v62  ;;  %v4793_v6 = vrot.slane %v10458_v59, 7  ;;  %v4795_v7 = vrot.slane %v10459_v60, 6 }
 0x233   : > { %v10462_v1 = vld [vmem:[%s12076_s19 + $0xda] sm:$0x1]  ;;  %v10463_v4 = vld [vmem:[%s12076_s19 + $0xea] sm:$0x1]  ;;  %5019 = vxpose.xlu0.b32.start [1/16] (narrow) %v4792_v2, 8  ;;  %v5354_v8 = vsel %vm1456_vm3, %v5353_v52, %v5352_v3  ;;  %v4797_v9 = vrot.slane %v10460_v63, 5 }
 0x234   : > { %v10464_v5 = vld [vmem:[%s12076_s19 + $0xfa] sm:$0x1]  ;;  %v4799_v10 = vrot.slane %v10461_v0, 4  ;;  %v4801_v11 = vrot.slane %v10462_v1, 3  ;;  %v10597_v12 = vld [vmem:[%s12076_s19 + $0x10b] sm:$0x1]  ;;  %v5356_v13 = vsel %vm1459_vm4, %v5355_v53, %v5354_v8  ;;  %v4794_v14 = vsel %vm1447_vm0, %v4793_v6, %v10457_v54 }
 0x235   : > { %v4803_v15 = vrot.slane %v10463_v4, 2  ;;  %v4805_v16 = vrot.slane %v10464_v5, 1  ;;  %v10598_v17 = vld [vmem:[%s12076_s19 + $0x11b] sm:$0x1]  ;;  %v10599_v18 = vld [vmem:[%s12076_s19 + $0x12b] sm:$0x1]  ;;  %v5358_v19 = vsel %vm1462_vm5, %v5357_v57, %v5356_v13  ;;  %v4796_v20 = vsel %vm1450_vm1, %v4795_v7, %v4794_v14 }
 0x236   : > { %v10600_v21 = vld [vmem:[%s12076_s19 + $0x13b] sm:$0x1]  ;;  %v10601_v22 = vld [vmem:[%s12076_s19 + $0x14b] sm:$0x1]  ;;  %v5360_v24 = vsel %vm1465_vm6, %v5359_v58, %v5358_v19  ;;  %v4798_v25 = vsel %vm1453_vm2, %v4797_v9, %v4796_v20  ;;  %v5361_v28 = vrot.slane %v10598_v17, 7  ;;  %v5363_v29 = vrot.slane %v10599_v18, 6 }
 0x237   : > { %v10602_v23 = vld [vmem:[%s12076_s19 + $0x15b] sm:$0x1]  ;;  %v10603_v26 = vld [vmem:[%s12076_s19 + $0x16b] sm:$0x1]  ;;  %5574 = vxpose.xlu1.b32.cont [2/16] (narrow) %v5360_v24, 8  ;;  %v4800_v30 = vsel %vm1456_vm3, %v4799_v10, %v4798_v25  ;;  %v5365_v31 = vrot.slane %v10600_v21, 5 }
 0x238   : > { %v10604_v27 = vld [vmem:[%s12076_s19 + $0x17b] sm:$0x1]  ;;  %v5367_v32 = vrot.slane %v10601_v22, 4  ;;  %v5369_v33 = vrot.slane %v10602_v23, 3  ;;  %v10465_v34 = vld [vmem:[%s12076_s19 + $0x10a] sm:$0x1]  ;;  %v4802_v35 = vsel %vm1459_vm4, %v4801_v11, %v4800_v30  ;;  %v5362_v36 = vsel %vm1447_vm0, %v5361_v28, %v10597_v12 }
 0x239   : > { %v5371_v37 = vrot.slane %v10603_v26, 2  ;;  %v5373_v38 = vrot.slane %v10604_v27, 1  ;;  %v10466_v39 = vld [vmem:[%s12076_s19 + $0x11a] sm:$0x1]  ;;  %v10467_v40 = vld [vmem:[%s12076_s19 + $0x12a] sm:$0x1]  ;;  %v4804_v41 = vsel %vm1462_vm5, %v4803_v15, %v4802_v35  ;;  %v5364_v42 = vsel %vm1450_vm1, %v5363_v29, %v5362_v36 }
 0x23a   : > { %v10468_v43 = vld [vmem:[%s12076_s19 + $0x13a] sm:$0x1]  ;;  %v10469_v44 = vld [vmem:[%s12076_s19 + $0x14a] sm:$0x1]  ;;  %v4806_v46 = vsel %vm1465_vm6, %v4805_v16, %v4804_v41  ;;  %v5366_v47 = vsel %vm1453_vm2, %v5365_v31, %v5364_v42  ;;  %v4807_v50 = vrot.slane %v10466_v39, 7  ;;  %v4809_v51 = vrot.slane %v10467_v40, 6 }
 0x23b   : > { %v10470_v45 = vld [vmem:[%s12076_s19 + $0x15a] sm:$0x1]  ;;  %v10471_v48 = vld [vmem:[%s12076_s19 + $0x16a] sm:$0x1]  ;;  %5020 = vxpose.xlu0.b32.cont [2/16] (narrow) %v4806_v46, 8  ;;  %v5368_v52 = vsel %vm1456_vm3, %v5367_v32, %v5366_v47  ;;  %v4811_v53 = vrot.slane %v10468_v43, 5 }
 0x23c   : > { %v10472_v49 = vld [vmem:[%s12076_s19 + $0x17a] sm:$0x1]  ;;  %v4813_v54 = vrot.slane %v10469_v44, 4  ;;  %v4815_v55 = vrot.slane %v10470_v45, 3  ;;  %v10605_v56 = vld [vmem:[%s12076_s19 + $0x18b] sm:$0x1]  ;;  %v5370_v57 = vsel %vm1459_vm4, %v5369_v33, %v5368_v52  ;;  %v4808_v58 = vsel %vm1447_vm0, %v4807_v50, %v10465_v34 }
 0x23d   : > { %v4817_v59 = vrot.slane %v10471_v48, 2  ;;  %v4819_v60 = vrot.slane %v10472_v49, 1  ;;  %v10606_v61 = vld [vmem:[%s12076_s19 + $0x19b] sm:$0x1]  ;;  %v10607_v62 = vld [vmem:[%s12076_s19 + $0x1ab] sm:$0x1]  ;;  %v5372_v63 = vsel %vm1462_vm5, %v5371_v37, %v5370_v57  ;;  %v4810_v0 = vsel %vm1450_vm1, %v4809_v51, %v4808_v58 }
 0x23e   : > { %v10608_v1 = vld [vmem:[%s12076_s19 + $0x1bb] sm:$0x1]  ;;  %v10609_v2 = vld [vmem:[%s12076_s19 + $0x1cb] sm:$0x1]  ;;  %v5374_v4 = vsel %vm1465_vm6, %v5373_v38, %v5372_v63  ;;  %v4812_v5 = vsel %vm1453_vm2, %v4811_v53, %v4810_v0  ;;  %v5375_v8 = vrot.slane %v10606_v61, 7  ;;  %v5377_v9 = vrot.slane %v10607_v62, 6 }
 0x23f   : > { %v10610_v3 = vld [vmem:[%s12076_s19 + $0x1db] sm:$0x1]  ;;  %v10611_v6 = vld [vmem:[%s12076_s19 + $0x1eb] sm:$0x1]  ;;  %5575 = vxpose.xlu1.b32.cont [3/16] (narrow) %v5374_v4, 8  ;;  %v4814_v10 = vsel %vm1456_vm3, %v4813_v54, %v4812_v5  ;;  %v5379_v11 = vrot.slane %v10608_v1, 5 }
 0x240   : > { %v10612_v7 = vld [vmem:[%s12076_s19 + $0x1fb] sm:$0x1]  ;;  %v5381_v12 = vrot.slane %v10609_v2, 4  ;;  %v5383_v13 = vrot.slane %v10610_v3, 3  ;;  %v10473_v14 = vld [vmem:[%s12076_s19 + $0x18a] sm:$0x1]  ;;  %v4816_v15 = vsel %vm1459_vm4, %v4815_v55, %v4814_v10  ;;  %v5376_v16 = vsel %vm1447_vm0, %v5375_v8, %v10605_v56 }
 0x241   : > { %v5385_v17 = vrot.slane %v10611_v6, 2  ;;  %v5387_v18 = vrot.slane %v10612_v7, 1  ;;  %v10474_v19 = vld [vmem:[%s12076_s19 + $0x19a] sm:$0x1]  ;;  %v10475_v20 = vld [vmem:[%s12076_s19 + $0x1aa] sm:$0x1]  ;;  %v4818_v21 = vsel %vm1462_vm5, %v4817_v59, %v4816_v15  ;;  %v5378_v22 = vsel %vm1450_vm1, %v5377_v9, %v5376_v16 }
 0x242   : > { %v10476_v23 = vld [vmem:[%s12076_s19 + $0x1ba] sm:$0x1]  ;;  %v10477_v24 = vld [vmem:[%s12076_s19 + $0x1ca] sm:$0x1]  ;;  %v4820_v26 = vsel %vm1465_vm6, %v4819_v60, %v4818_v21  ;;  %v5380_v27 = vsel %vm1453_vm2, %v5379_v11, %v5378_v22  ;;  %v4821_v30 = vrot.slane %v10474_v19, 7  ;;  %v4823_v31 = vrot.slane %v10475_v20, 6 }
 0x243   : > { %v10478_v25 = vld [vmem:[%s12076_s19 + $0x1da] sm:$0x1]  ;;  %v10479_v28 = vld [vmem:[%s12076_s19 + $0x1ea] sm:$0x1]  ;;  %5021 = vxpose.xlu0.b32.cont [3/16] (narrow) %v4820_v26, 8  ;;  %v5382_v32 = vsel %vm1456_vm3, %v5381_v12, %v5380_v27  ;;  %v4825_v33 = vrot.slane %v10476_v23, 5 }
 0x244   : > { %v10480_v29 = vld [vmem:[%s12076_s19 + $0x1fa] sm:$0x1]  ;;  %v4827_v34 = vrot.slane %v10477_v24, 4  ;;  %v4829_v35 = vrot.slane %v10478_v25, 3  ;;  %v10613_v36 = vld [vmem:[%s12076_s19 + $0x20b] sm:$0x1]  ;;  %v5384_v37 = vsel %vm1459_vm4, %v5383_v13, %v5382_v32  ;;  %v4822_v38 = vsel %vm1447_vm0, %v4821_v30, %v10473_v14 }
 0x245   : > { %v4831_v39 = vrot.slane %v10479_v28, 2  ;;  %v4833_v40 = vrot.slane %v10480_v29, 1  ;;  %v10614_v41 = vld [vmem:[%s12076_s19 + $0x21b] sm:$0x1]  ;;  %v10615_v42 = vld [vmem:[%s12076_s19 + $0x22b] sm:$0x1]  ;;  %v5386_v43 = vsel %vm1462_vm5, %v5385_v17, %v5384_v37  ;;  %v4824_v44 = vsel %vm1450_vm1, %v4823_v31, %v4822_v38 }
 0x246   : > { %v10616_v45 = vld [vmem:[%s12076_s19 + $0x23b] sm:$0x1]  ;;  %v10617_v46 = vld [vmem:[%s12076_s19 + $0x24b] sm:$0x1]  ;;  %v5388_v48 = vsel %vm1465_vm6, %v5387_v18, %v5386_v43  ;;  %v4826_v49 = vsel %vm1453_vm2, %v4825_v33, %v4824_v44  ;;  %v5389_v52 = vrot.slane %v10614_v41, 7  ;;  %v5391_v53 = vrot.slane %v10615_v42, 6 }
 0x247   : > { %v10618_v47 = vld [vmem:[%s12076_s19 + $0x25b] sm:$0x1]  ;;  %v10619_v50 = vld [vmem:[%s12076_s19 + $0x26b] sm:$0x1]  ;;  %5576 = vxpose.xlu1.b32.cont [4/16] (narrow) %v5388_v48, 8  ;;  %v4828_v54 = vsel %vm1456_vm3, %v4827_v34, %v4826_v49  ;;  %v5393_v55 = vrot.slane %v10616_v45, 5 }
 0x248   : > { %v10620_v51 = vld [vmem:[%s12076_s19 + $0x27b] sm:$0x1]  ;;  %v5395_v56 = vrot.slane %v10617_v46, 4  ;;  %v5397_v57 = vrot.slane %v10618_v47, 3  ;;  %v10481_v58 = vld [vmem:[%s12076_s19 + $0x20a] sm:$0x1]  ;;  %v4830_v59 = vsel %vm1459_vm4, %v4829_v35, %v4828_v54  ;;  %v5390_v60 = vsel %vm1447_vm0, %v5389_v52, %v10613_v36 }
 0x249   : > { %v5399_v61 = vrot.slane %v10619_v50, 2  ;;  %v5401_v62 = vrot.slane %v10620_v51, 1  ;;  %v10482_v63 = vld [vmem:[%s12076_s19 + $0x21a] sm:$0x1]  ;;  %v10483_v0 = vld [vmem:[%s12076_s19 + $0x22a] sm:$0x1]  ;;  %v4832_v1 = vsel %vm1462_vm5, %v4831_v39, %v4830_v59  ;;  %v5392_v2 = vsel %vm1450_vm1, %v5391_v53, %v5390_v60 }
 0x24a   : > { %v10484_v3 = vld [vmem:[%s12076_s19 + $0x23a] sm:$0x1]  ;;  %v10485_v4 = vld [vmem:[%s12076_s19 + $0x24a] sm:$0x1]  ;;  %v4834_v6 = vsel %vm1465_vm6, %v4833_v40, %v4832_v1  ;;  %v5394_v7 = vsel %vm1453_vm2, %v5393_v55, %v5392_v2  ;;  %v4835_v10 = vrot.slane %v10482_v63, 7  ;;  %v4837_v11 = vrot.slane %v10483_v0, 6 }
 0x24b   : > { %v10486_v5 = vld [vmem:[%s12076_s19 + $0x25a] sm:$0x1]  ;;  %v10487_v8 = vld [vmem:[%s12076_s19 + $0x26a] sm:$0x1]  ;;  %5022 = vxpose.xlu0.b32.cont [4/16] (narrow) %v4834_v6, 8  ;;  %v5396_v12 = vsel %vm1456_vm3, %v5395_v56, %v5394_v7  ;;  %v4839_v13 = vrot.slane %v10484_v3, 5 }
 0x24c   : > { %v10488_v9 = vld [vmem:[%s12076_s19 + $0x27a] sm:$0x1]  ;;  %v4841_v14 = vrot.slane %v10485_v4, 4  ;;  %v4843_v15 = vrot.slane %v10486_v5, 3  ;;  %v10621_v16 = vld [vmem:[%s12076_s19 + $0x28b] sm:$0x1]  ;;  %v5398_v17 = vsel %vm1459_vm4, %v5397_v57, %v5396_v12  ;;  %v4836_v18 = vsel %vm1447_vm0, %v4835_v10, %v10481_v58 }
 0x24d   : > { %v4845_v19 = vrot.slane %v10487_v8, 2  ;;  %v4847_v20 = vrot.slane %v10488_v9, 1  ;;  %v10622_v21 = vld [vmem:[%s12076_s19 + $0x29b] sm:$0x1]  ;;  %v10623_v22 = vld [vmem:[%s12076_s19 + $0x2ab] sm:$0x1]  ;;  %v5400_v23 = vsel %vm1462_vm5, %v5399_v61, %v5398_v17  ;;  %v4838_v24 = vsel %vm1450_vm1, %v4837_v11, %v4836_v18 }
 0x24e   : > { %v10624_v25 = vld [vmem:[%s12076_s19 + $0x2bb] sm:$0x1]  ;;  %v10625_v26 = vld [vmem:[%s12076_s19 + $0x2cb] sm:$0x1]  ;;  %v5402_v28 = vsel %vm1465_vm6, %v5401_v62, %v5400_v23  ;;  %v4840_v29 = vsel %vm1453_vm2, %v4839_v13, %v4838_v24  ;;  %v5403_v32 = vrot.slane %v10622_v21, 7  ;;  %v5405_v33 = vrot.slane %v10623_v22, 6 }
 0x24f   : > { %v10626_v27 = vld [vmem:[%s12076_s19 + $0x2db] sm:$0x1]  ;;  %v10627_v30 = vld [vmem:[%s12076_s19 + $0x2eb] sm:$0x1]  ;;  %5577 = vxpose.xlu1.b32.cont [5/16] (narrow) %v5402_v28, 8  ;;  %v4842_v34 = vsel %vm1456_vm3, %v4841_v14, %v4840_v29  ;;  %v5407_v35 = vrot.slane %v10624_v25, 5 }
 0x250   : > { %v10628_v31 = vld [vmem:[%s12076_s19 + $0x2fb] sm:$0x1]  ;;  %v5409_v36 = vrot.slane %v10625_v26, 4  ;;  %v5411_v37 = vrot.slane %v10626_v27, 3  ;;  %v10489_v38 = vld [vmem:[%s12076_s19 + $0x28a] sm:$0x1]  ;;  %v4844_v39 = vsel %vm1459_vm4, %v4843_v15, %v4842_v34  ;;  %v5404_v40 = vsel %vm1447_vm0, %v5403_v32, %v10621_v16 }
 0x251   : > { %v5413_v41 = vrot.slane %v10627_v30, 2  ;;  %v5415_v42 = vrot.slane %v10628_v31, 1  ;;  %v10490_v43 = vld [vmem:[%s12076_s19 + $0x29a] sm:$0x1]  ;;  %v10491_v44 = vld [vmem:[%s12076_s19 + $0x2aa] sm:$0x1]  ;;  %v4846_v45 = vsel %vm1462_vm5, %v4845_v19, %v4844_v39  ;;  %v5406_v46 = vsel %vm1450_vm1, %v5405_v33, %v5404_v40 }
 0x252   : > { %v10492_v47 = vld [vmem:[%s12076_s19 + $0x2ba] sm:$0x1]  ;;  %v10493_v48 = vld [vmem:[%s12076_s19 + $0x2ca] sm:$0x1]  ;;  %v4848_v50 = vsel %vm1465_vm6, %v4847_v20, %v4846_v45  ;;  %v5408_v51 = vsel %vm1453_vm2, %v5407_v35, %v5406_v46  ;;  %v4849_v54 = vrot.slane %v10490_v43, 7  ;;  %v4851_v55 = vrot.slane %v10491_v44, 6 }
 0x253   : > { %v10494_v49 = vld [vmem:[%s12076_s19 + $0x2da] sm:$0x1]  ;;  %v10495_v52 = vld [vmem:[%s12076_s19 + $0x2ea] sm:$0x1]  ;;  %5023 = vxpose.xlu0.b32.cont [5/16] (narrow) %v4848_v50, 8  ;;  %v5410_v56 = vsel %vm1456_vm3, %v5409_v36, %v5408_v51  ;;  %v4853_v57 = vrot.slane %v10492_v47, 5 }
 0x254   : > { %v10496_v53 = vld [vmem:[%s12076_s19 + $0x2fa] sm:$0x1]  ;;  %v4855_v58 = vrot.slane %v10493_v48, 4  ;;  %v4857_v59 = vrot.slane %v10494_v49, 3  ;;  %v10629_v60 = vld [vmem:[%s12076_s19 + $0x30b] sm:$0x1]  ;;  %v5412_v61 = vsel %vm1459_vm4, %v5411_v37, %v5410_v56  ;;  %v4850_v62 = vsel %vm1447_vm0, %v4849_v54, %v10489_v38 }
 0x255   : > { %v4859_v63 = vrot.slane %v10495_v52, 2  ;;  %v4861_v0 = vrot.slane %v10496_v53, 1  ;;  %v10630_v1 = vld [vmem:[%s12076_s19 + $0x31b] sm:$0x1]  ;;  %v10631_v2 = vld [vmem:[%s12076_s19 + $0x32b] sm:$0x1]  ;;  %v5414_v3 = vsel %vm1462_vm5, %v5413_v41, %v5412_v61  ;;  %v4852_v4 = vsel %vm1450_vm1, %v4851_v55, %v4850_v62 }
 0x256   : > { %v10632_v5 = vld [vmem:[%s12076_s19 + $0x33b] sm:$0x1]  ;;  %v10633_v6 = vld [vmem:[%s12076_s19 + $0x34b] sm:$0x1]  ;;  %v5416_v8 = vsel %vm1465_vm6, %v5415_v42, %v5414_v3  ;;  %v4854_v9 = vsel %vm1453_vm2, %v4853_v57, %v4852_v4  ;;  %v5417_v12 = vrot.slane %v10630_v1, 7  ;;  %v5419_v13 = vrot.slane %v10631_v2, 6 }
 0x257   : > { %v10634_v7 = vld [vmem:[%s12076_s19 + $0x35b] sm:$0x1]  ;;  %v10635_v10 = vld [vmem:[%s12076_s19 + $0x36b] sm:$0x1]  ;;  %5578 = vxpose.xlu1.b32.cont [6/16] (narrow) %v5416_v8, 8  ;;  %v4856_v14 = vsel %vm1456_vm3, %v4855_v58, %v4854_v9  ;;  %v5421_v15 = vrot.slane %v10632_v5, 5 }
 0x258   : > { %v10636_v11 = vld [vmem:[%s12076_s19 + $0x37b] sm:$0x1]  ;;  %v5423_v16 = vrot.slane %v10633_v6, 4  ;;  %v5425_v17 = vrot.slane %v10634_v7, 3  ;;  %v10497_v18 = vld [vmem:[%s12076_s19 + $0x30a] sm:$0x1]  ;;  %v4858_v19 = vsel %vm1459_vm4, %v4857_v59, %v4856_v14  ;;  %v5418_v20 = vsel %vm1447_vm0, %v5417_v12, %v10629_v60 }
 0x259   : > { %v5427_v21 = vrot.slane %v10635_v10, 2  ;;  %v5429_v22 = vrot.slane %v10636_v11, 1  ;;  %v10498_v23 = vld [vmem:[%s12076_s19 + $0x31a] sm:$0x1]  ;;  %v10499_v24 = vld [vmem:[%s12076_s19 + $0x32a] sm:$0x1]  ;;  %v4860_v25 = vsel %vm1462_vm5, %v4859_v63, %v4858_v19  ;;  %v5420_v26 = vsel %vm1450_vm1, %v5419_v13, %v5418_v20 }
 0x25a   : > { %v10500_v27 = vld [vmem:[%s12076_s19 + $0x33a] sm:$0x1]  ;;  %v10501_v28 = vld [vmem:[%s12076_s19 + $0x34a] sm:$0x1]  ;;  %v4862_v30 = vsel %vm1465_vm6, %v4861_v0, %v4860_v25  ;;  %v5422_v31 = vsel %vm1453_vm2, %v5421_v15, %v5420_v26  ;;  %v4863_v34 = vrot.slane %v10498_v23, 7  ;;  %v4865_v35 = vrot.slane %v10499_v24, 6 }
 0x25b   : > { %v10502_v29 = vld [vmem:[%s12076_s19 + $0x35a] sm:$0x1]  ;;  %v10503_v32 = vld [vmem:[%s12076_s19 + $0x36a] sm:$0x1]  ;;  %5024 = vxpose.xlu0.b32.cont [6/16] (narrow) %v4862_v30, 8  ;;  %v5424_v36 = vsel %vm1456_vm3, %v5423_v16, %v5422_v31  ;;  %v4867_v37 = vrot.slane %v10500_v27, 5 }
 0x25c   : > { %v10504_v33 = vld [vmem:[%s12076_s19 + $0x37a] sm:$0x1]  ;;  %v4869_v38 = vrot.slane %v10501_v28, 4  ;;  %v4871_v39 = vrot.slane %v10502_v29, 3  ;;  %v10637_v40 = vld [vmem:[%s12076_s19 + $0x38b] sm:$0x1]  ;;  %v5426_v41 = vsel %vm1459_vm4, %v5425_v17, %v5424_v36  ;;  %v4864_v42 = vsel %vm1447_vm0, %v4863_v34, %v10497_v18 }
 0x25d   : > { %v4873_v43 = vrot.slane %v10503_v32, 2  ;;  %v4875_v44 = vrot.slane %v10504_v33, 1  ;;  %v10638_v45 = vld [vmem:[%s12076_s19 + $0x39b] sm:$0x1]  ;;  %v10639_v46 = vld [vmem:[%s12076_s19 + $0x3ab] sm:$0x1]  ;;  %v5428_v47 = vsel %vm1462_vm5, %v5427_v21, %v5426_v41  ;;  %v4866_v48 = vsel %vm1450_vm1, %v4865_v35, %v4864_v42 }
 0x25e   : > { %v10640_v49 = vld [vmem:[%s12076_s19 + $0x3bb] sm:$0x1]  ;;  %v10641_v50 = vld [vmem:[%s12076_s19 + $0x3cb] sm:$0x1]  ;;  %v5430_v52 = vsel %vm1465_vm6, %v5429_v22, %v5428_v47  ;;  %v4868_v53 = vsel %vm1453_vm2, %v4867_v37, %v4866_v48  ;;  %v5431_v56 = vrot.slane %v10638_v45, 7  ;;  %v5433_v57 = vrot.slane %v10639_v46, 6 }
 0x25f   : > { %v10642_v51 = vld [vmem:[%s12076_s19 + $0x3db] sm:$0x1]  ;;  %v10643_v54 = vld [vmem:[%s12076_s19 + $0x3eb] sm:$0x1]  ;;  %5579 = vxpose.xlu1.b32.cont [7/16] (narrow) %v5430_v52, 8  ;;  %v4870_v58 = vsel %vm1456_vm3, %v4869_v38, %v4868_v53  ;;  %v5435_v59 = vrot.slane %v10640_v49, 5 }
 0x260   : > { %v10644_v55 = vld [vmem:[%s12076_s19 + $0x3fb] sm:$0x1]  ;;  %v5437_v60 = vrot.slane %v10641_v50, 4  ;;  %v5439_v61 = vrot.slane %v10642_v51, 3  ;;  %v10505_v62 = vld [vmem:[%s12076_s19 + $0x38a] sm:$0x1]  ;;  %v4872_v63 = vsel %vm1459_vm4, %v4871_v39, %v4870_v58  ;;  %v5432_v0 = vsel %vm1447_vm0, %v5431_v56, %v10637_v40 }
 0x261   : > { %v5441_v1 = vrot.slane %v10643_v54, 2  ;;  %v5443_v2 = vrot.slane %v10644_v55, 1  ;;  %v10506_v3 = vld [vmem:[%s12076_s19 + $0x39a] sm:$0x1]  ;;  %v10507_v4 = vld [vmem:[%s12076_s19 + $0x3aa] sm:$0x1]  ;;  %v4874_v5 = vsel %vm1462_vm5, %v4873_v43, %v4872_v63  ;;  %v5434_v6 = vsel %vm1450_vm1, %v5433_v57, %v5432_v0 }
 0x262   : > { %v10508_v7 = vld [vmem:[%s12076_s19 + $0x3ba] sm:$0x1]  ;;  %v10509_v8 = vld [vmem:[%s12076_s19 + $0x3ca] sm:$0x1]  ;;  %v4876_v10 = vsel %vm1465_vm6, %v4875_v44, %v4874_v5  ;;  %v5436_v11 = vsel %vm1453_vm2, %v5435_v59, %v5434_v6  ;;  %v4877_v14 = vrot.slane %v10506_v3, 7  ;;  %v4879_v15 = vrot.slane %v10507_v4, 6 }
 0x263   : > { %v10510_v9 = vld [vmem:[%s12076_s19 + $0x3da] sm:$0x1]  ;;  %v10511_v12 = vld [vmem:[%s12076_s19 + $0x3ea] sm:$0x1]  ;;  %5025 = vxpose.xlu0.b32.cont [7/16] (narrow) %v4876_v10, 8  ;;  %v5438_v16 = vsel %vm1456_vm3, %v5437_v60, %v5436_v11  ;;  %v4881_v17 = vrot.slane %v10508_v7, 5 }
 0x264   : > { %v10512_v13 = vld [vmem:[%s12076_s19 + $0x3fa] sm:$0x1]  ;;  %v4883_v18 = vrot.slane %v10509_v8, 4  ;;  %v4885_v19 = vrot.slane %v10510_v9, 3  ;;  %v10645_v20 = vld [vmem:[%s12076_s19 + $0x40b] sm:$0x1]  ;;  %v5440_v21 = vsel %vm1459_vm4, %v5439_v61, %v5438_v16  ;;  %v4878_v22 = vsel %vm1447_vm0, %v4877_v14, %v10505_v62 }
 0x265   : > { %v4887_v23 = vrot.slane %v10511_v12, 2  ;;  %v4889_v24 = vrot.slane %v10512_v13, 1  ;;  %v10646_v25 = vld [vmem:[%s12076_s19 + $0x41b] sm:$0x1]  ;;  %v10647_v26 = vld [vmem:[%s12076_s19 + $0x42b] sm:$0x1]  ;;  %v5442_v27 = vsel %vm1462_vm5, %v5441_v1, %v5440_v21  ;;  %v4880_v28 = vsel %vm1450_vm1, %v4879_v15, %v4878_v22 }
 0x266   : > { %v10648_v29 = vld [vmem:[%s12076_s19 + $0x43b] sm:$0x1]  ;;  %v10649_v30 = vld [vmem:[%s12076_s19 + $0x44b] sm:$0x1]  ;;  %v5444_v32 = vsel %vm1465_vm6, %v5443_v2, %v5442_v27  ;;  %v4882_v33 = vsel %vm1453_vm2, %v4881_v17, %v4880_v28  ;;  %v5445_v36 = vrot.slane %v10646_v25, 7  ;;  %v5447_v37 = vrot.slane %v10647_v26, 6 }
 0x267   : > { %v10650_v31 = vld [vmem:[%s12076_s19 + $0x45b] sm:$0x1]  ;;  %v10651_v34 = vld [vmem:[%s12076_s19 + $0x46b] sm:$0x1]  ;;  %5580 = vxpose.xlu1.b32.cont [8/16] (narrow) %v5444_v32, 8  ;;  %v4884_v38 = vsel %vm1456_vm3, %v4883_v18, %v4882_v33  ;;  %v5449_v39 = vrot.slane %v10648_v29, 5 }
 0x268   : > { %v10652_v35 = vld [vmem:[%s12076_s19 + $0x47b] sm:$0x1]  ;;  %v5451_v40 = vrot.slane %v10649_v30, 4  ;;  %v5453_v41 = vrot.slane %v10650_v31, 3  ;;  %v10513_v42 = vld [vmem:[%s12076_s19 + $0x40a] sm:$0x1]  ;;  %v4886_v43 = vsel %vm1459_vm4, %v4885_v19, %v4884_v38  ;;  %v5446_v44 = vsel %vm1447_vm0, %v5445_v36, %v10645_v20 }
 0x269   : > { %v5455_v45 = vrot.slane %v10651_v34, 2  ;;  %v5457_v46 = vrot.slane %v10652_v35, 1  ;;  %v10514_v47 = vld [vmem:[%s12076_s19 + $0x41a] sm:$0x1]  ;;  %v10515_v48 = vld [vmem:[%s12076_s19 + $0x42a] sm:$0x1]  ;;  %v4888_v49 = vsel %vm1462_vm5, %v4887_v23, %v4886_v43  ;;  %v5448_v50 = vsel %vm1450_vm1, %v5447_v37, %v5446_v44 }
 0x26a   : > { %v10516_v51 = vld [vmem:[%s12076_s19 + $0x43a] sm:$0x1]  ;;  %v10517_v52 = vld [vmem:[%s12076_s19 + $0x44a] sm:$0x1]  ;;  %v4890_v54 = vsel %vm1465_vm6, %v4889_v24, %v4888_v49  ;;  %v5450_v55 = vsel %vm1453_vm2, %v5449_v39, %v5448_v50  ;;  %v4891_v58 = vrot.slane %v10514_v47, 7  ;;  %v4893_v59 = vrot.slane %v10515_v48, 6 }
 0x26b   : > { %v10518_v53 = vld [vmem:[%s12076_s19 + $0x45a] sm:$0x1]  ;;  %v10519_v56 = vld [vmem:[%s12076_s19 + $0x46a] sm:$0x1]  ;;  %5026 = vxpose.xlu0.b32.cont [8/16] (narrow) %v4890_v54, 8  ;;  %v5452_v60 = vsel %vm1456_vm3, %v5451_v40, %v5450_v55  ;;  %v4895_v61 = vrot.slane %v10516_v51, 5 }
 0x26c   : > { %v10520_v57 = vld [vmem:[%s12076_s19 + $0x47a] sm:$0x1]  ;;  %v4897_v62 = vrot.slane %v10517_v52, 4  ;;  %v4899_v63 = vrot.slane %v10518_v53, 3  ;;  %v10653_v0 = vld [vmem:[%s12076_s19 + $0x48b] sm:$0x1]  ;;  %v5454_v1 = vsel %vm1459_vm4, %v5453_v41, %v5452_v60  ;;  %v4892_v2 = vsel %vm1447_vm0, %v4891_v58, %v10513_v42 }
 0x26d   : > { %v4901_v3 = vrot.slane %v10519_v56, 2  ;;  %v4903_v4 = vrot.slane %v10520_v57, 1  ;;  %v10654_v5 = vld [vmem:[%s12076_s19 + $0x49b] sm:$0x1]  ;;  %v10655_v6 = vld [vmem:[%s12076_s19 + $0x4ab] sm:$0x1]  ;;  %v5456_v7 = vsel %vm1462_vm5, %v5455_v45, %v5454_v1  ;;  %v4894_v8 = vsel %vm1450_vm1, %v4893_v59, %v4892_v2 }
 0x26e   : > { %v10656_v9 = vld [vmem:[%s12076_s19 + $0x4bb] sm:$0x1]  ;;  %v10657_v10 = vld [vmem:[%s12076_s19 + $0x4cb] sm:$0x1]  ;;  %v5458_v12 = vsel %vm1465_vm6, %v5457_v46, %v5456_v7  ;;  %v4896_v13 = vsel %vm1453_vm2, %v4895_v61, %v4894_v8  ;;  %v5459_v16 = vrot.slane %v10654_v5, 7  ;;  %v5461_v17 = vrot.slane %v10655_v6, 6 }
 0x26f   : > { %v10658_v11 = vld [vmem:[%s12076_s19 + $0x4db] sm:$0x1]  ;;  %v10659_v14 = vld [vmem:[%s12076_s19 + $0x4eb] sm:$0x1]  ;;  %5581 = vxpose.xlu1.b32.cont [9/16] (narrow) %v5458_v12, 8  ;;  %v4898_v18 = vsel %vm1456_vm3, %v4897_v62, %v4896_v13  ;;  %v5463_v19 = vrot.slane %v10656_v9, 5 }
 0x270   : > { %v10660_v15 = vld [vmem:[%s12076_s19 + $0x4fb] sm:$0x1]  ;;  %v5465_v20 = vrot.slane %v10657_v10, 4  ;;  %v5467_v21 = vrot.slane %v10658_v11, 3  ;;  %v10521_v22 = vld [vmem:[%s12076_s19 + $0x48a] sm:$0x1]  ;;  %v4900_v23 = vsel %vm1459_vm4, %v4899_v63, %v4898_v18  ;;  %v5460_v24 = vsel %vm1447_vm0, %v5459_v16, %v10653_v0 }
 0x271   : > { %v5469_v25 = vrot.slane %v10659_v14, 2  ;;  %v5471_v26 = vrot.slane %v10660_v15, 1  ;;  %v10522_v27 = vld [vmem:[%s12076_s19 + $0x49a] sm:$0x1]  ;;  %v10523_v28 = vld [vmem:[%s12076_s19 + $0x4aa] sm:$0x1]  ;;  %v4902_v29 = vsel %vm1462_vm5, %v4901_v3, %v4900_v23  ;;  %v5462_v30 = vsel %vm1450_vm1, %v5461_v17, %v5460_v24 }
 0x272   : > { %v10524_v31 = vld [vmem:[%s12076_s19 + $0x4ba] sm:$0x1]  ;;  %v10525_v32 = vld [vmem:[%s12076_s19 + $0x4ca] sm:$0x1]  ;;  %v4904_v34 = vsel %vm1465_vm6, %v4903_v4, %v4902_v29  ;;  %v5464_v35 = vsel %vm1453_vm2, %v5463_v19, %v5462_v30  ;;  %v4905_v38 = vrot.slane %v10522_v27, 7  ;;  %v4907_v39 = vrot.slane %v10523_v28, 6 }
 0x273   : > { %v10526_v33 = vld [vmem:[%s12076_s19 + $0x4da] sm:$0x1]  ;;  %v10527_v36 = vld [vmem:[%s12076_s19 + $0x4ea] sm:$0x1]  ;;  %5027 = vxpose.xlu0.b32.cont [9/16] (narrow) %v4904_v34, 8  ;;  %v5466_v40 = vsel %vm1456_vm3, %v5465_v20, %v5464_v35  ;;  %v4909_v41 = vrot.slane %v10524_v31, 5 }
 0x274   : > { %v10528_v37 = vld [vmem:[%s12076_s19 + $0x4fa] sm:$0x1]  ;;  %v4911_v42 = vrot.slane %v10525_v32, 4  ;;  %v4913_v43 = vrot.slane %v10526_v33, 3  ;;  %v10661_v44 = vld [vmem:[%s12076_s19 + $0x50b] sm:$0x1]  ;;  %v5468_v45 = vsel %vm1459_vm4, %v5467_v21, %v5466_v40  ;;  %v4906_v46 = vsel %vm1447_vm0, %v4905_v38, %v10521_v22 }
 0x275   : > { %v4915_v47 = vrot.slane %v10527_v36, 2  ;;  %v4917_v48 = vrot.slane %v10528_v37, 1  ;;  %v10662_v49 = vld [vmem:[%s12076_s19 + $0x51b] sm:$0x1]  ;;  %v10663_v50 = vld [vmem:[%s12076_s19 + $0x52b] sm:$0x1]  ;;  %v5470_v51 = vsel %vm1462_vm5, %v5469_v25, %v5468_v45  ;;  %v4908_v52 = vsel %vm1450_vm1, %v4907_v39, %v4906_v46 }
 0x276   : > { %v10664_v53 = vld [vmem:[%s12076_s19 + $0x53b] sm:$0x1]  ;;  %v10665_v54 = vld [vmem:[%s12076_s19 + $0x54b] sm:$0x1]  ;;  %v5472_v56 = vsel %vm1465_vm6, %v5471_v26, %v5470_v51  ;;  %v4910_v57 = vsel %vm1453_vm2, %v4909_v41, %v4908_v52  ;;  %v5473_v60 = vrot.slane %v10662_v49, 7  ;;  %v5475_v61 = vrot.slane %v10663_v50, 6 }
 0x277   : > { %v10666_v55 = vld [vmem:[%s12076_s19 + $0x55b] sm:$0x1]  ;;  %v10667_v58 = vld [vmem:[%s12076_s19 + $0x56b] sm:$0x1]  ;;  %5582 = vxpose.xlu1.b32.cont [10/16] (narrow) %v5472_v56, 8  ;;  %v4912_v62 = vsel %vm1456_vm3, %v4911_v42, %v4910_v57  ;;  %v5477_v63 = vrot.slane %v10664_v53, 5 }
 0x278   : > { %v10668_v59 = vld [vmem:[%s12076_s19 + $0x57b] sm:$0x1]  ;;  %v5479_v0 = vrot.slane %v10665_v54, 4  ;;  %v5481_v1 = vrot.slane %v10666_v55, 3  ;;  %v10529_v2 = vld [vmem:[%s12076_s19 + $0x50a] sm:$0x1]  ;;  %v4914_v3 = vsel %vm1459_vm4, %v4913_v43, %v4912_v62  ;;  %v5474_v4 = vsel %vm1447_vm0, %v5473_v60, %v10661_v44 }
 0x279   : > { %v5483_v5 = vrot.slane %v10667_v58, 2  ;;  %v5485_v6 = vrot.slane %v10668_v59, 1  ;;  %v10530_v7 = vld [vmem:[%s12076_s19 + $0x51a] sm:$0x1]  ;;  %v10531_v8 = vld [vmem:[%s12076_s19 + $0x52a] sm:$0x1]  ;;  %v4916_v9 = vsel %vm1462_vm5, %v4915_v47, %v4914_v3  ;;  %v5476_v10 = vsel %vm1450_vm1, %v5475_v61, %v5474_v4 }
 0x27a   : > { %v10532_v11 = vld [vmem:[%s12076_s19 + $0x53a] sm:$0x1]  ;;  %v10533_v12 = vld [vmem:[%s12076_s19 + $0x54a] sm:$0x1]  ;;  %v4918_v14 = vsel %vm1465_vm6, %v4917_v48, %v4916_v9  ;;  %v5478_v15 = vsel %vm1453_vm2, %v5477_v63, %v5476_v10  ;;  %v4919_v18 = vrot.slane %v10530_v7, 7  ;;  %v4921_v19 = vrot.slane %v10531_v8, 6 }
 0x27b   : > { %v10534_v13 = vld [vmem:[%s12076_s19 + $0x55a] sm:$0x1]  ;;  %v10535_v16 = vld [vmem:[%s12076_s19 + $0x56a] sm:$0x1]  ;;  %5028 = vxpose.xlu0.b32.cont [10/16] (narrow) %v4918_v14, 8  ;;  %v5480_v20 = vsel %vm1456_vm3, %v5479_v0, %v5478_v15  ;;  %v4923_v21 = vrot.slane %v10532_v11, 5 }
 0x27c   : > { %v10536_v17 = vld [vmem:[%s12076_s19 + $0x57a] sm:$0x1]  ;;  %v4925_v22 = vrot.slane %v10533_v12, 4  ;;  %v4927_v23 = vrot.slane %v10534_v13, 3  ;;  %v10669_v24 = vld [vmem:[%s12076_s19 + $0x58b] sm:$0x1]  ;;  %v5482_v25 = vsel %vm1459_vm4, %v5481_v1, %v5480_v20  ;;  %v4920_v26 = vsel %vm1447_vm0, %v4919_v18, %v10529_v2 }
 0x27d   : > { %v4929_v27 = vrot.slane %v10535_v16, 2  ;;  %v4931_v28 = vrot.slane %v10536_v17, 1  ;;  %v10670_v29 = vld [vmem:[%s12076_s19 + $0x59b] sm:$0x1]  ;;  %v10671_v30 = vld [vmem:[%s12076_s19 + $0x5ab] sm:$0x1]  ;;  %v5484_v31 = vsel %vm1462_vm5, %v5483_v5, %v5482_v25  ;;  %v4922_v32 = vsel %vm1450_vm1, %v4921_v19, %v4920_v26 }
 0x27e   : > { %v10672_v33 = vld [vmem:[%s12076_s19 + $0x5bb] sm:$0x1]  ;;  %v10673_v34 = vld [vmem:[%s12076_s19 + $0x5cb] sm:$0x1]  ;;  %v5486_v36 = vsel %vm1465_vm6, %v5485_v6, %v5484_v31  ;;  %v4924_v37 = vsel %vm1453_vm2, %v4923_v21, %v4922_v32  ;;  %v5487_v40 = vrot.slane %v10670_v29, 7  ;;  %v5489_v41 = vrot.slane %v10671_v30, 6 }
 0x27f   : > { %v10674_v35 = vld [vmem:[%s12076_s19 + $0x5db] sm:$0x1]  ;;  %v10675_v38 = vld [vmem:[%s12076_s19 + $0x5eb] sm:$0x1]  ;;  %5583 = vxpose.xlu1.b32.cont [11/16] (narrow) %v5486_v36, 8  ;;  %v4926_v42 = vsel %vm1456_vm3, %v4925_v22, %v4924_v37  ;;  %v5491_v43 = vrot.slane %v10672_v33, 5 }
 0x280   : > { %v10676_v39 = vld [vmem:[%s12076_s19 + $0x5fb] sm:$0x1]  ;;  %v5493_v44 = vrot.slane %v10673_v34, 4  ;;  %v5495_v45 = vrot.slane %v10674_v35, 3  ;;  %v10537_v46 = vld [vmem:[%s12076_s19 + $0x58a] sm:$0x1]  ;;  %v4928_v47 = vsel %vm1459_vm4, %v4927_v23, %v4926_v42  ;;  %v5488_v48 = vsel %vm1447_vm0, %v5487_v40, %v10669_v24 }
 0x281   : > { %v5497_v49 = vrot.slane %v10675_v38, 2  ;;  %v5499_v50 = vrot.slane %v10676_v39, 1  ;;  %v10538_v51 = vld [vmem:[%s12076_s19 + $0x59a] sm:$0x1]  ;;  %v10539_v52 = vld [vmem:[%s12076_s19 + $0x5aa] sm:$0x1]  ;;  %v4930_v53 = vsel %vm1462_vm5, %v4929_v27, %v4928_v47  ;;  %v5490_v54 = vsel %vm1450_vm1, %v5489_v41, %v5488_v48 }
 0x282   : > { %v10540_v55 = vld [vmem:[%s12076_s19 + $0x5ba] sm:$0x1]  ;;  %v10541_v56 = vld [vmem:[%s12076_s19 + $0x5ca] sm:$0x1]  ;;  %v4932_v58 = vsel %vm1465_vm6, %v4931_v28, %v4930_v53  ;;  %v5492_v59 = vsel %vm1453_vm2, %v5491_v43, %v5490_v54  ;;  %v4933_v62 = vrot.slane %v10538_v51, 7  ;;  %v4935_v63 = vrot.slane %v10539_v52, 6 }
 0x283   : > { %v10542_v57 = vld [vmem:[%s12076_s19 + $0x5da] sm:$0x1]  ;;  %v10543_v60 = vld [vmem:[%s12076_s19 + $0x5ea] sm:$0x1]  ;;  %5029 = vxpose.xlu0.b32.cont [11/16] (narrow) %v4932_v58, 8  ;;  %v5494_v0 = vsel %vm1456_vm3, %v5493_v44, %v5492_v59  ;;  %v4937_v1 = vrot.slane %v10540_v55, 5 }
 0x284   : > { %v10544_v61 = vld [vmem:[%s12076_s19 + $0x5fa] sm:$0x1]  ;;  %v4939_v2 = vrot.slane %v10541_v56, 4  ;;  %v4941_v3 = vrot.slane %v10542_v57, 3  ;;  %v10677_v4 = vld [vmem:[%s12076_s19 + $0x60b] sm:$0x1]  ;;  %v5496_v5 = vsel %vm1459_vm4, %v5495_v45, %v5494_v0  ;;  %v4934_v6 = vsel %vm1447_vm0, %v4933_v62, %v10537_v46 }
 0x285   : > { %v4943_v7 = vrot.slane %v10543_v60, 2  ;;  %v4945_v8 = vrot.slane %v10544_v61, 1  ;;  %v10678_v9 = vld [vmem:[%s12076_s19 + $0x61b] sm:$0x1]  ;;  %v10679_v10 = vld [vmem:[%s12076_s19 + $0x62b] sm:$0x1]  ;;  %v5498_v11 = vsel %vm1462_vm5, %v5497_v49, %v5496_v5  ;;  %v4936_v12 = vsel %vm1450_vm1, %v4935_v63, %v4934_v6 }
 0x286   : > { %v10680_v13 = vld [vmem:[%s12076_s19 + $0x63b] sm:$0x1]  ;;  %v10681_v14 = vld [vmem:[%s12076_s19 + $0x64b] sm:$0x1]  ;;  %v5500_v16 = vsel %vm1465_vm6, %v5499_v50, %v5498_v11  ;;  %v4938_v17 = vsel %vm1453_vm2, %v4937_v1, %v4936_v12  ;;  %v5501_v20 = vrot.slane %v10678_v9, 7  ;;  %v5503_v21 = vrot.slane %v10679_v10, 6 }
 0x287   : > { %v10682_v15 = vld [vmem:[%s12076_s19 + $0x65b] sm:$0x1]  ;;  %v10683_v18 = vld [vmem:[%s12076_s19 + $0x66b] sm:$0x1]  ;;  %5584 = vxpose.xlu1.b32.cont [12/16] (narrow) %v5500_v16, 8  ;;  %v4940_v22 = vsel %vm1456_vm3, %v4939_v2, %v4938_v17  ;;  %v5505_v23 = vrot.slane %v10680_v13, 5 }
 0x288   : > { %v10684_v19 = vld [vmem:[%s12076_s19 + $0x67b] sm:$0x1]  ;;  %v5507_v24 = vrot.slane %v10681_v14, 4  ;;  %v5509_v25 = vrot.slane %v10682_v15, 3  ;;  %v10545_v26 = vld [vmem:[%s12076_s19 + $0x60a] sm:$0x1]  ;;  %v4942_v27 = vsel %vm1459_vm4, %v4941_v3, %v4940_v22  ;;  %v5502_v28 = vsel %vm1447_vm0, %v5501_v20, %v10677_v4 }
 0x289   : > { %v5511_v29 = vrot.slane %v10683_v18, 2  ;;  %v5513_v30 = vrot.slane %v10684_v19, 1  ;;  %v10546_v31 = vld [vmem:[%s12076_s19 + $0x61a] sm:$0x1]  ;;  %v10547_v32 = vld [vmem:[%s12076_s19 + $0x62a] sm:$0x1]  ;;  %v4944_v33 = vsel %vm1462_vm5, %v4943_v7, %v4942_v27  ;;  %v5504_v34 = vsel %vm1450_vm1, %v5503_v21, %v5502_v28 }
 0x28a   : > { %v10548_v35 = vld [vmem:[%s12076_s19 + $0x63a] sm:$0x1]  ;;  %v10549_v36 = vld [vmem:[%s12076_s19 + $0x64a] sm:$0x1]  ;;  %v4946_v38 = vsel %vm1465_vm6, %v4945_v8, %v4944_v33  ;;  %v5506_v39 = vsel %vm1453_vm2, %v5505_v23, %v5504_v34  ;;  %v4947_v42 = vrot.slane %v10546_v31, 7  ;;  %v4949_v43 = vrot.slane %v10547_v32, 6 }
 0x28b   : > { %v10550_v37 = vld [vmem:[%s12076_s19 + $0x65a] sm:$0x1]  ;;  %v10551_v40 = vld [vmem:[%s12076_s19 + $0x66a] sm:$0x1]  ;;  %5030 = vxpose.xlu0.b32.cont [12/16] (narrow) %v4946_v38, 8  ;;  %v5508_v44 = vsel %vm1456_vm3, %v5507_v24, %v5506_v39  ;;  %v4951_v45 = vrot.slane %v10548_v35, 5 }
 0x28c   : > { %v10552_v41 = vld [vmem:[%s12076_s19 + $0x67a] sm:$0x1]  ;;  %v4953_v46 = vrot.slane %v10549_v36, 4  ;;  %v4955_v47 = vrot.slane %v10550_v37, 3  ;;  %v10685_v48 = vld [vmem:[%s12076_s19 + $0x68b] sm:$0x1]  ;;  %v5510_v49 = vsel %vm1459_vm4, %v5509_v25, %v5508_v44  ;;  %v4948_v50 = vsel %vm1447_vm0, %v4947_v42, %v10545_v26 }
 0x28d   : > { %v4957_v51 = vrot.slane %v10551_v40, 2  ;;  %v4959_v52 = vrot.slane %v10552_v41, 1  ;;  %v10686_v53 = vld [vmem:[%s12076_s19 + $0x69b] sm:$0x1]  ;;  %v10687_v54 = vld [vmem:[%s12076_s19 + $0x6ab] sm:$0x1]  ;;  %v5512_v55 = vsel %vm1462_vm5, %v5511_v29, %v5510_v49  ;;  %v4950_v56 = vsel %vm1450_vm1, %v4949_v43, %v4948_v50 }
 0x28e   : > { %v10688_v57 = vld [vmem:[%s12076_s19 + $0x6bb] sm:$0x1]  ;;  %v10689_v58 = vld [vmem:[%s12076_s19 + $0x6cb] sm:$0x1]  ;;  %v5514_v60 = vsel %vm1465_vm6, %v5513_v30, %v5512_v55  ;;  %v4952_v61 = vsel %vm1453_vm2, %v4951_v45, %v4950_v56  ;;  %v5515_v0 = vrot.slane %v10686_v53, 7  ;;  %v5517_v1 = vrot.slane %v10687_v54, 6 }
 0x28f   : > { %v10690_v59 = vld [vmem:[%s12076_s19 + $0x6db] sm:$0x1]  ;;  %v10691_v62 = vld [vmem:[%s12076_s19 + $0x6eb] sm:$0x1]  ;;  %5585 = vxpose.xlu1.b32.cont [13/16] (narrow) %v5514_v60, 8  ;;  %v4954_v2 = vsel %vm1456_vm3, %v4953_v46, %v4952_v61  ;;  %v5519_v3 = vrot.slane %v10688_v57, 5 }
 0x290   : > { %v10692_v63 = vld [vmem:[%s12076_s19 + $0x6fb] sm:$0x1]  ;;  %v5521_v4 = vrot.slane %v10689_v58, 4  ;;  %v5523_v5 = vrot.slane %v10690_v59, 3  ;;  %v10553_v6 = vld [vmem:[%s12076_s19 + $0x68a] sm:$0x1]  ;;  %v4956_v7 = vsel %vm1459_vm4, %v4955_v47, %v4954_v2  ;;  %v5516_v8 = vsel %vm1447_vm0, %v5515_v0, %v10685_v48 }
 0x291   : > { %v5525_v9 = vrot.slane %v10691_v62, 2  ;;  %v5527_v10 = vrot.slane %v10692_v63, 1  ;;  %v10554_v11 = vld [vmem:[%s12076_s19 + $0x69a] sm:$0x1]  ;;  %v10555_v12 = vld [vmem:[%s12076_s19 + $0x6aa] sm:$0x1]  ;;  %v4958_v13 = vsel %vm1462_vm5, %v4957_v51, %v4956_v7  ;;  %v5518_v14 = vsel %vm1450_vm1, %v5517_v1, %v5516_v8 }
 0x292   : > { %v10556_v15 = vld [vmem:[%s12076_s19 + $0x6ba] sm:$0x1]  ;;  %v10557_v16 = vld [vmem:[%s12076_s19 + $0x6ca] sm:$0x1]  ;;  %v4960_v18 = vsel %vm1465_vm6, %v4959_v52, %v4958_v13  ;;  %v5520_v19 = vsel %vm1453_vm2, %v5519_v3, %v5518_v14  ;;  %v4961_v22 = vrot.slane %v10554_v11, 7  ;;  %v4963_v23 = vrot.slane %v10555_v12, 6 }
 0x293   : > { %v10558_v17 = vld [vmem:[%s12076_s19 + $0x6da] sm:$0x1]  ;;  %v10559_v20 = vld [vmem:[%s12076_s19 + $0x6ea] sm:$0x1]  ;;  %5031 = vxpose.xlu0.b32.cont [13/16] (narrow) %v4960_v18, 8  ;;  %v5522_v24 = vsel %vm1456_vm3, %v5521_v4, %v5520_v19  ;;  %v4965_v25 = vrot.slane %v10556_v15, 5 }
 0x294   : > { %v10560_v21 = vld [vmem:[%s12076_s19 + $0x6fa] sm:$0x1]  ;;  %v4967_v26 = vrot.slane %v10557_v16, 4  ;;  %v4969_v27 = vrot.slane %v10558_v17, 3  ;;  %v10693_v28 = vld [vmem:[%s12076_s19 + $0x70b] sm:$0x1]  ;;  %v5524_v29 = vsel %vm1459_vm4, %v5523_v5, %v5522_v24  ;;  %v4962_v30 = vsel %vm1447_vm0, %v4961_v22, %v10553_v6 }
 0x295   : > { %v4971_v31 = vrot.slane %v10559_v20, 2  ;;  %v4973_v32 = vrot.slane %v10560_v21, 1  ;;  %v10694_v33 = vld [vmem:[%s12076_s19 + $0x71b] sm:$0x1]  ;;  %v10695_v34 = vld [vmem:[%s12076_s19 + $0x72b] sm:$0x1]  ;;  %v5526_v35 = vsel %vm1462_vm5, %v5525_v9, %v5524_v29  ;;  %v4964_v36 = vsel %vm1450_vm1, %v4963_v23, %v4962_v30 }
 0x296   : > { %v10696_v37 = vld [vmem:[%s12076_s19 + $0x73b] sm:$0x1]  ;;  %v10697_v38 = vld [vmem:[%s12076_s19 + $0x74b] sm:$0x1]  ;;  %v5528_v40 = vsel %vm1465_vm6, %v5527_v10, %v5526_v35  ;;  %v4966_v41 = vsel %vm1453_vm2, %v4965_v25, %v4964_v36  ;;  %v5529_v44 = vrot.slane %v10694_v33, 7  ;;  %v5531_v45 = vrot.slane %v10695_v34, 6 }
 0x297   : > { %v10698_v39 = vld [vmem:[%s12076_s19 + $0x75b] sm:$0x1]  ;;  %v10699_v42 = vld [vmem:[%s12076_s19 + $0x76b] sm:$0x1]  ;;  %5586 = vxpose.xlu1.b32.cont [14/16] (narrow) %v5528_v40, 8  ;;  %v4968_v46 = vsel %vm1456_vm3, %v4967_v26, %v4966_v41  ;;  %v5533_v47 = vrot.slane %v10696_v37, 5 }
 0x298   : > { %v10700_v43 = vld [vmem:[%s12076_s19 + $0x77b] sm:$0x1]  ;;  %v5535_v48 = vrot.slane %v10697_v38, 4  ;;  %v5537_v49 = vrot.slane %v10698_v39, 3  ;;  %v10561_v50 = vld [vmem:[%s12076_s19 + $0x70a] sm:$0x1]  ;;  %v4970_v51 = vsel %vm1459_vm4, %v4969_v27, %v4968_v46  ;;  %v5530_v52 = vsel %vm1447_vm0, %v5529_v44, %v10693_v28 }
 0x299   : > { %v5539_v53 = vrot.slane %v10699_v42, 2  ;;  %v5541_v54 = vrot.slane %v10700_v43, 1  ;;  %v10562_v55 = vld [vmem:[%s12076_s19 + $0x71a] sm:$0x1]  ;;  %v10563_v56 = vld [vmem:[%s12076_s19 + $0x72a] sm:$0x1]  ;;  %v4972_v57 = vsel %vm1462_vm5, %v4971_v31, %v4970_v51  ;;  %v5532_v58 = vsel %vm1450_vm1, %v5531_v45, %v5530_v52 }
 0x29a   : > { %v10564_v59 = vld [vmem:[%s12076_s19 + $0x73a] sm:$0x1]  ;;  %v10565_v60 = vld [vmem:[%s12076_s19 + $0x74a] sm:$0x1]  ;;  %v4974_v62 = vsel %vm1465_vm6, %v4973_v32, %v4972_v57  ;;  %v5534_v63 = vsel %vm1453_vm2, %v5533_v47, %v5532_v58  ;;  %v4975_v2 = vrot.slane %v10562_v55, 7  ;;  %v4977_v3 = vrot.slane %v10563_v56, 6 }
 0x29b   : > { %v10566_v61 = vld [vmem:[%s12076_s19 + $0x75a] sm:$0x1]  ;;  %v10567_v0 = vld [vmem:[%s12076_s19 + $0x76a] sm:$0x1]  ;;  %5032 = vxpose.xlu0.b32.cont [14/16] (narrow) %v4974_v62, 8  ;;  %v5536_v4 = vsel %vm1456_vm3, %v5535_v48, %v5534_v63  ;;  %v4979_v5 = vrot.slane %v10564_v59, 5 }
 0x29c   : > { %v10568_v1 = vld [vmem:[%s12076_s19 + $0x77a] sm:$0x1]  ;;  %v4981_v6 = vrot.slane %v10565_v60, 4  ;;  %v4983_v7 = vrot.slane %v10566_v61, 3  ;;  %v10701_v8 = vld [vmem:[%s12076_s19 + $0x78b] sm:$0x1]  ;;  %v5538_v9 = vsel %vm1459_vm4, %v5537_v49, %v5536_v4  ;;  %v4976_v10 = vsel %vm1447_vm0, %v4975_v2, %v10561_v50 }
 0x29d   : > { %v4985_v11 = vrot.slane %v10567_v0, 2  ;;  %v4987_v12 = vrot.slane %v10568_v1, 1  ;;  %v10702_v13 = vld [vmem:[%s12076_s19 + $0x79b] sm:$0x1]  ;;  %v10703_v14 = vld [vmem:[%s12076_s19 + $0x7ab] sm:$0x1]  ;;  %v5540_v15 = vsel %vm1462_vm5, %v5539_v53, %v5538_v9  ;;  %v4978_v16 = vsel %vm1450_vm1, %v4977_v3, %v4976_v10 }
 0x29e   : > { %v10704_v17 = vld [vmem:[%s12076_s19 + $0x7bb] sm:$0x1]  ;;  %v10705_v18 = vld [vmem:[%s12076_s19 + $0x7cb] sm:$0x1]  ;;  %v5542_v20 = vsel %vm1465_vm6, %v5541_v54, %v5540_v15  ;;  %v4980_v21 = vsel %vm1453_vm2, %v4979_v5, %v4978_v16  ;;  %v5543_v24 = vrot.slane %v10702_v13, 7  ;;  %v5545_v25 = vrot.slane %v10703_v14, 6 }
 0x29f   : > { %v10706_v19 = vld [vmem:[%s12076_s19 + $0x7db] sm:$0x1]  ;;  %v10707_v22 = vld [vmem:[%s12076_s19 + $0x7eb] sm:$0x1]  ;;  %5587 = vxpose.xlu1.b32.cont [15/16] (narrow) %v5542_v20, 8  ;;  %v4982_v26 = vsel %vm1456_vm3, %v4981_v6, %v4980_v21  ;;  %v5547_v27 = vrot.slane %v10704_v17, 5 }
 0x2a0   : > { %v10708_v23 = vld [vmem:[%s12076_s19 + $0x7fb] sm:$0x1]  ;;  %v5549_v28 = vrot.slane %v10705_v18, 4  ;;  %v5551_v29 = vrot.slane %v10706_v19, 3  ;;  %v10569_v30 = vld [vmem:[%s12076_s19 + $0x78a] sm:$0x1]  ;;  %v4984_v31 = vsel %vm1459_vm4, %v4983_v7, %v4982_v26  ;;  %v5544_v32 = vsel %vm1447_vm0, %v5543_v24, %v10701_v8 }
 0x2a1   : > { %v5553_v33 = vrot.slane %v10707_v22, 2  ;;  %v5555_v34 = vrot.slane %v10708_v23, 1  ;;  %v10570_v35 = vld [vmem:[%s12076_s19 + $0x79a] sm:$0x1]  ;;  %v10571_v36 = vld [vmem:[%s12076_s19 + $0x7aa] sm:$0x1]  ;;  %v4986_v37 = vsel %vm1462_vm5, %v4985_v11, %v4984_v31  ;;  %v5546_v38 = vsel %vm1450_vm1, %v5545_v25, %v5544_v32 }
 0x2a2   : > { %v10572_v39 = vld [vmem:[%s12076_s19 + $0x7ba] sm:$0x1]  ;;  %v10573_v40 = vld [vmem:[%s12076_s19 + $0x7ca] sm:$0x1]  ;;  %v4988_v42 = vsel %vm1465_vm6, %v4987_v12, %v4986_v37  ;;  %v5548_v43 = vsel %vm1453_vm2, %v5547_v27, %v5546_v38  ;;  %v4989_v46 = vrot.slane %v10570_v35, 7  ;;  %v4991_v47 = vrot.slane %v10571_v36, 6 }
 0x2a3   : > { %v10574_v41 = vld [vmem:[%s12076_s19 + $0x7da] sm:$0x1]  ;;  %v10575_v44 = vld [vmem:[%s12076_s19 + $0x7ea] sm:$0x1]  ;;  %5033 = vxpose.xlu0.b32.cont [15/16] (narrow) %v4988_v42, 8  ;;  %v5550_v48 = vsel %vm1456_vm3, %v5549_v28, %v5548_v43  ;;  %v4993_v49 = vrot.slane %v10572_v39, 5 }
 0x2a4   : > { %v10576_v45 = vld [vmem:[%s12076_s19 + $0x7fa] sm:$0x1]  ;;  %v4995_v50 = vrot.slane %v10573_v40, 4  ;;  %v4997_v51 = vrot.slane %v10574_v41, 3  ;;  %v6186_v52 = vld [vmem:[%s12076_s19 + $0x5] sm:$0x1]  ;;  %v5552_v53 = vsel %vm1459_vm4, %v5551_v29, %v5550_v48  ;;  %v4990_v54 = vsel %vm1447_vm0, %v4989_v46, %v10569_v30 }
 0x2a5   : > { %v4999_v55 = vrot.slane %v10575_v44, 2  ;;  %v5001_v56 = vrot.slane %v10576_v45, 1  ;;  %v6187_v57 = vld [vmem:[%s12076_s19 + $0x15] sm:$0x1]  ;;  %v6188_v58 = vld [vmem:[%s12076_s19 + $0x25] sm:$0x1]  ;;  %v5554_v59 = vsel %vm1462_vm5, %v5553_v33, %v5552_v53  ;;  %v4992_v60 = vsel %vm1450_vm1, %v4991_v47, %v4990_v54 }
 0x2a6   : > { %v6189_v61 = vld [vmem:[%s12076_s19 + $0x35] sm:$0x1]  ;;  %v6190_v62 = vld [vmem:[%s12076_s19 + $0x45] sm:$0x1]  ;;  %v5556_v0 = vsel %vm1465_vm6, %v5555_v34, %v5554_v59  ;;  %v4994_v1 = vsel %vm1453_vm2, %v4993_v49, %v4992_v60  ;;  %v6442_v4 = vrot.slane %v6187_v57, 7  ;;  %v6444_v5 = vrot.slane %v6188_v58, 6 }
 0x2a7   : > { %v6191_v63 = vld [vmem:[%s12076_s19 + $0x55] sm:$0x1]  ;;  %v6192_v2 = vld [vmem:[%s12076_s19 + $0x65] sm:$0x1]  ;;  %5588 = vxpose.xlu1.b32.end [16/16] (narrow) %v5556_v0, 8  ;;  %v4996_v6 = vsel %vm1456_vm3, %v4995_v50, %v4994_v1  ;;  %v6446_v7 = vrot.slane %v6189_v61, 5 }
 0x2a8   : > { %v6193_v3 = vld [vmem:[%s12076_s19 + $0x75] sm:$0x1]  ;;  %v6448_v8 = vrot.slane %v6190_v62, 4  ;;  %v6450_v9 = vrot.slane %v6191_v63, 3  ;;  %v5631_v10 = vld [vmem:[%s12076_s19 + $0x4] sm:$0x1]  ;;  %v4998_v11 = vsel %vm1459_vm4, %v4997_v51, %v4996_v6  ;;  %v6443_v12 = vsel %vm1447_vm0, %v6442_v4, %v6186_v52 }
 0x2a9   : > { %v6452_v13 = vrot.slane %v6192_v2, 2  ;;  %v6454_v14 = vrot.slane %v6193_v3, 1  ;;  %v5632_v15 = vld [vmem:[%s12076_s19 + $0x14] sm:$0x1]  ;;  %v5633_v16 = vld [vmem:[%s12076_s19 + $0x24] sm:$0x1]  ;;  %v5000_v17 = vsel %vm1462_vm5, %v4999_v55, %v4998_v11  ;;  %v6445_v18 = vsel %vm1450_vm1, %v6444_v5, %v6443_v12 }
 0x2aa   : > { %v5634_v19 = vld [vmem:[%s12076_s19 + $0x34] sm:$0x1]  ;;  %v5635_v20 = vld [vmem:[%s12076_s19 + $0x44] sm:$0x1]  ;;  %v5002_v22 = vsel %vm1465_vm6, %v5001_v56, %v5000_v17  ;;  %v6447_v23 = vsel %vm1453_vm2, %v6446_v7, %v6445_v18  ;;  %v5887_v26 = vrot.slane %v5632_v15, 7  ;;  %v5889_v27 = vrot.slane %v5633_v16, 6 }
 0x2ab   : > { %v5636_v21 = vld [vmem:[%s12076_s19 + $0x54] sm:$0x1]  ;;  %v5637_v24 = vld [vmem:[%s12076_s19 + $0x64] sm:$0x1]  ;;  %5034 = vxpose.xlu0.b32.end [16/16] (narrow) %v5002_v22, 8  ;;  %v6449_v28 = vsel %vm1456_vm3, %v6448_v8, %v6447_v23  ;;  %v5891_v29 = vrot.slane %v5634_v19, 5 }
 0x2ac   : > { %v5638_v25 = vld [vmem:[%s12076_s19 + $0x74] sm:$0x1]  ;;  %v5893_v30 = vrot.slane %v5635_v20, 4  ;;  %v5895_v31 = vrot.slane %v5636_v21, 3  ;;  %v6194_v32 = vld [vmem:[%s12076_s19 + $0x85] sm:$0x1]  ;;  %v6451_v33 = vsel %vm1459_vm4, %v6450_v9, %v6449_v28  ;;  %v5888_v34 = vsel %vm1447_vm0, %v5887_v26, %v5631_v10 }
 0x2ad   : > { %v5897_v35 = vrot.slane %v5637_v24, 2  ;;  %v5899_v36 = vrot.slane %v5638_v25, 1  ;;  %v6195_v37 = vld [vmem:[%s12076_s19 + $0x95] sm:$0x1]  ;;  %v6196_v38 = vld [vmem:[%s12076_s19 + $0xa5] sm:$0x1]  ;;  %v6453_v39 = vsel %vm1462_vm5, %v6452_v13, %v6451_v33  ;;  %v5890_v40 = vsel %vm1450_vm1, %v5889_v27, %v5888_v34 }
 0x2ae   : > { %v6197_v41 = vld [vmem:[%s12076_s19 + $0xb5] sm:$0x1]  ;;  %v6198_v42 = vld [vmem:[%s12076_s19 + $0xc5] sm:$0x1]  ;;  %v6455_v44 = vsel %vm1465_vm6, %v6454_v14, %v6453_v39  ;;  %v5892_v45 = vsel %vm1453_vm2, %v5891_v29, %v5890_v40  ;;  %v6456_v48 = vrot.slane %v6195_v37, 7  ;;  %v6458_v49 = vrot.slane %v6196_v38, 6 }
 0x2af   : > { %v6199_v43 = vld [vmem:[%s12076_s19 + $0xd5] sm:$0x1]  ;;  %v6200_v46 = vld [vmem:[%s12076_s19 + $0xe5] sm:$0x1]  ;;  %6682 = vxpose.xlu1.b32.start [1/16] (narrow) %v6455_v44, 8  ;;  %v5894_v50 = vsel %vm1456_vm3, %v5893_v30, %v5892_v45  ;;  %v6460_v51 = vrot.slane %v6197_v41, 5 }
 0x2b0   : > { %v6201_v47 = vld [vmem:[%s12076_s19 + $0xf5] sm:$0x1]  ;;  %v6462_v52 = vrot.slane %v6198_v42, 4  ;;  %v6464_v53 = vrot.slane %v6199_v43, 3  ;;  %v5639_v54 = vld [vmem:[%s12076_s19 + $0x84] sm:$0x1]  ;;  %v5896_v55 = vsel %vm1459_vm4, %v5895_v31, %v5894_v50  ;;  %v6457_v56 = vsel %vm1447_vm0, %v6456_v48, %v6194_v32 }
 0x2b1   : > { %v6466_v57 = vrot.slane %v6200_v46, 2  ;;  %v6468_v58 = vrot.slane %v6201_v47, 1  ;;  %v5640_v59 = vld [vmem:[%s12076_s19 + $0x94] sm:$0x1]  ;;  %v5641_v60 = vld [vmem:[%s12076_s19 + $0xa4] sm:$0x1]  ;;  %v5898_v61 = vsel %vm1462_vm5, %v5897_v35, %v5896_v55  ;;  %v6459_v62 = vsel %vm1450_vm1, %v6458_v49, %v6457_v56 }
 0x2b2   : > { %v5642_v63 = vld [vmem:[%s12076_s19 + $0xb4] sm:$0x1]  ;;  %v5643_v0 = vld [vmem:[%s12076_s19 + $0xc4] sm:$0x1]  ;;  %v5900_v2 = vsel %vm1465_vm6, %v5899_v36, %v5898_v61  ;;  %v6461_v3 = vsel %vm1453_vm2, %v6460_v51, %v6459_v62  ;;  %v5901_v6 = vrot.slane %v5640_v59, 7  ;;  %v5903_v7 = vrot.slane %v5641_v60, 6 }
 0x2b3   : > { %v5644_v1 = vld [vmem:[%s12076_s19 + $0xd4] sm:$0x1]  ;;  %v5645_v4 = vld [vmem:[%s12076_s19 + $0xe4] sm:$0x1]  ;;  %6127 = vxpose.xlu0.b32.start [1/16] (narrow) %v5900_v2, 8  ;;  %v6463_v8 = vsel %vm1456_vm3, %v6462_v52, %v6461_v3  ;;  %v5905_v9 = vrot.slane %v5642_v63, 5 }
 0x2b4   : > { %v5646_v5 = vld [vmem:[%s12076_s19 + $0xf4] sm:$0x1]  ;;  %v5907_v10 = vrot.slane %v5643_v0, 4  ;;  %v5909_v11 = vrot.slane %v5644_v1, 3  ;;  %v6202_v12 = vld [vmem:[%s12076_s19 + $0x105] sm:$0x1]  ;;  %v6465_v13 = vsel %vm1459_vm4, %v6464_v53, %v6463_v8  ;;  %v5902_v14 = vsel %vm1447_vm0, %v5901_v6, %v5639_v54 }
 0x2b5   : > { %v5911_v15 = vrot.slane %v5645_v4, 2  ;;  %v5913_v16 = vrot.slane %v5646_v5, 1  ;;  %v6203_v17 = vld [vmem:[%s12076_s19 + $0x115] sm:$0x1]  ;;  %v6204_v18 = vld [vmem:[%s12076_s19 + $0x125] sm:$0x1]  ;;  %v6467_v19 = vsel %vm1462_vm5, %v6466_v57, %v6465_v13  ;;  %v5904_v20 = vsel %vm1450_vm1, %v5903_v7, %v5902_v14 }
 0x2b6   : > { %v6205_v21 = vld [vmem:[%s12076_s19 + $0x135] sm:$0x1]  ;;  %v6206_v22 = vld [vmem:[%s12076_s19 + $0x145] sm:$0x1]  ;;  %v6469_v24 = vsel %vm1465_vm6, %v6468_v58, %v6467_v19  ;;  %v5906_v25 = vsel %vm1453_vm2, %v5905_v9, %v5904_v20  ;;  %v6470_v28 = vrot.slane %v6203_v17, 7  ;;  %v6472_v29 = vrot.slane %v6204_v18, 6 }
 0x2b7   : > { %v6207_v23 = vld [vmem:[%s12076_s19 + $0x155] sm:$0x1]  ;;  %v6208_v26 = vld [vmem:[%s12076_s19 + $0x165] sm:$0x1]  ;;  %6683 = vxpose.xlu1.b32.cont [2/16] (narrow) %v6469_v24, 8  ;;  %v5908_v30 = vsel %vm1456_vm3, %v5907_v10, %v5906_v25  ;;  %v6474_v31 = vrot.slane %v6205_v21, 5 }
 0x2b8   : > { %v6209_v27 = vld [vmem:[%s12076_s19 + $0x175] sm:$0x1]  ;;  %v6476_v32 = vrot.slane %v6206_v22, 4  ;;  %v6478_v33 = vrot.slane %v6207_v23, 3  ;;  %v5647_v34 = vld [vmem:[%s12076_s19 + $0x104] sm:$0x1]  ;;  %v5910_v35 = vsel %vm1459_vm4, %v5909_v11, %v5908_v30  ;;  %v6471_v36 = vsel %vm1447_vm0, %v6470_v28, %v6202_v12 }
 0x2b9   : > { %v6480_v37 = vrot.slane %v6208_v26, 2  ;;  %v6482_v38 = vrot.slane %v6209_v27, 1  ;;  %v5648_v39 = vld [vmem:[%s12076_s19 + $0x114] sm:$0x1]  ;;  %v5649_v40 = vld [vmem:[%s12076_s19 + $0x124] sm:$0x1]  ;;  %v5912_v41 = vsel %vm1462_vm5, %v5911_v15, %v5910_v35  ;;  %v6473_v42 = vsel %vm1450_vm1, %v6472_v29, %v6471_v36 }
 0x2ba   : > { %v5650_v43 = vld [vmem:[%s12076_s19 + $0x134] sm:$0x1]  ;;  %v5651_v44 = vld [vmem:[%s12076_s19 + $0x144] sm:$0x1]  ;;  %v5914_v46 = vsel %vm1465_vm6, %v5913_v16, %v5912_v41  ;;  %v6475_v47 = vsel %vm1453_vm2, %v6474_v31, %v6473_v42  ;;  %v5915_v50 = vrot.slane %v5648_v39, 7  ;;  %v5917_v51 = vrot.slane %v5649_v40, 6 }
 0x2bb   : > { %v5652_v45 = vld [vmem:[%s12076_s19 + $0x154] sm:$0x1]  ;;  %v5653_v48 = vld [vmem:[%s12076_s19 + $0x164] sm:$0x1]  ;;  %6128 = vxpose.xlu0.b32.cont [2/16] (narrow) %v5914_v46, 8  ;;  %v6477_v52 = vsel %vm1456_vm3, %v6476_v32, %v6475_v47  ;;  %v5919_v53 = vrot.slane %v5650_v43, 5 }
 0x2bc   : > { %v5654_v49 = vld [vmem:[%s12076_s19 + $0x174] sm:$0x1]  ;;  %v5921_v54 = vrot.slane %v5651_v44, 4  ;;  %v5923_v55 = vrot.slane %v5652_v45, 3  ;;  %v6210_v56 = vld [vmem:[%s12076_s19 + $0x185] sm:$0x1]  ;;  %v6479_v57 = vsel %vm1459_vm4, %v6478_v33, %v6477_v52  ;;  %v5916_v58 = vsel %vm1447_vm0, %v5915_v50, %v5647_v34 }
 0x2bd   : > { %v5925_v59 = vrot.slane %v5653_v48, 2  ;;  %v5927_v60 = vrot.slane %v5654_v49, 1  ;;  %v6211_v61 = vld [vmem:[%s12076_s19 + $0x195] sm:$0x1]  ;;  %v6212_v62 = vld [vmem:[%s12076_s19 + $0x1a5] sm:$0x1]  ;;  %v6481_v63 = vsel %vm1462_vm5, %v6480_v37, %v6479_v57  ;;  %v5918_v0 = vsel %vm1450_vm1, %v5917_v51, %v5916_v58 }
 0x2be   : > { %v6213_v1 = vld [vmem:[%s12076_s19 + $0x1b5] sm:$0x1]  ;;  %v6214_v2 = vld [vmem:[%s12076_s19 + $0x1c5] sm:$0x1]  ;;  %v6483_v4 = vsel %vm1465_vm6, %v6482_v38, %v6481_v63  ;;  %v5920_v5 = vsel %vm1453_vm2, %v5919_v53, %v5918_v0  ;;  %v6484_v8 = vrot.slane %v6211_v61, 7  ;;  %v6486_v9 = vrot.slane %v6212_v62, 6 }
 0x2bf   : > { %v6215_v3 = vld [vmem:[%s12076_s19 + $0x1d5] sm:$0x1]  ;;  %v6216_v6 = vld [vmem:[%s12076_s19 + $0x1e5] sm:$0x1]  ;;  %6684 = vxpose.xlu1.b32.cont [3/16] (narrow) %v6483_v4, 8  ;;  %v5922_v10 = vsel %vm1456_vm3, %v5921_v54, %v5920_v5  ;;  %v6488_v11 = vrot.slane %v6213_v1, 5 }
 0x2c0   : > { %v6217_v7 = vld [vmem:[%s12076_s19 + $0x1f5] sm:$0x1]  ;;  %v6490_v12 = vrot.slane %v6214_v2, 4  ;;  %v6492_v13 = vrot.slane %v6215_v3, 3  ;;  %v5655_v14 = vld [vmem:[%s12076_s19 + $0x184] sm:$0x1]  ;;  %v5924_v15 = vsel %vm1459_vm4, %v5923_v55, %v5922_v10  ;;  %v6485_v16 = vsel %vm1447_vm0, %v6484_v8, %v6210_v56 }
 0x2c1   : > { %v6494_v17 = vrot.slane %v6216_v6, 2  ;;  %v6496_v18 = vrot.slane %v6217_v7, 1  ;;  %v5656_v19 = vld [vmem:[%s12076_s19 + $0x194] sm:$0x1]  ;;  %v5657_v20 = vld [vmem:[%s12076_s19 + $0x1a4] sm:$0x1]  ;;  %v5926_v21 = vsel %vm1462_vm5, %v5925_v59, %v5924_v15  ;;  %v6487_v22 = vsel %vm1450_vm1, %v6486_v9, %v6485_v16 }
 0x2c2   : > { %v5658_v23 = vld [vmem:[%s12076_s19 + $0x1b4] sm:$0x1]  ;;  %v5659_v24 = vld [vmem:[%s12076_s19 + $0x1c4] sm:$0x1]  ;;  %v5928_v26 = vsel %vm1465_vm6, %v5927_v60, %v5926_v21  ;;  %v6489_v27 = vsel %vm1453_vm2, %v6488_v11, %v6487_v22  ;;  %v5929_v30 = vrot.slane %v5656_v19, 7  ;;  %v5931_v31 = vrot.slane %v5657_v20, 6 }
 0x2c3   : > { %v5660_v25 = vld [vmem:[%s12076_s19 + $0x1d4] sm:$0x1]  ;;  %v5661_v28 = vld [vmem:[%s12076_s19 + $0x1e4] sm:$0x1]  ;;  %6129 = vxpose.xlu0.b32.cont [3/16] (narrow) %v5928_v26, 8  ;;  %v6491_v32 = vsel %vm1456_vm3, %v6490_v12, %v6489_v27  ;;  %v5933_v33 = vrot.slane %v5658_v23, 5 }
 0x2c4   : > { %v5662_v29 = vld [vmem:[%s12076_s19 + $0x1f4] sm:$0x1]  ;;  %v5935_v34 = vrot.slane %v5659_v24, 4  ;;  %v5937_v35 = vrot.slane %v5660_v25, 3  ;;  %v6218_v36 = vld [vmem:[%s12076_s19 + $0x205] sm:$0x1]  ;;  %v6493_v37 = vsel %vm1459_vm4, %v6492_v13, %v6491_v32  ;;  %v5930_v38 = vsel %vm1447_vm0, %v5929_v30, %v5655_v14 }
 0x2c5   : > { %v5939_v39 = vrot.slane %v5661_v28, 2  ;;  %v5941_v40 = vrot.slane %v5662_v29, 1  ;;  %v6219_v41 = vld [vmem:[%s12076_s19 + $0x215] sm:$0x1]  ;;  %v6220_v42 = vld [vmem:[%s12076_s19 + $0x225] sm:$0x1]  ;;  %v6495_v43 = vsel %vm1462_vm5, %v6494_v17, %v6493_v37  ;;  %v5932_v44 = vsel %vm1450_vm1, %v5931_v31, %v5930_v38 }
 0x2c6   : > { %v6221_v45 = vld [vmem:[%s12076_s19 + $0x235] sm:$0x1]  ;;  %v6222_v46 = vld [vmem:[%s12076_s19 + $0x245] sm:$0x1]  ;;  %v6497_v48 = vsel %vm1465_vm6, %v6496_v18, %v6495_v43  ;;  %v5934_v49 = vsel %vm1453_vm2, %v5933_v33, %v5932_v44  ;;  %v6498_v52 = vrot.slane %v6219_v41, 7  ;;  %v6500_v53 = vrot.slane %v6220_v42, 6 }
 0x2c7   : > { %v6223_v47 = vld [vmem:[%s12076_s19 + $0x255] sm:$0x1]  ;;  %v6224_v50 = vld [vmem:[%s12076_s19 + $0x265] sm:$0x1]  ;;  %6685 = vxpose.xlu1.b32.cont [4/16] (narrow) %v6497_v48, 8  ;;  %v5936_v54 = vsel %vm1456_vm3, %v5935_v34, %v5934_v49  ;;  %v6502_v55 = vrot.slane %v6221_v45, 5 }
 0x2c8   : > { %v6225_v51 = vld [vmem:[%s12076_s19 + $0x275] sm:$0x1]  ;;  %v6504_v56 = vrot.slane %v6222_v46, 4  ;;  %v6506_v57 = vrot.slane %v6223_v47, 3  ;;  %v5663_v58 = vld [vmem:[%s12076_s19 + $0x204] sm:$0x1]  ;;  %v5938_v59 = vsel %vm1459_vm4, %v5937_v35, %v5936_v54  ;;  %v6499_v60 = vsel %vm1447_vm0, %v6498_v52, %v6218_v36 }
 0x2c9   : > { %v6508_v61 = vrot.slane %v6224_v50, 2  ;;  %v6510_v62 = vrot.slane %v6225_v51, 1  ;;  %v5664_v63 = vld [vmem:[%s12076_s19 + $0x214] sm:$0x1]  ;;  %v5665_v0 = vld [vmem:[%s12076_s19 + $0x224] sm:$0x1]  ;;  %v5940_v1 = vsel %vm1462_vm5, %v5939_v39, %v5938_v59  ;;  %v6501_v2 = vsel %vm1450_vm1, %v6500_v53, %v6499_v60 }
 0x2ca   : > { %v5666_v3 = vld [vmem:[%s12076_s19 + $0x234] sm:$0x1]  ;;  %v5667_v4 = vld [vmem:[%s12076_s19 + $0x244] sm:$0x1]  ;;  %v5942_v6 = vsel %vm1465_vm6, %v5941_v40, %v5940_v1  ;;  %v6503_v7 = vsel %vm1453_vm2, %v6502_v55, %v6501_v2  ;;  %v5943_v10 = vrot.slane %v5664_v63, 7  ;;  %v5945_v11 = vrot.slane %v5665_v0, 6 }
 0x2cb   : > { %v5668_v5 = vld [vmem:[%s12076_s19 + $0x254] sm:$0x1]  ;;  %v5669_v8 = vld [vmem:[%s12076_s19 + $0x264] sm:$0x1]  ;;  %6130 = vxpose.xlu0.b32.cont [4/16] (narrow) %v5942_v6, 8  ;;  %v6505_v12 = vsel %vm1456_vm3, %v6504_v56, %v6503_v7  ;;  %v5947_v13 = vrot.slane %v5666_v3, 5 }
 0x2cc   : > { %v5670_v9 = vld [vmem:[%s12076_s19 + $0x274] sm:$0x1]  ;;  %v5949_v14 = vrot.slane %v5667_v4, 4  ;;  %v5951_v15 = vrot.slane %v5668_v5, 3  ;;  %v6226_v16 = vld [vmem:[%s12076_s19 + $0x285] sm:$0x1]  ;;  %v6507_v17 = vsel %vm1459_vm4, %v6506_v57, %v6505_v12  ;;  %v5944_v18 = vsel %vm1447_vm0, %v5943_v10, %v5663_v58 }
 0x2cd   : > { %v5953_v19 = vrot.slane %v5669_v8, 2  ;;  %v5955_v20 = vrot.slane %v5670_v9, 1  ;;  %v6227_v21 = vld [vmem:[%s12076_s19 + $0x295] sm:$0x1]  ;;  %v6228_v22 = vld [vmem:[%s12076_s19 + $0x2a5] sm:$0x1]  ;;  %v6509_v23 = vsel %vm1462_vm5, %v6508_v61, %v6507_v17  ;;  %v5946_v24 = vsel %vm1450_vm1, %v5945_v11, %v5944_v18 }
 0x2ce   : > { %v6229_v25 = vld [vmem:[%s12076_s19 + $0x2b5] sm:$0x1]  ;;  %v6230_v26 = vld [vmem:[%s12076_s19 + $0x2c5] sm:$0x1]  ;;  %v6511_v28 = vsel %vm1465_vm6, %v6510_v62, %v6509_v23  ;;  %v5948_v29 = vsel %vm1453_vm2, %v5947_v13, %v5946_v24  ;;  %v6512_v32 = vrot.slane %v6227_v21, 7  ;;  %v6514_v33 = vrot.slane %v6228_v22, 6 }
 0x2cf   : > { %v6231_v27 = vld [vmem:[%s12076_s19 + $0x2d5] sm:$0x1]  ;;  %v6232_v30 = vld [vmem:[%s12076_s19 + $0x2e5] sm:$0x1]  ;;  %6686 = vxpose.xlu1.b32.cont [5/16] (narrow) %v6511_v28, 8  ;;  %v5950_v34 = vsel %vm1456_vm3, %v5949_v14, %v5948_v29  ;;  %v6516_v35 = vrot.slane %v6229_v25, 5 }
 0x2d0   : > { %v6233_v31 = vld [vmem:[%s12076_s19 + $0x2f5] sm:$0x1]  ;;  %v6518_v36 = vrot.slane %v6230_v26, 4  ;;  %v6520_v37 = vrot.slane %v6231_v27, 3  ;;  %v5671_v38 = vld [vmem:[%s12076_s19 + $0x284] sm:$0x1]  ;;  %v5952_v39 = vsel %vm1459_vm4, %v5951_v15, %v5950_v34  ;;  %v6513_v40 = vsel %vm1447_vm0, %v6512_v32, %v6226_v16 }
 0x2d1   : > { %v6522_v41 = vrot.slane %v6232_v30, 2  ;;  %v6524_v42 = vrot.slane %v6233_v31, 1  ;;  %v5672_v43 = vld [vmem:[%s12076_s19 + $0x294] sm:$0x1]  ;;  %v5673_v44 = vld [vmem:[%s12076_s19 + $0x2a4] sm:$0x1]  ;;  %v5954_v45 = vsel %vm1462_vm5, %v5953_v19, %v5952_v39  ;;  %v6515_v46 = vsel %vm1450_vm1, %v6514_v33, %v6513_v40 }
 0x2d2   : > { %v5674_v47 = vld [vmem:[%s12076_s19 + $0x2b4] sm:$0x1]  ;;  %v5675_v48 = vld [vmem:[%s12076_s19 + $0x2c4] sm:$0x1]  ;;  %v5956_v50 = vsel %vm1465_vm6, %v5955_v20, %v5954_v45  ;;  %v6517_v51 = vsel %vm1453_vm2, %v6516_v35, %v6515_v46  ;;  %v5957_v54 = vrot.slane %v5672_v43, 7  ;;  %v5959_v55 = vrot.slane %v5673_v44, 6 }
 0x2d3   : > { %v5676_v49 = vld [vmem:[%s12076_s19 + $0x2d4] sm:$0x1]  ;;  %v5677_v52 = vld [vmem:[%s12076_s19 + $0x2e4] sm:$0x1]  ;;  %6131 = vxpose.xlu0.b32.cont [5/16] (narrow) %v5956_v50, 8  ;;  %v6519_v56 = vsel %vm1456_vm3, %v6518_v36, %v6517_v51  ;;  %v5961_v57 = vrot.slane %v5674_v47, 5 }
 0x2d4   : > { %v5678_v53 = vld [vmem:[%s12076_s19 + $0x2f4] sm:$0x1]  ;;  %v5963_v58 = vrot.slane %v5675_v48, 4  ;;  %v5965_v59 = vrot.slane %v5676_v49, 3  ;;  %v6234_v60 = vld [vmem:[%s12076_s19 + $0x305] sm:$0x1]  ;;  %v6521_v61 = vsel %vm1459_vm4, %v6520_v37, %v6519_v56  ;;  %v5958_v62 = vsel %vm1447_vm0, %v5957_v54, %v5671_v38 }
 0x2d5   : > { %v5967_v63 = vrot.slane %v5677_v52, 2  ;;  %v5969_v0 = vrot.slane %v5678_v53, 1  ;;  %v6235_v1 = vld [vmem:[%s12076_s19 + $0x315] sm:$0x1]  ;;  %v6236_v2 = vld [vmem:[%s12076_s19 + $0x325] sm:$0x1]  ;;  %v6523_v3 = vsel %vm1462_vm5, %v6522_v41, %v6521_v61  ;;  %v5960_v4 = vsel %vm1450_vm1, %v5959_v55, %v5958_v62 }
 0x2d6   : > { %v6237_v5 = vld [vmem:[%s12076_s19 + $0x335] sm:$0x1]  ;;  %v6238_v6 = vld [vmem:[%s12076_s19 + $0x345] sm:$0x1]  ;;  %v6525_v8 = vsel %vm1465_vm6, %v6524_v42, %v6523_v3  ;;  %v5962_v9 = vsel %vm1453_vm2, %v5961_v57, %v5960_v4  ;;  %v6526_v12 = vrot.slane %v6235_v1, 7  ;;  %v6528_v13 = vrot.slane %v6236_v2, 6 }
 0x2d7   : > { %v6239_v7 = vld [vmem:[%s12076_s19 + $0x355] sm:$0x1]  ;;  %v6240_v10 = vld [vmem:[%s12076_s19 + $0x365] sm:$0x1]  ;;  %6687 = vxpose.xlu1.b32.cont [6/16] (narrow) %v6525_v8, 8  ;;  %v5964_v14 = vsel %vm1456_vm3, %v5963_v58, %v5962_v9  ;;  %v6530_v15 = vrot.slane %v6237_v5, 5 }
 0x2d8   : > { %v6241_v11 = vld [vmem:[%s12076_s19 + $0x375] sm:$0x1]  ;;  %v6532_v16 = vrot.slane %v6238_v6, 4  ;;  %v6534_v17 = vrot.slane %v6239_v7, 3  ;;  %v5679_v18 = vld [vmem:[%s12076_s19 + $0x304] sm:$0x1]  ;;  %v5966_v19 = vsel %vm1459_vm4, %v5965_v59, %v5964_v14  ;;  %v6527_v20 = vsel %vm1447_vm0, %v6526_v12, %v6234_v60 }
 0x2d9   : > { %v6536_v21 = vrot.slane %v6240_v10, 2  ;;  %v6538_v22 = vrot.slane %v6241_v11, 1  ;;  %v5680_v23 = vld [vmem:[%s12076_s19 + $0x314] sm:$0x1]  ;;  %v5681_v24 = vld [vmem:[%s12076_s19 + $0x324] sm:$0x1]  ;;  %v5968_v25 = vsel %vm1462_vm5, %v5967_v63, %v5966_v19  ;;  %v6529_v26 = vsel %vm1450_vm1, %v6528_v13, %v6527_v20 }
 0x2da   : > { %v5682_v27 = vld [vmem:[%s12076_s19 + $0x334] sm:$0x1]  ;;  %v5683_v28 = vld [vmem:[%s12076_s19 + $0x344] sm:$0x1]  ;;  %v5970_v30 = vsel %vm1465_vm6, %v5969_v0, %v5968_v25  ;;  %v6531_v31 = vsel %vm1453_vm2, %v6530_v15, %v6529_v26  ;;  %v5971_v34 = vrot.slane %v5680_v23, 7  ;;  %v5973_v35 = vrot.slane %v5681_v24, 6 }
 0x2db   : > { %v5684_v29 = vld [vmem:[%s12076_s19 + $0x354] sm:$0x1]  ;;  %v5685_v32 = vld [vmem:[%s12076_s19 + $0x364] sm:$0x1]  ;;  %6132 = vxpose.xlu0.b32.cont [6/16] (narrow) %v5970_v30, 8  ;;  %v6533_v36 = vsel %vm1456_vm3, %v6532_v16, %v6531_v31  ;;  %v5975_v37 = vrot.slane %v5682_v27, 5 }
 0x2dc   : > { %v5686_v33 = vld [vmem:[%s12076_s19 + $0x374] sm:$0x1]  ;;  %v5977_v38 = vrot.slane %v5683_v28, 4  ;;  %v5979_v39 = vrot.slane %v5684_v29, 3  ;;  %v6242_v40 = vld [vmem:[%s12076_s19 + $0x385] sm:$0x1]  ;;  %v6535_v41 = vsel %vm1459_vm4, %v6534_v17, %v6533_v36  ;;  %v5972_v42 = vsel %vm1447_vm0, %v5971_v34, %v5679_v18 }
 0x2dd   : > { %v5981_v43 = vrot.slane %v5685_v32, 2  ;;  %v5983_v44 = vrot.slane %v5686_v33, 1  ;;  %v6243_v45 = vld [vmem:[%s12076_s19 + $0x395] sm:$0x1]  ;;  %v6244_v46 = vld [vmem:[%s12076_s19 + $0x3a5] sm:$0x1]  ;;  %v6537_v47 = vsel %vm1462_vm5, %v6536_v21, %v6535_v41  ;;  %v5974_v48 = vsel %vm1450_vm1, %v5973_v35, %v5972_v42 }
 0x2de   : > { %v6245_v49 = vld [vmem:[%s12076_s19 + $0x3b5] sm:$0x1]  ;;  %v6246_v50 = vld [vmem:[%s12076_s19 + $0x3c5] sm:$0x1]  ;;  %v6539_v52 = vsel %vm1465_vm6, %v6538_v22, %v6537_v47  ;;  %v5976_v53 = vsel %vm1453_vm2, %v5975_v37, %v5974_v48  ;;  %v6540_v56 = vrot.slane %v6243_v45, 7  ;;  %v6542_v57 = vrot.slane %v6244_v46, 6 }
 0x2df   : > { %v6247_v51 = vld [vmem:[%s12076_s19 + $0x3d5] sm:$0x1]  ;;  %v6248_v54 = vld [vmem:[%s12076_s19 + $0x3e5] sm:$0x1]  ;;  %6688 = vxpose.xlu1.b32.cont [7/16] (narrow) %v6539_v52, 8  ;;  %v5978_v58 = vsel %vm1456_vm3, %v5977_v38, %v5976_v53  ;;  %v6544_v59 = vrot.slane %v6245_v49, 5 }
 0x2e0   : > { %v6249_v55 = vld [vmem:[%s12076_s19 + $0x3f5] sm:$0x1]  ;;  %v6546_v60 = vrot.slane %v6246_v50, 4  ;;  %v6548_v61 = vrot.slane %v6247_v51, 3  ;;  %v5687_v62 = vld [vmem:[%s12076_s19 + $0x384] sm:$0x1]  ;;  %v5980_v63 = vsel %vm1459_vm4, %v5979_v39, %v5978_v58  ;;  %v6541_v0 = vsel %vm1447_vm0, %v6540_v56, %v6242_v40 }
 0x2e1   : > { %v6550_v1 = vrot.slane %v6248_v54, 2  ;;  %v6552_v2 = vrot.slane %v6249_v55, 1  ;;  %v5688_v3 = vld [vmem:[%s12076_s19 + $0x394] sm:$0x1]  ;;  %v5689_v4 = vld [vmem:[%s12076_s19 + $0x3a4] sm:$0x1]  ;;  %v5982_v5 = vsel %vm1462_vm5, %v5981_v43, %v5980_v63  ;;  %v6543_v6 = vsel %vm1450_vm1, %v6542_v57, %v6541_v0 }
 0x2e2   : > { %v5690_v7 = vld [vmem:[%s12076_s19 + $0x3b4] sm:$0x1]  ;;  %v5691_v8 = vld [vmem:[%s12076_s19 + $0x3c4] sm:$0x1]  ;;  %v5984_v10 = vsel %vm1465_vm6, %v5983_v44, %v5982_v5  ;;  %v6545_v11 = vsel %vm1453_vm2, %v6544_v59, %v6543_v6  ;;  %v5985_v14 = vrot.slane %v5688_v3, 7  ;;  %v5987_v15 = vrot.slane %v5689_v4, 6 }
 0x2e3   : > { %v5692_v9 = vld [vmem:[%s12076_s19 + $0x3d4] sm:$0x1]  ;;  %v5693_v12 = vld [vmem:[%s12076_s19 + $0x3e4] sm:$0x1]  ;;  %6133 = vxpose.xlu0.b32.cont [7/16] (narrow) %v5984_v10, 8  ;;  %v6547_v16 = vsel %vm1456_vm3, %v6546_v60, %v6545_v11  ;;  %v5989_v17 = vrot.slane %v5690_v7, 5 }
 0x2e4   : > { %v5694_v13 = vld [vmem:[%s12076_s19 + $0x3f4] sm:$0x1]  ;;  %v5991_v18 = vrot.slane %v5691_v8, 4  ;;  %v5993_v19 = vrot.slane %v5692_v9, 3  ;;  %v6250_v20 = vld [vmem:[%s12076_s19 + $0x405] sm:$0x1]  ;;  %v6549_v21 = vsel %vm1459_vm4, %v6548_v61, %v6547_v16  ;;  %v5986_v22 = vsel %vm1447_vm0, %v5985_v14, %v5687_v62 }
 0x2e5   : > { %v5995_v23 = vrot.slane %v5693_v12, 2  ;;  %v5997_v24 = vrot.slane %v5694_v13, 1  ;;  %v6251_v25 = vld [vmem:[%s12076_s19 + $0x415] sm:$0x1]  ;;  %v6252_v26 = vld [vmem:[%s12076_s19 + $0x425] sm:$0x1]  ;;  %v6551_v27 = vsel %vm1462_vm5, %v6550_v1, %v6549_v21  ;;  %v5988_v28 = vsel %vm1450_vm1, %v5987_v15, %v5986_v22 }
 0x2e6   : > { %v6253_v29 = vld [vmem:[%s12076_s19 + $0x435] sm:$0x1]  ;;  %v6254_v30 = vld [vmem:[%s12076_s19 + $0x445] sm:$0x1]  ;;  %v6553_v32 = vsel %vm1465_vm6, %v6552_v2, %v6551_v27  ;;  %v5990_v33 = vsel %vm1453_vm2, %v5989_v17, %v5988_v28  ;;  %v6554_v36 = vrot.slane %v6251_v25, 7  ;;  %v6556_v37 = vrot.slane %v6252_v26, 6 }
 0x2e7   : > { %v6255_v31 = vld [vmem:[%s12076_s19 + $0x455] sm:$0x1]  ;;  %v6256_v34 = vld [vmem:[%s12076_s19 + $0x465] sm:$0x1]  ;;  %6689 = vxpose.xlu1.b32.cont [8/16] (narrow) %v6553_v32, 8  ;;  %v5992_v38 = vsel %vm1456_vm3, %v5991_v18, %v5990_v33  ;;  %v6558_v39 = vrot.slane %v6253_v29, 5 }
 0x2e8   : > { %v6257_v35 = vld [vmem:[%s12076_s19 + $0x475] sm:$0x1]  ;;  %v6560_v40 = vrot.slane %v6254_v30, 4  ;;  %v6562_v41 = vrot.slane %v6255_v31, 3  ;;  %v5695_v42 = vld [vmem:[%s12076_s19 + $0x404] sm:$0x1]  ;;  %v5994_v43 = vsel %vm1459_vm4, %v5993_v19, %v5992_v38  ;;  %v6555_v44 = vsel %vm1447_vm0, %v6554_v36, %v6250_v20 }
 0x2e9   : > { %v6564_v45 = vrot.slane %v6256_v34, 2  ;;  %v6566_v46 = vrot.slane %v6257_v35, 1  ;;  %v5696_v47 = vld [vmem:[%s12076_s19 + $0x414] sm:$0x1]  ;;  %v5697_v48 = vld [vmem:[%s12076_s19 + $0x424] sm:$0x1]  ;;  %v5996_v49 = vsel %vm1462_vm5, %v5995_v23, %v5994_v43  ;;  %v6557_v50 = vsel %vm1450_vm1, %v6556_v37, %v6555_v44 }
 0x2ea   : > { %v5698_v51 = vld [vmem:[%s12076_s19 + $0x434] sm:$0x1]  ;;  %v5699_v52 = vld [vmem:[%s12076_s19 + $0x444] sm:$0x1]  ;;  %v5998_v54 = vsel %vm1465_vm6, %v5997_v24, %v5996_v49  ;;  %v6559_v55 = vsel %vm1453_vm2, %v6558_v39, %v6557_v50  ;;  %v5999_v58 = vrot.slane %v5696_v47, 7  ;;  %v6001_v59 = vrot.slane %v5697_v48, 6 }
 0x2eb   : > { %v5700_v53 = vld [vmem:[%s12076_s19 + $0x454] sm:$0x1]  ;;  %v5701_v56 = vld [vmem:[%s12076_s19 + $0x464] sm:$0x1]  ;;  %6134 = vxpose.xlu0.b32.cont [8/16] (narrow) %v5998_v54, 8  ;;  %v6561_v60 = vsel %vm1456_vm3, %v6560_v40, %v6559_v55  ;;  %v6003_v61 = vrot.slane %v5698_v51, 5 }
 0x2ec   : > { %v5702_v57 = vld [vmem:[%s12076_s19 + $0x474] sm:$0x1]  ;;  %v6005_v62 = vrot.slane %v5699_v52, 4  ;;  %v6007_v63 = vrot.slane %v5700_v53, 3  ;;  %v6258_v0 = vld [vmem:[%s12076_s19 + $0x485] sm:$0x1]  ;;  %v6563_v1 = vsel %vm1459_vm4, %v6562_v41, %v6561_v60  ;;  %v6000_v2 = vsel %vm1447_vm0, %v5999_v58, %v5695_v42 }
 0x2ed   : > { %v6009_v3 = vrot.slane %v5701_v56, 2  ;;  %v6011_v4 = vrot.slane %v5702_v57, 1  ;;  %v6259_v5 = vld [vmem:[%s12076_s19 + $0x495] sm:$0x1]  ;;  %v6260_v6 = vld [vmem:[%s12076_s19 + $0x4a5] sm:$0x1]  ;;  %v6565_v7 = vsel %vm1462_vm5, %v6564_v45, %v6563_v1  ;;  %v6002_v8 = vsel %vm1450_vm1, %v6001_v59, %v6000_v2 }
 0x2ee   : > { %v6261_v9 = vld [vmem:[%s12076_s19 + $0x4b5] sm:$0x1]  ;;  %v6262_v10 = vld [vmem:[%s12076_s19 + $0x4c5] sm:$0x1]  ;;  %v6567_v12 = vsel %vm1465_vm6, %v6566_v46, %v6565_v7  ;;  %v6004_v13 = vsel %vm1453_vm2, %v6003_v61, %v6002_v8  ;;  %v6568_v16 = vrot.slane %v6259_v5, 7  ;;  %v6570_v17 = vrot.slane %v6260_v6, 6 }
 0x2ef   : > { %v6263_v11 = vld [vmem:[%s12076_s19 + $0x4d5] sm:$0x1]  ;;  %v6264_v14 = vld [vmem:[%s12076_s19 + $0x4e5] sm:$0x1]  ;;  %6690 = vxpose.xlu1.b32.cont [9/16] (narrow) %v6567_v12, 8  ;;  %v6006_v18 = vsel %vm1456_vm3, %v6005_v62, %v6004_v13  ;;  %v6572_v19 = vrot.slane %v6261_v9, 5 }
 0x2f0   : > { %v6265_v15 = vld [vmem:[%s12076_s19 + $0x4f5] sm:$0x1]  ;;  %v6574_v20 = vrot.slane %v6262_v10, 4  ;;  %v6576_v21 = vrot.slane %v6263_v11, 3  ;;  %v5703_v22 = vld [vmem:[%s12076_s19 + $0x484] sm:$0x1]  ;;  %v6008_v23 = vsel %vm1459_vm4, %v6007_v63, %v6006_v18  ;;  %v6569_v24 = vsel %vm1447_vm0, %v6568_v16, %v6258_v0 }
 0x2f1   : > { %v6578_v25 = vrot.slane %v6264_v14, 2  ;;  %v6580_v26 = vrot.slane %v6265_v15, 1  ;;  %v5704_v27 = vld [vmem:[%s12076_s19 + $0x494] sm:$0x1]  ;;  %v5705_v28 = vld [vmem:[%s12076_s19 + $0x4a4] sm:$0x1]  ;;  %v6010_v29 = vsel %vm1462_vm5, %v6009_v3, %v6008_v23  ;;  %v6571_v30 = vsel %vm1450_vm1, %v6570_v17, %v6569_v24 }
 0x2f2   : > { %v5706_v31 = vld [vmem:[%s12076_s19 + $0x4b4] sm:$0x1]  ;;  %v5707_v32 = vld [vmem:[%s12076_s19 + $0x4c4] sm:$0x1]  ;;  %v6012_v34 = vsel %vm1465_vm6, %v6011_v4, %v6010_v29  ;;  %v6573_v35 = vsel %vm1453_vm2, %v6572_v19, %v6571_v30  ;;  %v6013_v38 = vrot.slane %v5704_v27, 7  ;;  %v6015_v39 = vrot.slane %v5705_v28, 6 }
 0x2f3   : > { %v5708_v33 = vld [vmem:[%s12076_s19 + $0x4d4] sm:$0x1]  ;;  %v5709_v36 = vld [vmem:[%s12076_s19 + $0x4e4] sm:$0x1]  ;;  %6135 = vxpose.xlu0.b32.cont [9/16] (narrow) %v6012_v34, 8  ;;  %v6575_v40 = vsel %vm1456_vm3, %v6574_v20, %v6573_v35  ;;  %v6017_v41 = vrot.slane %v5706_v31, 5 }
 0x2f4   : > { %v5710_v37 = vld [vmem:[%s12076_s19 + $0x4f4] sm:$0x1]  ;;  %v6019_v42 = vrot.slane %v5707_v32, 4  ;;  %v6021_v43 = vrot.slane %v5708_v33, 3  ;;  %v6266_v44 = vld [vmem:[%s12076_s19 + $0x505] sm:$0x1]  ;;  %v6577_v45 = vsel %vm1459_vm4, %v6576_v21, %v6575_v40  ;;  %v6014_v46 = vsel %vm1447_vm0, %v6013_v38, %v5703_v22 }
 0x2f5   : > { %v6023_v47 = vrot.slane %v5709_v36, 2  ;;  %v6025_v48 = vrot.slane %v5710_v37, 1  ;;  %v6267_v49 = vld [vmem:[%s12076_s19 + $0x515] sm:$0x1]  ;;  %v6268_v50 = vld [vmem:[%s12076_s19 + $0x525] sm:$0x1]  ;;  %v6579_v51 = vsel %vm1462_vm5, %v6578_v25, %v6577_v45  ;;  %v6016_v52 = vsel %vm1450_vm1, %v6015_v39, %v6014_v46 }
 0x2f6   : > { %v6269_v53 = vld [vmem:[%s12076_s19 + $0x535] sm:$0x1]  ;;  %v6270_v54 = vld [vmem:[%s12076_s19 + $0x545] sm:$0x1]  ;;  %v6581_v56 = vsel %vm1465_vm6, %v6580_v26, %v6579_v51  ;;  %v6018_v57 = vsel %vm1453_vm2, %v6017_v41, %v6016_v52  ;;  %v6582_v60 = vrot.slane %v6267_v49, 7  ;;  %v6584_v61 = vrot.slane %v6268_v50, 6 }
 0x2f7   : > { %v6271_v55 = vld [vmem:[%s12076_s19 + $0x555] sm:$0x1]  ;;  %v6272_v58 = vld [vmem:[%s12076_s19 + $0x565] sm:$0x1]  ;;  %6691 = vxpose.xlu1.b32.cont [10/16] (narrow) %v6581_v56, 8  ;;  %v6020_v62 = vsel %vm1456_vm3, %v6019_v42, %v6018_v57  ;;  %v6586_v63 = vrot.slane %v6269_v53, 5 }
 0x2f8   : > { %v6273_v59 = vld [vmem:[%s12076_s19 + $0x575] sm:$0x1]  ;;  %v6588_v0 = vrot.slane %v6270_v54, 4  ;;  %v6590_v1 = vrot.slane %v6271_v55, 3  ;;  %v5711_v2 = vld [vmem:[%s12076_s19 + $0x504] sm:$0x1]  ;;  %v6022_v3 = vsel %vm1459_vm4, %v6021_v43, %v6020_v62  ;;  %v6583_v4 = vsel %vm1447_vm0, %v6582_v60, %v6266_v44 }
 0x2f9   : > { %v6592_v5 = vrot.slane %v6272_v58, 2  ;;  %v6594_v6 = vrot.slane %v6273_v59, 1  ;;  %v5712_v7 = vld [vmem:[%s12076_s19 + $0x514] sm:$0x1]  ;;  %v5713_v8 = vld [vmem:[%s12076_s19 + $0x524] sm:$0x1]  ;;  %v6024_v9 = vsel %vm1462_vm5, %v6023_v47, %v6022_v3  ;;  %v6585_v10 = vsel %vm1450_vm1, %v6584_v61, %v6583_v4 }
 0x2fa   : > { %v5714_v11 = vld [vmem:[%s12076_s19 + $0x534] sm:$0x1]  ;;  %v5715_v12 = vld [vmem:[%s12076_s19 + $0x544] sm:$0x1]  ;;  %v6026_v14 = vsel %vm1465_vm6, %v6025_v48, %v6024_v9  ;;  %v6587_v15 = vsel %vm1453_vm2, %v6586_v63, %v6585_v10  ;;  %v6027_v18 = vrot.slane %v5712_v7, 7  ;;  %v6029_v19 = vrot.slane %v5713_v8, 6 }
 0x2fb   : > { %v5716_v13 = vld [vmem:[%s12076_s19 + $0x554] sm:$0x1]  ;;  %v5717_v16 = vld [vmem:[%s12076_s19 + $0x564] sm:$0x1]  ;;  %6136 = vxpose.xlu0.b32.cont [10/16] (narrow) %v6026_v14, 8  ;;  %v6589_v20 = vsel %vm1456_vm3, %v6588_v0, %v6587_v15  ;;  %v6031_v21 = vrot.slane %v5714_v11, 5 }
 0x2fc   : > { %v5718_v17 = vld [vmem:[%s12076_s19 + $0x574] sm:$0x1]  ;;  %v6033_v22 = vrot.slane %v5715_v12, 4  ;;  %v6035_v23 = vrot.slane %v5716_v13, 3  ;;  %v6274_v24 = vld [vmem:[%s12076_s19 + $0x585] sm:$0x1]  ;;  %v6591_v25 = vsel %vm1459_vm4, %v6590_v1, %v6589_v20  ;;  %v6028_v26 = vsel %vm1447_vm0, %v6027_v18, %v5711_v2 }
 0x2fd   : > { %v6037_v27 = vrot.slane %v5717_v16, 2  ;;  %v6039_v28 = vrot.slane %v5718_v17, 1  ;;  %v6275_v29 = vld [vmem:[%s12076_s19 + $0x595] sm:$0x1]  ;;  %v6276_v30 = vld [vmem:[%s12076_s19 + $0x5a5] sm:$0x1]  ;;  %v6593_v31 = vsel %vm1462_vm5, %v6592_v5, %v6591_v25  ;;  %v6030_v32 = vsel %vm1450_vm1, %v6029_v19, %v6028_v26 }
 0x2fe   : > { %v6277_v33 = vld [vmem:[%s12076_s19 + $0x5b5] sm:$0x1]  ;;  %v6278_v34 = vld [vmem:[%s12076_s19 + $0x5c5] sm:$0x1]  ;;  %v6595_v36 = vsel %vm1465_vm6, %v6594_v6, %v6593_v31  ;;  %v6032_v37 = vsel %vm1453_vm2, %v6031_v21, %v6030_v32  ;;  %v6596_v40 = vrot.slane %v6275_v29, 7  ;;  %v6598_v41 = vrot.slane %v6276_v30, 6 }
 0x2ff   : > { %v6279_v35 = vld [vmem:[%s12076_s19 + $0x5d5] sm:$0x1]  ;;  %v6280_v38 = vld [vmem:[%s12076_s19 + $0x5e5] sm:$0x1]  ;;  %6692 = vxpose.xlu1.b32.cont [11/16] (narrow) %v6595_v36, 8  ;;  %v6034_v42 = vsel %vm1456_vm3, %v6033_v22, %v6032_v37  ;;  %v6600_v43 = vrot.slane %v6277_v33, 5 }
 0x300   : > { %v6281_v39 = vld [vmem:[%s12076_s19 + $0x5f5] sm:$0x1]  ;;  %v6602_v44 = vrot.slane %v6278_v34, 4  ;;  %v6604_v45 = vrot.slane %v6279_v35, 3  ;;  %v5719_v46 = vld [vmem:[%s12076_s19 + $0x584] sm:$0x1]  ;;  %v6036_v47 = vsel %vm1459_vm4, %v6035_v23, %v6034_v42  ;;  %v6597_v48 = vsel %vm1447_vm0, %v6596_v40, %v6274_v24 }
 0x301   : > { %v6606_v49 = vrot.slane %v6280_v38, 2  ;;  %v6608_v50 = vrot.slane %v6281_v39, 1  ;;  %v5720_v51 = vld [vmem:[%s12076_s19 + $0x594] sm:$0x1]  ;;  %v5721_v52 = vld [vmem:[%s12076_s19 + $0x5a4] sm:$0x1]  ;;  %v6038_v53 = vsel %vm1462_vm5, %v6037_v27, %v6036_v47  ;;  %v6599_v54 = vsel %vm1450_vm1, %v6598_v41, %v6597_v48 }
 0x302   : > { %v5722_v55 = vld [vmem:[%s12076_s19 + $0x5b4] sm:$0x1]  ;;  %v5723_v56 = vld [vmem:[%s12076_s19 + $0x5c4] sm:$0x1]  ;;  %v6040_v58 = vsel %vm1465_vm6, %v6039_v28, %v6038_v53  ;;  %v6601_v59 = vsel %vm1453_vm2, %v6600_v43, %v6599_v54  ;;  %v6041_v62 = vrot.slane %v5720_v51, 7  ;;  %v6043_v63 = vrot.slane %v5721_v52, 6 }
 0x303   : > { %v5724_v57 = vld [vmem:[%s12076_s19 + $0x5d4] sm:$0x1]  ;;  %v5725_v60 = vld [vmem:[%s12076_s19 + $0x5e4] sm:$0x1]  ;;  %6137 = vxpose.xlu0.b32.cont [11/16] (narrow) %v6040_v58, 8  ;;  %v6603_v0 = vsel %vm1456_vm3, %v6602_v44, %v6601_v59  ;;  %v6045_v1 = vrot.slane %v5722_v55, 5 }
 0x304   : > { %v5726_v61 = vld [vmem:[%s12076_s19 + $0x5f4] sm:$0x1]  ;;  %v6047_v2 = vrot.slane %v5723_v56, 4  ;;  %v6049_v3 = vrot.slane %v5724_v57, 3  ;;  %v6282_v4 = vld [vmem:[%s12076_s19 + $0x605] sm:$0x1]  ;;  %v6605_v5 = vsel %vm1459_vm4, %v6604_v45, %v6603_v0  ;;  %v6042_v6 = vsel %vm1447_vm0, %v6041_v62, %v5719_v46 }
 0x305   : > { %v6051_v7 = vrot.slane %v5725_v60, 2  ;;  %v6053_v8 = vrot.slane %v5726_v61, 1  ;;  %v6283_v9 = vld [vmem:[%s12076_s19 + $0x615] sm:$0x1]  ;;  %v6284_v10 = vld [vmem:[%s12076_s19 + $0x625] sm:$0x1]  ;;  %v6607_v11 = vsel %vm1462_vm5, %v6606_v49, %v6605_v5  ;;  %v6044_v12 = vsel %vm1450_vm1, %v6043_v63, %v6042_v6 }
 0x306   : > { %v6285_v13 = vld [vmem:[%s12076_s19 + $0x635] sm:$0x1]  ;;  %v6286_v14 = vld [vmem:[%s12076_s19 + $0x645] sm:$0x1]  ;;  %v6609_v16 = vsel %vm1465_vm6, %v6608_v50, %v6607_v11  ;;  %v6046_v17 = vsel %vm1453_vm2, %v6045_v1, %v6044_v12  ;;  %v6610_v20 = vrot.slane %v6283_v9, 7  ;;  %v6612_v21 = vrot.slane %v6284_v10, 6 }
 0x307   : > { %v6287_v15 = vld [vmem:[%s12076_s19 + $0x655] sm:$0x1]  ;;  %v6288_v18 = vld [vmem:[%s12076_s19 + $0x665] sm:$0x1]  ;;  %6693 = vxpose.xlu1.b32.cont [12/16] (narrow) %v6609_v16, 8  ;;  %v6048_v22 = vsel %vm1456_vm3, %v6047_v2, %v6046_v17  ;;  %v6614_v23 = vrot.slane %v6285_v13, 5 }
 0x308   : > { %v6289_v19 = vld [vmem:[%s12076_s19 + $0x675] sm:$0x1]  ;;  %v6616_v24 = vrot.slane %v6286_v14, 4  ;;  %v6618_v25 = vrot.slane %v6287_v15, 3  ;;  %v5727_v26 = vld [vmem:[%s12076_s19 + $0x604] sm:$0x1]  ;;  %v6050_v27 = vsel %vm1459_vm4, %v6049_v3, %v6048_v22  ;;  %v6611_v28 = vsel %vm1447_vm0, %v6610_v20, %v6282_v4 }
 0x309   : > { %v6620_v29 = vrot.slane %v6288_v18, 2  ;;  %v6622_v30 = vrot.slane %v6289_v19, 1  ;;  %v5728_v31 = vld [vmem:[%s12076_s19 + $0x614] sm:$0x1]  ;;  %v5729_v32 = vld [vmem:[%s12076_s19 + $0x624] sm:$0x1]  ;;  %v6052_v33 = vsel %vm1462_vm5, %v6051_v7, %v6050_v27  ;;  %v6613_v34 = vsel %vm1450_vm1, %v6612_v21, %v6611_v28 }
 0x30a   : > { %v5730_v35 = vld [vmem:[%s12076_s19 + $0x634] sm:$0x1]  ;;  %v5731_v36 = vld [vmem:[%s12076_s19 + $0x644] sm:$0x1]  ;;  %v6054_v38 = vsel %vm1465_vm6, %v6053_v8, %v6052_v33  ;;  %v6615_v39 = vsel %vm1453_vm2, %v6614_v23, %v6613_v34  ;;  %v6055_v42 = vrot.slane %v5728_v31, 7  ;;  %v6057_v43 = vrot.slane %v5729_v32, 6 }
 0x30b   : > { %v5732_v37 = vld [vmem:[%s12076_s19 + $0x654] sm:$0x1]  ;;  %v5733_v40 = vld [vmem:[%s12076_s19 + $0x664] sm:$0x1]  ;;  %6138 = vxpose.xlu0.b32.cont [12/16] (narrow) %v6054_v38, 8  ;;  %v6617_v44 = vsel %vm1456_vm3, %v6616_v24, %v6615_v39  ;;  %v6059_v45 = vrot.slane %v5730_v35, 5 }
 0x30c   : > { %v5734_v41 = vld [vmem:[%s12076_s19 + $0x674] sm:$0x1]  ;;  %v6061_v46 = vrot.slane %v5731_v36, 4  ;;  %v6063_v47 = vrot.slane %v5732_v37, 3  ;;  %v6290_v48 = vld [vmem:[%s12076_s19 + $0x685] sm:$0x1]  ;;  %v6619_v49 = vsel %vm1459_vm4, %v6618_v25, %v6617_v44  ;;  %v6056_v50 = vsel %vm1447_vm0, %v6055_v42, %v5727_v26 }
 0x30d   : > { %v6065_v51 = vrot.slane %v5733_v40, 2  ;;  %v6067_v52 = vrot.slane %v5734_v41, 1  ;;  %v6291_v53 = vld [vmem:[%s12076_s19 + $0x695] sm:$0x1]  ;;  %v6292_v54 = vld [vmem:[%s12076_s19 + $0x6a5] sm:$0x1]  ;;  %v6621_v55 = vsel %vm1462_vm5, %v6620_v29, %v6619_v49  ;;  %v6058_v56 = vsel %vm1450_vm1, %v6057_v43, %v6056_v50 }
 0x30e   : > { %v6293_v57 = vld [vmem:[%s12076_s19 + $0x6b5] sm:$0x1]  ;;  %v6294_v58 = vld [vmem:[%s12076_s19 + $0x6c5] sm:$0x1]  ;;  %v6623_v60 = vsel %vm1465_vm6, %v6622_v30, %v6621_v55  ;;  %v6060_v61 = vsel %vm1453_vm2, %v6059_v45, %v6058_v56  ;;  %v6624_v0 = vrot.slane %v6291_v53, 7  ;;  %v6626_v1 = vrot.slane %v6292_v54, 6 }
 0x30f   : > { %v6295_v59 = vld [vmem:[%s12076_s19 + $0x6d5] sm:$0x1]  ;;  %v6296_v62 = vld [vmem:[%s12076_s19 + $0x6e5] sm:$0x1]  ;;  %6694 = vxpose.xlu1.b32.cont [13/16] (narrow) %v6623_v60, 8  ;;  %v6062_v2 = vsel %vm1456_vm3, %v6061_v46, %v6060_v61  ;;  %v6628_v3 = vrot.slane %v6293_v57, 5 }
 0x310   : > { %v6297_v63 = vld [vmem:[%s12076_s19 + $0x6f5] sm:$0x1]  ;;  %v6630_v4 = vrot.slane %v6294_v58, 4  ;;  %v6632_v5 = vrot.slane %v6295_v59, 3  ;;  %v5735_v6 = vld [vmem:[%s12076_s19 + $0x684] sm:$0x1]  ;;  %v6064_v7 = vsel %vm1459_vm4, %v6063_v47, %v6062_v2  ;;  %v6625_v8 = vsel %vm1447_vm0, %v6624_v0, %v6290_v48 }
 0x311   : > { %v6634_v9 = vrot.slane %v6296_v62, 2  ;;  %v6636_v10 = vrot.slane %v6297_v63, 1  ;;  %v5736_v11 = vld [vmem:[%s12076_s19 + $0x694] sm:$0x1]  ;;  %v5737_v12 = vld [vmem:[%s12076_s19 + $0x6a4] sm:$0x1]  ;;  %v6066_v13 = vsel %vm1462_vm5, %v6065_v51, %v6064_v7  ;;  %v6627_v14 = vsel %vm1450_vm1, %v6626_v1, %v6625_v8 }
 0x312   : > { %v5738_v15 = vld [vmem:[%s12076_s19 + $0x6b4] sm:$0x1]  ;;  %v5739_v16 = vld [vmem:[%s12076_s19 + $0x6c4] sm:$0x1]  ;;  %v6068_v18 = vsel %vm1465_vm6, %v6067_v52, %v6066_v13  ;;  %v6629_v19 = vsel %vm1453_vm2, %v6628_v3, %v6627_v14  ;;  %v6069_v22 = vrot.slane %v5736_v11, 7  ;;  %v6071_v23 = vrot.slane %v5737_v12, 6 }
 0x313   : > { %v5740_v17 = vld [vmem:[%s12076_s19 + $0x6d4] sm:$0x1]  ;;  %v5741_v20 = vld [vmem:[%s12076_s19 + $0x6e4] sm:$0x1]  ;;  %6139 = vxpose.xlu0.b32.cont [13/16] (narrow) %v6068_v18, 8  ;;  %v6631_v24 = vsel %vm1456_vm3, %v6630_v4, %v6629_v19  ;;  %v6073_v25 = vrot.slane %v5738_v15, 5 }
 0x314   : > { %v5742_v21 = vld [vmem:[%s12076_s19 + $0x6f4] sm:$0x1]  ;;  %v6075_v26 = vrot.slane %v5739_v16, 4  ;;  %v6077_v27 = vrot.slane %v5740_v17, 3  ;;  %v6298_v28 = vld [vmem:[%s12076_s19 + $0x705] sm:$0x1]  ;;  %v6633_v29 = vsel %vm1459_vm4, %v6632_v5, %v6631_v24  ;;  %v6070_v30 = vsel %vm1447_vm0, %v6069_v22, %v5735_v6 }
 0x315   : > { %v6079_v31 = vrot.slane %v5741_v20, 2  ;;  %v6081_v32 = vrot.slane %v5742_v21, 1  ;;  %v6299_v33 = vld [vmem:[%s12076_s19 + $0x715] sm:$0x1]  ;;  %v6300_v34 = vld [vmem:[%s12076_s19 + $0x725] sm:$0x1]  ;;  %v6635_v35 = vsel %vm1462_vm5, %v6634_v9, %v6633_v29  ;;  %v6072_v36 = vsel %vm1450_vm1, %v6071_v23, %v6070_v30 }
 0x316   : > { %v6301_v37 = vld [vmem:[%s12076_s19 + $0x735] sm:$0x1]  ;;  %v6302_v38 = vld [vmem:[%s12076_s19 + $0x745] sm:$0x1]  ;;  %v6637_v40 = vsel %vm1465_vm6, %v6636_v10, %v6635_v35  ;;  %v6074_v41 = vsel %vm1453_vm2, %v6073_v25, %v6072_v36  ;;  %v6638_v44 = vrot.slane %v6299_v33, 7  ;;  %v6640_v45 = vrot.slane %v6300_v34, 6 }
 0x317   : > { %v6303_v39 = vld [vmem:[%s12076_s19 + $0x755] sm:$0x1]  ;;  %v6304_v42 = vld [vmem:[%s12076_s19 + $0x765] sm:$0x1]  ;;  %6695 = vxpose.xlu1.b32.cont [14/16] (narrow) %v6637_v40, 8  ;;  %v6076_v46 = vsel %vm1456_vm3, %v6075_v26, %v6074_v41  ;;  %v6642_v47 = vrot.slane %v6301_v37, 5 }
 0x318   : > { %v6305_v43 = vld [vmem:[%s12076_s19 + $0x775] sm:$0x1]  ;;  %v6644_v48 = vrot.slane %v6302_v38, 4  ;;  %v6646_v49 = vrot.slane %v6303_v39, 3  ;;  %v5743_v50 = vld [vmem:[%s12076_s19 + $0x704] sm:$0x1]  ;;  %v6078_v51 = vsel %vm1459_vm4, %v6077_v27, %v6076_v46  ;;  %v6639_v52 = vsel %vm1447_vm0, %v6638_v44, %v6298_v28 }
 0x319   : > { %v6648_v53 = vrot.slane %v6304_v42, 2  ;;  %v6650_v54 = vrot.slane %v6305_v43, 1  ;;  %v5744_v55 = vld [vmem:[%s12076_s19 + $0x714] sm:$0x1]  ;;  %v5745_v56 = vld [vmem:[%s12076_s19 + $0x724] sm:$0x1]  ;;  %v6080_v57 = vsel %vm1462_vm5, %v6079_v31, %v6078_v51  ;;  %v6641_v58 = vsel %vm1450_vm1, %v6640_v45, %v6639_v52 }
 0x31a   : > { %v5746_v59 = vld [vmem:[%s12076_s19 + $0x734] sm:$0x1]  ;;  %v5747_v60 = vld [vmem:[%s12076_s19 + $0x744] sm:$0x1]  ;;  %v6082_v62 = vsel %vm1465_vm6, %v6081_v32, %v6080_v57  ;;  %v6643_v63 = vsel %vm1453_vm2, %v6642_v47, %v6641_v58  ;;  %v6083_v2 = vrot.slane %v5744_v55, 7  ;;  %v6085_v3 = vrot.slane %v5745_v56, 6 }
 0x31b   : > { %v5748_v61 = vld [vmem:[%s12076_s19 + $0x754] sm:$0x1]  ;;  %v5749_v0 = vld [vmem:[%s12076_s19 + $0x764] sm:$0x1]  ;;  %6140 = vxpose.xlu0.b32.cont [14/16] (narrow) %v6082_v62, 8  ;;  %v6645_v4 = vsel %vm1456_vm3, %v6644_v48, %v6643_v63  ;;  %v6087_v5 = vrot.slane %v5746_v59, 5 }
 0x31c   : > { %v5750_v1 = vld [vmem:[%s12076_s19 + $0x774] sm:$0x1]  ;;  %v6089_v6 = vrot.slane %v5747_v60, 4  ;;  %v6091_v7 = vrot.slane %v5748_v61, 3  ;;  %v6306_v8 = vld [vmem:[%s12076_s19 + $0x785] sm:$0x1]  ;;  %v6647_v9 = vsel %vm1459_vm4, %v6646_v49, %v6645_v4  ;;  %v6084_v10 = vsel %vm1447_vm0, %v6083_v2, %v5743_v50 }
 0x31d   : > { %v6093_v11 = vrot.slane %v5749_v0, 2  ;;  %v6095_v12 = vrot.slane %v5750_v1, 1  ;;  %v6307_v13 = vld [vmem:[%s12076_s19 + $0x795] sm:$0x1]  ;;  %v6308_v14 = vld [vmem:[%s12076_s19 + $0x7a5] sm:$0x1]  ;;  %v6649_v15 = vsel %vm1462_vm5, %v6648_v53, %v6647_v9  ;;  %v6086_v16 = vsel %vm1450_vm1, %v6085_v3, %v6084_v10 }
 0x31e   : > { %v6309_v17 = vld [vmem:[%s12076_s19 + $0x7b5] sm:$0x1]  ;;  %v6310_v18 = vld [vmem:[%s12076_s19 + $0x7c5] sm:$0x1]  ;;  %v6651_v20 = vsel %vm1465_vm6, %v6650_v54, %v6649_v15  ;;  %v6088_v21 = vsel %vm1453_vm2, %v6087_v5, %v6086_v16  ;;  %v6652_v24 = vrot.slane %v6307_v13, 7  ;;  %v6654_v25 = vrot.slane %v6308_v14, 6 }
 0x31f   : > { %v6311_v19 = vld [vmem:[%s12076_s19 + $0x7d5] sm:$0x1]  ;;  %v6312_v22 = vld [vmem:[%s12076_s19 + $0x7e5] sm:$0x1]  ;;  %6696 = vxpose.xlu1.b32.cont [15/16] (narrow) %v6651_v20, 8  ;;  %v6090_v26 = vsel %vm1456_vm3, %v6089_v6, %v6088_v21  ;;  %v6656_v27 = vrot.slane %v6309_v17, 5 }
 0x320   : > { %v6313_v23 = vld [vmem:[%s12076_s19 + $0x7f5] sm:$0x1]  ;;  %v6658_v28 = vrot.slane %v6310_v18, 4  ;;  %v6660_v29 = vrot.slane %v6311_v19, 3  ;;  %v5751_v30 = vld [vmem:[%s12076_s19 + $0x784] sm:$0x1]  ;;  %v6092_v31 = vsel %vm1459_vm4, %v6091_v7, %v6090_v26  ;;  %v6653_v32 = vsel %vm1447_vm0, %v6652_v24, %v6306_v8 }
 0x321   : > { %v6662_v33 = vrot.slane %v6312_v22, 2  ;;  %v6664_v34 = vrot.slane %v6313_v23, 1  ;;  %v5752_v35 = vld [vmem:[%s12076_s19 + $0x794] sm:$0x1]  ;;  %v5753_v36 = vld [vmem:[%s12076_s19 + $0x7a4] sm:$0x1]  ;;  %v6094_v37 = vsel %vm1462_vm5, %v6093_v11, %v6092_v31  ;;  %v6655_v38 = vsel %vm1450_vm1, %v6654_v25, %v6653_v32 }
 0x322   : > { %v5754_v39 = vld [vmem:[%s12076_s19 + $0x7b4] sm:$0x1]  ;;  %v5755_v40 = vld [vmem:[%s12076_s19 + $0x7c4] sm:$0x1]  ;;  %v6096_v42 = vsel %vm1465_vm6, %v6095_v12, %v6094_v37  ;;  %v6657_v43 = vsel %vm1453_vm2, %v6656_v27, %v6655_v38  ;;  %v6097_v46 = vrot.slane %v5752_v35, 7  ;;  %v6099_v47 = vrot.slane %v5753_v36, 6 }
 0x323   : > { %v5756_v41 = vld [vmem:[%s12076_s19 + $0x7d4] sm:$0x1]  ;;  %v5757_v44 = vld [vmem:[%s12076_s19 + $0x7e4] sm:$0x1]  ;;  %6141 = vxpose.xlu0.b32.cont [15/16] (narrow) %v6096_v42, 8  ;;  %v6659_v48 = vsel %vm1456_vm3, %v6658_v28, %v6657_v43  ;;  %v6101_v49 = vrot.slane %v5754_v39, 5 }
 0x324   : > { %v5758_v45 = vld [vmem:[%s12076_s19 + $0x7f4] sm:$0x1]  ;;  %v6103_v50 = vrot.slane %v5755_v40, 4  ;;  %v6105_v51 = vrot.slane %v5756_v41, 3  ;;  %v10853_v52 = vld [vmem:[%s12076_s19 + $0xd] sm:$0x1]  ;;  %v6661_v53 = vsel %vm1459_vm4, %v6660_v29, %v6659_v48  ;;  %v6098_v54 = vsel %vm1447_vm0, %v6097_v46, %v5751_v30 }
 0x325   : > { %v6107_v55 = vrot.slane %v5757_v44, 2  ;;  %v6109_v56 = vrot.slane %v5758_v45, 1  ;;  %v10854_v57 = vld [vmem:[%s12076_s19 + $0x1d] sm:$0x1]  ;;  %v10855_v58 = vld [vmem:[%s12076_s19 + $0x2d] sm:$0x1]  ;;  %v6663_v59 = vsel %vm1462_vm5, %v6662_v33, %v6661_v53  ;;  %v6100_v60 = vsel %vm1450_vm1, %v6099_v47, %v6098_v54 }
 0x326   : > { %v10856_v61 = vld [vmem:[%s12076_s19 + $0x3d] sm:$0x1]  ;;  %v10857_v62 = vld [vmem:[%s12076_s19 + $0x4d] sm:$0x1]  ;;  %v6665_v0 = vsel %vm1465_vm6, %v6664_v34, %v6663_v59  ;;  %v6102_v1 = vsel %vm1453_vm2, %v6101_v49, %v6100_v60  ;;  %v7550_v4 = vrot.slane %v10854_v57, 7  ;;  %v7552_v5 = vrot.slane %v10855_v58, 6 }
 0x327   : > { %v10858_v63 = vld [vmem:[%s12076_s19 + $0x5d] sm:$0x1]  ;;  %v10859_v2 = vld [vmem:[%s12076_s19 + $0x6d] sm:$0x1]  ;;  %6697 = vxpose.xlu1.b32.end [16/16] (narrow) %v6665_v0, 8  ;;  %v6104_v6 = vsel %vm1456_vm3, %v6103_v50, %v6102_v1  ;;  %v7554_v7 = vrot.slane %v10856_v61, 5 }
 0x328   : > { %v10860_v3 = vld [vmem:[%s12076_s19 + $0x7d] sm:$0x1]  ;;  %v7556_v8 = vrot.slane %v10857_v62, 4  ;;  %v7558_v9 = vrot.slane %v10858_v63, 3  ;;  %v10721_v10 = vld [vmem:[%s12076_s19 + $0xc] sm:$0x1]  ;;  %v6106_v11 = vsel %vm1459_vm4, %v6105_v51, %v6104_v6  ;;  %v7551_v12 = vsel %vm1447_vm0, %v7550_v4, %v10853_v52 }
 0x329   : > { %v7560_v13 = vrot.slane %v10859_v2, 2  ;;  %v7562_v14 = vrot.slane %v10860_v3, 1  ;;  %v10722_v15 = vld [vmem:[%s12076_s19 + $0x1c] sm:$0x1]  ;;  %v10723_v16 = vld [vmem:[%s12076_s19 + $0x2c] sm:$0x1]  ;;  %v6108_v17 = vsel %vm1462_vm5, %v6107_v55, %v6106_v11  ;;  %v7553_v18 = vsel %vm1450_vm1, %v7552_v5, %v7551_v12 }
 0x32a   : > { %v10724_v19 = vld [vmem:[%s12076_s19 + $0x3c] sm:$0x1]  ;;  %v10725_v20 = vld [vmem:[%s12076_s19 + $0x4c] sm:$0x1]  ;;  %v6110_v22 = vsel %vm1465_vm6, %v6109_v56, %v6108_v17  ;;  %v7555_v23 = vsel %vm1453_vm2, %v7554_v7, %v7553_v18  ;;  %v6996_v26 = vrot.slane %v10722_v15, 7  ;;  %v6998_v27 = vrot.slane %v10723_v16, 6 }
 0x32b   : > { %v10726_v21 = vld [vmem:[%s12076_s19 + $0x5c] sm:$0x1]  ;;  %v10727_v24 = vld [vmem:[%s12076_s19 + $0x6c] sm:$0x1]  ;;  %6142 = vxpose.xlu0.b32.end [16/16] (narrow) %v6110_v22, 8  ;;  %v7557_v28 = vsel %vm1456_vm3, %v7556_v8, %v7555_v23  ;;  %v7000_v29 = vrot.slane %v10724_v19, 5 }
 0x32c   : > { %v10728_v25 = vld [vmem:[%s12076_s19 + $0x7c] sm:$0x1]  ;;  %v7002_v30 = vrot.slane %v10725_v20, 4  ;;  %v7004_v31 = vrot.slane %v10726_v21, 3  ;;  %v10861_v32 = vld [vmem:[%s12076_s19 + $0x8d] sm:$0x1]  ;;  %v7559_v33 = vsel %vm1459_vm4, %v7558_v9, %v7557_v28  ;;  %v6997_v34 = vsel %vm1447_vm0, %v6996_v26, %v10721_v10 }
 0x32d   : > { %v7006_v35 = vrot.slane %v10727_v24, 2  ;;  %v7008_v36 = vrot.slane %v10728_v25, 1  ;;  %v10862_v37 = vld [vmem:[%s12076_s19 + $0x9d] sm:$0x1]  ;;  %v10863_v38 = vld [vmem:[%s12076_s19 + $0xad] sm:$0x1]  ;;  %v7561_v39 = vsel %vm1462_vm5, %v7560_v13, %v7559_v33  ;;  %v6999_v40 = vsel %vm1450_vm1, %v6998_v27, %v6997_v34 }
 0x32e   : > { %v10864_v41 = vld [vmem:[%s12076_s19 + $0xbd] sm:$0x1]  ;;  %v10865_v42 = vld [vmem:[%s12076_s19 + $0xcd] sm:$0x1]  ;;  %v7563_v44 = vsel %vm1465_vm6, %v7562_v14, %v7561_v39  ;;  %v7001_v45 = vsel %vm1453_vm2, %v7000_v29, %v6999_v40  ;;  %v7564_v48 = vrot.slane %v10862_v37, 7  ;;  %v7566_v49 = vrot.slane %v10863_v38, 6 }
 0x32f   : > { %v10866_v43 = vld [vmem:[%s12076_s19 + $0xdd] sm:$0x1]  ;;  %v10867_v46 = vld [vmem:[%s12076_s19 + $0xed] sm:$0x1]  ;;  %7790 = vxpose.xlu1.b32.start [1/16] (narrow) %v7563_v44, 8  ;;  %v7003_v50 = vsel %vm1456_vm3, %v7002_v30, %v7001_v45  ;;  %v7568_v51 = vrot.slane %v10864_v41, 5 }
 0x330   : > { %v10868_v47 = vld [vmem:[%s12076_s19 + $0xfd] sm:$0x1]  ;;  %v7570_v52 = vrot.slane %v10865_v42, 4  ;;  %v7572_v53 = vrot.slane %v10866_v43, 3  ;;  %v10729_v54 = vld [vmem:[%s12076_s19 + $0x8c] sm:$0x1]  ;;  %v7005_v55 = vsel %vm1459_vm4, %v7004_v31, %v7003_v50  ;;  %v7565_v56 = vsel %vm1447_vm0, %v7564_v48, %v10861_v32 }
 0x331   : > { %v7574_v57 = vrot.slane %v10867_v46, 2  ;;  %v7576_v58 = vrot.slane %v10868_v47, 1  ;;  %v10730_v59 = vld [vmem:[%s12076_s19 + $0x9c] sm:$0x1]  ;;  %v10731_v60 = vld [vmem:[%s12076_s19 + $0xac] sm:$0x1]  ;;  %v7007_v61 = vsel %vm1462_vm5, %v7006_v35, %v7005_v55  ;;  %v7567_v62 = vsel %vm1450_vm1, %v7566_v49, %v7565_v56 }
 0x332   : > { %v10732_v63 = vld [vmem:[%s12076_s19 + $0xbc] sm:$0x1]  ;;  %v10733_v0 = vld [vmem:[%s12076_s19 + $0xcc] sm:$0x1]  ;;  %v7009_v2 = vsel %vm1465_vm6, %v7008_v36, %v7007_v61  ;;  %v7569_v3 = vsel %vm1453_vm2, %v7568_v51, %v7567_v62  ;;  %v7010_v6 = vrot.slane %v10730_v59, 7  ;;  %v7012_v7 = vrot.slane %v10731_v60, 6 }
 0x333   : > { %v10734_v1 = vld [vmem:[%s12076_s19 + $0xdc] sm:$0x1]  ;;  %v10735_v4 = vld [vmem:[%s12076_s19 + $0xec] sm:$0x1]  ;;  %7236 = vxpose.xlu0.b32.start [1/16] (narrow) %v7009_v2, 8  ;;  %v7571_v8 = vsel %vm1456_vm3, %v7570_v52, %v7569_v3  ;;  %v7014_v9 = vrot.slane %v10732_v63, 5 }
 0x334   : > { %v10736_v5 = vld [vmem:[%s12076_s19 + $0xfc] sm:$0x1]  ;;  %v7016_v10 = vrot.slane %v10733_v0, 4  ;;  %v7018_v11 = vrot.slane %v10734_v1, 3  ;;  %v10869_v12 = vld [vmem:[%s12076_s19 + $0x10d] sm:$0x1]  ;;  %v7573_v13 = vsel %vm1459_vm4, %v7572_v53, %v7571_v8  ;;  %v7011_v14 = vsel %vm1447_vm0, %v7010_v6, %v10729_v54 }
 0x335   : > { %v7020_v15 = vrot.slane %v10735_v4, 2  ;;  %v7022_v16 = vrot.slane %v10736_v5, 1  ;;  %v10870_v17 = vld [vmem:[%s12076_s19 + $0x11d] sm:$0x1]  ;;  %v10871_v18 = vld [vmem:[%s12076_s19 + $0x12d] sm:$0x1]  ;;  %v7575_v19 = vsel %vm1462_vm5, %v7574_v57, %v7573_v13  ;;  %v7013_v20 = vsel %vm1450_vm1, %v7012_v7, %v7011_v14 }
 0x336   : > { %v10872_v21 = vld [vmem:[%s12076_s19 + $0x13d] sm:$0x1]  ;;  %v10873_v22 = vld [vmem:[%s12076_s19 + $0x14d] sm:$0x1]  ;;  %v7577_v24 = vsel %vm1465_vm6, %v7576_v58, %v7575_v19  ;;  %v7015_v25 = vsel %vm1453_vm2, %v7014_v9, %v7013_v20  ;;  %v7578_v28 = vrot.slane %v10870_v17, 7  ;;  %v7580_v29 = vrot.slane %v10871_v18, 6 }
 0x337   : > { %v10874_v23 = vld [vmem:[%s12076_s19 + $0x15d] sm:$0x1]  ;;  %v10875_v26 = vld [vmem:[%s12076_s19 + $0x16d] sm:$0x1]  ;;  %7791 = vxpose.xlu1.b32.cont [2/16] (narrow) %v7577_v24, 8  ;;  %v7017_v30 = vsel %vm1456_vm3, %v7016_v10, %v7015_v25  ;;  %v7582_v31 = vrot.slane %v10872_v21, 5 }
 0x338   : > { %v10876_v27 = vld [vmem:[%s12076_s19 + $0x17d] sm:$0x1]  ;;  %v7584_v32 = vrot.slane %v10873_v22, 4  ;;  %v7586_v33 = vrot.slane %v10874_v23, 3  ;;  %v10737_v34 = vld [vmem:[%s12076_s19 + $0x10c] sm:$0x1]  ;;  %v7019_v35 = vsel %vm1459_vm4, %v7018_v11, %v7017_v30  ;;  %v7579_v36 = vsel %vm1447_vm0, %v7578_v28, %v10869_v12 }
 0x339   : > { %v7588_v37 = vrot.slane %v10875_v26, 2  ;;  %v7590_v38 = vrot.slane %v10876_v27, 1  ;;  %v10738_v39 = vld [vmem:[%s12076_s19 + $0x11c] sm:$0x1]  ;;  %v10739_v40 = vld [vmem:[%s12076_s19 + $0x12c] sm:$0x1]  ;;  %v7021_v41 = vsel %vm1462_vm5, %v7020_v15, %v7019_v35  ;;  %v7581_v42 = vsel %vm1450_vm1, %v7580_v29, %v7579_v36 }
 0x33a   : > { %v10740_v43 = vld [vmem:[%s12076_s19 + $0x13c] sm:$0x1]  ;;  %v10741_v44 = vld [vmem:[%s12076_s19 + $0x14c] sm:$0x1]  ;;  %v7023_v46 = vsel %vm1465_vm6, %v7022_v16, %v7021_v41  ;;  %v7583_v47 = vsel %vm1453_vm2, %v7582_v31, %v7581_v42  ;;  %v7024_v50 = vrot.slane %v10738_v39, 7  ;;  %v7026_v51 = vrot.slane %v10739_v40, 6 }
 0x33b   : > { %v10742_v45 = vld [vmem:[%s12076_s19 + $0x15c] sm:$0x1]  ;;  %v10743_v48 = vld [vmem:[%s12076_s19 + $0x16c] sm:$0x1]  ;;  %7237 = vxpose.xlu0.b32.cont [2/16] (narrow) %v7023_v46, 8  ;;  %v7585_v52 = vsel %vm1456_vm3, %v7584_v32, %v7583_v47  ;;  %v7028_v53 = vrot.slane %v10740_v43, 5 }
 0x33c   : > { %v10744_v49 = vld [vmem:[%s12076_s19 + $0x17c] sm:$0x1]  ;;  %v7030_v54 = vrot.slane %v10741_v44, 4  ;;  %v7032_v55 = vrot.slane %v10742_v45, 3  ;;  %v10877_v56 = vld [vmem:[%s12076_s19 + $0x18d] sm:$0x1]  ;;  %v7587_v57 = vsel %vm1459_vm4, %v7586_v33, %v7585_v52  ;;  %v7025_v58 = vsel %vm1447_vm0, %v7024_v50, %v10737_v34 }
 0x33d   : > { %v7034_v59 = vrot.slane %v10743_v48, 2  ;;  %v7036_v60 = vrot.slane %v10744_v49, 1  ;;  %v10878_v61 = vld [vmem:[%s12076_s19 + $0x19d] sm:$0x1]  ;;  %v10879_v62 = vld [vmem:[%s12076_s19 + $0x1ad] sm:$0x1]  ;;  %v7589_v63 = vsel %vm1462_vm5, %v7588_v37, %v7587_v57  ;;  %v7027_v0 = vsel %vm1450_vm1, %v7026_v51, %v7025_v58 }
 0x33e   : > { %v10880_v1 = vld [vmem:[%s12076_s19 + $0x1bd] sm:$0x1]  ;;  %v10881_v2 = vld [vmem:[%s12076_s19 + $0x1cd] sm:$0x1]  ;;  %v7591_v4 = vsel %vm1465_vm6, %v7590_v38, %v7589_v63  ;;  %v7029_v5 = vsel %vm1453_vm2, %v7028_v53, %v7027_v0  ;;  %v7592_v8 = vrot.slane %v10878_v61, 7  ;;  %v7594_v9 = vrot.slane %v10879_v62, 6 }
 0x33f   : > { %v10882_v3 = vld [vmem:[%s12076_s19 + $0x1dd] sm:$0x1]  ;;  %v10883_v6 = vld [vmem:[%s12076_s19 + $0x1ed] sm:$0x1]  ;;  %7792 = vxpose.xlu1.b32.cont [3/16] (narrow) %v7591_v4, 8  ;;  %v7031_v10 = vsel %vm1456_vm3, %v7030_v54, %v7029_v5  ;;  %v7596_v11 = vrot.slane %v10880_v1, 5 }
 0x340   : > { %v10884_v7 = vld [vmem:[%s12076_s19 + $0x1fd] sm:$0x1]  ;;  %v7598_v12 = vrot.slane %v10881_v2, 4  ;;  %v7600_v13 = vrot.slane %v10882_v3, 3  ;;  %v10745_v14 = vld [vmem:[%s12076_s19 + $0x18c] sm:$0x1]  ;;  %v7033_v15 = vsel %vm1459_vm4, %v7032_v55, %v7031_v10  ;;  %v7593_v16 = vsel %vm1447_vm0, %v7592_v8, %v10877_v56 }
 0x341   : > { %v7602_v17 = vrot.slane %v10883_v6, 2  ;;  %v7604_v18 = vrot.slane %v10884_v7, 1  ;;  %v10746_v19 = vld [vmem:[%s12076_s19 + $0x19c] sm:$0x1]  ;;  %v10747_v20 = vld [vmem:[%s12076_s19 + $0x1ac] sm:$0x1]  ;;  %v7035_v21 = vsel %vm1462_vm5, %v7034_v59, %v7033_v15  ;;  %v7595_v22 = vsel %vm1450_vm1, %v7594_v9, %v7593_v16 }
 0x342   : > { %v10748_v23 = vld [vmem:[%s12076_s19 + $0x1bc] sm:$0x1]  ;;  %v10749_v24 = vld [vmem:[%s12076_s19 + $0x1cc] sm:$0x1]  ;;  %v7037_v26 = vsel %vm1465_vm6, %v7036_v60, %v7035_v21  ;;  %v7597_v27 = vsel %vm1453_vm2, %v7596_v11, %v7595_v22  ;;  %v7038_v30 = vrot.slane %v10746_v19, 7  ;;  %v7040_v31 = vrot.slane %v10747_v20, 6 }
 0x343   : > { %v10750_v25 = vld [vmem:[%s12076_s19 + $0x1dc] sm:$0x1]  ;;  %v10751_v28 = vld [vmem:[%s12076_s19 + $0x1ec] sm:$0x1]  ;;  %7238 = vxpose.xlu0.b32.cont [3/16] (narrow) %v7037_v26, 8  ;;  %v7599_v32 = vsel %vm1456_vm3, %v7598_v12, %v7597_v27  ;;  %v7042_v33 = vrot.slane %v10748_v23, 5 }
 0x344   : > { %v10752_v29 = vld [vmem:[%s12076_s19 + $0x1fc] sm:$0x1]  ;;  %v7044_v34 = vrot.slane %v10749_v24, 4  ;;  %v7046_v35 = vrot.slane %v10750_v25, 3  ;;  %v10885_v36 = vld [vmem:[%s12076_s19 + $0x20d] sm:$0x1]  ;;  %v7601_v37 = vsel %vm1459_vm4, %v7600_v13, %v7599_v32  ;;  %v7039_v38 = vsel %vm1447_vm0, %v7038_v30, %v10745_v14 }
 0x345   : > { %v7048_v39 = vrot.slane %v10751_v28, 2  ;;  %v7050_v40 = vrot.slane %v10752_v29, 1  ;;  %v10886_v41 = vld [vmem:[%s12076_s19 + $0x21d] sm:$0x1]  ;;  %v10887_v42 = vld [vmem:[%s12076_s19 + $0x22d] sm:$0x1]  ;;  %v7603_v43 = vsel %vm1462_vm5, %v7602_v17, %v7601_v37  ;;  %v7041_v44 = vsel %vm1450_vm1, %v7040_v31, %v7039_v38 }
 0x346   : > { %v10888_v45 = vld [vmem:[%s12076_s19 + $0x23d] sm:$0x1]  ;;  %v10889_v46 = vld [vmem:[%s12076_s19 + $0x24d] sm:$0x1]  ;;  %v7605_v48 = vsel %vm1465_vm6, %v7604_v18, %v7603_v43  ;;  %v7043_v49 = vsel %vm1453_vm2, %v7042_v33, %v7041_v44  ;;  %v7606_v52 = vrot.slane %v10886_v41, 7  ;;  %v7608_v53 = vrot.slane %v10887_v42, 6 }
 0x347   : > { %v10890_v47 = vld [vmem:[%s12076_s19 + $0x25d] sm:$0x1]  ;;  %v10891_v50 = vld [vmem:[%s12076_s19 + $0x26d] sm:$0x1]  ;;  %7793 = vxpose.xlu1.b32.cont [4/16] (narrow) %v7605_v48, 8  ;;  %v7045_v54 = vsel %vm1456_vm3, %v7044_v34, %v7043_v49  ;;  %v7610_v55 = vrot.slane %v10888_v45, 5 }
 0x348   : > { %v10892_v51 = vld [vmem:[%s12076_s19 + $0x27d] sm:$0x1]  ;;  %v7612_v56 = vrot.slane %v10889_v46, 4  ;;  %v7614_v57 = vrot.slane %v10890_v47, 3  ;;  %v10753_v58 = vld [vmem:[%s12076_s19 + $0x20c] sm:$0x1]  ;;  %v7047_v59 = vsel %vm1459_vm4, %v7046_v35, %v7045_v54  ;;  %v7607_v60 = vsel %vm1447_vm0, %v7606_v52, %v10885_v36 }
 0x349   : > { %v7616_v61 = vrot.slane %v10891_v50, 2  ;;  %v7618_v62 = vrot.slane %v10892_v51, 1  ;;  %v10754_v63 = vld [vmem:[%s12076_s19 + $0x21c] sm:$0x1]  ;;  %v10755_v0 = vld [vmem:[%s12076_s19 + $0x22c] sm:$0x1]  ;;  %v7049_v1 = vsel %vm1462_vm5, %v7048_v39, %v7047_v59  ;;  %v7609_v2 = vsel %vm1450_vm1, %v7608_v53, %v7607_v60 }
 0x34a   : > { %v10756_v3 = vld [vmem:[%s12076_s19 + $0x23c] sm:$0x1]  ;;  %v10757_v4 = vld [vmem:[%s12076_s19 + $0x24c] sm:$0x1]  ;;  %v7051_v6 = vsel %vm1465_vm6, %v7050_v40, %v7049_v1  ;;  %v7611_v7 = vsel %vm1453_vm2, %v7610_v55, %v7609_v2  ;;  %v7052_v10 = vrot.slane %v10754_v63, 7  ;;  %v7054_v11 = vrot.slane %v10755_v0, 6 }
 0x34b   : > { %v10758_v5 = vld [vmem:[%s12076_s19 + $0x25c] sm:$0x1]  ;;  %v10759_v8 = vld [vmem:[%s12076_s19 + $0x26c] sm:$0x1]  ;;  %7239 = vxpose.xlu0.b32.cont [4/16] (narrow) %v7051_v6, 8  ;;  %v7613_v12 = vsel %vm1456_vm3, %v7612_v56, %v7611_v7  ;;  %v7056_v13 = vrot.slane %v10756_v3, 5 }
 0x34c   : > { %v10760_v9 = vld [vmem:[%s12076_s19 + $0x27c] sm:$0x1]  ;;  %v7058_v14 = vrot.slane %v10757_v4, 4  ;;  %v7060_v15 = vrot.slane %v10758_v5, 3  ;;  %v10893_v16 = vld [vmem:[%s12076_s19 + $0x28d] sm:$0x1]  ;;  %v7615_v17 = vsel %vm1459_vm4, %v7614_v57, %v7613_v12  ;;  %v7053_v18 = vsel %vm1447_vm0, %v7052_v10, %v10753_v58 }
 0x34d   : > { %v7062_v19 = vrot.slane %v10759_v8, 2  ;;  %v7064_v20 = vrot.slane %v10760_v9, 1  ;;  %v10894_v21 = vld [vmem:[%s12076_s19 + $0x29d] sm:$0x1]  ;;  %v10895_v22 = vld [vmem:[%s12076_s19 + $0x2ad] sm:$0x1]  ;;  %v7617_v23 = vsel %vm1462_vm5, %v7616_v61, %v7615_v17  ;;  %v7055_v24 = vsel %vm1450_vm1, %v7054_v11, %v7053_v18 }
 0x34e   : > { %v10896_v25 = vld [vmem:[%s12076_s19 + $0x2bd] sm:$0x1]  ;;  %v10897_v26 = vld [vmem:[%s12076_s19 + $0x2cd] sm:$0x1]  ;;  %v7619_v28 = vsel %vm1465_vm6, %v7618_v62, %v7617_v23  ;;  %v7057_v29 = vsel %vm1453_vm2, %v7056_v13, %v7055_v24  ;;  %v7620_v32 = vrot.slane %v10894_v21, 7  ;;  %v7622_v33 = vrot.slane %v10895_v22, 6 }
 0x34f   : > { %v10898_v27 = vld [vmem:[%s12076_s19 + $0x2dd] sm:$0x1]  ;;  %v10899_v30 = vld [vmem:[%s12076_s19 + $0x2ed] sm:$0x1]  ;;  %7794 = vxpose.xlu1.b32.cont [5/16] (narrow) %v7619_v28, 8  ;;  %v7059_v34 = vsel %vm1456_vm3, %v7058_v14, %v7057_v29  ;;  %v7624_v35 = vrot.slane %v10896_v25, 5 }
 0x350   : > { %v10900_v31 = vld [vmem:[%s12076_s19 + $0x2fd] sm:$0x1]  ;;  %v7626_v36 = vrot.slane %v10897_v26, 4  ;;  %v7628_v37 = vrot.slane %v10898_v27, 3  ;;  %v10761_v38 = vld [vmem:[%s12076_s19 + $0x28c] sm:$0x1]  ;;  %v7061_v39 = vsel %vm1459_vm4, %v7060_v15, %v7059_v34  ;;  %v7621_v40 = vsel %vm1447_vm0, %v7620_v32, %v10893_v16 }
 0x351   : > { %v7630_v41 = vrot.slane %v10899_v30, 2  ;;  %v7632_v42 = vrot.slane %v10900_v31, 1  ;;  %v10762_v43 = vld [vmem:[%s12076_s19 + $0x29c] sm:$0x1]  ;;  %v10763_v44 = vld [vmem:[%s12076_s19 + $0x2ac] sm:$0x1]  ;;  %v7063_v45 = vsel %vm1462_vm5, %v7062_v19, %v7061_v39  ;;  %v7623_v46 = vsel %vm1450_vm1, %v7622_v33, %v7621_v40 }
 0x352   : > { %v10764_v47 = vld [vmem:[%s12076_s19 + $0x2bc] sm:$0x1]  ;;  %v10765_v48 = vld [vmem:[%s12076_s19 + $0x2cc] sm:$0x1]  ;;  %v7065_v50 = vsel %vm1465_vm6, %v7064_v20, %v7063_v45  ;;  %v7625_v51 = vsel %vm1453_vm2, %v7624_v35, %v7623_v46  ;;  %v7066_v54 = vrot.slane %v10762_v43, 7  ;;  %v7068_v55 = vrot.slane %v10763_v44, 6 }
 0x353   : > { %v10766_v49 = vld [vmem:[%s12076_s19 + $0x2dc] sm:$0x1]  ;;  %v10767_v52 = vld [vmem:[%s12076_s19 + $0x2ec] sm:$0x1]  ;;  %7240 = vxpose.xlu0.b32.cont [5/16] (narrow) %v7065_v50, 8  ;;  %v7627_v56 = vsel %vm1456_vm3, %v7626_v36, %v7625_v51  ;;  %v7070_v57 = vrot.slane %v10764_v47, 5 }
 0x354   : > { %v10768_v53 = vld [vmem:[%s12076_s19 + $0x2fc] sm:$0x1]  ;;  %v7072_v58 = vrot.slane %v10765_v48, 4  ;;  %v7074_v59 = vrot.slane %v10766_v49, 3  ;;  %v10901_v60 = vld [vmem:[%s12076_s19 + $0x30d] sm:$0x1]  ;;  %v7629_v61 = vsel %vm1459_vm4, %v7628_v37, %v7627_v56  ;;  %v7067_v62 = vsel %vm1447_vm0, %v7066_v54, %v10761_v38 }
 0x355   : > { %v7076_v63 = vrot.slane %v10767_v52, 2  ;;  %v7078_v0 = vrot.slane %v10768_v53, 1  ;;  %v10902_v1 = vld [vmem:[%s12076_s19 + $0x31d] sm:$0x1]  ;;  %v10903_v2 = vld [vmem:[%s12076_s19 + $0x32d] sm:$0x1]  ;;  %v7631_v3 = vsel %vm1462_vm5, %v7630_v41, %v7629_v61  ;;  %v7069_v4 = vsel %vm1450_vm1, %v7068_v55, %v7067_v62 }
 0x356   : > { %v10904_v5 = vld [vmem:[%s12076_s19 + $0x33d] sm:$0x1]  ;;  %v10905_v6 = vld [vmem:[%s12076_s19 + $0x34d] sm:$0x1]  ;;  %v7633_v8 = vsel %vm1465_vm6, %v7632_v42, %v7631_v3  ;;  %v7071_v9 = vsel %vm1453_vm2, %v7070_v57, %v7069_v4  ;;  %v7634_v12 = vrot.slane %v10902_v1, 7  ;;  %v7636_v13 = vrot.slane %v10903_v2, 6 }
 0x357   : > { %v10906_v7 = vld [vmem:[%s12076_s19 + $0x35d] sm:$0x1]  ;;  %v10907_v10 = vld [vmem:[%s12076_s19 + $0x36d] sm:$0x1]  ;;  %7795 = vxpose.xlu1.b32.cont [6/16] (narrow) %v7633_v8, 8  ;;  %v7073_v14 = vsel %vm1456_vm3, %v7072_v58, %v7071_v9  ;;  %v7638_v15 = vrot.slane %v10904_v5, 5 }
 0x358   : > { %v10908_v11 = vld [vmem:[%s12076_s19 + $0x37d] sm:$0x1]  ;;  %v7640_v16 = vrot.slane %v10905_v6, 4  ;;  %v7642_v17 = vrot.slane %v10906_v7, 3  ;;  %v10769_v18 = vld [vmem:[%s12076_s19 + $0x30c] sm:$0x1]  ;;  %v7075_v19 = vsel %vm1459_vm4, %v7074_v59, %v7073_v14  ;;  %v7635_v20 = vsel %vm1447_vm0, %v7634_v12, %v10901_v60 }
 0x359   : > { %v7644_v21 = vrot.slane %v10907_v10, 2  ;;  %v7646_v22 = vrot.slane %v10908_v11, 1  ;;  %v10770_v23 = vld [vmem:[%s12076_s19 + $0x31c] sm:$0x1]  ;;  %v10771_v24 = vld [vmem:[%s12076_s19 + $0x32c] sm:$0x1]  ;;  %v7077_v25 = vsel %vm1462_vm5, %v7076_v63, %v7075_v19  ;;  %v7637_v26 = vsel %vm1450_vm1, %v7636_v13, %v7635_v20 }
 0x35a   : > { %v10772_v27 = vld [vmem:[%s12076_s19 + $0x33c] sm:$0x1]  ;;  %v10773_v28 = vld [vmem:[%s12076_s19 + $0x34c] sm:$0x1]  ;;  %v7079_v30 = vsel %vm1465_vm6, %v7078_v0, %v7077_v25  ;;  %v7639_v31 = vsel %vm1453_vm2, %v7638_v15, %v7637_v26  ;;  %v7080_v34 = vrot.slane %v10770_v23, 7  ;;  %v7082_v35 = vrot.slane %v10771_v24, 6 }
 0x35b   : > { %v10774_v29 = vld [vmem:[%s12076_s19 + $0x35c] sm:$0x1]  ;;  %v10775_v32 = vld [vmem:[%s12076_s19 + $0x36c] sm:$0x1]  ;;  %7241 = vxpose.xlu0.b32.cont [6/16] (narrow) %v7079_v30, 8  ;;  %v7641_v36 = vsel %vm1456_vm3, %v7640_v16, %v7639_v31  ;;  %v7084_v37 = vrot.slane %v10772_v27, 5 }
 0x35c   : > { %v10776_v33 = vld [vmem:[%s12076_s19 + $0x37c] sm:$0x1]  ;;  %v7086_v38 = vrot.slane %v10773_v28, 4  ;;  %v7088_v39 = vrot.slane %v10774_v29, 3  ;;  %v10909_v40 = vld [vmem:[%s12076_s19 + $0x38d] sm:$0x1]  ;;  %v7643_v41 = vsel %vm1459_vm4, %v7642_v17, %v7641_v36  ;;  %v7081_v42 = vsel %vm1447_vm0, %v7080_v34, %v10769_v18 }
 0x35d   : > { %v7090_v43 = vrot.slane %v10775_v32, 2  ;;  %v7092_v44 = vrot.slane %v10776_v33, 1  ;;  %v10910_v45 = vld [vmem:[%s12076_s19 + $0x39d] sm:$0x1]  ;;  %v10911_v46 = vld [vmem:[%s12076_s19 + $0x3ad] sm:$0x1]  ;;  %v7645_v47 = vsel %vm1462_vm5, %v7644_v21, %v7643_v41  ;;  %v7083_v48 = vsel %vm1450_vm1, %v7082_v35, %v7081_v42 }
 0x35e   : > { %v10912_v49 = vld [vmem:[%s12076_s19 + $0x3bd] sm:$0x1]  ;;  %v10913_v50 = vld [vmem:[%s12076_s19 + $0x3cd] sm:$0x1]  ;;  %v7647_v52 = vsel %vm1465_vm6, %v7646_v22, %v7645_v47  ;;  %v7085_v53 = vsel %vm1453_vm2, %v7084_v37, %v7083_v48  ;;  %v7648_v56 = vrot.slane %v10910_v45, 7  ;;  %v7650_v57 = vrot.slane %v10911_v46, 6 }
 0x35f   : > { %v10914_v51 = vld [vmem:[%s12076_s19 + $0x3dd] sm:$0x1]  ;;  %v10915_v54 = vld [vmem:[%s12076_s19 + $0x3ed] sm:$0x1]  ;;  %7796 = vxpose.xlu1.b32.cont [7/16] (narrow) %v7647_v52, 8  ;;  %v7087_v58 = vsel %vm1456_vm3, %v7086_v38, %v7085_v53  ;;  %v7652_v59 = vrot.slane %v10912_v49, 5 }
 0x360   : > { %v10916_v55 = vld [vmem:[%s12076_s19 + $0x3fd] sm:$0x1]  ;;  %v7654_v60 = vrot.slane %v10913_v50, 4  ;;  %v7656_v61 = vrot.slane %v10914_v51, 3  ;;  %v10777_v62 = vld [vmem:[%s12076_s19 + $0x38c] sm:$0x1]  ;;  %v7089_v63 = vsel %vm1459_vm4, %v7088_v39, %v7087_v58  ;;  %v7649_v0 = vsel %vm1447_vm0, %v7648_v56, %v10909_v40 }
 0x361   : > { %v7658_v1 = vrot.slane %v10915_v54, 2  ;;  %v7660_v2 = vrot.slane %v10916_v55, 1  ;;  %v10778_v3 = vld [vmem:[%s12076_s19 + $0x39c] sm:$0x1]  ;;  %v10779_v4 = vld [vmem:[%s12076_s19 + $0x3ac] sm:$0x1]  ;;  %v7091_v5 = vsel %vm1462_vm5, %v7090_v43, %v7089_v63  ;;  %v7651_v6 = vsel %vm1450_vm1, %v7650_v57, %v7649_v0 }
 0x362   : > { %v10780_v7 = vld [vmem:[%s12076_s19 + $0x3bc] sm:$0x1]  ;;  %v10781_v8 = vld [vmem:[%s12076_s19 + $0x3cc] sm:$0x1]  ;;  %v7093_v10 = vsel %vm1465_vm6, %v7092_v44, %v7091_v5  ;;  %v7653_v11 = vsel %vm1453_vm2, %v7652_v59, %v7651_v6  ;;  %v7094_v14 = vrot.slane %v10778_v3, 7  ;;  %v7096_v15 = vrot.slane %v10779_v4, 6 }
 0x363   : > { %v10782_v9 = vld [vmem:[%s12076_s19 + $0x3dc] sm:$0x1]  ;;  %v10783_v12 = vld [vmem:[%s12076_s19 + $0x3ec] sm:$0x1]  ;;  %7242 = vxpose.xlu0.b32.cont [7/16] (narrow) %v7093_v10, 8  ;;  %v7655_v16 = vsel %vm1456_vm3, %v7654_v60, %v7653_v11  ;;  %v7098_v17 = vrot.slane %v10780_v7, 5 }
 0x364   : > { %v10784_v13 = vld [vmem:[%s12076_s19 + $0x3fc] sm:$0x1]  ;;  %v7100_v18 = vrot.slane %v10781_v8, 4  ;;  %v7102_v19 = vrot.slane %v10782_v9, 3  ;;  %v10917_v20 = vld [vmem:[%s12076_s19 + $0x40d] sm:$0x1]  ;;  %v7657_v21 = vsel %vm1459_vm4, %v7656_v61, %v7655_v16  ;;  %v7095_v22 = vsel %vm1447_vm0, %v7094_v14, %v10777_v62 }
 0x365   : > { %v7104_v23 = vrot.slane %v10783_v12, 2  ;;  %v7106_v24 = vrot.slane %v10784_v13, 1  ;;  %v10918_v25 = vld [vmem:[%s12076_s19 + $0x41d] sm:$0x1]  ;;  %v10919_v26 = vld [vmem:[%s12076_s19 + $0x42d] sm:$0x1]  ;;  %v7659_v27 = vsel %vm1462_vm5, %v7658_v1, %v7657_v21  ;;  %v7097_v28 = vsel %vm1450_vm1, %v7096_v15, %v7095_v22 }
 0x366   : > { %v10920_v29 = vld [vmem:[%s12076_s19 + $0x43d] sm:$0x1]  ;;  %v10921_v30 = vld [vmem:[%s12076_s19 + $0x44d] sm:$0x1]  ;;  %v7661_v32 = vsel %vm1465_vm6, %v7660_v2, %v7659_v27  ;;  %v7099_v33 = vsel %vm1453_vm2, %v7098_v17, %v7097_v28  ;;  %v7662_v36 = vrot.slane %v10918_v25, 7  ;;  %v7664_v37 = vrot.slane %v10919_v26, 6 }
 0x367   : > { %v10922_v31 = vld [vmem:[%s12076_s19 + $0x45d] sm:$0x1]  ;;  %v10923_v34 = vld [vmem:[%s12076_s19 + $0x46d] sm:$0x1]  ;;  %7797 = vxpose.xlu1.b32.cont [8/16] (narrow) %v7661_v32, 8  ;;  %v7101_v38 = vsel %vm1456_vm3, %v7100_v18, %v7099_v33  ;;  %v7666_v39 = vrot.slane %v10920_v29, 5 }
 0x368   : > { %v10924_v35 = vld [vmem:[%s12076_s19 + $0x47d] sm:$0x1]  ;;  %v7668_v40 = vrot.slane %v10921_v30, 4  ;;  %v7670_v41 = vrot.slane %v10922_v31, 3  ;;  %v10785_v42 = vld [vmem:[%s12076_s19 + $0x40c] sm:$0x1]  ;;  %v7103_v43 = vsel %vm1459_vm4, %v7102_v19, %v7101_v38  ;;  %v7663_v44 = vsel %vm1447_vm0, %v7662_v36, %v10917_v20 }
 0x369   : > { %v7672_v45 = vrot.slane %v10923_v34, 2  ;;  %v7674_v46 = vrot.slane %v10924_v35, 1  ;;  %v10786_v47 = vld [vmem:[%s12076_s19 + $0x41c] sm:$0x1]  ;;  %v10787_v48 = vld [vmem:[%s12076_s19 + $0x42c] sm:$0x1]  ;;  %v7105_v49 = vsel %vm1462_vm5, %v7104_v23, %v7103_v43  ;;  %v7665_v50 = vsel %vm1450_vm1, %v7664_v37, %v7663_v44 }
 0x36a   : > { %v10788_v51 = vld [vmem:[%s12076_s19 + $0x43c] sm:$0x1]  ;;  %v10789_v52 = vld [vmem:[%s12076_s19 + $0x44c] sm:$0x1]  ;;  %v7107_v54 = vsel %vm1465_vm6, %v7106_v24, %v7105_v49  ;;  %v7667_v55 = vsel %vm1453_vm2, %v7666_v39, %v7665_v50  ;;  %v7108_v58 = vrot.slane %v10786_v47, 7  ;;  %v7110_v59 = vrot.slane %v10787_v48, 6 }
 0x36b   : > { %v10790_v53 = vld [vmem:[%s12076_s19 + $0x45c] sm:$0x1]  ;;  %v10791_v56 = vld [vmem:[%s12076_s19 + $0x46c] sm:$0x1]  ;;  %7243 = vxpose.xlu0.b32.cont [8/16] (narrow) %v7107_v54, 8  ;;  %v7669_v60 = vsel %vm1456_vm3, %v7668_v40, %v7667_v55  ;;  %v7112_v61 = vrot.slane %v10788_v51, 5 }
 0x36c   : > { %v10792_v57 = vld [vmem:[%s12076_s19 + $0x47c] sm:$0x1]  ;;  %v7114_v62 = vrot.slane %v10789_v52, 4  ;;  %v7116_v63 = vrot.slane %v10790_v53, 3  ;;  %v10925_v0 = vld [vmem:[%s12076_s19 + $0x48d] sm:$0x1]  ;;  %v7671_v1 = vsel %vm1459_vm4, %v7670_v41, %v7669_v60  ;;  %v7109_v2 = vsel %vm1447_vm0, %v7108_v58, %v10785_v42 }
 0x36d   : > { %v7118_v3 = vrot.slane %v10791_v56, 2  ;;  %v7120_v4 = vrot.slane %v10792_v57, 1  ;;  %v10926_v5 = vld [vmem:[%s12076_s19 + $0x49d] sm:$0x1]  ;;  %v10927_v6 = vld [vmem:[%s12076_s19 + $0x4ad] sm:$0x1]  ;;  %v7673_v7 = vsel %vm1462_vm5, %v7672_v45, %v7671_v1  ;;  %v7111_v8 = vsel %vm1450_vm1, %v7110_v59, %v7109_v2 }
 0x36e   : > { %v10928_v9 = vld [vmem:[%s12076_s19 + $0x4bd] sm:$0x1]  ;;  %v10929_v10 = vld [vmem:[%s12076_s19 + $0x4cd] sm:$0x1]  ;;  %v7675_v12 = vsel %vm1465_vm6, %v7674_v46, %v7673_v7  ;;  %v7113_v13 = vsel %vm1453_vm2, %v7112_v61, %v7111_v8  ;;  %v7676_v16 = vrot.slane %v10926_v5, 7  ;;  %v7678_v17 = vrot.slane %v10927_v6, 6 }
 0x36f   : > { %v10930_v11 = vld [vmem:[%s12076_s19 + $0x4dd] sm:$0x1]  ;;  %v10931_v14 = vld [vmem:[%s12076_s19 + $0x4ed] sm:$0x1]  ;;  %7798 = vxpose.xlu1.b32.cont [9/16] (narrow) %v7675_v12, 8  ;;  %v7115_v18 = vsel %vm1456_vm3, %v7114_v62, %v7113_v13  ;;  %v7680_v19 = vrot.slane %v10928_v9, 5 }
 0x370   : > { %v10932_v15 = vld [vmem:[%s12076_s19 + $0x4fd] sm:$0x1]  ;;  %v7682_v20 = vrot.slane %v10929_v10, 4  ;;  %v7684_v21 = vrot.slane %v10930_v11, 3  ;;  %v10793_v22 = vld [vmem:[%s12076_s19 + $0x48c] sm:$0x1]  ;;  %v7117_v23 = vsel %vm1459_vm4, %v7116_v63, %v7115_v18  ;;  %v7677_v24 = vsel %vm1447_vm0, %v7676_v16, %v10925_v0 }
 0x371   : > { %v7686_v25 = vrot.slane %v10931_v14, 2  ;;  %v7688_v26 = vrot.slane %v10932_v15, 1  ;;  %v10794_v27 = vld [vmem:[%s12076_s19 + $0x49c] sm:$0x1]  ;;  %v10795_v28 = vld [vmem:[%s12076_s19 + $0x4ac] sm:$0x1]  ;;  %v7119_v29 = vsel %vm1462_vm5, %v7118_v3, %v7117_v23  ;;  %v7679_v30 = vsel %vm1450_vm1, %v7678_v17, %v7677_v24 }
 0x372   : > { %v10796_v31 = vld [vmem:[%s12076_s19 + $0x4bc] sm:$0x1]  ;;  %v10797_v32 = vld [vmem:[%s12076_s19 + $0x4cc] sm:$0x1]  ;;  %v7121_v34 = vsel %vm1465_vm6, %v7120_v4, %v7119_v29  ;;  %v7681_v35 = vsel %vm1453_vm2, %v7680_v19, %v7679_v30  ;;  %v7122_v38 = vrot.slane %v10794_v27, 7  ;;  %v7124_v39 = vrot.slane %v10795_v28, 6 }
 0x373   : > { %v10798_v33 = vld [vmem:[%s12076_s19 + $0x4dc] sm:$0x1]  ;;  %v10799_v36 = vld [vmem:[%s12076_s19 + $0x4ec] sm:$0x1]  ;;  %7244 = vxpose.xlu0.b32.cont [9/16] (narrow) %v7121_v34, 8  ;;  %v7683_v40 = vsel %vm1456_vm3, %v7682_v20, %v7681_v35  ;;  %v7126_v41 = vrot.slane %v10796_v31, 5 }
 0x374   : > { %v10800_v37 = vld [vmem:[%s12076_s19 + $0x4fc] sm:$0x1]  ;;  %v7128_v42 = vrot.slane %v10797_v32, 4  ;;  %v7130_v43 = vrot.slane %v10798_v33, 3  ;;  %v10933_v44 = vld [vmem:[%s12076_s19 + $0x50d] sm:$0x1]  ;;  %v7685_v45 = vsel %vm1459_vm4, %v7684_v21, %v7683_v40  ;;  %v7123_v46 = vsel %vm1447_vm0, %v7122_v38, %v10793_v22 }
 0x375   : > { %v7132_v47 = vrot.slane %v10799_v36, 2  ;;  %v7134_v48 = vrot.slane %v10800_v37, 1  ;;  %v10934_v49 = vld [vmem:[%s12076_s19 + $0x51d] sm:$0x1]  ;;  %v10935_v50 = vld [vmem:[%s12076_s19 + $0x52d] sm:$0x1]  ;;  %v7687_v51 = vsel %vm1462_vm5, %v7686_v25, %v7685_v45  ;;  %v7125_v52 = vsel %vm1450_vm1, %v7124_v39, %v7123_v46 }
 0x376   : > { %v10936_v53 = vld [vmem:[%s12076_s19 + $0x53d] sm:$0x1]  ;;  %v10937_v54 = vld [vmem:[%s12076_s19 + $0x54d] sm:$0x1]  ;;  %v7689_v56 = vsel %vm1465_vm6, %v7688_v26, %v7687_v51  ;;  %v7127_v57 = vsel %vm1453_vm2, %v7126_v41, %v7125_v52  ;;  %v7690_v60 = vrot.slane %v10934_v49, 7  ;;  %v7692_v61 = vrot.slane %v10935_v50, 6 }
 0x377   : > { %v10938_v55 = vld [vmem:[%s12076_s19 + $0x55d] sm:$0x1]  ;;  %v10939_v58 = vld [vmem:[%s12076_s19 + $0x56d] sm:$0x1]  ;;  %7799 = vxpose.xlu1.b32.cont [10/16] (narrow) %v7689_v56, 8  ;;  %v7129_v62 = vsel %vm1456_vm3, %v7128_v42, %v7127_v57  ;;  %v7694_v63 = vrot.slane %v10936_v53, 5 }
 0x378   : > { %v10940_v59 = vld [vmem:[%s12076_s19 + $0x57d] sm:$0x1]  ;;  %v7696_v0 = vrot.slane %v10937_v54, 4  ;;  %v7698_v1 = vrot.slane %v10938_v55, 3  ;;  %v10801_v2 = vld [vmem:[%s12076_s19 + $0x50c] sm:$0x1]  ;;  %v7131_v3 = vsel %vm1459_vm4, %v7130_v43, %v7129_v62  ;;  %v7691_v4 = vsel %vm1447_vm0, %v7690_v60, %v10933_v44 }
 0x379   : > { %v7700_v5 = vrot.slane %v10939_v58, 2  ;;  %v7702_v6 = vrot.slane %v10940_v59, 1  ;;  %v10802_v7 = vld [vmem:[%s12076_s19 + $0x51c] sm:$0x1]  ;;  %v10803_v8 = vld [vmem:[%s12076_s19 + $0x52c] sm:$0x1]  ;;  %v7133_v9 = vsel %vm1462_vm5, %v7132_v47, %v7131_v3  ;;  %v7693_v10 = vsel %vm1450_vm1, %v7692_v61, %v7691_v4 }
 0x37a   : > { %v10804_v11 = vld [vmem:[%s12076_s19 + $0x53c] sm:$0x1]  ;;  %v10805_v12 = vld [vmem:[%s12076_s19 + $0x54c] sm:$0x1]  ;;  %v7135_v14 = vsel %vm1465_vm6, %v7134_v48, %v7133_v9  ;;  %v7695_v15 = vsel %vm1453_vm2, %v7694_v63, %v7693_v10  ;;  %v7136_v18 = vrot.slane %v10802_v7, 7  ;;  %v7138_v19 = vrot.slane %v10803_v8, 6 }
 0x37b   : > { %v10806_v13 = vld [vmem:[%s12076_s19 + $0x55c] sm:$0x1]  ;;  %v10807_v16 = vld [vmem:[%s12076_s19 + $0x56c] sm:$0x1]  ;;  %7245 = vxpose.xlu0.b32.cont [10/16] (narrow) %v7135_v14, 8  ;;  %v7697_v20 = vsel %vm1456_vm3, %v7696_v0, %v7695_v15  ;;  %v7140_v21 = vrot.slane %v10804_v11, 5 }
 0x37c   : > { %v10808_v17 = vld [vmem:[%s12076_s19 + $0x57c] sm:$0x1]  ;;  %v7142_v22 = vrot.slane %v10805_v12, 4  ;;  %v7144_v23 = vrot.slane %v10806_v13, 3  ;;  %v10941_v24 = vld [vmem:[%s12076_s19 + $0x58d] sm:$0x1]  ;;  %v7699_v25 = vsel %vm1459_vm4, %v7698_v1, %v7697_v20  ;;  %v7137_v26 = vsel %vm1447_vm0, %v7136_v18, %v10801_v2 }
 0x37d   : > { %v7146_v27 = vrot.slane %v10807_v16, 2  ;;  %v7148_v28 = vrot.slane %v10808_v17, 1  ;;  %v10942_v29 = vld [vmem:[%s12076_s19 + $0x59d] sm:$0x1]  ;;  %v10943_v30 = vld [vmem:[%s12076_s19 + $0x5ad] sm:$0x1]  ;;  %v7701_v31 = vsel %vm1462_vm5, %v7700_v5, %v7699_v25  ;;  %v7139_v32 = vsel %vm1450_vm1, %v7138_v19, %v7137_v26 }
 0x37e   : > { %v10944_v33 = vld [vmem:[%s12076_s19 + $0x5bd] sm:$0x1]  ;;  %v10945_v34 = vld [vmem:[%s12076_s19 + $0x5cd] sm:$0x1]  ;;  %v7703_v36 = vsel %vm1465_vm6, %v7702_v6, %v7701_v31  ;;  %v7141_v37 = vsel %vm1453_vm2, %v7140_v21, %v7139_v32  ;;  %v7704_v40 = vrot.slane %v10942_v29, 7  ;;  %v7706_v41 = vrot.slane %v10943_v30, 6 }
 0x37f   : > { %v10946_v35 = vld [vmem:[%s12076_s19 + $0x5dd] sm:$0x1]  ;;  %v10947_v38 = vld [vmem:[%s12076_s19 + $0x5ed] sm:$0x1]  ;;  %7800 = vxpose.xlu1.b32.cont [11/16] (narrow) %v7703_v36, 8  ;;  %v7143_v42 = vsel %vm1456_vm3, %v7142_v22, %v7141_v37  ;;  %v7708_v43 = vrot.slane %v10944_v33, 5 }
 0x380   : > { %v10948_v39 = vld [vmem:[%s12076_s19 + $0x5fd] sm:$0x1]  ;;  %v7710_v44 = vrot.slane %v10945_v34, 4  ;;  %v7712_v45 = vrot.slane %v10946_v35, 3  ;;  %v10809_v46 = vld [vmem:[%s12076_s19 + $0x58c] sm:$0x1]  ;;  %v7145_v47 = vsel %vm1459_vm4, %v7144_v23, %v7143_v42  ;;  %v7705_v48 = vsel %vm1447_vm0, %v7704_v40, %v10941_v24 }
 0x381   : > { %v7714_v49 = vrot.slane %v10947_v38, 2  ;;  %v7716_v50 = vrot.slane %v10948_v39, 1  ;;  %v10810_v51 = vld [vmem:[%s12076_s19 + $0x59c] sm:$0x1]  ;;  %v10811_v52 = vld [vmem:[%s12076_s19 + $0x5ac] sm:$0x1]  ;;  %v7147_v53 = vsel %vm1462_vm5, %v7146_v27, %v7145_v47  ;;  %v7707_v54 = vsel %vm1450_vm1, %v7706_v41, %v7705_v48 }
 0x382   : > { %v10812_v55 = vld [vmem:[%s12076_s19 + $0x5bc] sm:$0x1]  ;;  %v10813_v56 = vld [vmem:[%s12076_s19 + $0x5cc] sm:$0x1]  ;;  %v7149_v58 = vsel %vm1465_vm6, %v7148_v28, %v7147_v53  ;;  %v7709_v59 = vsel %vm1453_vm2, %v7708_v43, %v7707_v54  ;;  %v7150_v62 = vrot.slane %v10810_v51, 7  ;;  %v7152_v63 = vrot.slane %v10811_v52, 6 }
 0x383   : > { %v10814_v57 = vld [vmem:[%s12076_s19 + $0x5dc] sm:$0x1]  ;;  %v10815_v60 = vld [vmem:[%s12076_s19 + $0x5ec] sm:$0x1]  ;;  %7246 = vxpose.xlu0.b32.cont [11/16] (narrow) %v7149_v58, 8  ;;  %v7711_v0 = vsel %vm1456_vm3, %v7710_v44, %v7709_v59  ;;  %v7154_v1 = vrot.slane %v10812_v55, 5 }
 0x384   : > { %v10816_v61 = vld [vmem:[%s12076_s19 + $0x5fc] sm:$0x1]  ;;  %v7156_v2 = vrot.slane %v10813_v56, 4  ;;  %v7158_v3 = vrot.slane %v10814_v57, 3  ;;  %v10949_v4 = vld [vmem:[%s12076_s19 + $0x60d] sm:$0x1]  ;;  %v7713_v5 = vsel %vm1459_vm4, %v7712_v45, %v7711_v0  ;;  %v7151_v6 = vsel %vm1447_vm0, %v7150_v62, %v10809_v46 }
 0x385   : > { %v7160_v7 = vrot.slane %v10815_v60, 2  ;;  %v7162_v8 = vrot.slane %v10816_v61, 1  ;;  %v10950_v9 = vld [vmem:[%s12076_s19 + $0x61d] sm:$0x1]  ;;  %v10951_v10 = vld [vmem:[%s12076_s19 + $0x62d] sm:$0x1]  ;;  %v7715_v11 = vsel %vm1462_vm5, %v7714_v49, %v7713_v5  ;;  %v7153_v12 = vsel %vm1450_vm1, %v7152_v63, %v7151_v6 }
 0x386   : > { %v10952_v13 = vld [vmem:[%s12076_s19 + $0x63d] sm:$0x1]  ;;  %v10953_v14 = vld [vmem:[%s12076_s19 + $0x64d] sm:$0x1]  ;;  %v7717_v16 = vsel %vm1465_vm6, %v7716_v50, %v7715_v11  ;;  %v7155_v17 = vsel %vm1453_vm2, %v7154_v1, %v7153_v12  ;;  %v7718_v20 = vrot.slane %v10950_v9, 7  ;;  %v7720_v21 = vrot.slane %v10951_v10, 6 }
 0x387   : > { %v10954_v15 = vld [vmem:[%s12076_s19 + $0x65d] sm:$0x1]  ;;  %v10955_v18 = vld [vmem:[%s12076_s19 + $0x66d] sm:$0x1]  ;;  %7801 = vxpose.xlu1.b32.cont [12/16] (narrow) %v7717_v16, 8  ;;  %v7157_v22 = vsel %vm1456_vm3, %v7156_v2, %v7155_v17  ;;  %v7722_v23 = vrot.slane %v10952_v13, 5 }
 0x388   : > { %v10956_v19 = vld [vmem:[%s12076_s19 + $0x67d] sm:$0x1]  ;;  %v7724_v24 = vrot.slane %v10953_v14, 4  ;;  %v7726_v25 = vrot.slane %v10954_v15, 3  ;;  %v10817_v26 = vld [vmem:[%s12076_s19 + $0x60c] sm:$0x1]  ;;  %v7159_v27 = vsel %vm1459_vm4, %v7158_v3, %v7157_v22  ;;  %v7719_v28 = vsel %vm1447_vm0, %v7718_v20, %v10949_v4 }
 0x389   : > { %v7728_v29 = vrot.slane %v10955_v18, 2  ;;  %v7730_v30 = vrot.slane %v10956_v19, 1  ;;  %v10818_v31 = vld [vmem:[%s12076_s19 + $0x61c] sm:$0x1]  ;;  %v10819_v32 = vld [vmem:[%s12076_s19 + $0x62c] sm:$0x1]  ;;  %v7161_v33 = vsel %vm1462_vm5, %v7160_v7, %v7159_v27  ;;  %v7721_v34 = vsel %vm1450_vm1, %v7720_v21, %v7719_v28 }
 0x38a   : > { %v10820_v35 = vld [vmem:[%s12076_s19 + $0x63c] sm:$0x1]  ;;  %v10821_v36 = vld [vmem:[%s12076_s19 + $0x64c] sm:$0x1]  ;;  %v7163_v38 = vsel %vm1465_vm6, %v7162_v8, %v7161_v33  ;;  %v7723_v39 = vsel %vm1453_vm2, %v7722_v23, %v7721_v34  ;;  %v7164_v42 = vrot.slane %v10818_v31, 7  ;;  %v7166_v43 = vrot.slane %v10819_v32, 6 }
 0x38b   : > { %v10822_v37 = vld [vmem:[%s12076_s19 + $0x65c] sm:$0x1]  ;;  %v10823_v40 = vld [vmem:[%s12076_s19 + $0x66c] sm:$0x1]  ;;  %7247 = vxpose.xlu0.b32.cont [12/16] (narrow) %v7163_v38, 8  ;;  %v7725_v44 = vsel %vm1456_vm3, %v7724_v24, %v7723_v39  ;;  %v7168_v45 = vrot.slane %v10820_v35, 5 }
 0x38c   : > { %v10824_v41 = vld [vmem:[%s12076_s19 + $0x67c] sm:$0x1]  ;;  %v7170_v46 = vrot.slane %v10821_v36, 4  ;;  %v7172_v47 = vrot.slane %v10822_v37, 3  ;;  %v10957_v48 = vld [vmem:[%s12076_s19 + $0x68d] sm:$0x1]  ;;  %v7727_v49 = vsel %vm1459_vm4, %v7726_v25, %v7725_v44  ;;  %v7165_v50 = vsel %vm1447_vm0, %v7164_v42, %v10817_v26 }
 0x38d   : > { %v7174_v51 = vrot.slane %v10823_v40, 2  ;;  %v7176_v52 = vrot.slane %v10824_v41, 1  ;;  %v10958_v53 = vld [vmem:[%s12076_s19 + $0x69d] sm:$0x1]  ;;  %v10959_v54 = vld [vmem:[%s12076_s19 + $0x6ad] sm:$0x1]  ;;  %v7729_v55 = vsel %vm1462_vm5, %v7728_v29, %v7727_v49  ;;  %v7167_v56 = vsel %vm1450_vm1, %v7166_v43, %v7165_v50 }
 0x38e   : > { %v10960_v57 = vld [vmem:[%s12076_s19 + $0x6bd] sm:$0x1]  ;;  %v10961_v58 = vld [vmem:[%s12076_s19 + $0x6cd] sm:$0x1]  ;;  %v7731_v60 = vsel %vm1465_vm6, %v7730_v30, %v7729_v55  ;;  %v7169_v61 = vsel %vm1453_vm2, %v7168_v45, %v7167_v56  ;;  %v7732_v0 = vrot.slane %v10958_v53, 7  ;;  %v7734_v1 = vrot.slane %v10959_v54, 6 }
 0x38f   : > { %v10962_v59 = vld [vmem:[%s12076_s19 + $0x6dd] sm:$0x1]  ;;  %v10963_v62 = vld [vmem:[%s12076_s19 + $0x6ed] sm:$0x1]  ;;  %7802 = vxpose.xlu1.b32.cont [13/16] (narrow) %v7731_v60, 8  ;;  %v7171_v2 = vsel %vm1456_vm3, %v7170_v46, %v7169_v61  ;;  %v7736_v3 = vrot.slane %v10960_v57, 5 }
 0x390   : > { %v10964_v63 = vld [vmem:[%s12076_s19 + $0x6fd] sm:$0x1]  ;;  %v7738_v4 = vrot.slane %v10961_v58, 4  ;;  %v7740_v5 = vrot.slane %v10962_v59, 3  ;;  %v10825_v6 = vld [vmem:[%s12076_s19 + $0x68c] sm:$0x1]  ;;  %v7173_v7 = vsel %vm1459_vm4, %v7172_v47, %v7171_v2  ;;  %v7733_v8 = vsel %vm1447_vm0, %v7732_v0, %v10957_v48 }
 0x391   : > { %v7742_v9 = vrot.slane %v10963_v62, 2  ;;  %v7744_v10 = vrot.slane %v10964_v63, 1  ;;  %v10826_v11 = vld [vmem:[%s12076_s19 + $0x69c] sm:$0x1]  ;;  %v10827_v12 = vld [vmem:[%s12076_s19 + $0x6ac] sm:$0x1]  ;;  %v7175_v13 = vsel %vm1462_vm5, %v7174_v51, %v7173_v7  ;;  %v7735_v14 = vsel %vm1450_vm1, %v7734_v1, %v7733_v8 }
 0x392   : > { %v10828_v15 = vld [vmem:[%s12076_s19 + $0x6bc] sm:$0x1]  ;;  %v10829_v16 = vld [vmem:[%s12076_s19 + $0x6cc] sm:$0x1]  ;;  %v7177_v18 = vsel %vm1465_vm6, %v7176_v52, %v7175_v13  ;;  %v7737_v19 = vsel %vm1453_vm2, %v7736_v3, %v7735_v14  ;;  %v7178_v22 = vrot.slane %v10826_v11, 7  ;;  %v7180_v23 = vrot.slane %v10827_v12, 6 }
 0x393   : > { %v10830_v17 = vld [vmem:[%s12076_s19 + $0x6dc] sm:$0x1]  ;;  %v10831_v20 = vld [vmem:[%s12076_s19 + $0x6ec] sm:$0x1]  ;;  %7248 = vxpose.xlu0.b32.cont [13/16] (narrow) %v7177_v18, 8  ;;  %v7739_v24 = vsel %vm1456_vm3, %v7738_v4, %v7737_v19  ;;  %v7182_v25 = vrot.slane %v10828_v15, 5 }
 0x394   : > { %v10832_v21 = vld [vmem:[%s12076_s19 + $0x6fc] sm:$0x1]  ;;  %v7184_v26 = vrot.slane %v10829_v16, 4  ;;  %v7186_v27 = vrot.slane %v10830_v17, 3  ;;  %v10965_v28 = vld [vmem:[%s12076_s19 + $0x70d] sm:$0x1]  ;;  %v7741_v29 = vsel %vm1459_vm4, %v7740_v5, %v7739_v24  ;;  %v7179_v30 = vsel %vm1447_vm0, %v7178_v22, %v10825_v6 }
 0x395   : > { %v7188_v31 = vrot.slane %v10831_v20, 2  ;;  %v7190_v32 = vrot.slane %v10832_v21, 1  ;;  %v10966_v33 = vld [vmem:[%s12076_s19 + $0x71d] sm:$0x1]  ;;  %v10967_v34 = vld [vmem:[%s12076_s19 + $0x72d] sm:$0x1]  ;;  %v7743_v35 = vsel %vm1462_vm5, %v7742_v9, %v7741_v29  ;;  %v7181_v36 = vsel %vm1450_vm1, %v7180_v23, %v7179_v30 }
 0x396   : > { %v10968_v37 = vld [vmem:[%s12076_s19 + $0x73d] sm:$0x1]  ;;  %v10969_v38 = vld [vmem:[%s12076_s19 + $0x74d] sm:$0x1]  ;;  %v7745_v40 = vsel %vm1465_vm6, %v7744_v10, %v7743_v35  ;;  %v7183_v41 = vsel %vm1453_vm2, %v7182_v25, %v7181_v36  ;;  %v7746_v44 = vrot.slane %v10966_v33, 7  ;;  %v7748_v45 = vrot.slane %v10967_v34, 6 }
 0x397   : > { %v10970_v39 = vld [vmem:[%s12076_s19 + $0x75d] sm:$0x1]  ;;  %v10971_v42 = vld [vmem:[%s12076_s19 + $0x76d] sm:$0x1]  ;;  %7803 = vxpose.xlu1.b32.cont [14/16] (narrow) %v7745_v40, 8  ;;  %v7185_v46 = vsel %vm1456_vm3, %v7184_v26, %v7183_v41  ;;  %v7750_v47 = vrot.slane %v10968_v37, 5 }
 0x398   : > { %v10972_v43 = vld [vmem:[%s12076_s19 + $0x77d] sm:$0x1]  ;;  %v7752_v48 = vrot.slane %v10969_v38, 4  ;;  %v7754_v49 = vrot.slane %v10970_v39, 3  ;;  %v10833_v50 = vld [vmem:[%s12076_s19 + $0x70c] sm:$0x1]  ;;  %v7187_v51 = vsel %vm1459_vm4, %v7186_v27, %v7185_v46  ;;  %v7747_v52 = vsel %vm1447_vm0, %v7746_v44, %v10965_v28 }
 0x399   : > { %v7756_v53 = vrot.slane %v10971_v42, 2  ;;  %v7758_v54 = vrot.slane %v10972_v43, 1  ;;  %v10834_v55 = vld [vmem:[%s12076_s19 + $0x71c] sm:$0x1]  ;;  %v10835_v56 = vld [vmem:[%s12076_s19 + $0x72c] sm:$0x1]  ;;  %v7189_v57 = vsel %vm1462_vm5, %v7188_v31, %v7187_v51  ;;  %v7749_v58 = vsel %vm1450_vm1, %v7748_v45, %v7747_v52 }
 0x39a   : > { %v10836_v59 = vld [vmem:[%s12076_s19 + $0x73c] sm:$0x1]  ;;  %v10837_v60 = vld [vmem:[%s12076_s19 + $0x74c] sm:$0x1]  ;;  %v7191_v62 = vsel %vm1465_vm6, %v7190_v32, %v7189_v57  ;;  %v7751_v63 = vsel %vm1453_vm2, %v7750_v47, %v7749_v58  ;;  %v7192_v2 = vrot.slane %v10834_v55, 7  ;;  %v7194_v3 = vrot.slane %v10835_v56, 6 }
 0x39b   : > { %v10838_v61 = vld [vmem:[%s12076_s19 + $0x75c] sm:$0x1]  ;;  %v10839_v0 = vld [vmem:[%s12076_s19 + $0x76c] sm:$0x1]  ;;  %7249 = vxpose.xlu0.b32.cont [14/16] (narrow) %v7191_v62, 8  ;;  %v7753_v4 = vsel %vm1456_vm3, %v7752_v48, %v7751_v63  ;;  %v7196_v5 = vrot.slane %v10836_v59, 5 }
 0x39c   : > { %v10840_v1 = vld [vmem:[%s12076_s19 + $0x77c] sm:$0x1]  ;;  %v7198_v6 = vrot.slane %v10837_v60, 4  ;;  %v7200_v7 = vrot.slane %v10838_v61, 3  ;;  %v10973_v8 = vld [vmem:[%s12076_s19 + $0x78d] sm:$0x1]  ;;  %v7755_v9 = vsel %vm1459_vm4, %v7754_v49, %v7753_v4  ;;  %v7193_v10 = vsel %vm1447_vm0, %v7192_v2, %v10833_v50 }
 0x39d   : > { %v7202_v11 = vrot.slane %v10839_v0, 2  ;;  %v7204_v12 = vrot.slane %v10840_v1, 1  ;;  %v10974_v13 = vld [vmem:[%s12076_s19 + $0x79d] sm:$0x1]  ;;  %v10975_v14 = vld [vmem:[%s12076_s19 + $0x7ad] sm:$0x1]  ;;  %v7757_v15 = vsel %vm1462_vm5, %v7756_v53, %v7755_v9  ;;  %v7195_v16 = vsel %vm1450_vm1, %v7194_v3, %v7193_v10 }
 0x39e   : > { %v10976_v17 = vld [vmem:[%s12076_s19 + $0x7bd] sm:$0x1]  ;;  %v10977_v18 = vld [vmem:[%s12076_s19 + $0x7cd] sm:$0x1]  ;;  %v7759_v20 = vsel %vm1465_vm6, %v7758_v54, %v7757_v15  ;;  %v7197_v21 = vsel %vm1453_vm2, %v7196_v5, %v7195_v16  ;;  %v7760_v24 = vrot.slane %v10974_v13, 7  ;;  %v7762_v25 = vrot.slane %v10975_v14, 6 }
 0x39f   : > { %v10978_v19 = vld [vmem:[%s12076_s19 + $0x7dd] sm:$0x1]  ;;  %v10979_v22 = vld [vmem:[%s12076_s19 + $0x7ed] sm:$0x1]  ;;  %7804 = vxpose.xlu1.b32.cont [15/16] (narrow) %v7759_v20, 8  ;;  %v7199_v26 = vsel %vm1456_vm3, %v7198_v6, %v7197_v21  ;;  %v7764_v27 = vrot.slane %v10976_v17, 5 }
 0x3a0   : > { %v10980_v23 = vld [vmem:[%s12076_s19 + $0x7fd] sm:$0x1]  ;;  %v7766_v28 = vrot.slane %v10977_v18, 4  ;;  %v7768_v29 = vrot.slane %v10978_v19, 3  ;;  %v10841_v30 = vld [vmem:[%s12076_s19 + $0x78c] sm:$0x1]  ;;  %v7201_v31 = vsel %vm1459_vm4, %v7200_v7, %v7199_v26  ;;  %v7761_v32 = vsel %vm1447_vm0, %v7760_v24, %v10973_v8 }
 0x3a1   : > { %v7770_v33 = vrot.slane %v10979_v22, 2  ;;  %v7772_v34 = vrot.slane %v10980_v23, 1  ;;  %v10842_v35 = vld [vmem:[%s12076_s19 + $0x79c] sm:$0x1]  ;;  %v10843_v36 = vld [vmem:[%s12076_s19 + $0x7ac] sm:$0x1]  ;;  %v7203_v37 = vsel %vm1462_vm5, %v7202_v11, %v7201_v31  ;;  %v7763_v38 = vsel %vm1450_vm1, %v7762_v25, %v7761_v32 }
 0x3a2   : > { %v10844_v39 = vld [vmem:[%s12076_s19 + $0x7bc] sm:$0x1]  ;;  %v10845_v40 = vld [vmem:[%s12076_s19 + $0x7cc] sm:$0x1]  ;;  %v7205_v42 = vsel %vm1465_vm6, %v7204_v12, %v7203_v37  ;;  %v7765_v43 = vsel %vm1453_vm2, %v7764_v27, %v7763_v38  ;;  %v7206_v46 = vrot.slane %v10842_v35, 7  ;;  %v7208_v47 = vrot.slane %v10843_v36, 6 }
 0x3a3   : > { %v10846_v41 = vld [vmem:[%s12076_s19 + $0x7dc] sm:$0x1]  ;;  %v10847_v44 = vld [vmem:[%s12076_s19 + $0x7ec] sm:$0x1]  ;;  %7250 = vxpose.xlu0.b32.cont [15/16] (narrow) %v7205_v42, 8  ;;  %v7767_v48 = vsel %vm1456_vm3, %v7766_v28, %v7765_v43  ;;  %v7210_v49 = vrot.slane %v10844_v39, 5 }
 0x3a4   : > { %v10848_v45 = vld [vmem:[%s12076_s19 + $0x7fc] sm:$0x1]  ;;  %v7212_v50 = vrot.slane %v10845_v40, 4  ;;  %v7214_v51 = vrot.slane %v10846_v41, 3  ;;  %v8403_v52 = vld [vmem:[%s12076_s19 + $0x7] sm:$0x1]  ;;  %v7769_v53 = vsel %vm1459_vm4, %v7768_v29, %v7767_v48  ;;  %v7207_v54 = vsel %vm1447_vm0, %v7206_v46, %v10841_v30 }
 0x3a5   : > { %v7216_v55 = vrot.slane %v10847_v44, 2  ;;  %v7218_v56 = vrot.slane %v10848_v45, 1  ;;  %v8404_v57 = vld [vmem:[%s12076_s19 + $0x17] sm:$0x1]  ;;  %v8405_v58 = vld [vmem:[%s12076_s19 + $0x27] sm:$0x1]  ;;  %v7771_v59 = vsel %vm1462_vm5, %v7770_v33, %v7769_v53  ;;  %v7209_v60 = vsel %vm1450_vm1, %v7208_v47, %v7207_v54 }
 0x3a6   : > { %v8406_v61 = vld [vmem:[%s12076_s19 + $0x37] sm:$0x1]  ;;  %v8407_v62 = vld [vmem:[%s12076_s19 + $0x47] sm:$0x1]  ;;  %v7773_v0 = vsel %vm1465_vm6, %v7772_v34, %v7771_v59  ;;  %v7211_v1 = vsel %vm1453_vm2, %v7210_v49, %v7209_v60  ;;  %v8659_v4 = vrot.slane %v8404_v57, 7  ;;  %v8661_v5 = vrot.slane %v8405_v58, 6 }
 0x3a7   : > { %v8408_v63 = vld [vmem:[%s12076_s19 + $0x57] sm:$0x1]  ;;  %v8409_v2 = vld [vmem:[%s12076_s19 + $0x67] sm:$0x1]  ;;  %7805 = vxpose.xlu1.b32.end [16/16] (narrow) %v7773_v0, 8  ;;  %v7213_v6 = vsel %vm1456_vm3, %v7212_v50, %v7211_v1  ;;  %v8663_v7 = vrot.slane %v8406_v61, 5 }
 0x3a8   : > { %v8410_v3 = vld [vmem:[%s12076_s19 + $0x77] sm:$0x1]  ;;  %v8665_v8 = vrot.slane %v8407_v62, 4  ;;  %v8667_v9 = vrot.slane %v8408_v63, 3  ;;  %v7848_v10 = vld [vmem:[%s12076_s19 + $0x6] sm:$0x1]  ;;  %v7215_v11 = vsel %vm1459_vm4, %v7214_v51, %v7213_v6  ;;  %v8660_v12 = vsel %vm1447_vm0, %v8659_v4, %v8403_v52 }
 0x3a9   : > { %v8669_v13 = vrot.slane %v8409_v2, 2  ;;  %v8671_v14 = vrot.slane %v8410_v3, 1  ;;  %v7849_v15 = vld [vmem:[%s12076_s19 + $0x16] sm:$0x1]  ;;  %v7850_v16 = vld [vmem:[%s12076_s19 + $0x26] sm:$0x1]  ;;  %v7217_v17 = vsel %vm1462_vm5, %v7216_v55, %v7215_v11  ;;  %v8662_v18 = vsel %vm1450_vm1, %v8661_v5, %v8660_v12 }
 0x3aa   : > { %v7851_v19 = vld [vmem:[%s12076_s19 + $0x36] sm:$0x1]  ;;  %v7852_v20 = vld [vmem:[%s12076_s19 + $0x46] sm:$0x1]  ;;  %v7219_v22 = vsel %vm1465_vm6, %v7218_v56, %v7217_v17  ;;  %v8664_v23 = vsel %vm1453_vm2, %v8663_v7, %v8662_v18  ;;  %v8104_v26 = vrot.slane %v7849_v15, 7  ;;  %v8106_v27 = vrot.slane %v7850_v16, 6 }
 0x3ab   : > { %v7853_v21 = vld [vmem:[%s12076_s19 + $0x56] sm:$0x1]  ;;  %v7854_v24 = vld [vmem:[%s12076_s19 + $0x66] sm:$0x1]  ;;  %7251 = vxpose.xlu0.b32.end [16/16] (narrow) %v7219_v22, 8  ;;  %v8666_v28 = vsel %vm1456_vm3, %v8665_v8, %v8664_v23  ;;  %v8108_v29 = vrot.slane %v7851_v19, 5 }
 0x3ac   : > { %v7855_v25 = vld [vmem:[%s12076_s19 + $0x76] sm:$0x1]  ;;  %v8110_v30 = vrot.slane %v7852_v20, 4  ;;  %v8112_v31 = vrot.slane %v7853_v21, 3  ;;  %v8411_v32 = vld [vmem:[%s12076_s19 + $0x87] sm:$0x1]  ;;  %v8668_v33 = vsel %vm1459_vm4, %v8667_v9, %v8666_v28  ;;  %v8105_v34 = vsel %vm1447_vm0, %v8104_v26, %v7848_v10 }
 0x3ad   : > { %v8114_v35 = vrot.slane %v7854_v24, 2  ;;  %v8116_v36 = vrot.slane %v7855_v25, 1  ;;  %v8412_v37 = vld [vmem:[%s12076_s19 + $0x97] sm:$0x1]  ;;  %v8413_v38 = vld [vmem:[%s12076_s19 + $0xa7] sm:$0x1]  ;;  %v8670_v39 = vsel %vm1462_vm5, %v8669_v13, %v8668_v33  ;;  %v8107_v40 = vsel %vm1450_vm1, %v8106_v27, %v8105_v34 }
 0x3ae   : > { %v8414_v41 = vld [vmem:[%s12076_s19 + $0xb7] sm:$0x1]  ;;  %v8415_v42 = vld [vmem:[%s12076_s19 + $0xc7] sm:$0x1]  ;;  %v8672_v44 = vsel %vm1465_vm6, %v8671_v14, %v8670_v39  ;;  %v8109_v45 = vsel %vm1453_vm2, %v8108_v29, %v8107_v40  ;;  %v8673_v48 = vrot.slane %v8412_v37, 7  ;;  %v8675_v49 = vrot.slane %v8413_v38, 6 }
 0x3af   : > { %v8416_v43 = vld [vmem:[%s12076_s19 + $0xd7] sm:$0x1]  ;;  %v8417_v46 = vld [vmem:[%s12076_s19 + $0xe7] sm:$0x1]  ;;  %8899 = vxpose.xlu1.b32.start [1/16] (narrow) %v8672_v44, 8  ;;  %v8111_v50 = vsel %vm1456_vm3, %v8110_v30, %v8109_v45  ;;  %v8677_v51 = vrot.slane %v8414_v41, 5 }
 0x3b0   : > { %v8418_v47 = vld [vmem:[%s12076_s19 + $0xf7] sm:$0x1]  ;;  %v8679_v52 = vrot.slane %v8415_v42, 4  ;;  %v8681_v53 = vrot.slane %v8416_v43, 3  ;;  %v7856_v54 = vld [vmem:[%s12076_s19 + $0x86] sm:$0x1]  ;;  %v8113_v55 = vsel %vm1459_vm4, %v8112_v31, %v8111_v50  ;;  %v8674_v56 = vsel %vm1447_vm0, %v8673_v48, %v8411_v32 }
 0x3b1   : > { %v8683_v57 = vrot.slane %v8417_v46, 2  ;;  %v8685_v58 = vrot.slane %v8418_v47, 1  ;;  %v7857_v59 = vld [vmem:[%s12076_s19 + $0x96] sm:$0x1]  ;;  %v7858_v60 = vld [vmem:[%s12076_s19 + $0xa6] sm:$0x1]  ;;  %v8115_v61 = vsel %vm1462_vm5, %v8114_v35, %v8113_v55  ;;  %v8676_v62 = vsel %vm1450_vm1, %v8675_v49, %v8674_v56 }
 0x3b2   : > { %v7859_v63 = vld [vmem:[%s12076_s19 + $0xb6] sm:$0x1]  ;;  %v7860_v0 = vld [vmem:[%s12076_s19 + $0xc6] sm:$0x1]  ;;  %v8117_v2 = vsel %vm1465_vm6, %v8116_v36, %v8115_v61  ;;  %v8678_v3 = vsel %vm1453_vm2, %v8677_v51, %v8676_v62  ;;  %v8118_v6 = vrot.slane %v7857_v59, 7  ;;  %v8120_v7 = vrot.slane %v7858_v60, 6 }
 0x3b3   : > { %v7861_v1 = vld [vmem:[%s12076_s19 + $0xd6] sm:$0x1]  ;;  %v7862_v4 = vld [vmem:[%s12076_s19 + $0xe6] sm:$0x1]  ;;  %8344 = vxpose.xlu0.b32.start [1/16] (narrow) %v8117_v2, 8  ;;  %v8680_v8 = vsel %vm1456_vm3, %v8679_v52, %v8678_v3  ;;  %v8122_v9 = vrot.slane %v7859_v63, 5 }
 0x3b4   : > { %v7863_v5 = vld [vmem:[%s12076_s19 + $0xf6] sm:$0x1]  ;;  %v8124_v10 = vrot.slane %v7860_v0, 4  ;;  %v8126_v11 = vrot.slane %v7861_v1, 3  ;;  %v8419_v12 = vld [vmem:[%s12076_s19 + $0x107] sm:$0x1]  ;;  %v8682_v13 = vsel %vm1459_vm4, %v8681_v53, %v8680_v8  ;;  %v8119_v14 = vsel %vm1447_vm0, %v8118_v6, %v7856_v54 }
 0x3b5   : > { %v8128_v15 = vrot.slane %v7862_v4, 2  ;;  %v8130_v16 = vrot.slane %v7863_v5, 1  ;;  %v8420_v17 = vld [vmem:[%s12076_s19 + $0x117] sm:$0x1]  ;;  %v8421_v18 = vld [vmem:[%s12076_s19 + $0x127] sm:$0x1]  ;;  %v8684_v19 = vsel %vm1462_vm5, %v8683_v57, %v8682_v13  ;;  %v8121_v20 = vsel %vm1450_vm1, %v8120_v7, %v8119_v14 }
 0x3b6   : > { %v8422_v21 = vld [vmem:[%s12076_s19 + $0x137] sm:$0x1]  ;;  %v8423_v22 = vld [vmem:[%s12076_s19 + $0x147] sm:$0x1]  ;;  %v8686_v24 = vsel %vm1465_vm6, %v8685_v58, %v8684_v19  ;;  %v8123_v25 = vsel %vm1453_vm2, %v8122_v9, %v8121_v20  ;;  %v8687_v28 = vrot.slane %v8420_v17, 7  ;;  %v8689_v29 = vrot.slane %v8421_v18, 6 }
 0x3b7   : > { %v8424_v23 = vld [vmem:[%s12076_s19 + $0x157] sm:$0x1]  ;;  %v8425_v26 = vld [vmem:[%s12076_s19 + $0x167] sm:$0x1]  ;;  %8900 = vxpose.xlu1.b32.cont [2/16] (narrow) %v8686_v24, 8  ;;  %v8125_v30 = vsel %vm1456_vm3, %v8124_v10, %v8123_v25  ;;  %v8691_v31 = vrot.slane %v8422_v21, 5 }
 0x3b8   : > { %v8426_v27 = vld [vmem:[%s12076_s19 + $0x177] sm:$0x1]  ;;  %v8693_v32 = vrot.slane %v8423_v22, 4  ;;  %v8695_v33 = vrot.slane %v8424_v23, 3  ;;  %v7864_v34 = vld [vmem:[%s12076_s19 + $0x106] sm:$0x1]  ;;  %v8127_v35 = vsel %vm1459_vm4, %v8126_v11, %v8125_v30  ;;  %v8688_v36 = vsel %vm1447_vm0, %v8687_v28, %v8419_v12 }
 0x3b9   : > { %v8697_v37 = vrot.slane %v8425_v26, 2  ;;  %v8699_v38 = vrot.slane %v8426_v27, 1  ;;  %v7865_v39 = vld [vmem:[%s12076_s19 + $0x116] sm:$0x1]  ;;  %v7866_v40 = vld [vmem:[%s12076_s19 + $0x126] sm:$0x1]  ;;  %v8129_v41 = vsel %vm1462_vm5, %v8128_v15, %v8127_v35  ;;  %v8690_v42 = vsel %vm1450_vm1, %v8689_v29, %v8688_v36 }
 0x3ba   : > { %v7867_v43 = vld [vmem:[%s12076_s19 + $0x136] sm:$0x1]  ;;  %v7868_v44 = vld [vmem:[%s12076_s19 + $0x146] sm:$0x1]  ;;  %v8131_v46 = vsel %vm1465_vm6, %v8130_v16, %v8129_v41  ;;  %v8692_v47 = vsel %vm1453_vm2, %v8691_v31, %v8690_v42  ;;  %v8132_v50 = vrot.slane %v7865_v39, 7  ;;  %v8134_v51 = vrot.slane %v7866_v40, 6 }
 0x3bb   : > { %v7869_v45 = vld [vmem:[%s12076_s19 + $0x156] sm:$0x1]  ;;  %v7870_v48 = vld [vmem:[%s12076_s19 + $0x166] sm:$0x1]  ;;  %8345 = vxpose.xlu0.b32.cont [2/16] (narrow) %v8131_v46, 8  ;;  %v8694_v52 = vsel %vm1456_vm3, %v8693_v32, %v8692_v47  ;;  %v8136_v53 = vrot.slane %v7867_v43, 5 }
 0x3bc   : > { %v7871_v49 = vld [vmem:[%s12076_s19 + $0x176] sm:$0x1]  ;;  %v8138_v54 = vrot.slane %v7868_v44, 4  ;;  %v8140_v55 = vrot.slane %v7869_v45, 3  ;;  %v8427_v56 = vld [vmem:[%s12076_s19 + $0x187] sm:$0x1]  ;;  %v8696_v57 = vsel %vm1459_vm4, %v8695_v33, %v8694_v52  ;;  %v8133_v58 = vsel %vm1447_vm0, %v8132_v50, %v7864_v34 }
 0x3bd   : > { %v8142_v59 = vrot.slane %v7870_v48, 2  ;;  %v8144_v60 = vrot.slane %v7871_v49, 1  ;;  %v8428_v61 = vld [vmem:[%s12076_s19 + $0x197] sm:$0x1]  ;;  %v8429_v62 = vld [vmem:[%s12076_s19 + $0x1a7] sm:$0x1]  ;;  %v8698_v63 = vsel %vm1462_vm5, %v8697_v37, %v8696_v57  ;;  %v8135_v0 = vsel %vm1450_vm1, %v8134_v51, %v8133_v58 }
 0x3be   : > { %v8430_v1 = vld [vmem:[%s12076_s19 + $0x1b7] sm:$0x1]  ;;  %v8431_v2 = vld [vmem:[%s12076_s19 + $0x1c7] sm:$0x1]  ;;  %v8700_v4 = vsel %vm1465_vm6, %v8699_v38, %v8698_v63  ;;  %v8137_v5 = vsel %vm1453_vm2, %v8136_v53, %v8135_v0  ;;  %v8701_v8 = vrot.slane %v8428_v61, 7  ;;  %v8703_v9 = vrot.slane %v8429_v62, 6 }
 0x3bf   : > { %v8432_v3 = vld [vmem:[%s12076_s19 + $0x1d7] sm:$0x1]  ;;  %v8433_v6 = vld [vmem:[%s12076_s19 + $0x1e7] sm:$0x1]  ;;  %8901 = vxpose.xlu1.b32.cont [3/16] (narrow) %v8700_v4, 8  ;;  %v8139_v10 = vsel %vm1456_vm3, %v8138_v54, %v8137_v5  ;;  %v8705_v11 = vrot.slane %v8430_v1, 5 }
 0x3c0   : > { %v8434_v7 = vld [vmem:[%s12076_s19 + $0x1f7] sm:$0x1]  ;;  %v8707_v12 = vrot.slane %v8431_v2, 4  ;;  %v8709_v13 = vrot.slane %v8432_v3, 3  ;;  %v7872_v14 = vld [vmem:[%s12076_s19 + $0x186] sm:$0x1]  ;;  %v8141_v15 = vsel %vm1459_vm4, %v8140_v55, %v8139_v10  ;;  %v8702_v16 = vsel %vm1447_vm0, %v8701_v8, %v8427_v56 }
 0x3c1   : > { %v8711_v17 = vrot.slane %v8433_v6, 2  ;;  %v8713_v18 = vrot.slane %v8434_v7, 1  ;;  %v7873_v19 = vld [vmem:[%s12076_s19 + $0x196] sm:$0x1]  ;;  %v7874_v20 = vld [vmem:[%s12076_s19 + $0x1a6] sm:$0x1]  ;;  %v8143_v21 = vsel %vm1462_vm5, %v8142_v59, %v8141_v15  ;;  %v8704_v22 = vsel %vm1450_vm1, %v8703_v9, %v8702_v16 }
 0x3c2   : > { %v7875_v23 = vld [vmem:[%s12076_s19 + $0x1b6] sm:$0x1]  ;;  %v7876_v24 = vld [vmem:[%s12076_s19 + $0x1c6] sm:$0x1]  ;;  %v8145_v26 = vsel %vm1465_vm6, %v8144_v60, %v8143_v21  ;;  %v8706_v27 = vsel %vm1453_vm2, %v8705_v11, %v8704_v22  ;;  %v8146_v30 = vrot.slane %v7873_v19, 7  ;;  %v8148_v31 = vrot.slane %v7874_v20, 6 }
 0x3c3   : > { %v7877_v25 = vld [vmem:[%s12076_s19 + $0x1d6] sm:$0x1]  ;;  %v7878_v28 = vld [vmem:[%s12076_s19 + $0x1e6] sm:$0x1]  ;;  %8346 = vxpose.xlu0.b32.cont [3/16] (narrow) %v8145_v26, 8  ;;  %v8708_v32 = vsel %vm1456_vm3, %v8707_v12, %v8706_v27  ;;  %v8150_v33 = vrot.slane %v7875_v23, 5 }
 0x3c4   : > { %v7879_v29 = vld [vmem:[%s12076_s19 + $0x1f6] sm:$0x1]  ;;  %v8152_v34 = vrot.slane %v7876_v24, 4  ;;  %v8154_v35 = vrot.slane %v7877_v25, 3  ;;  %v8435_v36 = vld [vmem:[%s12076_s19 + $0x207] sm:$0x1]  ;;  %v8710_v37 = vsel %vm1459_vm4, %v8709_v13, %v8708_v32  ;;  %v8147_v38 = vsel %vm1447_vm0, %v8146_v30, %v7872_v14 }
 0x3c5   : > { %v8156_v39 = vrot.slane %v7878_v28, 2  ;;  %v8158_v40 = vrot.slane %v7879_v29, 1  ;;  %v8436_v41 = vld [vmem:[%s12076_s19 + $0x217] sm:$0x1]  ;;  %v8437_v42 = vld [vmem:[%s12076_s19 + $0x227] sm:$0x1]  ;;  %v8712_v43 = vsel %vm1462_vm5, %v8711_v17, %v8710_v37  ;;  %v8149_v44 = vsel %vm1450_vm1, %v8148_v31, %v8147_v38 }
 0x3c6   : > { %v8438_v45 = vld [vmem:[%s12076_s19 + $0x237] sm:$0x1]  ;;  %v8439_v46 = vld [vmem:[%s12076_s19 + $0x247] sm:$0x1]  ;;  %v8714_v48 = vsel %vm1465_vm6, %v8713_v18, %v8712_v43  ;;  %v8151_v49 = vsel %vm1453_vm2, %v8150_v33, %v8149_v44  ;;  %v8715_v52 = vrot.slane %v8436_v41, 7  ;;  %v8717_v53 = vrot.slane %v8437_v42, 6 }
 0x3c7   : > { %v8440_v47 = vld [vmem:[%s12076_s19 + $0x257] sm:$0x1]  ;;  %v8441_v50 = vld [vmem:[%s12076_s19 + $0x267] sm:$0x1]  ;;  %8902 = vxpose.xlu1.b32.cont [4/16] (narrow) %v8714_v48, 8  ;;  %v8153_v54 = vsel %vm1456_vm3, %v8152_v34, %v8151_v49  ;;  %v8719_v55 = vrot.slane %v8438_v45, 5 }
 0x3c8   : > { %v8442_v51 = vld [vmem:[%s12076_s19 + $0x277] sm:$0x1]  ;;  %v8721_v56 = vrot.slane %v8439_v46, 4  ;;  %v8723_v57 = vrot.slane %v8440_v47, 3  ;;  %v7880_v58 = vld [vmem:[%s12076_s19 + $0x206] sm:$0x1]  ;;  %v8155_v59 = vsel %vm1459_vm4, %v8154_v35, %v8153_v54  ;;  %v8716_v60 = vsel %vm1447_vm0, %v8715_v52, %v8435_v36 }
 0x3c9   : > { %v8725_v61 = vrot.slane %v8441_v50, 2  ;;  %v8727_v62 = vrot.slane %v8442_v51, 1  ;;  %v7881_v63 = vld [vmem:[%s12076_s19 + $0x216] sm:$0x1]  ;;  %v7882_v0 = vld [vmem:[%s12076_s19 + $0x226] sm:$0x1]  ;;  %v8157_v1 = vsel %vm1462_vm5, %v8156_v39, %v8155_v59  ;;  %v8718_v2 = vsel %vm1450_vm1, %v8717_v53, %v8716_v60 }
 0x3ca   : > { %v7883_v3 = vld [vmem:[%s12076_s19 + $0x236] sm:$0x1]  ;;  %v7884_v4 = vld [vmem:[%s12076_s19 + $0x246] sm:$0x1]  ;;  %v8159_v6 = vsel %vm1465_vm6, %v8158_v40, %v8157_v1  ;;  %v8720_v7 = vsel %vm1453_vm2, %v8719_v55, %v8718_v2  ;;  %v8160_v10 = vrot.slane %v7881_v63, 7  ;;  %v8162_v11 = vrot.slane %v7882_v0, 6 }
 0x3cb   : > { %v7885_v5 = vld [vmem:[%s12076_s19 + $0x256] sm:$0x1]  ;;  %v7886_v8 = vld [vmem:[%s12076_s19 + $0x266] sm:$0x1]  ;;  %8347 = vxpose.xlu0.b32.cont [4/16] (narrow) %v8159_v6, 8  ;;  %v8722_v12 = vsel %vm1456_vm3, %v8721_v56, %v8720_v7  ;;  %v8164_v13 = vrot.slane %v7883_v3, 5 }
 0x3cc   : > { %v7887_v9 = vld [vmem:[%s12076_s19 + $0x276] sm:$0x1]  ;;  %v8166_v14 = vrot.slane %v7884_v4, 4  ;;  %v8168_v15 = vrot.slane %v7885_v5, 3  ;;  %v8443_v16 = vld [vmem:[%s12076_s19 + $0x287] sm:$0x1]  ;;  %v8724_v17 = vsel %vm1459_vm4, %v8723_v57, %v8722_v12  ;;  %v8161_v18 = vsel %vm1447_vm0, %v8160_v10, %v7880_v58 }
 0x3cd   : > { %v8170_v19 = vrot.slane %v7886_v8, 2  ;;  %v8172_v20 = vrot.slane %v7887_v9, 1  ;;  %v8444_v21 = vld [vmem:[%s12076_s19 + $0x297] sm:$0x1]  ;;  %v8445_v22 = vld [vmem:[%s12076_s19 + $0x2a7] sm:$0x1]  ;;  %v8726_v23 = vsel %vm1462_vm5, %v8725_v61, %v8724_v17  ;;  %v8163_v24 = vsel %vm1450_vm1, %v8162_v11, %v8161_v18 }
 0x3ce   : > { %v8446_v25 = vld [vmem:[%s12076_s19 + $0x2b7] sm:$0x1]  ;;  %v8447_v26 = vld [vmem:[%s12076_s19 + $0x2c7] sm:$0x1]  ;;  %v8728_v28 = vsel %vm1465_vm6, %v8727_v62, %v8726_v23  ;;  %v8165_v29 = vsel %vm1453_vm2, %v8164_v13, %v8163_v24  ;;  %v8729_v32 = vrot.slane %v8444_v21, 7  ;;  %v8731_v33 = vrot.slane %v8445_v22, 6 }
 0x3cf   : > { %v8448_v27 = vld [vmem:[%s12076_s19 + $0x2d7] sm:$0x1]  ;;  %v8449_v30 = vld [vmem:[%s12076_s19 + $0x2e7] sm:$0x1]  ;;  %8903 = vxpose.xlu1.b32.cont [5/16] (narrow) %v8728_v28, 8  ;;  %v8167_v34 = vsel %vm1456_vm3, %v8166_v14, %v8165_v29  ;;  %v8733_v35 = vrot.slane %v8446_v25, 5 }
 0x3d0   : > { %v8450_v31 = vld [vmem:[%s12076_s19 + $0x2f7] sm:$0x1]  ;;  %v8735_v36 = vrot.slane %v8447_v26, 4  ;;  %v8737_v37 = vrot.slane %v8448_v27, 3  ;;  %v7888_v38 = vld [vmem:[%s12076_s19 + $0x286] sm:$0x1]  ;;  %v8169_v39 = vsel %vm1459_vm4, %v8168_v15, %v8167_v34  ;;  %v8730_v40 = vsel %vm1447_vm0, %v8729_v32, %v8443_v16 }
 0x3d1   : > { %v8739_v41 = vrot.slane %v8449_v30, 2  ;;  %v8741_v42 = vrot.slane %v8450_v31, 1  ;;  %v7889_v43 = vld [vmem:[%s12076_s19 + $0x296] sm:$0x1]  ;;  %v7890_v44 = vld [vmem:[%s12076_s19 + $0x2a6] sm:$0x1]  ;;  %v8171_v45 = vsel %vm1462_vm5, %v8170_v19, %v8169_v39  ;;  %v8732_v46 = vsel %vm1450_vm1, %v8731_v33, %v8730_v40 }
 0x3d2   : > { %v7891_v47 = vld [vmem:[%s12076_s19 + $0x2b6] sm:$0x1]  ;;  %v7892_v48 = vld [vmem:[%s12076_s19 + $0x2c6] sm:$0x1]  ;;  %v8173_v50 = vsel %vm1465_vm6, %v8172_v20, %v8171_v45  ;;  %v8734_v51 = vsel %vm1453_vm2, %v8733_v35, %v8732_v46  ;;  %v8174_v54 = vrot.slane %v7889_v43, 7  ;;  %v8176_v55 = vrot.slane %v7890_v44, 6 }
 0x3d3   : > { %v7893_v49 = vld [vmem:[%s12076_s19 + $0x2d6] sm:$0x1]  ;;  %v7894_v52 = vld [vmem:[%s12076_s19 + $0x2e6] sm:$0x1]  ;;  %8348 = vxpose.xlu0.b32.cont [5/16] (narrow) %v8173_v50, 8  ;;  %v8736_v56 = vsel %vm1456_vm3, %v8735_v36, %v8734_v51  ;;  %v8178_v57 = vrot.slane %v7891_v47, 5 }
 0x3d4   : > { %v7895_v53 = vld [vmem:[%s12076_s19 + $0x2f6] sm:$0x1]  ;;  %v8180_v58 = vrot.slane %v7892_v48, 4  ;;  %v8182_v59 = vrot.slane %v7893_v49, 3  ;;  %v8451_v60 = vld [vmem:[%s12076_s19 + $0x307] sm:$0x1]  ;;  %v8738_v61 = vsel %vm1459_vm4, %v8737_v37, %v8736_v56  ;;  %v8175_v62 = vsel %vm1447_vm0, %v8174_v54, %v7888_v38 }
 0x3d5   : > { %v8184_v63 = vrot.slane %v7894_v52, 2  ;;  %v8186_v0 = vrot.slane %v7895_v53, 1  ;;  %v8452_v1 = vld [vmem:[%s12076_s19 + $0x317] sm:$0x1]  ;;  %v8453_v2 = vld [vmem:[%s12076_s19 + $0x327] sm:$0x1]  ;;  %v8740_v3 = vsel %vm1462_vm5, %v8739_v41, %v8738_v61  ;;  %v8177_v4 = vsel %vm1450_vm1, %v8176_v55, %v8175_v62 }
 0x3d6   : > { %v8454_v5 = vld [vmem:[%s12076_s19 + $0x337] sm:$0x1]  ;;  %v8455_v6 = vld [vmem:[%s12076_s19 + $0x347] sm:$0x1]  ;;  %v8742_v8 = vsel %vm1465_vm6, %v8741_v42, %v8740_v3  ;;  %v8179_v9 = vsel %vm1453_vm2, %v8178_v57, %v8177_v4  ;;  %v8743_v12 = vrot.slane %v8452_v1, 7  ;;  %v8745_v13 = vrot.slane %v8453_v2, 6 }
 0x3d7   : > { %v8456_v7 = vld [vmem:[%s12076_s19 + $0x357] sm:$0x1]  ;;  %v8457_v10 = vld [vmem:[%s12076_s19 + $0x367] sm:$0x1]  ;;  %8904 = vxpose.xlu1.b32.cont [6/16] (narrow) %v8742_v8, 8  ;;  %v8181_v14 = vsel %vm1456_vm3, %v8180_v58, %v8179_v9  ;;  %v8747_v15 = vrot.slane %v8454_v5, 5 }
 0x3d8   : > { %v8458_v11 = vld [vmem:[%s12076_s19 + $0x377] sm:$0x1]  ;;  %v8749_v16 = vrot.slane %v8455_v6, 4  ;;  %v8751_v17 = vrot.slane %v8456_v7, 3  ;;  %v7896_v18 = vld [vmem:[%s12076_s19 + $0x306] sm:$0x1]  ;;  %v8183_v19 = vsel %vm1459_vm4, %v8182_v59, %v8181_v14  ;;  %v8744_v20 = vsel %vm1447_vm0, %v8743_v12, %v8451_v60 }
 0x3d9   : > { %v8753_v21 = vrot.slane %v8457_v10, 2  ;;  %v8755_v22 = vrot.slane %v8458_v11, 1  ;;  %v7897_v23 = vld [vmem:[%s12076_s19 + $0x316] sm:$0x1]  ;;  %v7898_v24 = vld [vmem:[%s12076_s19 + $0x326] sm:$0x1]  ;;  %v8185_v25 = vsel %vm1462_vm5, %v8184_v63, %v8183_v19  ;;  %v8746_v26 = vsel %vm1450_vm1, %v8745_v13, %v8744_v20 }
 0x3da   : > { %v7899_v27 = vld [vmem:[%s12076_s19 + $0x336] sm:$0x1]  ;;  %v7900_v28 = vld [vmem:[%s12076_s19 + $0x346] sm:$0x1]  ;;  %v8187_v30 = vsel %vm1465_vm6, %v8186_v0, %v8185_v25  ;;  %v8748_v31 = vsel %vm1453_vm2, %v8747_v15, %v8746_v26  ;;  %v8188_v34 = vrot.slane %v7897_v23, 7  ;;  %v8190_v35 = vrot.slane %v7898_v24, 6 }
 0x3db   : > { %v7901_v29 = vld [vmem:[%s12076_s19 + $0x356] sm:$0x1]  ;;  %v7902_v32 = vld [vmem:[%s12076_s19 + $0x366] sm:$0x1]  ;;  %8349 = vxpose.xlu0.b32.cont [6/16] (narrow) %v8187_v30, 8  ;;  %v8750_v36 = vsel %vm1456_vm3, %v8749_v16, %v8748_v31  ;;  %v8192_v37 = vrot.slane %v7899_v27, 5 }
 0x3dc   : > { %v7903_v33 = vld [vmem:[%s12076_s19 + $0x376] sm:$0x1]  ;;  %v8194_v38 = vrot.slane %v7900_v28, 4  ;;  %v8196_v39 = vrot.slane %v7901_v29, 3  ;;  %v8459_v40 = vld [vmem:[%s12076_s19 + $0x387] sm:$0x1]  ;;  %v8752_v41 = vsel %vm1459_vm4, %v8751_v17, %v8750_v36  ;;  %v8189_v42 = vsel %vm1447_vm0, %v8188_v34, %v7896_v18 }
 0x3dd   : > { %v8198_v43 = vrot.slane %v7902_v32, 2  ;;  %v8200_v44 = vrot.slane %v7903_v33, 1  ;;  %v8460_v45 = vld [vmem:[%s12076_s19 + $0x397] sm:$0x1]  ;;  %v8461_v46 = vld [vmem:[%s12076_s19 + $0x3a7] sm:$0x1]  ;;  %v8754_v47 = vsel %vm1462_vm5, %v8753_v21, %v8752_v41  ;;  %v8191_v48 = vsel %vm1450_vm1, %v8190_v35, %v8189_v42 }
 0x3de   : > { %v8462_v49 = vld [vmem:[%s12076_s19 + $0x3b7] sm:$0x1]  ;;  %v8463_v50 = vld [vmem:[%s12076_s19 + $0x3c7] sm:$0x1]  ;;  %v8756_v52 = vsel %vm1465_vm6, %v8755_v22, %v8754_v47  ;;  %v8193_v53 = vsel %vm1453_vm2, %v8192_v37, %v8191_v48  ;;  %v8757_v56 = vrot.slane %v8460_v45, 7  ;;  %v8759_v57 = vrot.slane %v8461_v46, 6 }
 0x3df   : > { %v8464_v51 = vld [vmem:[%s12076_s19 + $0x3d7] sm:$0x1]  ;;  %v8465_v54 = vld [vmem:[%s12076_s19 + $0x3e7] sm:$0x1]  ;;  %8905 = vxpose.xlu1.b32.cont [7/16] (narrow) %v8756_v52, 8  ;;  %v8195_v58 = vsel %vm1456_vm3, %v8194_v38, %v8193_v53  ;;  %v8761_v59 = vrot.slane %v8462_v49, 5 }
 0x3e0   : > { %v8466_v55 = vld [vmem:[%s12076_s19 + $0x3f7] sm:$0x1]  ;;  %v8763_v60 = vrot.slane %v8463_v50, 4  ;;  %v8765_v61 = vrot.slane %v8464_v51, 3  ;;  %v7904_v62 = vld [vmem:[%s12076_s19 + $0x386] sm:$0x1]  ;;  %v8197_v63 = vsel %vm1459_vm4, %v8196_v39, %v8195_v58  ;;  %v8758_v0 = vsel %vm1447_vm0, %v8757_v56, %v8459_v40 }
 0x3e1   : > { %v8767_v1 = vrot.slane %v8465_v54, 2  ;;  %v8769_v2 = vrot.slane %v8466_v55, 1  ;;  %v7905_v3 = vld [vmem:[%s12076_s19 + $0x396] sm:$0x1]  ;;  %v7906_v4 = vld [vmem:[%s12076_s19 + $0x3a6] sm:$0x1]  ;;  %v8199_v5 = vsel %vm1462_vm5, %v8198_v43, %v8197_v63  ;;  %v8760_v6 = vsel %vm1450_vm1, %v8759_v57, %v8758_v0 }
 0x3e2   : > { %v7907_v7 = vld [vmem:[%s12076_s19 + $0x3b6] sm:$0x1]  ;;  %v7908_v8 = vld [vmem:[%s12076_s19 + $0x3c6] sm:$0x1]  ;;  %v8201_v10 = vsel %vm1465_vm6, %v8200_v44, %v8199_v5  ;;  %v8762_v11 = vsel %vm1453_vm2, %v8761_v59, %v8760_v6  ;;  %v8202_v14 = vrot.slane %v7905_v3, 7  ;;  %v8204_v15 = vrot.slane %v7906_v4, 6 }
 0x3e3   : > { %v7909_v9 = vld [vmem:[%s12076_s19 + $0x3d6] sm:$0x1]  ;;  %v7910_v12 = vld [vmem:[%s12076_s19 + $0x3e6] sm:$0x1]  ;;  %8350 = vxpose.xlu0.b32.cont [7/16] (narrow) %v8201_v10, 8  ;;  %v8764_v16 = vsel %vm1456_vm3, %v8763_v60, %v8762_v11  ;;  %v8206_v17 = vrot.slane %v7907_v7, 5 }
 0x3e4   : > { %v7911_v13 = vld [vmem:[%s12076_s19 + $0x3f6] sm:$0x1]  ;;  %v8208_v18 = vrot.slane %v7908_v8, 4  ;;  %v8210_v19 = vrot.slane %v7909_v9, 3  ;;  %v8467_v20 = vld [vmem:[%s12076_s19 + $0x407] sm:$0x1]  ;;  %v8766_v21 = vsel %vm1459_vm4, %v8765_v61, %v8764_v16  ;;  %v8203_v22 = vsel %vm1447_vm0, %v8202_v14, %v7904_v62 }
 0x3e5   : > { %v8212_v23 = vrot.slane %v7910_v12, 2  ;;  %v8214_v24 = vrot.slane %v7911_v13, 1  ;;  %v8468_v25 = vld [vmem:[%s12076_s19 + $0x417] sm:$0x1]  ;;  %v8469_v26 = vld [vmem:[%s12076_s19 + $0x427] sm:$0x1]  ;;  %v8768_v27 = vsel %vm1462_vm5, %v8767_v1, %v8766_v21  ;;  %v8205_v28 = vsel %vm1450_vm1, %v8204_v15, %v8203_v22 }
 0x3e6   : > { %v8470_v29 = vld [vmem:[%s12076_s19 + $0x437] sm:$0x1]  ;;  %v8471_v30 = vld [vmem:[%s12076_s19 + $0x447] sm:$0x1]  ;;  %v8770_v32 = vsel %vm1465_vm6, %v8769_v2, %v8768_v27  ;;  %v8207_v33 = vsel %vm1453_vm2, %v8206_v17, %v8205_v28  ;;  %v8771_v36 = vrot.slane %v8468_v25, 7  ;;  %v8773_v37 = vrot.slane %v8469_v26, 6 }
 0x3e7   : > { %v8472_v31 = vld [vmem:[%s12076_s19 + $0x457] sm:$0x1]  ;;  %v8473_v34 = vld [vmem:[%s12076_s19 + $0x467] sm:$0x1]  ;;  %8906 = vxpose.xlu1.b32.cont [8/16] (narrow) %v8770_v32, 8  ;;  %v8209_v38 = vsel %vm1456_vm3, %v8208_v18, %v8207_v33  ;;  %v8775_v39 = vrot.slane %v8470_v29, 5 }
 0x3e8   : > { %v8474_v35 = vld [vmem:[%s12076_s19 + $0x477] sm:$0x1]  ;;  %v8777_v40 = vrot.slane %v8471_v30, 4  ;;  %v8779_v41 = vrot.slane %v8472_v31, 3  ;;  %v7912_v42 = vld [vmem:[%s12076_s19 + $0x406] sm:$0x1]  ;;  %v8211_v43 = vsel %vm1459_vm4, %v8210_v19, %v8209_v38  ;;  %v8772_v44 = vsel %vm1447_vm0, %v8771_v36, %v8467_v20 }
 0x3e9   : > { %v8781_v45 = vrot.slane %v8473_v34, 2  ;;  %v8783_v46 = vrot.slane %v8474_v35, 1  ;;  %v7913_v47 = vld [vmem:[%s12076_s19 + $0x416] sm:$0x1]  ;;  %v7914_v48 = vld [vmem:[%s12076_s19 + $0x426] sm:$0x1]  ;;  %v8213_v49 = vsel %vm1462_vm5, %v8212_v23, %v8211_v43  ;;  %v8774_v50 = vsel %vm1450_vm1, %v8773_v37, %v8772_v44 }
 0x3ea   : > { %v7915_v51 = vld [vmem:[%s12076_s19 + $0x436] sm:$0x1]  ;;  %v7916_v52 = vld [vmem:[%s12076_s19 + $0x446] sm:$0x1]  ;;  %v8215_v54 = vsel %vm1465_vm6, %v8214_v24, %v8213_v49  ;;  %v8776_v55 = vsel %vm1453_vm2, %v8775_v39, %v8774_v50  ;;  %v8216_v58 = vrot.slane %v7913_v47, 7  ;;  %v8218_v59 = vrot.slane %v7914_v48, 6 }
 0x3eb   : > { %v7917_v53 = vld [vmem:[%s12076_s19 + $0x456] sm:$0x1]  ;;  %v7918_v56 = vld [vmem:[%s12076_s19 + $0x466] sm:$0x1]  ;;  %8351 = vxpose.xlu0.b32.cont [8/16] (narrow) %v8215_v54, 8  ;;  %v8778_v60 = vsel %vm1456_vm3, %v8777_v40, %v8776_v55  ;;  %v8220_v61 = vrot.slane %v7915_v51, 5 }
 0x3ec   : > { %v7919_v57 = vld [vmem:[%s12076_s19 + $0x476] sm:$0x1]  ;;  %v8222_v62 = vrot.slane %v7916_v52, 4  ;;  %v8224_v63 = vrot.slane %v7917_v53, 3  ;;  %v8475_v0 = vld [vmem:[%s12076_s19 + $0x487] sm:$0x1]  ;;  %v8780_v1 = vsel %vm1459_vm4, %v8779_v41, %v8778_v60  ;;  %v8217_v2 = vsel %vm1447_vm0, %v8216_v58, %v7912_v42 }
 0x3ed   : > { %v8226_v3 = vrot.slane %v7918_v56, 2  ;;  %v8228_v4 = vrot.slane %v7919_v57, 1  ;;  %v8476_v5 = vld [vmem:[%s12076_s19 + $0x497] sm:$0x1]  ;;  %v8477_v6 = vld [vmem:[%s12076_s19 + $0x4a7] sm:$0x1]  ;;  %v8782_v7 = vsel %vm1462_vm5, %v8781_v45, %v8780_v1  ;;  %v8219_v8 = vsel %vm1450_vm1, %v8218_v59, %v8217_v2 }
 0x3ee   : > { %v8478_v9 = vld [vmem:[%s12076_s19 + $0x4b7] sm:$0x1]  ;;  %v8479_v10 = vld [vmem:[%s12076_s19 + $0x4c7] sm:$0x1]  ;;  %v8784_v12 = vsel %vm1465_vm6, %v8783_v46, %v8782_v7  ;;  %v8221_v13 = vsel %vm1453_vm2, %v8220_v61, %v8219_v8  ;;  %v8785_v16 = vrot.slane %v8476_v5, 7  ;;  %v8787_v17 = vrot.slane %v8477_v6, 6 }
 0x3ef   : > { %v8480_v11 = vld [vmem:[%s12076_s19 + $0x4d7] sm:$0x1]  ;;  %v8481_v14 = vld [vmem:[%s12076_s19 + $0x4e7] sm:$0x1]  ;;  %8907 = vxpose.xlu1.b32.cont [9/16] (narrow) %v8784_v12, 8  ;;  %v8223_v18 = vsel %vm1456_vm3, %v8222_v62, %v8221_v13  ;;  %v8789_v19 = vrot.slane %v8478_v9, 5 }
 0x3f0   : > { %v8482_v15 = vld [vmem:[%s12076_s19 + $0x4f7] sm:$0x1]  ;;  %v8791_v20 = vrot.slane %v8479_v10, 4  ;;  %v8793_v21 = vrot.slane %v8480_v11, 3  ;;  %v7920_v22 = vld [vmem:[%s12076_s19 + $0x486] sm:$0x1]  ;;  %v8225_v23 = vsel %vm1459_vm4, %v8224_v63, %v8223_v18  ;;  %v8786_v24 = vsel %vm1447_vm0, %v8785_v16, %v8475_v0 }
 0x3f1   : > { %v8795_v25 = vrot.slane %v8481_v14, 2  ;;  %v8797_v26 = vrot.slane %v8482_v15, 1  ;;  %v7921_v27 = vld [vmem:[%s12076_s19 + $0x496] sm:$0x1]  ;;  %v7922_v28 = vld [vmem:[%s12076_s19 + $0x4a6] sm:$0x1]  ;;  %v8227_v29 = vsel %vm1462_vm5, %v8226_v3, %v8225_v23  ;;  %v8788_v30 = vsel %vm1450_vm1, %v8787_v17, %v8786_v24 }
 0x3f2   : > { %v7923_v31 = vld [vmem:[%s12076_s19 + $0x4b6] sm:$0x1]  ;;  %v7924_v32 = vld [vmem:[%s12076_s19 + $0x4c6] sm:$0x1]  ;;  %v8229_v34 = vsel %vm1465_vm6, %v8228_v4, %v8227_v29  ;;  %v8790_v35 = vsel %vm1453_vm2, %v8789_v19, %v8788_v30  ;;  %v8230_v38 = vrot.slane %v7921_v27, 7  ;;  %v8232_v39 = vrot.slane %v7922_v28, 6 }
 0x3f3   : > { %v7925_v33 = vld [vmem:[%s12076_s19 + $0x4d6] sm:$0x1]  ;;  %v7926_v36 = vld [vmem:[%s12076_s19 + $0x4e6] sm:$0x1]  ;;  %8352 = vxpose.xlu0.b32.cont [9/16] (narrow) %v8229_v34, 8  ;;  %v8792_v40 = vsel %vm1456_vm3, %v8791_v20, %v8790_v35  ;;  %v8234_v41 = vrot.slane %v7923_v31, 5 }
 0x3f4   : > { %v7927_v37 = vld [vmem:[%s12076_s19 + $0x4f6] sm:$0x1]  ;;  %v8236_v42 = vrot.slane %v7924_v32, 4  ;;  %v8238_v43 = vrot.slane %v7925_v33, 3  ;;  %v8483_v44 = vld [vmem:[%s12076_s19 + $0x507] sm:$0x1]  ;;  %v8794_v45 = vsel %vm1459_vm4, %v8793_v21, %v8792_v40  ;;  %v8231_v46 = vsel %vm1447_vm0, %v8230_v38, %v7920_v22 }
 0x3f5   : > { %v8240_v47 = vrot.slane %v7926_v36, 2  ;;  %v8242_v48 = vrot.slane %v7927_v37, 1  ;;  %v8484_v49 = vld [vmem:[%s12076_s19 + $0x517] sm:$0x1]  ;;  %v8485_v50 = vld [vmem:[%s12076_s19 + $0x527] sm:$0x1]  ;;  %v8796_v51 = vsel %vm1462_vm5, %v8795_v25, %v8794_v45  ;;  %v8233_v52 = vsel %vm1450_vm1, %v8232_v39, %v8231_v46 }
 0x3f6   : > { %v8486_v53 = vld [vmem:[%s12076_s19 + $0x537] sm:$0x1]  ;;  %v8487_v54 = vld [vmem:[%s12076_s19 + $0x547] sm:$0x1]  ;;  %v8798_v56 = vsel %vm1465_vm6, %v8797_v26, %v8796_v51  ;;  %v8235_v57 = vsel %vm1453_vm2, %v8234_v41, %v8233_v52  ;;  %v8799_v60 = vrot.slane %v8484_v49, 7  ;;  %v8801_v61 = vrot.slane %v8485_v50, 6 }
 0x3f7   : > { %v8488_v55 = vld [vmem:[%s12076_s19 + $0x557] sm:$0x1]  ;;  %v8489_v58 = vld [vmem:[%s12076_s19 + $0x567] sm:$0x1]  ;;  %8908 = vxpose.xlu1.b32.cont [10/16] (narrow) %v8798_v56, 8  ;;  %v8237_v62 = vsel %vm1456_vm3, %v8236_v42, %v8235_v57  ;;  %v8803_v63 = vrot.slane %v8486_v53, 5 }
 0x3f8   : > { %v8490_v59 = vld [vmem:[%s12076_s19 + $0x577] sm:$0x1]  ;;  %v8805_v0 = vrot.slane %v8487_v54, 4  ;;  %v8807_v1 = vrot.slane %v8488_v55, 3  ;;  %v7928_v2 = vld [vmem:[%s12076_s19 + $0x506] sm:$0x1]  ;;  %v8239_v3 = vsel %vm1459_vm4, %v8238_v43, %v8237_v62  ;;  %v8800_v4 = vsel %vm1447_vm0, %v8799_v60, %v8483_v44 }
 0x3f9   : > { %v8809_v5 = vrot.slane %v8489_v58, 2  ;;  %v8811_v6 = vrot.slane %v8490_v59, 1  ;;  %v7929_v7 = vld [vmem:[%s12076_s19 + $0x516] sm:$0x1]  ;;  %v7930_v8 = vld [vmem:[%s12076_s19 + $0x526] sm:$0x1]  ;;  %v8241_v9 = vsel %vm1462_vm5, %v8240_v47, %v8239_v3  ;;  %v8802_v10 = vsel %vm1450_vm1, %v8801_v61, %v8800_v4 }
 0x3fa   : > { %v7931_v11 = vld [vmem:[%s12076_s19 + $0x536] sm:$0x1]  ;;  %v7932_v12 = vld [vmem:[%s12076_s19 + $0x546] sm:$0x1]  ;;  %v8243_v14 = vsel %vm1465_vm6, %v8242_v48, %v8241_v9  ;;  %v8804_v15 = vsel %vm1453_vm2, %v8803_v63, %v8802_v10  ;;  %v8244_v18 = vrot.slane %v7929_v7, 7  ;;  %v8246_v19 = vrot.slane %v7930_v8, 6 }
 0x3fb   : > { %v7933_v13 = vld [vmem:[%s12076_s19 + $0x556] sm:$0x1]  ;;  %v7934_v16 = vld [vmem:[%s12076_s19 + $0x566] sm:$0x1]  ;;  %8353 = vxpose.xlu0.b32.cont [10/16] (narrow) %v8243_v14, 8  ;;  %v8806_v20 = vsel %vm1456_vm3, %v8805_v0, %v8804_v15  ;;  %v8248_v21 = vrot.slane %v7931_v11, 5 }
 0x3fc   : > { %v7935_v17 = vld [vmem:[%s12076_s19 + $0x576] sm:$0x1]  ;;  %v8250_v22 = vrot.slane %v7932_v12, 4  ;;  %v8252_v23 = vrot.slane %v7933_v13, 3  ;;  %v8491_v24 = vld [vmem:[%s12076_s19 + $0x587] sm:$0x1]  ;;  %v8808_v25 = vsel %vm1459_vm4, %v8807_v1, %v8806_v20  ;;  %v8245_v26 = vsel %vm1447_vm0, %v8244_v18, %v7928_v2 }
 0x3fd   : > { %v8254_v27 = vrot.slane %v7934_v16, 2  ;;  %v8256_v28 = vrot.slane %v7935_v17, 1  ;;  %v8492_v29 = vld [vmem:[%s12076_s19 + $0x597] sm:$0x1]  ;;  %v8493_v30 = vld [vmem:[%s12076_s19 + $0x5a7] sm:$0x1]  ;;  %v8810_v31 = vsel %vm1462_vm5, %v8809_v5, %v8808_v25  ;;  %v8247_v32 = vsel %vm1450_vm1, %v8246_v19, %v8245_v26 }
 0x3fe   : > { %v8494_v33 = vld [vmem:[%s12076_s19 + $0x5b7] sm:$0x1]  ;;  %v8495_v34 = vld [vmem:[%s12076_s19 + $0x5c7] sm:$0x1]  ;;  %v8812_v36 = vsel %vm1465_vm6, %v8811_v6, %v8810_v31  ;;  %v8249_v37 = vsel %vm1453_vm2, %v8248_v21, %v8247_v32  ;;  %v8813_v40 = vrot.slane %v8492_v29, 7  ;;  %v8815_v41 = vrot.slane %v8493_v30, 6 }
 0x3ff   : > { %v8496_v35 = vld [vmem:[%s12076_s19 + $0x5d7] sm:$0x1]  ;;  %v8497_v38 = vld [vmem:[%s12076_s19 + $0x5e7] sm:$0x1]  ;;  %8909 = vxpose.xlu1.b32.cont [11/16] (narrow) %v8812_v36, 8  ;;  %v8251_v42 = vsel %vm1456_vm3, %v8250_v22, %v8249_v37  ;;  %v8817_v43 = vrot.slane %v8494_v33, 5 }
 0x400   : > { %v8498_v39 = vld [vmem:[%s12076_s19 + $0x5f7] sm:$0x1]  ;;  %v8819_v44 = vrot.slane %v8495_v34, 4  ;;  %v8821_v45 = vrot.slane %v8496_v35, 3  ;;  %v7936_v46 = vld [vmem:[%s12076_s19 + $0x586] sm:$0x1]  ;;  %v8253_v47 = vsel %vm1459_vm4, %v8252_v23, %v8251_v42  ;;  %v8814_v48 = vsel %vm1447_vm0, %v8813_v40, %v8491_v24 }
 0x401   : > { %v8823_v49 = vrot.slane %v8497_v38, 2  ;;  %v8825_v50 = vrot.slane %v8498_v39, 1  ;;  %v7937_v51 = vld [vmem:[%s12076_s19 + $0x596] sm:$0x1]  ;;  %v7938_v52 = vld [vmem:[%s12076_s19 + $0x5a6] sm:$0x1]  ;;  %v8255_v53 = vsel %vm1462_vm5, %v8254_v27, %v8253_v47  ;;  %v8816_v54 = vsel %vm1450_vm1, %v8815_v41, %v8814_v48 }
 0x402   : > { %v7939_v55 = vld [vmem:[%s12076_s19 + $0x5b6] sm:$0x1]  ;;  %v7940_v56 = vld [vmem:[%s12076_s19 + $0x5c6] sm:$0x1]  ;;  %v8257_v58 = vsel %vm1465_vm6, %v8256_v28, %v8255_v53  ;;  %v8818_v59 = vsel %vm1453_vm2, %v8817_v43, %v8816_v54  ;;  %v8258_v62 = vrot.slane %v7937_v51, 7  ;;  %v8260_v63 = vrot.slane %v7938_v52, 6 }
 0x403   : > { %v7941_v57 = vld [vmem:[%s12076_s19 + $0x5d6] sm:$0x1]  ;;  %v7942_v60 = vld [vmem:[%s12076_s19 + $0x5e6] sm:$0x1]  ;;  %8354 = vxpose.xlu0.b32.cont [11/16] (narrow) %v8257_v58, 8  ;;  %v8820_v0 = vsel %vm1456_vm3, %v8819_v44, %v8818_v59  ;;  %v8262_v1 = vrot.slane %v7939_v55, 5 }
 0x404   : > { %v7943_v61 = vld [vmem:[%s12076_s19 + $0x5f6] sm:$0x1]  ;;  %v8264_v2 = vrot.slane %v7940_v56, 4  ;;  %v8266_v3 = vrot.slane %v7941_v57, 3  ;;  %v8499_v4 = vld [vmem:[%s12076_s19 + $0x607] sm:$0x1]  ;;  %v8822_v5 = vsel %vm1459_vm4, %v8821_v45, %v8820_v0  ;;  %v8259_v6 = vsel %vm1447_vm0, %v8258_v62, %v7936_v46 }
 0x405   : > { %v8268_v7 = vrot.slane %v7942_v60, 2  ;;  %v8270_v8 = vrot.slane %v7943_v61, 1  ;;  %v8500_v9 = vld [vmem:[%s12076_s19 + $0x617] sm:$0x1]  ;;  %v8501_v10 = vld [vmem:[%s12076_s19 + $0x627] sm:$0x1]  ;;  %v8824_v11 = vsel %vm1462_vm5, %v8823_v49, %v8822_v5  ;;  %v8261_v12 = vsel %vm1450_vm1, %v8260_v63, %v8259_v6 }
 0x406   : > { %v8502_v13 = vld [vmem:[%s12076_s19 + $0x637] sm:$0x1]  ;;  %v8503_v14 = vld [vmem:[%s12076_s19 + $0x647] sm:$0x1]  ;;  %v8826_v16 = vsel %vm1465_vm6, %v8825_v50, %v8824_v11  ;;  %v8263_v17 = vsel %vm1453_vm2, %v8262_v1, %v8261_v12  ;;  %v8827_v20 = vrot.slane %v8500_v9, 7  ;;  %v8829_v21 = vrot.slane %v8501_v10, 6 }
 0x407   : > { %v8504_v15 = vld [vmem:[%s12076_s19 + $0x657] sm:$0x1]  ;;  %v8505_v18 = vld [vmem:[%s12076_s19 + $0x667] sm:$0x1]  ;;  %8910 = vxpose.xlu1.b32.cont [12/16] (narrow) %v8826_v16, 8  ;;  %v8265_v22 = vsel %vm1456_vm3, %v8264_v2, %v8263_v17  ;;  %v8831_v23 = vrot.slane %v8502_v13, 5 }
 0x408   : > { %v8506_v19 = vld [vmem:[%s12076_s19 + $0x677] sm:$0x1]  ;;  %v8833_v24 = vrot.slane %v8503_v14, 4  ;;  %v8835_v25 = vrot.slane %v8504_v15, 3  ;;  %v7944_v26 = vld [vmem:[%s12076_s19 + $0x606] sm:$0x1]  ;;  %v8267_v27 = vsel %vm1459_vm4, %v8266_v3, %v8265_v22  ;;  %v8828_v28 = vsel %vm1447_vm0, %v8827_v20, %v8499_v4 }
 0x409   : > { %v8837_v29 = vrot.slane %v8505_v18, 2  ;;  %v8839_v30 = vrot.slane %v8506_v19, 1  ;;  %v7945_v31 = vld [vmem:[%s12076_s19 + $0x616] sm:$0x1]  ;;  %v7946_v32 = vld [vmem:[%s12076_s19 + $0x626] sm:$0x1]  ;;  %v8269_v33 = vsel %vm1462_vm5, %v8268_v7, %v8267_v27  ;;  %v8830_v34 = vsel %vm1450_vm1, %v8829_v21, %v8828_v28 }
 0x40a   : > { %v7947_v35 = vld [vmem:[%s12076_s19 + $0x636] sm:$0x1]  ;;  %v7948_v36 = vld [vmem:[%s12076_s19 + $0x646] sm:$0x1]  ;;  %v8271_v38 = vsel %vm1465_vm6, %v8270_v8, %v8269_v33  ;;  %v8832_v39 = vsel %vm1453_vm2, %v8831_v23, %v8830_v34  ;;  %v8272_v42 = vrot.slane %v7945_v31, 7  ;;  %v8274_v43 = vrot.slane %v7946_v32, 6 }
 0x40b   : > { %v7949_v37 = vld [vmem:[%s12076_s19 + $0x656] sm:$0x1]  ;;  %v7950_v40 = vld [vmem:[%s12076_s19 + $0x666] sm:$0x1]  ;;  %8355 = vxpose.xlu0.b32.cont [12/16] (narrow) %v8271_v38, 8  ;;  %v8834_v44 = vsel %vm1456_vm3, %v8833_v24, %v8832_v39  ;;  %v8276_v45 = vrot.slane %v7947_v35, 5 }
 0x40c   : > { %v7951_v41 = vld [vmem:[%s12076_s19 + $0x676] sm:$0x1]  ;;  %v8278_v46 = vrot.slane %v7948_v36, 4  ;;  %v8280_v47 = vrot.slane %v7949_v37, 3  ;;  %v8507_v48 = vld [vmem:[%s12076_s19 + $0x687] sm:$0x1]  ;;  %v8836_v49 = vsel %vm1459_vm4, %v8835_v25, %v8834_v44  ;;  %v8273_v50 = vsel %vm1447_vm0, %v8272_v42, %v7944_v26 }
 0x40d   : > { %v8282_v51 = vrot.slane %v7950_v40, 2  ;;  %v8284_v52 = vrot.slane %v7951_v41, 1  ;;  %v8508_v53 = vld [vmem:[%s12076_s19 + $0x697] sm:$0x1]  ;;  %v8509_v54 = vld [vmem:[%s12076_s19 + $0x6a7] sm:$0x1]  ;;  %v8838_v55 = vsel %vm1462_vm5, %v8837_v29, %v8836_v49  ;;  %v8275_v56 = vsel %vm1450_vm1, %v8274_v43, %v8273_v50 }
 0x40e   : > { %v8510_v57 = vld [vmem:[%s12076_s19 + $0x6b7] sm:$0x1]  ;;  %v8511_v58 = vld [vmem:[%s12076_s19 + $0x6c7] sm:$0x1]  ;;  %v8840_v60 = vsel %vm1465_vm6, %v8839_v30, %v8838_v55  ;;  %v8277_v61 = vsel %vm1453_vm2, %v8276_v45, %v8275_v56  ;;  %v8841_v0 = vrot.slane %v8508_v53, 7  ;;  %v8843_v1 = vrot.slane %v8509_v54, 6 }
 0x40f   : > { %v8512_v59 = vld [vmem:[%s12076_s19 + $0x6d7] sm:$0x1]  ;;  %v8513_v62 = vld [vmem:[%s12076_s19 + $0x6e7] sm:$0x1]  ;;  %8911 = vxpose.xlu1.b32.cont [13/16] (narrow) %v8840_v60, 8  ;;  %v8279_v2 = vsel %vm1456_vm3, %v8278_v46, %v8277_v61  ;;  %v8845_v3 = vrot.slane %v8510_v57, 5 }
 0x410   : > { %v8514_v63 = vld [vmem:[%s12076_s19 + $0x6f7] sm:$0x1]  ;;  %v8847_v4 = vrot.slane %v8511_v58, 4  ;;  %v8849_v5 = vrot.slane %v8512_v59, 3  ;;  %v7952_v6 = vld [vmem:[%s12076_s19 + $0x686] sm:$0x1]  ;;  %v8281_v7 = vsel %vm1459_vm4, %v8280_v47, %v8279_v2  ;;  %v8842_v8 = vsel %vm1447_vm0, %v8841_v0, %v8507_v48 }
 0x411   : > { %v8851_v9 = vrot.slane %v8513_v62, 2  ;;  %v8853_v10 = vrot.slane %v8514_v63, 1  ;;  %v7953_v11 = vld [vmem:[%s12076_s19 + $0x696] sm:$0x1]  ;;  %v7954_v12 = vld [vmem:[%s12076_s19 + $0x6a6] sm:$0x1]  ;;  %v8283_v13 = vsel %vm1462_vm5, %v8282_v51, %v8281_v7  ;;  %v8844_v14 = vsel %vm1450_vm1, %v8843_v1, %v8842_v8 }
 0x412   : > { %v7955_v15 = vld [vmem:[%s12076_s19 + $0x6b6] sm:$0x1]  ;;  %v7956_v16 = vld [vmem:[%s12076_s19 + $0x6c6] sm:$0x1]  ;;  %v8285_v18 = vsel %vm1465_vm6, %v8284_v52, %v8283_v13  ;;  %v8846_v19 = vsel %vm1453_vm2, %v8845_v3, %v8844_v14  ;;  %v8286_v22 = vrot.slane %v7953_v11, 7  ;;  %v8288_v23 = vrot.slane %v7954_v12, 6 }
 0x413   : > { %v7957_v17 = vld [vmem:[%s12076_s19 + $0x6d6] sm:$0x1]  ;;  %v7958_v20 = vld [vmem:[%s12076_s19 + $0x6e6] sm:$0x1]  ;;  %8356 = vxpose.xlu0.b32.cont [13/16] (narrow) %v8285_v18, 8  ;;  %v8848_v24 = vsel %vm1456_vm3, %v8847_v4, %v8846_v19  ;;  %v8290_v25 = vrot.slane %v7955_v15, 5 }
 0x414   : > { %v7959_v21 = vld [vmem:[%s12076_s19 + $0x6f6] sm:$0x1]  ;;  %v8292_v26 = vrot.slane %v7956_v16, 4  ;;  %v8294_v27 = vrot.slane %v7957_v17, 3  ;;  %v8515_v28 = vld [vmem:[%s12076_s19 + $0x707] sm:$0x1]  ;;  %v8850_v29 = vsel %vm1459_vm4, %v8849_v5, %v8848_v24  ;;  %v8287_v30 = vsel %vm1447_vm0, %v8286_v22, %v7952_v6 }
 0x415   : > { %v8296_v31 = vrot.slane %v7958_v20, 2  ;;  %v8298_v32 = vrot.slane %v7959_v21, 1  ;;  %v8516_v33 = vld [vmem:[%s12076_s19 + $0x717] sm:$0x1]  ;;  %v8517_v34 = vld [vmem:[%s12076_s19 + $0x727] sm:$0x1]  ;;  %v8852_v35 = vsel %vm1462_vm5, %v8851_v9, %v8850_v29  ;;  %v8289_v36 = vsel %vm1450_vm1, %v8288_v23, %v8287_v30 }
 0x416   : > { %v8518_v37 = vld [vmem:[%s12076_s19 + $0x737] sm:$0x1]  ;;  %v8519_v38 = vld [vmem:[%s12076_s19 + $0x747] sm:$0x1]  ;;  %v8854_v40 = vsel %vm1465_vm6, %v8853_v10, %v8852_v35  ;;  %v8291_v41 = vsel %vm1453_vm2, %v8290_v25, %v8289_v36  ;;  %v8855_v44 = vrot.slane %v8516_v33, 7  ;;  %v8857_v45 = vrot.slane %v8517_v34, 6 }
 0x417   : > { %v8520_v39 = vld [vmem:[%s12076_s19 + $0x757] sm:$0x1]  ;;  %v8521_v42 = vld [vmem:[%s12076_s19 + $0x767] sm:$0x1]  ;;  %8912 = vxpose.xlu1.b32.cont [14/16] (narrow) %v8854_v40, 8  ;;  %v8293_v46 = vsel %vm1456_vm3, %v8292_v26, %v8291_v41  ;;  %v8859_v47 = vrot.slane %v8518_v37, 5 }
 0x418   : > { %v8522_v43 = vld [vmem:[%s12076_s19 + $0x777] sm:$0x1]  ;;  %v8861_v48 = vrot.slane %v8519_v38, 4  ;;  %v8863_v49 = vrot.slane %v8520_v39, 3  ;;  %v7960_v50 = vld [vmem:[%s12076_s19 + $0x706] sm:$0x1]  ;;  %v8295_v51 = vsel %vm1459_vm4, %v8294_v27, %v8293_v46  ;;  %v8856_v52 = vsel %vm1447_vm0, %v8855_v44, %v8515_v28 }
 0x419   : > { %v8865_v53 = vrot.slane %v8521_v42, 2  ;;  %v8867_v54 = vrot.slane %v8522_v43, 1  ;;  %v7961_v55 = vld [vmem:[%s12076_s19 + $0x716] sm:$0x1]  ;;  %v7962_v56 = vld [vmem:[%s12076_s19 + $0x726] sm:$0x1]  ;;  %v8297_v57 = vsel %vm1462_vm5, %v8296_v31, %v8295_v51  ;;  %v8858_v58 = vsel %vm1450_vm1, %v8857_v45, %v8856_v52 }
 0x41a   : > { %v7963_v59 = vld [vmem:[%s12076_s19 + $0x736] sm:$0x1]  ;;  %v7964_v60 = vld [vmem:[%s12076_s19 + $0x746] sm:$0x1]  ;;  %v8299_v62 = vsel %vm1465_vm6, %v8298_v32, %v8297_v57  ;;  %v8860_v63 = vsel %vm1453_vm2, %v8859_v47, %v8858_v58  ;;  %v8300_v2 = vrot.slane %v7961_v55, 7  ;;  %v8302_v3 = vrot.slane %v7962_v56, 6 }
 0x41b   : > { %v7965_v61 = vld [vmem:[%s12076_s19 + $0x756] sm:$0x1]  ;;  %v7966_v0 = vld [vmem:[%s12076_s19 + $0x766] sm:$0x1]  ;;  %8357 = vxpose.xlu0.b32.cont [14/16] (narrow) %v8299_v62, 8  ;;  %v8862_v4 = vsel %vm1456_vm3, %v8861_v48, %v8860_v63  ;;  %v8304_v5 = vrot.slane %v7963_v59, 5 }
 0x41c   : > { %v7967_v1 = vld [vmem:[%s12076_s19 + $0x776] sm:$0x1]  ;;  %v8306_v6 = vrot.slane %v7964_v60, 4  ;;  %v8308_v7 = vrot.slane %v7965_v61, 3  ;;  %v8523_v8 = vld [vmem:[%s12076_s19 + $0x787] sm:$0x1]  ;;  %v8864_v9 = vsel %vm1459_vm4, %v8863_v49, %v8862_v4  ;;  %v8301_v10 = vsel %vm1447_vm0, %v8300_v2, %v7960_v50 }
 0x41d   : > { %v8310_v11 = vrot.slane %v7966_v0, 2  ;;  %v8312_v12 = vrot.slane %v7967_v1, 1  ;;  %v8524_v13 = vld [vmem:[%s12076_s19 + $0x797] sm:$0x1]  ;;  %v8525_v14 = vld [vmem:[%s12076_s19 + $0x7a7] sm:$0x1]  ;;  %v8866_v15 = vsel %vm1462_vm5, %v8865_v53, %v8864_v9  ;;  %v8303_v16 = vsel %vm1450_vm1, %v8302_v3, %v8301_v10 }
 0x41e   : > { %v8526_v17 = vld [vmem:[%s12076_s19 + $0x7b7] sm:$0x1]  ;;  %v8527_v18 = vld [vmem:[%s12076_s19 + $0x7c7] sm:$0x1]  ;;  %v8868_v20 = vsel %vm1465_vm6, %v8867_v54, %v8866_v15  ;;  %v8305_v21 = vsel %vm1453_vm2, %v8304_v5, %v8303_v16  ;;  %v8869_v24 = vrot.slane %v8524_v13, 7  ;;  %v8871_v25 = vrot.slane %v8525_v14, 6 }
 0x41f   : > { %v8528_v19 = vld [vmem:[%s12076_s19 + $0x7d7] sm:$0x1]  ;;  %v8529_v22 = vld [vmem:[%s12076_s19 + $0x7e7] sm:$0x1]  ;;  %8913 = vxpose.xlu1.b32.cont [15/16] (narrow) %v8868_v20, 8  ;;  %v8307_v26 = vsel %vm1456_vm3, %v8306_v6, %v8305_v21  ;;  %v8873_v27 = vrot.slane %v8526_v17, 5 }
 0x420   : > { %v8530_v23 = vld [vmem:[%s12076_s19 + $0x7f7] sm:$0x1]  ;;  %v8875_v28 = vrot.slane %v8527_v18, 4  ;;  %v8877_v29 = vrot.slane %v8528_v19, 3  ;;  %v7968_v30 = vld [vmem:[%s12076_s19 + $0x786] sm:$0x1]  ;;  %v8309_v31 = vsel %vm1459_vm4, %v8308_v7, %v8307_v26  ;;  %v8870_v32 = vsel %vm1447_vm0, %v8869_v24, %v8523_v8 }
 0x421   : > { %v8879_v33 = vrot.slane %v8529_v22, 2  ;;  %v8881_v34 = vrot.slane %v8530_v23, 1  ;;  %v7969_v35 = vld [vmem:[%s12076_s19 + $0x796] sm:$0x1]  ;;  %v7970_v36 = vld [vmem:[%s12076_s19 + $0x7a6] sm:$0x1]  ;;  %v8311_v37 = vsel %vm1462_vm5, %v8310_v11, %v8309_v31  ;;  %v8872_v38 = vsel %vm1450_vm1, %v8871_v25, %v8870_v32 }
 0x422   : > { %v7971_v39 = vld [vmem:[%s12076_s19 + $0x7b6] sm:$0x1]  ;;  %v7972_v40 = vld [vmem:[%s12076_s19 + $0x7c6] sm:$0x1]  ;;  %v8313_v42 = vsel %vm1465_vm6, %v8312_v12, %v8311_v37  ;;  %v8874_v43 = vsel %vm1453_vm2, %v8873_v27, %v8872_v38  ;;  %v8314_v46 = vrot.slane %v7969_v35, 7  ;;  %v8316_v47 = vrot.slane %v7970_v36, 6 }
 0x423   : > { %v7973_v41 = vld [vmem:[%s12076_s19 + $0x7d6] sm:$0x1]  ;;  %v7974_v44 = vld [vmem:[%s12076_s19 + $0x7e6] sm:$0x1]  ;;  %8358 = vxpose.xlu0.b32.cont [15/16] (narrow) %v8313_v42, 8  ;;  %v8876_v48 = vsel %vm1456_vm3, %v8875_v28, %v8874_v43  ;;  %v8318_v49 = vrot.slane %v7971_v39, 5 }
 0x424   : > { %v7975_v45 = vld [vmem:[%s12076_s19 + $0x7f6] sm:$0x1]  ;;  %v8320_v50 = vrot.slane %v7972_v40, 4  ;;  %v8322_v51 = vrot.slane %v7973_v41, 3  ;;  %v11125_v52 = vld [vmem:[%s12076_s19 + $0xf] sm:$0x1]  ;;  %v8878_v53 = vsel %vm1459_vm4, %v8877_v29, %v8876_v48  ;;  %v8315_v54 = vsel %vm1447_vm0, %v8314_v46, %v7968_v30 }
 0x425   : > { %v8324_v55 = vrot.slane %v7974_v44, 2  ;;  %v8326_v56 = vrot.slane %v7975_v45, 1  ;;  %v11126_v57 = vld [vmem:[%s12076_s19 + $0x1f] sm:$0x1]  ;;  %v11127_v58 = vld [vmem:[%s12076_s19 + $0x2f] sm:$0x1]  ;;  %v8880_v59 = vsel %vm1462_vm5, %v8879_v33, %v8878_v53  ;;  %v8317_v60 = vsel %vm1450_vm1, %v8316_v47, %v8315_v54 }
 0x426   : > { %v11128_v61 = vld [vmem:[%s12076_s19 + $0x3f] sm:$0x1]  ;;  %v11129_v62 = vld [vmem:[%s12076_s19 + $0x4f] sm:$0x1]  ;;  %v8882_v0 = vsel %vm1465_vm6, %v8881_v34, %v8880_v59  ;;  %v8319_v1 = vsel %vm1453_vm2, %v8318_v49, %v8317_v60  ;;  %v9767_v4 = vrot.slane %v11126_v57, 7  ;;  %v9769_v5 = vrot.slane %v11127_v58, 6 }
 0x427   : > { %v11130_v63 = vld [vmem:[%s12076_s19 + $0x5f] sm:$0x1]  ;;  %v11131_v2 = vld [vmem:[%s12076_s19 + $0x6f] sm:$0x1]  ;;  %8914 = vxpose.xlu1.b32.end [16/16] (narrow) %v8882_v0, 8  ;;  %v8321_v6 = vsel %vm1456_vm3, %v8320_v50, %v8319_v1  ;;  %v9771_v7 = vrot.slane %v11128_v61, 5 }
 0x428   : > { %v11132_v3 = vld [vmem:[%s12076_s19 + $0x7f] sm:$0x1]  ;;  %v9773_v8 = vrot.slane %v11129_v62, 4  ;;  %v9775_v9 = vrot.slane %v11130_v63, 3  ;;  %v10993_v10 = vld [vmem:[%s12076_s19 + $0xe] sm:$0x1]  ;;  %v8323_v11 = vsel %vm1459_vm4, %v8322_v51, %v8321_v6  ;;  %v9768_v12 = vsel %vm1447_vm0, %v9767_v4, %v11125_v52 }
 0x429   : > { %v9777_v13 = vrot.slane %v11131_v2, 2  ;;  %v9779_v14 = vrot.slane %v11132_v3, 1  ;;  %v10994_v15 = vld [vmem:[%s12076_s19 + $0x1e] sm:$0x1]  ;;  %v10995_v16 = vld [vmem:[%s12076_s19 + $0x2e] sm:$0x1]  ;;  %v8325_v17 = vsel %vm1462_vm5, %v8324_v55, %v8323_v11  ;;  %v9770_v18 = vsel %vm1450_vm1, %v9769_v5, %v9768_v12 }
 0x42a   : > { %v10996_v19 = vld [vmem:[%s12076_s19 + $0x3e] sm:$0x1]  ;;  %v10997_v20 = vld [vmem:[%s12076_s19 + $0x4e] sm:$0x1]  ;;  %v8327_v22 = vsel %vm1465_vm6, %v8326_v56, %v8325_v17  ;;  %v9772_v23 = vsel %vm1453_vm2, %v9771_v7, %v9770_v18  ;;  %v9213_v26 = vrot.slane %v10994_v15, 7  ;;  %v9215_v27 = vrot.slane %v10995_v16, 6 }
 0x42b   : > { %v10998_v21 = vld [vmem:[%s12076_s19 + $0x5e] sm:$0x1]  ;;  %v10999_v24 = vld [vmem:[%s12076_s19 + $0x6e] sm:$0x1]  ;;  %8359 = vxpose.xlu0.b32.end [16/16] (narrow) %v8327_v22, 8  ;;  %v9774_v28 = vsel %vm1456_vm3, %v9773_v8, %v9772_v23  ;;  %v9217_v29 = vrot.slane %v10996_v19, 5 }
 0x42c   : > { %v11000_v25 = vld [vmem:[%s12076_s19 + $0x7e] sm:$0x1]  ;;  %v9219_v30 = vrot.slane %v10997_v20, 4  ;;  %v9221_v31 = vrot.slane %v10998_v21, 3  ;;  %v11133_v32 = vld [vmem:[%s12076_s19 + $0x8f] sm:$0x1]  ;;  %v9776_v33 = vsel %vm1459_vm4, %v9775_v9, %v9774_v28  ;;  %v9214_v34 = vsel %vm1447_vm0, %v9213_v26, %v10993_v10 }
 0x42d   : > { %v9223_v35 = vrot.slane %v10999_v24, 2  ;;  %v9225_v36 = vrot.slane %v11000_v25, 1  ;;  %v11134_v37 = vld [vmem:[%s12076_s19 + $0x9f] sm:$0x1]  ;;  %v11135_v38 = vld [vmem:[%s12076_s19 + $0xaf] sm:$0x1]  ;;  %v9778_v39 = vsel %vm1462_vm5, %v9777_v13, %v9776_v33  ;;  %v9216_v40 = vsel %vm1450_vm1, %v9215_v27, %v9214_v34 }
 0x42e   : > { %v11136_v41 = vld [vmem:[%s12076_s19 + $0xbf] sm:$0x1]  ;;  %v11137_v42 = vld [vmem:[%s12076_s19 + $0xcf] sm:$0x1]  ;;  %v9780_v44 = vsel %vm1465_vm6, %v9779_v14, %v9778_v39  ;;  %v9218_v45 = vsel %vm1453_vm2, %v9217_v29, %v9216_v40  ;;  %v9781_v48 = vrot.slane %v11134_v37, 7  ;;  %v9783_v49 = vrot.slane %v11135_v38, 6 }
 0x42f   : > { %v11138_v43 = vld [vmem:[%s12076_s19 + $0xdf] sm:$0x1]  ;;  %v11139_v46 = vld [vmem:[%s12076_s19 + $0xef] sm:$0x1]  ;;  %10007 = vxpose.xlu1.b32.start [1/16] (narrow) %v9780_v44, 8  ;;  %v9220_v50 = vsel %vm1456_vm3, %v9219_v30, %v9218_v45  ;;  %v9785_v51 = vrot.slane %v11136_v41, 5 }
 0x430   : > { %v11140_v47 = vld [vmem:[%s12076_s19 + $0xff] sm:$0x1]  ;;  %v9787_v52 = vrot.slane %v11137_v42, 4  ;;  %v9789_v53 = vrot.slane %v11138_v43, 3  ;;  %v11001_v54 = vld [vmem:[%s12076_s19 + $0x8e] sm:$0x1]  ;;  %v9222_v55 = vsel %vm1459_vm4, %v9221_v31, %v9220_v50  ;;  %v9782_v56 = vsel %vm1447_vm0, %v9781_v48, %v11133_v32 }
 0x431   : > { %v9791_v57 = vrot.slane %v11139_v46, 2  ;;  %v9793_v58 = vrot.slane %v11140_v47, 1  ;;  %v11002_v59 = vld [vmem:[%s12076_s19 + $0x9e] sm:$0x1]  ;;  %v11003_v60 = vld [vmem:[%s12076_s19 + $0xae] sm:$0x1]  ;;  %v9224_v61 = vsel %vm1462_vm5, %v9223_v35, %v9222_v55  ;;  %v9784_v62 = vsel %vm1450_vm1, %v9783_v49, %v9782_v56 }
 0x432   : > { %v11004_v63 = vld [vmem:[%s12076_s19 + $0xbe] sm:$0x1]  ;;  %v11005_v0 = vld [vmem:[%s12076_s19 + $0xce] sm:$0x1]  ;;  %v9226_v2 = vsel %vm1465_vm6, %v9225_v36, %v9224_v61  ;;  %v9786_v3 = vsel %vm1453_vm2, %v9785_v51, %v9784_v62  ;;  %v9227_v6 = vrot.slane %v11002_v59, 7  ;;  %v9229_v7 = vrot.slane %v11003_v60, 6 }
 0x433   : > { %v11006_v1 = vld [vmem:[%s12076_s19 + $0xde] sm:$0x1]  ;;  %v11007_v4 = vld [vmem:[%s12076_s19 + $0xee] sm:$0x1]  ;;  %9453 = vxpose.xlu0.b32.start [1/16] (narrow) %v9226_v2, 8  ;;  %v9788_v8 = vsel %vm1456_vm3, %v9787_v52, %v9786_v3  ;;  %v9231_v9 = vrot.slane %v11004_v63, 5 }
 0x434   : > { %v11008_v5 = vld [vmem:[%s12076_s19 + $0xfe] sm:$0x1]  ;;  %v9233_v10 = vrot.slane %v11005_v0, 4  ;;  %v9235_v11 = vrot.slane %v11006_v1, 3  ;;  %v11141_v12 = vld [vmem:[%s12076_s19 + $0x10f] sm:$0x1]  ;;  %v9790_v13 = vsel %vm1459_vm4, %v9789_v53, %v9788_v8  ;;  %v9228_v14 = vsel %vm1447_vm0, %v9227_v6, %v11001_v54 }
 0x435   : > { %v9237_v15 = vrot.slane %v11007_v4, 2  ;;  %v9239_v16 = vrot.slane %v11008_v5, 1  ;;  %v11142_v17 = vld [vmem:[%s12076_s19 + $0x11f] sm:$0x1]  ;;  %v11143_v18 = vld [vmem:[%s12076_s19 + $0x12f] sm:$0x1]  ;;  %v9792_v19 = vsel %vm1462_vm5, %v9791_v57, %v9790_v13  ;;  %v9230_v20 = vsel %vm1450_vm1, %v9229_v7, %v9228_v14 }
 0x436   : > { %v11144_v21 = vld [vmem:[%s12076_s19 + $0x13f] sm:$0x1]  ;;  %v11145_v22 = vld [vmem:[%s12076_s19 + $0x14f] sm:$0x1]  ;;  %v9794_v24 = vsel %vm1465_vm6, %v9793_v58, %v9792_v19  ;;  %v9232_v25 = vsel %vm1453_vm2, %v9231_v9, %v9230_v20  ;;  %v9795_v28 = vrot.slane %v11142_v17, 7  ;;  %v9797_v29 = vrot.slane %v11143_v18, 6 }
 0x437   : > { %v11146_v23 = vld [vmem:[%s12076_s19 + $0x15f] sm:$0x1]  ;;  %v11147_v26 = vld [vmem:[%s12076_s19 + $0x16f] sm:$0x1]  ;;  %10008 = vxpose.xlu1.b32.cont [2/16] (narrow) %v9794_v24, 8  ;;  %v9234_v30 = vsel %vm1456_vm3, %v9233_v10, %v9232_v25  ;;  %v9799_v31 = vrot.slane %v11144_v21, 5 }
 0x438   : > { %v11148_v27 = vld [vmem:[%s12076_s19 + $0x17f] sm:$0x1]  ;;  %v9801_v32 = vrot.slane %v11145_v22, 4  ;;  %v9803_v33 = vrot.slane %v11146_v23, 3  ;;  %v11009_v34 = vld [vmem:[%s12076_s19 + $0x10e] sm:$0x1]  ;;  %v9236_v35 = vsel %vm1459_vm4, %v9235_v11, %v9234_v30  ;;  %v9796_v36 = vsel %vm1447_vm0, %v9795_v28, %v11141_v12 }
 0x439   : > { %v9805_v37 = vrot.slane %v11147_v26, 2  ;;  %v9807_v38 = vrot.slane %v11148_v27, 1  ;;  %v11010_v39 = vld [vmem:[%s12076_s19 + $0x11e] sm:$0x1]  ;;  %v11011_v40 = vld [vmem:[%s12076_s19 + $0x12e] sm:$0x1]  ;;  %v9238_v41 = vsel %vm1462_vm5, %v9237_v15, %v9236_v35  ;;  %v9798_v42 = vsel %vm1450_vm1, %v9797_v29, %v9796_v36 }
 0x43a   : > { %v11012_v43 = vld [vmem:[%s12076_s19 + $0x13e] sm:$0x1]  ;;  %v11013_v44 = vld [vmem:[%s12076_s19 + $0x14e] sm:$0x1]  ;;  %v9240_v46 = vsel %vm1465_vm6, %v9239_v16, %v9238_v41  ;;  %v9800_v47 = vsel %vm1453_vm2, %v9799_v31, %v9798_v42  ;;  %v9241_v50 = vrot.slane %v11010_v39, 7  ;;  %v9243_v51 = vrot.slane %v11011_v40, 6 }
 0x43b   : > { %v11014_v45 = vld [vmem:[%s12076_s19 + $0x15e] sm:$0x1]  ;;  %v11015_v48 = vld [vmem:[%s12076_s19 + $0x16e] sm:$0x1]  ;;  %9454 = vxpose.xlu0.b32.cont [2/16] (narrow) %v9240_v46, 8  ;;  %v9802_v52 = vsel %vm1456_vm3, %v9801_v32, %v9800_v47  ;;  %v9245_v53 = vrot.slane %v11012_v43, 5 }
 0x43c   : > { %v11016_v49 = vld [vmem:[%s12076_s19 + $0x17e] sm:$0x1]  ;;  %v9247_v54 = vrot.slane %v11013_v44, 4  ;;  %v9249_v55 = vrot.slane %v11014_v45, 3  ;;  %v11149_v56 = vld [vmem:[%s12076_s19 + $0x18f] sm:$0x1]  ;;  %v9804_v57 = vsel %vm1459_vm4, %v9803_v33, %v9802_v52  ;;  %v9242_v58 = vsel %vm1447_vm0, %v9241_v50, %v11009_v34 }
 0x43d   : > { %v9251_v59 = vrot.slane %v11015_v48, 2  ;;  %v9253_v60 = vrot.slane %v11016_v49, 1  ;;  %v11150_v61 = vld [vmem:[%s12076_s19 + $0x19f] sm:$0x1]  ;;  %v11151_v62 = vld [vmem:[%s12076_s19 + $0x1af] sm:$0x1]  ;;  %v9806_v63 = vsel %vm1462_vm5, %v9805_v37, %v9804_v57  ;;  %v9244_v0 = vsel %vm1450_vm1, %v9243_v51, %v9242_v58 }
 0x43e   : > { %v11152_v1 = vld [vmem:[%s12076_s19 + $0x1bf] sm:$0x1]  ;;  %v11153_v2 = vld [vmem:[%s12076_s19 + $0x1cf] sm:$0x1]  ;;  %v9808_v4 = vsel %vm1465_vm6, %v9807_v38, %v9806_v63  ;;  %v9246_v5 = vsel %vm1453_vm2, %v9245_v53, %v9244_v0  ;;  %v9809_v8 = vrot.slane %v11150_v61, 7  ;;  %v9811_v9 = vrot.slane %v11151_v62, 6 }
 0x43f   : > { %v11154_v3 = vld [vmem:[%s12076_s19 + $0x1df] sm:$0x1]  ;;  %v11155_v6 = vld [vmem:[%s12076_s19 + $0x1ef] sm:$0x1]  ;;  %10009 = vxpose.xlu1.b32.cont [3/16] (narrow) %v9808_v4, 8  ;;  %v9248_v10 = vsel %vm1456_vm3, %v9247_v54, %v9246_v5  ;;  %v9813_v11 = vrot.slane %v11152_v1, 5 }
 0x440   : > { %v11156_v7 = vld [vmem:[%s12076_s19 + $0x1ff] sm:$0x1]  ;;  %v9815_v12 = vrot.slane %v11153_v2, 4  ;;  %v9817_v13 = vrot.slane %v11154_v3, 3  ;;  %v11017_v14 = vld [vmem:[%s12076_s19 + $0x18e] sm:$0x1]  ;;  %v9250_v15 = vsel %vm1459_vm4, %v9249_v55, %v9248_v10  ;;  %v9810_v16 = vsel %vm1447_vm0, %v9809_v8, %v11149_v56 }
 0x441   : > { %v9819_v17 = vrot.slane %v11155_v6, 2  ;;  %v9821_v18 = vrot.slane %v11156_v7, 1  ;;  %v11018_v19 = vld [vmem:[%s12076_s19 + $0x19e] sm:$0x1]  ;;  %v11019_v20 = vld [vmem:[%s12076_s19 + $0x1ae] sm:$0x1]  ;;  %v9252_v21 = vsel %vm1462_vm5, %v9251_v59, %v9250_v15  ;;  %v9812_v22 = vsel %vm1450_vm1, %v9811_v9, %v9810_v16 }
 0x442   : > { %v11020_v23 = vld [vmem:[%s12076_s19 + $0x1be] sm:$0x1]  ;;  %v11021_v24 = vld [vmem:[%s12076_s19 + $0x1ce] sm:$0x1]  ;;  %v9254_v26 = vsel %vm1465_vm6, %v9253_v60, %v9252_v21  ;;  %v9814_v27 = vsel %vm1453_vm2, %v9813_v11, %v9812_v22  ;;  %v9255_v30 = vrot.slane %v11018_v19, 7  ;;  %v9257_v31 = vrot.slane %v11019_v20, 6 }
 0x443   : > { %v11022_v25 = vld [vmem:[%s12076_s19 + $0x1de] sm:$0x1]  ;;  %v11023_v28 = vld [vmem:[%s12076_s19 + $0x1ee] sm:$0x1]  ;;  %9455 = vxpose.xlu0.b32.cont [3/16] (narrow) %v9254_v26, 8  ;;  %v9816_v32 = vsel %vm1456_vm3, %v9815_v12, %v9814_v27  ;;  %v9259_v33 = vrot.slane %v11020_v23, 5 }
 0x444   : > { %v11024_v29 = vld [vmem:[%s12076_s19 + $0x1fe] sm:$0x1]  ;;  %v9261_v34 = vrot.slane %v11021_v24, 4  ;;  %v9263_v35 = vrot.slane %v11022_v25, 3  ;;  %v11157_v36 = vld [vmem:[%s12076_s19 + $0x20f] sm:$0x1]  ;;  %v9818_v37 = vsel %vm1459_vm4, %v9817_v13, %v9816_v32  ;;  %v9256_v38 = vsel %vm1447_vm0, %v9255_v30, %v11017_v14 }
 0x445   : > { %v9265_v39 = vrot.slane %v11023_v28, 2  ;;  %v9267_v40 = vrot.slane %v11024_v29, 1  ;;  %v11158_v41 = vld [vmem:[%s12076_s19 + $0x21f] sm:$0x1]  ;;  %v11159_v42 = vld [vmem:[%s12076_s19 + $0x22f] sm:$0x1]  ;;  %v9820_v43 = vsel %vm1462_vm5, %v9819_v17, %v9818_v37  ;;  %v9258_v44 = vsel %vm1450_vm1, %v9257_v31, %v9256_v38 }
 0x446   : > { %v11160_v45 = vld [vmem:[%s12076_s19 + $0x23f] sm:$0x1]  ;;  %v11161_v46 = vld [vmem:[%s12076_s19 + $0x24f] sm:$0x1]  ;;  %v9822_v48 = vsel %vm1465_vm6, %v9821_v18, %v9820_v43  ;;  %v9260_v49 = vsel %vm1453_vm2, %v9259_v33, %v9258_v44  ;;  %v9823_v52 = vrot.slane %v11158_v41, 7  ;;  %v9825_v53 = vrot.slane %v11159_v42, 6 }
 0x447   : > { %v11162_v47 = vld [vmem:[%s12076_s19 + $0x25f] sm:$0x1]  ;;  %v11163_v50 = vld [vmem:[%s12076_s19 + $0x26f] sm:$0x1]  ;;  %10010 = vxpose.xlu1.b32.cont [4/16] (narrow) %v9822_v48, 8  ;;  %v9262_v54 = vsel %vm1456_vm3, %v9261_v34, %v9260_v49  ;;  %v9827_v55 = vrot.slane %v11160_v45, 5 }
 0x448   : > { %v11164_v51 = vld [vmem:[%s12076_s19 + $0x27f] sm:$0x1]  ;;  %v9829_v56 = vrot.slane %v11161_v46, 4  ;;  %v9831_v57 = vrot.slane %v11162_v47, 3  ;;  %v11025_v58 = vld [vmem:[%s12076_s19 + $0x20e] sm:$0x1]  ;;  %v9264_v59 = vsel %vm1459_vm4, %v9263_v35, %v9262_v54  ;;  %v9824_v60 = vsel %vm1447_vm0, %v9823_v52, %v11157_v36 }
 0x449   : > { %v9833_v61 = vrot.slane %v11163_v50, 2  ;;  %v9835_v62 = vrot.slane %v11164_v51, 1  ;;  %v11026_v63 = vld [vmem:[%s12076_s19 + $0x21e] sm:$0x1]  ;;  %v11027_v0 = vld [vmem:[%s12076_s19 + $0x22e] sm:$0x1]  ;;  %v9266_v1 = vsel %vm1462_vm5, %v9265_v39, %v9264_v59  ;;  %v9826_v2 = vsel %vm1450_vm1, %v9825_v53, %v9824_v60 }
 0x44a   : > { %v11028_v3 = vld [vmem:[%s12076_s19 + $0x23e] sm:$0x1]  ;;  %v11029_v4 = vld [vmem:[%s12076_s19 + $0x24e] sm:$0x1]  ;;  %v9268_v6 = vsel %vm1465_vm6, %v9267_v40, %v9266_v1  ;;  %v9828_v7 = vsel %vm1453_vm2, %v9827_v55, %v9826_v2  ;;  %v9269_v10 = vrot.slane %v11026_v63, 7  ;;  %v9271_v11 = vrot.slane %v11027_v0, 6 }
 0x44b   : > { %v11030_v5 = vld [vmem:[%s12076_s19 + $0x25e] sm:$0x1]  ;;  %v11031_v8 = vld [vmem:[%s12076_s19 + $0x26e] sm:$0x1]  ;;  %9456 = vxpose.xlu0.b32.cont [4/16] (narrow) %v9268_v6, 8  ;;  %v9830_v12 = vsel %vm1456_vm3, %v9829_v56, %v9828_v7  ;;  %v9273_v13 = vrot.slane %v11028_v3, 5 }
 0x44c   : > { %v11032_v9 = vld [vmem:[%s12076_s19 + $0x27e] sm:$0x1]  ;;  %v9275_v14 = vrot.slane %v11029_v4, 4  ;;  %v9277_v15 = vrot.slane %v11030_v5, 3  ;;  %v11165_v16 = vld [vmem:[%s12076_s19 + $0x28f] sm:$0x1]  ;;  %v9832_v17 = vsel %vm1459_vm4, %v9831_v57, %v9830_v12  ;;  %v9270_v18 = vsel %vm1447_vm0, %v9269_v10, %v11025_v58 }
 0x44d   : > { %v9279_v19 = vrot.slane %v11031_v8, 2  ;;  %v9281_v20 = vrot.slane %v11032_v9, 1  ;;  %v11166_v21 = vld [vmem:[%s12076_s19 + $0x29f] sm:$0x1]  ;;  %v11167_v22 = vld [vmem:[%s12076_s19 + $0x2af] sm:$0x1]  ;;  %v9834_v23 = vsel %vm1462_vm5, %v9833_v61, %v9832_v17  ;;  %v9272_v24 = vsel %vm1450_vm1, %v9271_v11, %v9270_v18 }
 0x44e   : > { %v11168_v25 = vld [vmem:[%s12076_s19 + $0x2bf] sm:$0x1]  ;;  %v11169_v26 = vld [vmem:[%s12076_s19 + $0x2cf] sm:$0x1]  ;;  %v9836_v28 = vsel %vm1465_vm6, %v9835_v62, %v9834_v23  ;;  %v9274_v29 = vsel %vm1453_vm2, %v9273_v13, %v9272_v24  ;;  %v9837_v32 = vrot.slane %v11166_v21, 7  ;;  %v9839_v33 = vrot.slane %v11167_v22, 6 }
 0x44f   : > { %v11170_v27 = vld [vmem:[%s12076_s19 + $0x2df] sm:$0x1]  ;;  %v11171_v30 = vld [vmem:[%s12076_s19 + $0x2ef] sm:$0x1]  ;;  %10011 = vxpose.xlu1.b32.cont [5/16] (narrow) %v9836_v28, 8  ;;  %v9276_v34 = vsel %vm1456_vm3, %v9275_v14, %v9274_v29  ;;  %v9841_v35 = vrot.slane %v11168_v25, 5 }
 0x450   : > { %v11172_v31 = vld [vmem:[%s12076_s19 + $0x2ff] sm:$0x1]  ;;  %v9843_v36 = vrot.slane %v11169_v26, 4  ;;  %v9845_v37 = vrot.slane %v11170_v27, 3  ;;  %v11033_v38 = vld [vmem:[%s12076_s19 + $0x28e] sm:$0x1]  ;;  %v9278_v39 = vsel %vm1459_vm4, %v9277_v15, %v9276_v34  ;;  %v9838_v40 = vsel %vm1447_vm0, %v9837_v32, %v11165_v16 }
 0x451   : > { %v9847_v41 = vrot.slane %v11171_v30, 2  ;;  %v9849_v42 = vrot.slane %v11172_v31, 1  ;;  %v11034_v43 = vld [vmem:[%s12076_s19 + $0x29e] sm:$0x1]  ;;  %v11035_v44 = vld [vmem:[%s12076_s19 + $0x2ae] sm:$0x1]  ;;  %v9280_v45 = vsel %vm1462_vm5, %v9279_v19, %v9278_v39  ;;  %v9840_v46 = vsel %vm1450_vm1, %v9839_v33, %v9838_v40 }
 0x452   : > { %v11036_v47 = vld [vmem:[%s12076_s19 + $0x2be] sm:$0x1]  ;;  %v11037_v48 = vld [vmem:[%s12076_s19 + $0x2ce] sm:$0x1]  ;;  %v9282_v50 = vsel %vm1465_vm6, %v9281_v20, %v9280_v45  ;;  %v9842_v51 = vsel %vm1453_vm2, %v9841_v35, %v9840_v46  ;;  %v9283_v54 = vrot.slane %v11034_v43, 7  ;;  %v9285_v55 = vrot.slane %v11035_v44, 6 }
 0x453   : > { %v11038_v49 = vld [vmem:[%s12076_s19 + $0x2de] sm:$0x1]  ;;  %v11039_v52 = vld [vmem:[%s12076_s19 + $0x2ee] sm:$0x1]  ;;  %9457 = vxpose.xlu0.b32.cont [5/16] (narrow) %v9282_v50, 8  ;;  %v9844_v56 = vsel %vm1456_vm3, %v9843_v36, %v9842_v51  ;;  %v9287_v57 = vrot.slane %v11036_v47, 5 }
 0x454   : > { %v11040_v53 = vld [vmem:[%s12076_s19 + $0x2fe] sm:$0x1]  ;;  %v9289_v58 = vrot.slane %v11037_v48, 4  ;;  %v9291_v59 = vrot.slane %v11038_v49, 3  ;;  %v11173_v60 = vld [vmem:[%s12076_s19 + $0x30f] sm:$0x1]  ;;  %v9846_v61 = vsel %vm1459_vm4, %v9845_v37, %v9844_v56  ;;  %v9284_v62 = vsel %vm1447_vm0, %v9283_v54, %v11033_v38 }
 0x455   : > { %v9293_v63 = vrot.slane %v11039_v52, 2  ;;  %v9295_v0 = vrot.slane %v11040_v53, 1  ;;  %v11174_v1 = vld [vmem:[%s12076_s19 + $0x31f] sm:$0x1]  ;;  %v11175_v2 = vld [vmem:[%s12076_s19 + $0x32f] sm:$0x1]  ;;  %v9848_v3 = vsel %vm1462_vm5, %v9847_v41, %v9846_v61  ;;  %v9286_v4 = vsel %vm1450_vm1, %v9285_v55, %v9284_v62 }
 0x456   : > { %v11176_v5 = vld [vmem:[%s12076_s19 + $0x33f] sm:$0x1]  ;;  %v11177_v6 = vld [vmem:[%s12076_s19 + $0x34f] sm:$0x1]  ;;  %v9850_v8 = vsel %vm1465_vm6, %v9849_v42, %v9848_v3  ;;  %v9288_v9 = vsel %vm1453_vm2, %v9287_v57, %v9286_v4  ;;  %v9851_v12 = vrot.slane %v11174_v1, 7  ;;  %v9853_v13 = vrot.slane %v11175_v2, 6 }
 0x457   : > { %v11178_v7 = vld [vmem:[%s12076_s19 + $0x35f] sm:$0x1]  ;;  %v11179_v10 = vld [vmem:[%s12076_s19 + $0x36f] sm:$0x1]  ;;  %10012 = vxpose.xlu1.b32.cont [6/16] (narrow) %v9850_v8, 8  ;;  %v9290_v14 = vsel %vm1456_vm3, %v9289_v58, %v9288_v9  ;;  %v9855_v15 = vrot.slane %v11176_v5, 5 }
 0x458   : > { %v11180_v11 = vld [vmem:[%s12076_s19 + $0x37f] sm:$0x1]  ;;  %v9857_v16 = vrot.slane %v11177_v6, 4  ;;  %v9859_v17 = vrot.slane %v11178_v7, 3  ;;  %v11041_v18 = vld [vmem:[%s12076_s19 + $0x30e] sm:$0x1]  ;;  %v9292_v19 = vsel %vm1459_vm4, %v9291_v59, %v9290_v14  ;;  %v9852_v20 = vsel %vm1447_vm0, %v9851_v12, %v11173_v60 }
 0x459   : > { %v9861_v21 = vrot.slane %v11179_v10, 2  ;;  %v9863_v22 = vrot.slane %v11180_v11, 1  ;;  %v11042_v23 = vld [vmem:[%s12076_s19 + $0x31e] sm:$0x1]  ;;  %v11043_v24 = vld [vmem:[%s12076_s19 + $0x32e] sm:$0x1]  ;;  %v9294_v25 = vsel %vm1462_vm5, %v9293_v63, %v9292_v19  ;;  %v9854_v26 = vsel %vm1450_vm1, %v9853_v13, %v9852_v20 }
 0x45a   : > { %v11044_v27 = vld [vmem:[%s12076_s19 + $0x33e] sm:$0x1]  ;;  %v11045_v28 = vld [vmem:[%s12076_s19 + $0x34e] sm:$0x1]  ;;  %v9296_v30 = vsel %vm1465_vm6, %v9295_v0, %v9294_v25  ;;  %v9856_v31 = vsel %vm1453_vm2, %v9855_v15, %v9854_v26  ;;  %v9297_v34 = vrot.slane %v11042_v23, 7  ;;  %v9299_v35 = vrot.slane %v11043_v24, 6 }
 0x45b   : > { %v11046_v29 = vld [vmem:[%s12076_s19 + $0x35e] sm:$0x1]  ;;  %v11047_v32 = vld [vmem:[%s12076_s19 + $0x36e] sm:$0x1]  ;;  %9458 = vxpose.xlu0.b32.cont [6/16] (narrow) %v9296_v30, 8  ;;  %v9858_v36 = vsel %vm1456_vm3, %v9857_v16, %v9856_v31  ;;  %v9301_v37 = vrot.slane %v11044_v27, 5 }
 0x45c   : > { %v11048_v33 = vld [vmem:[%s12076_s19 + $0x37e] sm:$0x1]  ;;  %v9303_v38 = vrot.slane %v11045_v28, 4  ;;  %v9305_v39 = vrot.slane %v11046_v29, 3  ;;  %v11181_v40 = vld [vmem:[%s12076_s19 + $0x38f] sm:$0x1]  ;;  %v9860_v41 = vsel %vm1459_vm4, %v9859_v17, %v9858_v36  ;;  %v9298_v42 = vsel %vm1447_vm0, %v9297_v34, %v11041_v18 }
 0x45d   : > { %v9307_v43 = vrot.slane %v11047_v32, 2  ;;  %v9309_v44 = vrot.slane %v11048_v33, 1  ;;  %v11182_v45 = vld [vmem:[%s12076_s19 + $0x39f] sm:$0x1]  ;;  %v11183_v46 = vld [vmem:[%s12076_s19 + $0x3af] sm:$0x1]  ;;  %v9862_v47 = vsel %vm1462_vm5, %v9861_v21, %v9860_v41  ;;  %v9300_v48 = vsel %vm1450_vm1, %v9299_v35, %v9298_v42 }
 0x45e   : > { %v11184_v49 = vld [vmem:[%s12076_s19 + $0x3bf] sm:$0x1]  ;;  %v11185_v50 = vld [vmem:[%s12076_s19 + $0x3cf] sm:$0x1]  ;;  %v9864_v52 = vsel %vm1465_vm6, %v9863_v22, %v9862_v47  ;;  %v9302_v53 = vsel %vm1453_vm2, %v9301_v37, %v9300_v48  ;;  %v9865_v56 = vrot.slane %v11182_v45, 7  ;;  %v9867_v57 = vrot.slane %v11183_v46, 6 }
 0x45f   : > { %v11186_v51 = vld [vmem:[%s12076_s19 + $0x3df] sm:$0x1]  ;;  %v11187_v54 = vld [vmem:[%s12076_s19 + $0x3ef] sm:$0x1]  ;;  %10013 = vxpose.xlu1.b32.cont [7/16] (narrow) %v9864_v52, 8  ;;  %v9304_v58 = vsel %vm1456_vm3, %v9303_v38, %v9302_v53  ;;  %v9869_v59 = vrot.slane %v11184_v49, 5 }
 0x460   : > { %v11188_v55 = vld [vmem:[%s12076_s19 + $0x3ff] sm:$0x1]  ;;  %v9871_v60 = vrot.slane %v11185_v50, 4  ;;  %v9873_v61 = vrot.slane %v11186_v51, 3  ;;  %v11049_v62 = vld [vmem:[%s12076_s19 + $0x38e] sm:$0x1]  ;;  %v9306_v63 = vsel %vm1459_vm4, %v9305_v39, %v9304_v58  ;;  %v9866_v0 = vsel %vm1447_vm0, %v9865_v56, %v11181_v40 }
 0x461   : > { %v9875_v1 = vrot.slane %v11187_v54, 2  ;;  %v9877_v2 = vrot.slane %v11188_v55, 1  ;;  %v11050_v3 = vld [vmem:[%s12076_s19 + $0x39e] sm:$0x1]  ;;  %v11051_v4 = vld [vmem:[%s12076_s19 + $0x3ae] sm:$0x1]  ;;  %v9308_v5 = vsel %vm1462_vm5, %v9307_v43, %v9306_v63  ;;  %v9868_v6 = vsel %vm1450_vm1, %v9867_v57, %v9866_v0 }
 0x462   : > { %v11052_v7 = vld [vmem:[%s12076_s19 + $0x3be] sm:$0x1]  ;;  %v11053_v8 = vld [vmem:[%s12076_s19 + $0x3ce] sm:$0x1]  ;;  %v9310_v10 = vsel %vm1465_vm6, %v9309_v44, %v9308_v5  ;;  %v9870_v11 = vsel %vm1453_vm2, %v9869_v59, %v9868_v6  ;;  %v9311_v14 = vrot.slane %v11050_v3, 7  ;;  %v9313_v15 = vrot.slane %v11051_v4, 6 }
 0x463   : > { %v11054_v9 = vld [vmem:[%s12076_s19 + $0x3de] sm:$0x1]  ;;  %v11055_v12 = vld [vmem:[%s12076_s19 + $0x3ee] sm:$0x1]  ;;  %9459 = vxpose.xlu0.b32.cont [7/16] (narrow) %v9310_v10, 8  ;;  %v9872_v16 = vsel %vm1456_vm3, %v9871_v60, %v9870_v11  ;;  %v9315_v17 = vrot.slane %v11052_v7, 5 }
 0x464   : > { %v11056_v13 = vld [vmem:[%s12076_s19 + $0x3fe] sm:$0x1]  ;;  %v9317_v18 = vrot.slane %v11053_v8, 4  ;;  %v9319_v19 = vrot.slane %v11054_v9, 3  ;;  %v11189_v20 = vld [vmem:[%s12076_s19 + $0x40f] sm:$0x1]  ;;  %v9874_v21 = vsel %vm1459_vm4, %v9873_v61, %v9872_v16  ;;  %v9312_v22 = vsel %vm1447_vm0, %v9311_v14, %v11049_v62 }
 0x465   : > { %v9321_v23 = vrot.slane %v11055_v12, 2  ;;  %v9323_v24 = vrot.slane %v11056_v13, 1  ;;  %v11190_v25 = vld [vmem:[%s12076_s19 + $0x41f] sm:$0x1]  ;;  %v11191_v26 = vld [vmem:[%s12076_s19 + $0x42f] sm:$0x1]  ;;  %v9876_v27 = vsel %vm1462_vm5, %v9875_v1, %v9874_v21  ;;  %v9314_v28 = vsel %vm1450_vm1, %v9313_v15, %v9312_v22 }
 0x466   : > { %v11192_v29 = vld [vmem:[%s12076_s19 + $0x43f] sm:$0x1]  ;;  %v11193_v30 = vld [vmem:[%s12076_s19 + $0x44f] sm:$0x1]  ;;  %v9878_v32 = vsel %vm1465_vm6, %v9877_v2, %v9876_v27  ;;  %v9316_v33 = vsel %vm1453_vm2, %v9315_v17, %v9314_v28  ;;  %v9879_v36 = vrot.slane %v11190_v25, 7  ;;  %v9881_v37 = vrot.slane %v11191_v26, 6 }
 0x467   : > { %v11194_v31 = vld [vmem:[%s12076_s19 + $0x45f] sm:$0x1]  ;;  %v11195_v34 = vld [vmem:[%s12076_s19 + $0x46f] sm:$0x1]  ;;  %10014 = vxpose.xlu1.b32.cont [8/16] (narrow) %v9878_v32, 8  ;;  %v9318_v38 = vsel %vm1456_vm3, %v9317_v18, %v9316_v33  ;;  %v9883_v39 = vrot.slane %v11192_v29, 5 }
 0x468   : > { %v11196_v35 = vld [vmem:[%s12076_s19 + $0x47f] sm:$0x1]  ;;  %v9885_v40 = vrot.slane %v11193_v30, 4  ;;  %v9887_v41 = vrot.slane %v11194_v31, 3  ;;  %v11057_v42 = vld [vmem:[%s12076_s19 + $0x40e] sm:$0x1]  ;;  %v9320_v43 = vsel %vm1459_vm4, %v9319_v19, %v9318_v38  ;;  %v9880_v44 = vsel %vm1447_vm0, %v9879_v36, %v11189_v20 }
 0x469   : > { %v9889_v45 = vrot.slane %v11195_v34, 2  ;;  %v9891_v46 = vrot.slane %v11196_v35, 1  ;;  %v11058_v47 = vld [vmem:[%s12076_s19 + $0x41e] sm:$0x1]  ;;  %v11059_v48 = vld [vmem:[%s12076_s19 + $0x42e] sm:$0x1]  ;;  %v9322_v49 = vsel %vm1462_vm5, %v9321_v23, %v9320_v43  ;;  %v9882_v50 = vsel %vm1450_vm1, %v9881_v37, %v9880_v44 }
 0x46a   : > { %v11060_v51 = vld [vmem:[%s12076_s19 + $0x43e] sm:$0x1]  ;;  %v11061_v52 = vld [vmem:[%s12076_s19 + $0x44e] sm:$0x1]  ;;  %v9324_v54 = vsel %vm1465_vm6, %v9323_v24, %v9322_v49  ;;  %v9884_v55 = vsel %vm1453_vm2, %v9883_v39, %v9882_v50  ;;  %v9325_v58 = vrot.slane %v11058_v47, 7  ;;  %v9327_v59 = vrot.slane %v11059_v48, 6 }
 0x46b   : > { %v11062_v53 = vld [vmem:[%s12076_s19 + $0x45e] sm:$0x1]  ;;  %v11063_v56 = vld [vmem:[%s12076_s19 + $0x46e] sm:$0x1]  ;;  %9460 = vxpose.xlu0.b32.cont [8/16] (narrow) %v9324_v54, 8  ;;  %v9886_v60 = vsel %vm1456_vm3, %v9885_v40, %v9884_v55  ;;  %v9329_v61 = vrot.slane %v11060_v51, 5 }
 0x46c   : > { %v11064_v57 = vld [vmem:[%s12076_s19 + $0x47e] sm:$0x1]  ;;  %v9331_v62 = vrot.slane %v11061_v52, 4  ;;  %v9333_v63 = vrot.slane %v11062_v53, 3  ;;  %v11197_v0 = vld [vmem:[%s12076_s19 + $0x48f] sm:$0x1]  ;;  %v9888_v1 = vsel %vm1459_vm4, %v9887_v41, %v9886_v60  ;;  %v9326_v2 = vsel %vm1447_vm0, %v9325_v58, %v11057_v42 }
 0x46d   : > { %v9335_v3 = vrot.slane %v11063_v56, 2  ;;  %v9337_v4 = vrot.slane %v11064_v57, 1  ;;  %v11198_v5 = vld [vmem:[%s12076_s19 + $0x49f] sm:$0x1]  ;;  %v11199_v6 = vld [vmem:[%s12076_s19 + $0x4af] sm:$0x1]  ;;  %v9890_v7 = vsel %vm1462_vm5, %v9889_v45, %v9888_v1  ;;  %v9328_v8 = vsel %vm1450_vm1, %v9327_v59, %v9326_v2 }
 0x46e   : > { %v11200_v9 = vld [vmem:[%s12076_s19 + $0x4bf] sm:$0x1]  ;;  %v11201_v10 = vld [vmem:[%s12076_s19 + $0x4cf] sm:$0x1]  ;;  %v9892_v12 = vsel %vm1465_vm6, %v9891_v46, %v9890_v7  ;;  %v9330_v13 = vsel %vm1453_vm2, %v9329_v61, %v9328_v8  ;;  %v9893_v16 = vrot.slane %v11198_v5, 7  ;;  %v9895_v17 = vrot.slane %v11199_v6, 6 }
 0x46f   : > { %v11202_v11 = vld [vmem:[%s12076_s19 + $0x4df] sm:$0x1]  ;;  %v11203_v14 = vld [vmem:[%s12076_s19 + $0x4ef] sm:$0x1]  ;;  %10015 = vxpose.xlu1.b32.cont [9/16] (narrow) %v9892_v12, 8  ;;  %v9332_v18 = vsel %vm1456_vm3, %v9331_v62, %v9330_v13  ;;  %v9897_v19 = vrot.slane %v11200_v9, 5 }
 0x470   : > { %v11204_v15 = vld [vmem:[%s12076_s19 + $0x4ff] sm:$0x1]  ;;  %v9899_v20 = vrot.slane %v11201_v10, 4  ;;  %v9901_v21 = vrot.slane %v11202_v11, 3  ;;  %v11065_v22 = vld [vmem:[%s12076_s19 + $0x48e] sm:$0x1]  ;;  %v9334_v23 = vsel %vm1459_vm4, %v9333_v63, %v9332_v18  ;;  %v9894_v24 = vsel %vm1447_vm0, %v9893_v16, %v11197_v0 }
 0x471   : > { %v9903_v25 = vrot.slane %v11203_v14, 2  ;;  %v9905_v26 = vrot.slane %v11204_v15, 1  ;;  %v11066_v27 = vld [vmem:[%s12076_s19 + $0x49e] sm:$0x1]  ;;  %v11067_v28 = vld [vmem:[%s12076_s19 + $0x4ae] sm:$0x1]  ;;  %v9336_v29 = vsel %vm1462_vm5, %v9335_v3, %v9334_v23  ;;  %v9896_v30 = vsel %vm1450_vm1, %v9895_v17, %v9894_v24 }
 0x472   : > { %v11068_v31 = vld [vmem:[%s12076_s19 + $0x4be] sm:$0x1]  ;;  %v11069_v32 = vld [vmem:[%s12076_s19 + $0x4ce] sm:$0x1]  ;;  %v9338_v34 = vsel %vm1465_vm6, %v9337_v4, %v9336_v29  ;;  %v9898_v35 = vsel %vm1453_vm2, %v9897_v19, %v9896_v30  ;;  %v9339_v38 = vrot.slane %v11066_v27, 7  ;;  %v9341_v39 = vrot.slane %v11067_v28, 6 }
 0x473   : > { %v11070_v33 = vld [vmem:[%s12076_s19 + $0x4de] sm:$0x1]  ;;  %v11071_v36 = vld [vmem:[%s12076_s19 + $0x4ee] sm:$0x1]  ;;  %9461 = vxpose.xlu0.b32.cont [9/16] (narrow) %v9338_v34, 8  ;;  %v9900_v40 = vsel %vm1456_vm3, %v9899_v20, %v9898_v35  ;;  %v9343_v41 = vrot.slane %v11068_v31, 5  ;;  %v15757_v20 = vpop.trf.xlu1 }
 0x474   : > { %v11072_v37 = vld [vmem:[%s12076_s19 + $0x4fe] sm:$0x1]  ;;  %v9345_v42 = vrot.slane %v11069_v32, 4  ;;  %v9347_v43 = vrot.slane %v11070_v33, 3  ;;  %v11205_v44 = vld [vmem:[%s12076_s19 + $0x50f] sm:$0x1]  ;;  %v9902_v45 = vsel %vm1459_vm4, %v9901_v21, %v9900_v40  ;;  %v9340_v46 = vsel %vm1447_vm0, %v9339_v38, %v11065_v22  ;;  %v15759_v21 = vpop.trf.xlu0 }
 0x475   : > { %v9349_v47 = vrot.slane %v11071_v36, 2  ;;  %v9351_v48 = vrot.slane %v11072_v37, 1  ;;  %v11206_v49 = vld [vmem:[%s12076_s19 + $0x51f] sm:$0x1]  ;;  %v11207_v50 = vld [vmem:[%s12076_s19 + $0x52f] sm:$0x1]  ;;  %v9904_v51 = vsel %vm1462_vm5, %v9903_v25, %v9902_v45  ;;  %v9342_v52 = vsel %vm1450_vm1, %v9341_v39, %v9340_v46 }
 0x476   : > { %v11208_v53 = vld [vmem:[%s12076_s19 + $0x53f] sm:$0x1]  ;;  %v11209_v54 = vld [vmem:[%s12076_s19 + $0x54f] sm:$0x1]  ;;  %v9906_v56 = vsel %vm1465_vm6, %v9905_v26, %v9904_v51  ;;  %v9344_v57 = vsel %vm1453_vm2, %v9343_v41, %v9342_v52  ;;  %v9907_v60 = vrot.slane %v11206_v49, 7  ;;  %v9909_v61 = vrot.slane %v11207_v50, 6 }
 0x477   : > { %v11210_v55 = vld [vmem:[%s12076_s19 + $0x55f] sm:$0x1]  ;;  %v11211_v58 = vld [vmem:[%s12076_s19 + $0x56f] sm:$0x1]  ;;  %10016 = vxpose.xlu1.b32.cont [10/16] (narrow) %v9906_v56, 8  ;;  %v9346_v62 = vsel %vm1456_vm3, %v9345_v42, %v9344_v57  ;;  %v9911_v63 = vrot.slane %v11208_v53, 5 }
 0x478   : > { %v11212_v59 = vld [vmem:[%s12076_s19 + $0x57f] sm:$0x1]  ;;  %v9913_v0 = vrot.slane %v11209_v54, 4  ;;  %v9915_v1 = vrot.slane %v11210_v55, 3  ;;  %v11073_v2 = vld [vmem:[%s12076_s19 + $0x50e] sm:$0x1]  ;;  %v9348_v3 = vsel %vm1459_vm4, %v9347_v43, %v9346_v62  ;;  %v9908_v4 = vsel %vm1447_vm0, %v9907_v60, %v11205_v44  ;;  %v15782_v55 = vpop.trf.xlu1  ;;  %v15784_v56 = vpop.trf.xlu0 }
 0x479   : > { %v9917_v5 = vrot.slane %v11211_v58, 2  ;;  %v9919_v6 = vrot.slane %v11212_v59, 1  ;;  %v11074_v7 = vld [vmem:[%s12076_s19 + $0x51e] sm:$0x1]  ;;  %v11075_v8 = vld [vmem:[%s12076_s19 + $0x52e] sm:$0x1]  ;;  %v9350_v9 = vsel %vm1462_vm5, %v9349_v47, %v9348_v3  ;;  %v9910_v10 = vsel %vm1450_vm1, %v9909_v61, %v9908_v4 }
 0x47a   : > { %v11076_v11 = vld [vmem:[%s12076_s19 + $0x53e] sm:$0x1]  ;;  %v11077_v12 = vld [vmem:[%s12076_s19 + $0x54e] sm:$0x1]  ;;  %v9352_v14 = vsel %vm1465_vm6, %v9351_v48, %v9350_v9  ;;  %v9912_v15 = vsel %vm1453_vm2, %v9911_v63, %v9910_v10  ;;  %v9353_v18 = vrot.slane %v11074_v7, 7  ;;  %v9355_v19 = vrot.slane %v11075_v8, 6 }
 0x47b   : > { %v11078_v13 = vld [vmem:[%s12076_s19 + $0x55e] sm:$0x1]  ;;  %v11079_v16 = vld [vmem:[%s12076_s19 + $0x56e] sm:$0x1]  ;;  %9462 = vxpose.xlu0.b32.cont [10/16] (narrow) %v9352_v14, 8  ;;  %v9914_v22 = vsel %vm1456_vm3, %v9913_v0, %v9912_v15  ;;  %v9357_v23 = vrot.slane %v11076_v11, 5 }
 0x47c   : > { %v11080_v17 = vld [vmem:[%s12076_s19 + $0x57e] sm:$0x1]  ;;  %v9359_v24 = vrot.slane %v11077_v12, 4  ;;  %v9361_v25 = vrot.slane %v11078_v13, 3  ;;  %v11213_v26 = vld [vmem:[%s12076_s19 + $0x58f] sm:$0x1]  ;;  %v9916_v27 = vsel %vm1459_vm4, %v9915_v1, %v9914_v22  ;;  %v9354_v28 = vsel %vm1447_vm0, %v9353_v18, %v11073_v2 }
 0x47d   : > { %v9363_v29 = vrot.slane %v11079_v16, 2  ;;  %v9365_v30 = vrot.slane %v11080_v17, 1  ;;  %v11214_v31 = vld [vmem:[%s12076_s19 + $0x59f] sm:$0x1]  ;;  %v11215_v32 = vld [vmem:[%s12076_s19 + $0x5af] sm:$0x1]  ;;  %v9918_v33 = vsel %vm1462_vm5, %v9917_v5, %v9916_v27  ;;  %v9356_v34 = vsel %vm1450_vm1, %v9355_v19, %v9354_v28 }
 0x47e   : > { %v11216_v35 = vld [vmem:[%s12076_s19 + $0x5bf] sm:$0x1]  ;;  %v11217_v36 = vld [vmem:[%s12076_s19 + $0x5cf] sm:$0x1]  ;;  %v9920_v38 = vsel %vm1465_vm6, %v9919_v6, %v9918_v33  ;;  %v9358_v39 = vsel %vm1453_vm2, %v9357_v23, %v9356_v34  ;;  %v9921_v42 = vrot.slane %v11214_v31, 7  ;;  %v9923_v43 = vrot.slane %v11215_v32, 6 }
 0x47f   : > { %v11218_v37 = vld [vmem:[%s12076_s19 + $0x5df] sm:$0x1]  ;;  %v11219_v40 = vld [vmem:[%s12076_s19 + $0x5ef] sm:$0x1]  ;;  %10017 = vxpose.xlu1.b32.cont [11/16] (narrow) %v9920_v38, 8  ;;  %v9360_v44 = vsel %vm1456_vm3, %v9359_v24, %v9358_v39  ;;  %v9925_v45 = vrot.slane %v11216_v35, 5  ;;  %v1730_v22 = vlaneseq }
 0x480   : > { %v11220_v41 = vld [vmem:[%s12076_s19 + $0x5ff] sm:$0x1]  ;;  %v9927_v46 = vrot.slane %v11217_v36, 4  ;;  %v9929_v47 = vrot.slane %v11218_v37, 3  ;;  %v11081_v48 = vld [vmem:[%s12076_s19 + $0x58e] sm:$0x1]  ;;  %v9362_v49 = vsel %vm1459_vm4, %v9361_v25, %v9360_v44  ;;  %v9922_v50 = vsel %vm1447_vm0, %v9921_v42, %v11213_v26 }
 0x481   : > { %v9931_v51 = vrot.slane %v11219_v40, 2  ;;  %v9933_v52 = vrot.slane %v11220_v41, 1  ;;  %v11082_v53 = vld [vmem:[%s12076_s19 + $0x59e] sm:$0x1]  ;;  %v11083_v54 = vld [vmem:[%s12076_s19 + $0x5ae] sm:$0x1]  ;;  %v9364_v57 = vsel %vm1462_vm5, %v9363_v29, %v9362_v49  ;;  %v9924_v58 = vsel %vm1450_vm1, %v9923_v43, %v9922_v50  ;;  %v15810_v29 = vpop.trf.xlu1 }
 0x482   : > { %v11084_v59 = vld [vmem:[%s12076_s19 + $0x5be] sm:$0x1]  ;;  %v11085_v60 = vld [vmem:[%s12076_s19 + $0x5ce] sm:$0x1]  ;;  %v9366_v62 = vsel %vm1465_vm6, %v9365_v30, %v9364_v57  ;;  %v9926_v63 = vsel %vm1453_vm2, %v9925_v45, %v9924_v58  ;;  %v9367_v2 = vrot.slane %v11082_v53, 7  ;;  %v9369_v3 = vrot.slane %v11083_v54, 6  ;;  %v15812_v30 = vpop.trf.xlu0 }
 0x483   : > { %v11086_v61 = vld [vmem:[%s12076_s19 + $0x5de] sm:$0x1]  ;;  %v11087_v0 = vld [vmem:[%s12076_s19 + $0x5ee] sm:$0x1]  ;;  %9463 = vxpose.xlu0.b32.cont [11/16] (narrow) %v9366_v62, 8  ;;  %v9928_v4 = vsel %vm1456_vm3, %v9927_v46, %v9926_v63  ;;  %v9371_v5 = vrot.slane %v11084_v59, 5 }
 0x484   : > { %v11088_v1 = vld [vmem:[%s12076_s19 + $0x5fe] sm:$0x1]  ;;  %v9373_v6 = vrot.slane %v11085_v60, 4  ;;  %v9375_v7 = vrot.slane %v11086_v61, 3  ;;  %v11221_v8 = vld [vmem:[%s12076_s19 + $0x60f] sm:$0x1]  ;;  %v9930_v9 = vsel %vm1459_vm4, %v9929_v47, %v9928_v4  ;;  %v9368_v10 = vsel %vm1447_vm0, %v9367_v2, %v11081_v48 }
 0x485   : > { %v9377_v11 = vrot.slane %v11087_v0, 2  ;;  %v9379_v12 = vrot.slane %v11088_v1, 1  ;;  %v11222_v13 = vld [vmem:[%s12076_s19 + $0x61f] sm:$0x1]  ;;  %v11223_v14 = vld [vmem:[%s12076_s19 + $0x62f] sm:$0x1]  ;;  %v9932_v15 = vsel %vm1462_vm5, %v9931_v51, %v9930_v9  ;;  %v9370_v16 = vsel %vm1450_vm1, %v9369_v3, %v9368_v10  ;;  %v15843_v4 = vpop.trf.xlu1 }
 0x486   : > { %v11224_v17 = vld [vmem:[%s12076_s19 + $0x63f] sm:$0x1]  ;;  %v11225_v18 = vld [vmem:[%s12076_s19 + $0x64f] sm:$0x1]  ;;  %v9934_v23 = vsel %vm1465_vm6, %v9933_v52, %v9932_v15  ;;  %v9372_v24 = vsel %vm1453_vm2, %v9371_v5, %v9370_v16  ;;  %v9935_v27 = vrot.slane %v11222_v13, 7  ;;  %v9937_v28 = vrot.slane %v11223_v14, 6  ;;  %v15845_v5 = vpop.trf.xlu0 }
 0x487   : > { %v11226_v19 = vld [vmem:[%s12076_s19 + $0x65f] sm:$0x1]  ;;  %v11227_v25 = vld [vmem:[%s12076_s19 + $0x66f] sm:$0x1]  ;;  %10018 = vxpose.xlu1.b32.cont [12/16] (narrow) %v9934_v23, 8  ;;  %v9374_v31 = vsel %vm1456_vm3, %v9373_v6, %v9372_v24  ;;  %v9939_v32 = vrot.slane %v11224_v17, 5  ;;  %v15827_v47 = vcombine.high %v15757_v20, %v15757_v20  ;;  %v15831_v48 = vcombine.high %v15759_v21, %v15759_v21 }
 0x488   : > { %v11228_v26 = vld [vmem:[%s12076_s19 + $0x67f] sm:$0x1]  ;;  %v9941_v33 = vrot.slane %v11225_v18, 4  ;;  %v9943_v34 = vrot.slane %v11226_v19, 3  ;;  %v11089_v35 = vld [vmem:[%s12076_s19 + $0x60e] sm:$0x1]  ;;  %v9376_v36 = vsel %vm1459_vm4, %v9375_v7, %v9374_v31  ;;  %v9936_v37 = vsel %vm1447_vm0, %v9935_v27, %v11221_v8 }
 0x489   : > { %v9945_v38 = vrot.slane %v11227_v25, 2  ;;  %v9947_v39 = vrot.slane %v11228_v26, 1  ;;  %v11090_v40 = vld [vmem:[%s12076_s19 + $0x61e] sm:$0x1]  ;;  %v11091_v41 = vld [vmem:[%s12076_s19 + $0x62e] sm:$0x1]  ;;  %v9378_v42 = vsel %vm1462_vm5, %v9377_v11, %v9376_v36  ;;  %v9938_v43 = vsel %vm1450_vm1, %v9937_v28, %v9936_v37 }
 0x48a   : > { %v11092_v44 = vld [vmem:[%s12076_s19 + $0x63e] sm:$0x1]  ;;  %v11093_v45 = vld [vmem:[%s12076_s19 + $0x64e] sm:$0x1]  ;;  %v9380_v49 = vsel %vm1465_vm6, %v9379_v12, %v9378_v42  ;;  %v9940_v50 = vsel %vm1453_vm2, %v9939_v32, %v9938_v43  ;;  %v9381_v53 = vrot.slane %v11090_v40, 7  ;;  %v9383_v54 = vrot.slane %v11091_v41, 6 }
 0x48b   : > { %v11094_v46 = vld [vmem:[%s12076_s19 + $0x65e] sm:$0x1]  ;;  %v11095_v51 = vld [vmem:[%s12076_s19 + $0x66e] sm:$0x1]  ;;  %9464 = vxpose.xlu0.b32.cont [12/16] (narrow) %v9380_v49, 8  ;;  %v9942_v57 = vsel %vm1456_vm3, %v9941_v33, %v9940_v50  ;;  %v9385_v58 = vrot.slane %v11092_v44, 5  ;;  %v15854_v11 = vcombine.high %v15782_v55, %v15782_v55  ;;  %v15858_v12 = vcombine.high %v15784_v56, %v15784_v56  ;;  %v15887_v50 = vpop.trf.xlu1 }
 0x48c   : > { %v11096_v52 = vld [vmem:[%s12076_s19 + $0x67e] sm:$0x1]  ;;  %v9387_v59 = vrot.slane %v11093_v45, 4  ;;  %v9389_v60 = vrot.slane %v11094_v46, 3  ;;  %v11229_v61 = vld [vmem:[%s12076_s19 + $0x68f] sm:$0x1]  ;;  %v9944_v62 = vsel %vm1459_vm4, %v9943_v34, %v9942_v57  ;;  %v9382_v63 = vsel %vm1447_vm0, %v9381_v53, %v11089_v35 }
 0x48d   : > { %v9391_v0 = vrot.slane %v11095_v51, 2  ;;  %v9393_v1 = vrot.slane %v11096_v52, 1  ;;  %v11230_v2 = vld [vmem:[%s12076_s19 + $0x69f] sm:$0x1]  ;;  %v11231_v3 = vld [vmem:[%s12076_s19 + $0x6af] sm:$0x1]  ;;  %v9946_v6 = vsel %vm1462_vm5, %v9945_v38, %v9944_v62  ;;  %v9384_v7 = vsel %vm1450_vm1, %v9383_v54, %v9382_v63  ;;  %v15889_v51 = vpop.trf.xlu0 }
 0x48e   : > { %v11232_v8 = vld [vmem:[%s12076_s19 + $0x6bf] sm:$0x1]  ;;  %v11233_v9 = vld [vmem:[%s12076_s19 + $0x6cf] sm:$0x1]  ;;  %v9948_v13 = vsel %vm1465_vm6, %v9947_v39, %v9946_v6  ;;  %v9386_v14 = vsel %vm1453_vm2, %v9385_v58, %v9384_v7  ;;  %v9949_v17 = vrot.slane %v11230_v2, 7  ;;  %v9951_v18 = vrot.slane %v11231_v3, 6 }
 0x48f   : > { %v11234_v10 = vld [vmem:[%s12076_s19 + $0x6df] sm:$0x1]  ;;  %v11235_v15 = vld [vmem:[%s12076_s19 + $0x6ef] sm:$0x1]  ;;  %10019 = vxpose.xlu1.b32.cont [13/16] (narrow) %v9948_v13, 8  ;;  %v9388_v19 = vsel %vm1456_vm3, %v9387_v59, %v9386_v14  ;;  %v9953_v23 = vrot.slane %v11232_v8, 5  ;;  %v15877_v40 = vcombine.high %v15810_v29, %v15810_v29  ;;  %v15881_v41 = vcombine.high %v15812_v30, %v15812_v30 }
 0x490   : > { %v11236_v16 = vld [vmem:[%s12076_s19 + $0x6ff] sm:$0x1]  ;;  %v9955_v24 = vrot.slane %v11233_v9, 4  ;;  %v9957_v25 = vrot.slane %v11234_v10, 3  ;;  %v11097_v26 = vld [vmem:[%s12076_s19 + $0x68e] sm:$0x1]  ;;  %v9390_v27 = vsel %vm1459_vm4, %v9389_v60, %v9388_v19  ;;  %v9950_v28 = vsel %vm1447_vm0, %v9949_v17, %v11229_v61 }
 0x491   : > { %v9959_v31 = vrot.slane %v11235_v15, 2  ;;  %v9961_v32 = vrot.slane %v11236_v16, 1  ;;  %v11098_v33 = vld [vmem:[%s12076_s19 + $0x69e] sm:$0x1]  ;;  %v11099_v34 = vld [vmem:[%s12076_s19 + $0x6ae] sm:$0x1]  ;;  %v9392_v35 = vsel %vm1462_vm5, %v9391_v0, %v9390_v27  ;;  %v9952_v36 = vsel %vm1450_vm1, %v9951_v18, %v9950_v28 }
 0x492   : > { %v11100_v37 = vld [vmem:[%s12076_s19 + $0x6be] sm:$0x1]  ;;  %v11101_v38 = vld [vmem:[%s12076_s19 + $0x6ce] sm:$0x1]  ;;  %v9394_v42 = vsel %vm1465_vm6, %v9393_v1, %v9392_v35  ;;  %v9954_v43 = vsel %vm1453_vm2, %v9953_v23, %v9952_v36  ;;  %v9395_v46 = vrot.slane %v11098_v33, 7  ;;  %v9397_v49 = vrot.slane %v11099_v34, 6  ;;  %v15920_v34 = vpop.trf.xlu1  ;;  %v15922_v35 = vpop.trf.xlu0 }
 0x493   : > { %v11102_v39 = vld [vmem:[%s12076_s19 + $0x6de] sm:$0x1]  ;;  %v11103_v44 = vld [vmem:[%s12076_s19 + $0x6ee] sm:$0x1]  ;;  %9465 = vxpose.xlu0.b32.cont [13/16] (narrow) %v9394_v42, 8  ;;  %v9956_v52 = vsel %vm1456_vm3, %v9955_v24, %v9954_v43  ;;  %v9399_v53 = vrot.slane %v11100_v37, 5  ;;  %v15904_v8 = vcombine.high %v15843_v4, %v15843_v4  ;;  %v15908_v9 = vcombine.high %v15845_v5, %v15845_v5 }
 0x494   : > { %v11104_v45 = vld [vmem:[%s12076_s19 + $0x6fe] sm:$0x1]  ;;  %v9401_v54 = vrot.slane %v11101_v38, 4  ;;  %v9403_v57 = vrot.slane %v11102_v39, 3  ;;  %v11237_v58 = vld [vmem:[%s12076_s19 + $0x70f] sm:$0x1]  ;;  %v9958_v59 = vsel %vm1459_vm4, %v9957_v25, %v9956_v52  ;;  %v9396_v60 = vsel %vm1447_vm0, %v9395_v46, %v11097_v26 }
 0x495   : > { %v9405_v61 = vrot.slane %v11103_v44, 2  ;;  %v9407_v62 = vrot.slane %v11104_v45, 1  ;;  %v11238_v63 = vld [vmem:[%s12076_s19 + $0x71f] sm:$0x1]  ;;  %v11239_v0 = vld [vmem:[%s12076_s19 + $0x72f] sm:$0x1]  ;;  %v9960_v1 = vsel %vm1462_vm5, %v9959_v31, %v9958_v59  ;;  %v9398_v2 = vsel %vm1450_vm1, %v9397_v49, %v9396_v60 }
 0x496   : > { %v11240_v3 = vld [vmem:[%s12076_s19 + $0x73f] sm:$0x1]  ;;  %v11241_v6 = vld [vmem:[%s12076_s19 + $0x74f] sm:$0x1]  ;;  %v9962_v10 = vsel %vm1465_vm6, %v9961_v32, %v9960_v1  ;;  %v9400_v13 = vsel %vm1453_vm2, %v9399_v53, %v9398_v2  ;;  %v9963_v16 = vrot.slane %v11238_v63, 7  ;;  %v9965_v17 = vrot.slane %v11239_v0, 6 }
 0x497   : > { %v11242_v7 = vld [vmem:[%s12076_s19 + $0x75f] sm:$0x1]  ;;  %v11243_v14 = vld [vmem:[%s12076_s19 + $0x76f] sm:$0x1]  ;;  %10020 = vxpose.xlu1.b32.cont [14/16] (narrow) %v9962_v10, 8  ;;  %v9402_v18 = vsel %vm1456_vm3, %v9401_v54, %v9400_v13  ;;  %v9967_v19 = vrot.slane %v11240_v3, 5  ;;  %v15931_v43 = vcombine.high %v15887_v50, %v15887_v50  ;;  %v15935_v44 = vcombine.high %v15889_v51, %v15889_v51 }
 0x498   : > { %v11244_v15 = vld [vmem:[%s12076_s19 + $0x77f] sm:$0x1]  ;;  %v9969_v23 = vrot.slane %v11241_v6, 4  ;;  %v9971_v24 = vrot.slane %v11242_v7, 3  ;;  %v11105_v25 = vld [vmem:[%s12076_s19 + $0x70e] sm:$0x1]  ;;  %v9404_v26 = vsel %vm1459_vm4, %v9403_v57, %v9402_v18  ;;  %v9964_v27 = vsel %vm1447_vm0, %v9963_v16, %v11237_v58 }
 0x499   : > { %v9973_v28 = vrot.slane %v11243_v14, 2  ;;  %v9975_v31 = vrot.slane %v11244_v15, 1  ;;  %v11106_v32 = vld [vmem:[%s12076_s19 + $0x71e] sm:$0x1]  ;;  %v11107_v33 = vld [vmem:[%s12076_s19 + $0x72e] sm:$0x1]  ;;  %v9406_v36 = vsel %vm1462_vm5, %v9405_v61, %v9404_v26  ;;  %v9966_v37 = vsel %vm1450_vm1, %v9965_v17, %v9964_v27  ;;  %v15966_v26 = vpop.trf.xlu1  ;;  %v15968_v27 = vpop.trf.xlu0 }
 0x49a   : > { %v11108_v38 = vld [vmem:[%s12076_s19 + $0x73e] sm:$0x1]  ;;  %v11109_v39 = vld [vmem:[%s12076_s19 + $0x74e] sm:$0x1]  ;;  %v9408_v45 = vsel %vm1465_vm6, %v9407_v62, %v9406_v36  ;;  %v9968_v46 = vsel %vm1453_vm2, %v9967_v19, %v9966_v37  ;;  %v9409_v53 = vrot.slane %v11106_v32, 7  ;;  %v9411_v54 = vrot.slane %v11107_v33, 6 }
 0x49b   : > { %v11110_v42 = vld [vmem:[%s12076_s19 + $0x75e] sm:$0x1]  ;;  %v11111_v49 = vld [vmem:[%s12076_s19 + $0x76e] sm:$0x1]  ;;  %9466 = vxpose.xlu0.b32.cont [14/16] (narrow) %v9408_v45, 8  ;;  %v9970_v57 = vsel %vm1456_vm3, %v9969_v23, %v9968_v46  ;;  %v9413_v58 = vrot.slane %v11108_v38, 5  ;;  %v15954_v15 = vcombine.high %v15920_v34, %v15920_v34  ;;  %v15958_v16 = vcombine.high %v15922_v35, %v15922_v35 }
 0x49c   : > { %v11112_v52 = vld [vmem:[%s12076_s19 + $0x77e] sm:$0x1]  ;;  %v9415_v59 = vrot.slane %v11109_v39, 4  ;;  %v9417_v60 = vrot.slane %v11110_v42, 3  ;;  %v11245_v61 = vld [vmem:[%s12076_s19 + $0x78f] sm:$0x1]  ;;  %v9972_v62 = vsel %vm1459_vm4, %v9971_v24, %v9970_v57  ;;  %v9410_v63 = vsel %vm1447_vm0, %v9409_v53, %v11105_v25 }
 0x49d   : > { %v9419_v0 = vrot.slane %v11111_v49, 2  ;;  %v9421_v1 = vrot.slane %v11112_v52, 1  ;;  %v11246_v2 = vld [vmem:[%s12076_s19 + $0x79f] sm:$0x1]  ;;  %v11247_v3 = vld [vmem:[%s12076_s19 + $0x7af] sm:$0x1]  ;;  %v9974_v6 = vsel %vm1462_vm5, %v9973_v28, %v9972_v62  ;;  %v9412_v7 = vsel %vm1450_vm1, %v9411_v54, %v9410_v63 }
 0x49e   : > { %v11248_v10 = vld [vmem:[%s12076_s19 + $0x7bf] sm:$0x1]  ;;  %v11249_v13 = vld [vmem:[%s12076_s19 + $0x7cf] sm:$0x1]  ;;  %v9976_v17 = vsel %vm1465_vm6, %v9975_v31, %v9974_v6  ;;  %v9414_v18 = vsel %vm1453_vm2, %v9413_v58, %v9412_v7  ;;  %v9977_v24 = vrot.slane %v11246_v2, 7  ;;  %v9979_v25 = vrot.slane %v11247_v3, 6 }
 0x49f   : > { %v11250_v14 = vld [vmem:[%s12076_s19 + $0x7df] sm:$0x1]  ;;  %v11251_v19 = vld [vmem:[%s12076_s19 + $0x7ef] sm:$0x1]  ;;  %10021 = vxpose.xlu1.b32.cont [15/16] (narrow) %v9976_v17, 8  ;;  %v9416_v28 = vsel %vm1456_vm3, %v9415_v59, %v9414_v18  ;;  %v9981_v31 = vrot.slane %v11248_v10, 5  ;;  %v15984_v58 = vcombine.high %v15966_v26, %v15966_v26  ;;  %v15988_v59 = vcombine.high %v15968_v27, %v15968_v27 }
 0x4a0   : > { %v15964_v23 = vld [vmem:[%s12076_s19 + $0x7ff] sm:$0x1]  ;;  %v9983_v32 = vrot.slane %v11249_v13, 4  ;;  %v9985_v33 = vrot.slane %v11250_v14, 3  ;;  %v11113_v36 = vld [vmem:[%s12076_s19 + $0x78e] sm:$0x1]  ;;  %v9418_v37 = vsel %vm1459_vm4, %v9417_v60, %v9416_v28  ;;  %v9978_v38 = vsel %vm1447_vm0, %v9977_v24, %v11245_v61 }
 0x4a1   : > { %v9987_v39 = vrot.slane %v11251_v19, 2  ;;  %v9989_v42 = vrot.slane %v15964_v23, 1  ;;  %v11114_v45 = vld [vmem:[%s12076_s19 + $0x79e] sm:$0x1]  ;;  %v11115_v46 = vld [vmem:[%s12076_s19 + $0x7ae] sm:$0x1]  ;;  %v9420_v49 = vsel %vm1462_vm5, %v9419_v0, %v9418_v37  ;;  %v9980_v52 = vsel %vm1450_vm1, %v9979_v25, %v9978_v38 }
 0x4a2   : > { %v11116_v53 = vld [vmem:[%s12076_s19 + $0x7be] sm:$0x1]  ;;  %v11117_v54 = vld [vmem:[%s12076_s19 + $0x7ce] sm:$0x1]  ;;  %v9422_v60 = vsel %vm1465_vm6, %v9421_v1, %v9420_v49  ;;  %v9982_v61 = vsel %vm1453_vm2, %v9981_v31, %v9980_v52  ;;  %v9423_v0 = vrot.slane %v11114_v45, 7  ;;  %v9425_v2 = vrot.slane %v11115_v46, 6 }
 0x4a3   : > { %v11118_v57 = vld [vmem:[%s12076_s19 + $0x7de] sm:$0x1]  ;;  %v11119_v62 = vld [vmem:[%s12076_s19 + $0x7ee] sm:$0x1]  ;;  %9467 = vxpose.xlu0.b32.cont [15/16] (narrow) %v9422_v60, 8  ;;  %v9984_v3 = vsel %vm1456_vm3, %v9983_v32, %v9982_v61  ;;  %v9427_v6 = vrot.slane %v11116_v53, 5 }
 0x4a4   : > { %v11120_v63 = vld [vmem:[%s12076_s19 + $0x7fe] sm:$0x1]  ;;  %v9429_v7 = vrot.slane %v11117_v54, 4  ;;  %v9986_v10 = vsel %vm1459_vm4, %v9985_v33, %v9984_v3  ;;  %v9424_v13 = vsel %vm1447_vm0, %v9423_v0, %v11113_v36  ;;  %v9431_v14 = vrot.slane %v11118_v57, 3  ;;  %s10081_s9 = sshll.u32 %s16000_s23, 4  ;;  %s11260_s10 = sshll.u32 %s10078_s27, 7  ;;  %s16164_s9 = int_to_ptr.vmem [resolvable:$true] %s10081_s9 }
 0x4a5   : > { %v9433_v17 = vrot.slane %v11119_v62, 2  ;;  %v9988_v1 = vsel %vm1462_vm5, %v9987_v39, %v9986_v10  ;;  %v9426_v18 = vsel %vm1450_vm1, %v9425_v2, %v9424_v13  ;;  %v9435_v19 = vrot.slane %v11120_v63, 1  ;;  %10179 = vst.sshfl [vmem:[%s16000_s23 + $0x2] sm:$0x3 pattern:$0x76325410] %v15757_v20  ;;  %s16170_s30 = scalar_lea.hbm %s16226_s1, %s11260_s10 }
 0x4a6   : > { %10180 = vst.sshfl [vmem:[%s16000_s23 + $0x12] sm:$0x3 pattern:$0x76325410] %v15827_v47  ;;  %v9990_v23 = vsel %vm1465_vm6, %v9989_v42, %v9988_v1  ;;  %v9428_v24 = vsel %vm1453_vm2, %v9427_v6, %v9426_v18  ;;  %v11457_v25 = vmov 1983009808  }
 0x4a7   : > { %10177 = vst.sshfl [vmem:[%s16000_s23] sm:$0x3 pattern:$0x76325410] %v15759_v21  ;;  %v1728_v28 = vunpack.c.l.s4 %v11457_v25  ;;  %v1731_v31 = vshrl.u32 %v1730_v22, 7  ;;  %10022 = vxpose.xlu1.b32.end [16/16] (narrow) %v9990_v23, 8  ;;  %v9430_v32 = vsel %vm1456_vm3, %v9429_v7, %v9428_v24  ;;  %s10066_s2 = scalar_lea.sflag [#allocation4], %s12073_s15 }
 0x4a8   : > { %10178 = vst.sshfl [vmem:[%s16000_s23 + $0x10] sm:$0x3 pattern:$0x76325410] %v15831_v48  ;;  %v9432_v33 = vsel %vm1459_vm4, %v9431_v14, %v9430_v32  ;;  %s11361_s3 = scalar_lea.vmem %s16164_s9, 2048  ;;  %s11458_s4 = smov [#allocation3]  }
 0x4a9   : > { %10439 = vst.sshfl [vmem:[%s16000_s23 + $0x6] sm:$0x3 pattern:$0x76325410] %v15782_v55  ;;  %v1729_v36 = vunpack.c.0.s8 %v1728_v28  ;;  %v9434_v37 = vsel %vm1462_vm5, %v9433_v17, %v9432_v33  ;;  %p11362_p1 = scmp.ne.s32.totalorder %s16164_s9, %s11361_s3  ;;  %s11365_s5 = sshll.u32 %s11458_s4, 4  ;;  %s11366_s5 = int_to_ptr.vmem [resolvable:$false] %s11365_s5 }
 0x4aa   : > { %10440 = vst.sshfl [vmem:[%s16000_s23 + $0x16] sm:$0x3 pattern:$0x76325410] %v15854_v11  ;;  %v9436_v38 = vsel %vm1465_vm6, %v9435_v19, %v9434_v37  ;;  %s11367_s14 = scalar_lea.vmem %s11366_s5, 4096  ;;  %p11368_p4 = scmp.lt.s32.totalorder %s16164_s9, %s11366_s5 }
 0x4ab   : > { %10309 = vst.sshfl [vmem:[%s16000_s23 + $0x4] sm:$0x3 pattern:$0x76325410] %v15784_v56  ;;  %v16065_v39 = vsub.s32 %v1729_v36, %v1731_v31  ;;  %9468 = vxpose.xlu0.b32.end [16/16] (narrow) %v9436_v38, 8  ;;  %p11363_p2 = pnand %p11362_p1, %p11531_p8  ;;  %p11369_p5 = scmp.lt.s32.totalorder %s11367_s14, %s11361_s3 }
 0x4ac   : > { %10310 = vst.sshfl [vmem:[%s16000_s23 + $0x14] sm:$0x3 pattern:$0x76325410] %v15858_v12 }
 0x4ad   : > { %11265 = vst.sshfl [vmem:[%s16000_s23 + $0x22] sm:$0x3 pattern:$0x76325410] %v15810_v29  ;;  %v2287_v42 = vrot.slane %v15757_v20, %v16065_v39  ;;  %v2294_v22 = vrot.slane %v15827_v47, %v16065_v39  ;;  %v1733_v45 = vrot.slane %v15759_v21, %v16065_v39  ;;  %v1740_v46 = vrot.slane %v15831_v48, %v16065_v39  ;;  %p11364_p3 = pneg %p11363_p2  ;;  %p11370_p6 = por %p11369_p5, %p11368_p4 }
 0x4ae   : > { %11266 = vst.sshfl [vmem:[%s16000_s23 + $0x32] sm:$0x3 pattern:$0x76325410] %v15877_v40  ;;  %v3396_v49 = vrot.slane %v15782_v55, %v16065_v39  ;;  %v3403_v52 = vrot.slane %v15854_v11, %v16065_v39  ;;  %v2842_v20 = vrot.slane %v15784_v56, %v16065_v39  ;;  %v2849_v47 = vrot.slane %v15858_v12, %v16065_v39 }
 0x4af   : > { %11263 = vst.sshfl [vmem:[%s16000_s23 + $0x20] sm:$0x3 pattern:$0x76325410] %v15812_v30  ;;  %v2295_v53 = vcombine.high %v2287_v42, %v2287_v42  ;;  %v2296_v21 = vcombine.high %v2294_v22, %v2294_v22  ;;  %v1741_v54 = vcombine.high %v1733_v45, %v1733_v45  ;;  %v1742_v48 = vcombine.high %v1740_v46, %v1740_v46  ;;  %p11371_p7 = pnand %p11370_p6, %p11364_p3 }
 0x4b0   : > { %11264 = vst.sshfl [vmem:[%s16000_s23 + $0x30] sm:$0x3 pattern:$0x76325410] %v15881_v41  ;;  %v3404_v57 = vcombine.high %v3396_v49, %v3396_v49  ;;  %v3405_v60 = vcombine.high %v3403_v52, %v3403_v52  ;;  %v2850_v55 = vcombine.high %v2842_v20, %v2842_v20  ;;  %v2851_v61 = vcombine.high %v2849_v47, %v2849_v47 }
 0x4b1   : > { %11269 = vst.sshfl [vmem:[%s16000_s23 + $0x26] sm:$0x3 pattern:$0x76325410] %v15843_v4  ;;  %2302 = vst [vmem:[%s16000_s23 + $0xa] sm:$0x3] %v2295_v53  ;;  %v4505_v56 = vrot.slane %v15810_v29, %v16065_v39  ;;  %v4512_v11 = vrot.slane %v15877_v40, %v16065_v39  ;;  %v3950_v12 = vrot.slane %v15812_v30, %v16065_v39 }
 0x4b2   : > { %11270 = vst.sshfl [vmem:[%s16000_s23 + $0x36] sm:$0x3 pattern:$0x76325410] %v15904_v8  ;;  %2304 = vst [vmem:[%s16000_s23 + $0x1a] sm:$0x3] %v2296_v21  ;;  %v3957_v62 = vrot.slane %v15881_v41, %v16065_v39  ;;  %v5613_v29 = vrot.slane %v15843_v4, %v16065_v39  ;;  %v5620_v40 = vrot.slane %v15904_v8, %v16065_v39 }
 0x4b3   : > { %11267 = vst.sshfl [vmem:[%s16000_s23 + $0x24] sm:$0x3 pattern:$0x76325410] %v15845_v5  ;;  %1748 = vst [vmem:[%s16000_s23 + $0x8] sm:$0x3] %v1741_v54  ;;  %v5059_v30 = vrot.slane %v15845_v5, %v16065_v39  ;;  %v5066_v41 = vrot.slane %v15908_v9, %v16065_v39  ;;  %v4513_v63 = vcombine.high %v4505_v56, %v4505_v56 }
 0x4b4   : > { %11268 = vst.sshfl [vmem:[%s16000_s23 + $0x34] sm:$0x3 pattern:$0x76325410] %v15908_v9  ;;  %1750 = vst [vmem:[%s16000_s23 + $0x18] sm:$0x3] %v1742_v48  ;;  %v4514_v0 = vcombine.high %v4512_v11, %v4512_v11  ;;  %v3958_v2 = vcombine.high %v3950_v12, %v3950_v12  ;;  %v3959_v3 = vcombine.high %v3957_v62, %v3957_v62 }
 0x4b5   : > { %11273 = vst.sshfl [vmem:[%s16000_s23 + $0x42] sm:$0x3 pattern:$0x76325410] %v15887_v50  ;;  %3411 = vst [vmem:[%s16000_s23 + $0xe] sm:$0x3] %v3404_v57  ;;  %v5621_v6 = vcombine.high %v5613_v29, %v5613_v29  ;;  %v5622_v7 = vcombine.high %v5620_v40, %v5620_v40  ;;  %v5067_v4 = vcombine.high %v5059_v30, %v5059_v30 }
 0x4b6   : > { %11274 = vst.sshfl [vmem:[%s16000_s23 + $0x52] sm:$0x3 pattern:$0x76325410] %v15931_v43  ;;  %3413 = vst [vmem:[%s16000_s23 + $0x1e] sm:$0x3] %v3405_v60  ;;  %v5068_v10 = vcombine.high %v5066_v41, %v5066_v41  ;;  %v6722_v5 = vrot.slane %v15887_v50, %v16065_v39  ;;  %v6729_v8 = vrot.slane %v15931_v43, %v16065_v39 }
 0x4b7   : > { %11271 = vst.sshfl [vmem:[%s16000_s23 + $0x40] sm:$0x3 pattern:$0x76325410] %v15889_v51  ;;  %2857 = vst [vmem:[%s16000_s23 + $0xc] sm:$0x3] %v2850_v55  ;;  %v6167_v9 = vrot.slane %v15889_v51, %v16065_v39  ;;  %v6174_v13 = vrot.slane %v15935_v44, %v16065_v39  ;;  %v7830_v50 = vrot.slane %v15920_v34, %v16065_v39 }
 0x4b8   : > { %11272 = vst.sshfl [vmem:[%s16000_s23 + $0x50] sm:$0x3 pattern:$0x76325410] %v15935_v44  ;;  %2859 = vst [vmem:[%s16000_s23 + $0x1c] sm:$0x3] %v2851_v61  ;;  %v7837_v43 = vrot.slane %v15954_v15, %v16065_v39  ;;  %v7276_v51 = vrot.slane %v15922_v35, %v16065_v39  ;;  %v7283_v44 = vrot.slane %v15958_v16, %v16065_v39 }
 0x4b9   : > { %11277 = vst.sshfl [vmem:[%s16000_s23 + $0x46] sm:$0x3 pattern:$0x76325410] %v15920_v34  ;;  %10446 = vst [vmem:[%s16000_s23 + $0x2a] sm:$0x3] %v4513_v63  ;;  %v6730_v14 = vcombine.high %v6722_v5, %v6722_v5  ;;  %v6731_v17 = vcombine.high %v6729_v8, %v6729_v8  ;;  %v6175_v1 = vcombine.high %v6167_v9, %v6167_v9 }
 0x4ba   : > { %11278 = vst.sshfl [vmem:[%s16000_s23 + $0x56] sm:$0x3 pattern:$0x76325410] %v15954_v15  ;;  %10448 = vst [vmem:[%s16000_s23 + $0x3a] sm:$0x3] %v4514_v0  ;;  %v6176_v18 = vcombine.high %v6174_v13, %v6174_v13  ;;  %v7838_v19 = vcombine.high %v7830_v50, %v7830_v50  ;;  %v7839_v23 = vcombine.high %v7837_v43, %v7837_v43 }
 0x4bb   : > { %11275 = vst.sshfl [vmem:[%s16000_s23 + $0x44] sm:$0x3 pattern:$0x76325410] %v15922_v35  ;;  %10442 = vst [vmem:[%s16000_s23 + $0x28] sm:$0x3] %v3958_v2  ;;  %v7284_v34 = vcombine.high %v7276_v51, %v7276_v51  ;;  %v7285_v24 = vcombine.high %v7283_v44, %v7283_v44  ;;  %v8939_v35 = vrot.slane %v15966_v26, %v16065_v39 }
 0x4bc   : > { %11276 = vst.sshfl [vmem:[%s16000_s23 + $0x54] sm:$0x3 pattern:$0x76325410] %v15958_v16  ;;  %10444 = vst [vmem:[%s16000_s23 + $0x38] sm:$0x3] %v3959_v3  ;;  %v8946_v15 = vrot.slane %v15984_v58, %v16065_v39  ;;  %v8384_v16 = vrot.slane %v15968_v27, %v16065_v39  ;;  %v8391_v25 = vrot.slane %v15988_v59, %v16065_v39 }
 0x4bd   : > { %11281 = vst.sshfl [vmem:[%s16000_s23 + $0x62] sm:$0x3 pattern:$0x76325410] %v15966_v26  ;;  %10710 = vst [vmem:[%s16000_s23 + $0x2e] sm:$0x3] %v5621_v6  ;;  %v8947_v28 = vcombine.high %v8939_v35, %v8939_v35 }
 0x4be   : > { %11282 = vst.sshfl [vmem:[%s16000_s23 + $0x72] sm:$0x3 pattern:$0x76325410] %v15984_v58  ;;  %10712 = vst [vmem:[%s16000_s23 + $0x3e] sm:$0x3] %v5622_v7  ;;  %v8948_v31 = vcombine.high %v8946_v15, %v8946_v15  ;;  %v8392_v26 = vcombine.high %v8384_v16, %v8384_v16  ;;  %v8393_v32 = vcombine.high %v8391_v25, %v8391_v25 }
 0x4bf   : > { %11279 = vst.sshfl [vmem:[%s16000_s23 + $0x60] sm:$0x3 pattern:$0x76325410] %v15968_v27  ;;  %10578 = vst [vmem:[%s16000_s23 + $0x2c] sm:$0x3] %v5067_v4 }
 0x4c0   : > { %11280 = vst.sshfl [vmem:[%s16000_s23 + $0x70] sm:$0x3 pattern:$0x76325410] %v15988_v59  ;;  %10580 = vst [vmem:[%s16000_s23 + $0x3c] sm:$0x3] %v5068_v10 }
 0x4c1   : > { %10718 = vst [vmem:[%s16000_s23 + $0x4a] sm:$0x3] %v6730_v14  ;;  %10720 = vst [vmem:[%s16000_s23 + $0x5a] sm:$0x3] %v6731_v17 }
 0x4c2   : > { %10714 = vst [vmem:[%s16000_s23 + $0x48] sm:$0x3] %v6175_v1  ;;  %10716 = vst [vmem:[%s16000_s23 + $0x58] sm:$0x3] %v6176_v18 }
 0x4c3   : > { %10982 = vst [vmem:[%s16000_s23 + $0x4e] sm:$0x3] %v7838_v19  ;;  %10984 = vst [vmem:[%s16000_s23 + $0x5e] sm:$0x3] %v7839_v23 }
 0x4c4   : > { %10850 = vst [vmem:[%s16000_s23 + $0x4c] sm:$0x3] %v7284_v34  ;;  %10852 = vst [vmem:[%s16000_s23 + $0x5c] sm:$0x3] %v7285_v24 }
 0x4c5   : > { %10990 = vst [vmem:[%s16000_s23 + $0x6a] sm:$0x3] %v8947_v28  ;;  %10992 = vst [vmem:[%s16000_s23 + $0x7a] sm:$0x3] %v8948_v31 }
 0x4c6   : > { %10986 = vst [vmem:[%s16000_s23 + $0x68] sm:$0x3] %v8392_v26  ;;  %10988 = vst [vmem:[%s16000_s23 + $0x78] sm:$0x3] %v8393_v32 }
 0x4eb   : > { %v10023_v27 = vpop.trf.xlu1 }
 0x4ec   : > { %v10040_v58 = vcombine.high %v10023_v27, %v10023_v27  ;;  %v10047_v59 = vrot.slane %v10023_v27, %v16065_v39  ;;  %11285 = vst.sshfl [vmem:[%s16000_s23 + $0x66] sm:$0x3 pattern:$0x76325410] %v10023_v27 }
 0x4ee   : > { %v10054_v33 = vrot.slane %v10040_v58, %v16065_v39  ;;  %v10055_v36 = vcombine.high %v10047_v59, %v10047_v59  ;;  %11286 = vst.sshfl [vmem:[%s16000_s23 + $0x76] sm:$0x3 pattern:$0x76325410] %v10040_v58 }
 0x4ef   : > { %v9469_v37 = vpop.trf.xlu0 }
 0x4f0   : > { %v10056_v38 = vcombine.high %v10054_v33, %v10054_v33  ;;  %11254 = vst [vmem:[%s16000_s23 + $0x6e] sm:$0x3] %v10055_v36  ;;  %v9486_v42 = vcombine.high %v9469_v37, %v9469_v37  ;;  %v9493_v22 = vrot.slane %v9469_v37, %v16065_v39  ;;  %11283 = vst.sshfl [vmem:[%s16000_s23 + $0x64] sm:$0x3 pattern:$0x76325410] %v9469_v37 }
 0x4f2   : > { %11256 = vst [vmem:[%s16000_s23 + $0x7e] sm:$0x3] %v10056_v38  ;;  %v9500_v45 = vrot.slane %v9486_v42, %v16065_v39  ;;  %v9501_v46 = vcombine.high %v9493_v22, %v9493_v22  ;;  %11284 = vst.sshfl [vmem:[%s16000_s23 + $0x74] sm:$0x3 pattern:$0x76325410] %v9486_v42 }
 0x4f4   : > { %v9502_v49 = vcombine.high %v9500_v45, %v9500_v45  ;;  %11122 = vst [vmem:[%s16000_s23 + $0x6c] sm:$0x3] %v9501_v46 }
 0x4f6   : > { %11124 = vst [vmem:[%s16000_s23 + $0x7c] sm:$0x3] %v9502_v49 }
 0x4f7   : > { %11374 = shalt.err (!%p11371_p7)
}
 0x4f8   : > { %s11375_s18 = scalar_lea.hbm %s16170_s30, 2048  ;;  %s11379_s23 = scalar_lea.hbm %s16226_s1, 8192 }
 0x4f9   : > { %p11376_p10 = scmp.ne.s32.totalorder %s16170_s30, %s11375_s18  ;;  %p11380_p13 = scmp.lt.u32.totalorder %s16170_s30, %s16226_s1 }
 0x4fa   : > { %p11381_p0 = scmp.lt.u32.totalorder %s11379_s23, %s11375_s18  ;;  %p11383_p2 = scmp.lt.u32.totalorder %s11375_s18, %s16170_s30 }
 0x4fb   : > { %p11377_p11 = pnand %p11376_p10, %p11531_p8 }
 0x4fc   : > { %p11382_p1 = por %p11381_p0, %p11380_p13 }
 0x4fd   : > { %p11378_p12 = pneg %p11377_p11 }
 0x4fe   : > { %p11384_p3 = por %p11383_p2, %p11382_p1 }
 0x500   : > { %p11385_p4 = pnand %p11384_p3, %p11378_p12 }
 0x502   : > { %11388 = shalt.err (!%p11385_p4)
}
 0x503   : > { %s11459_s27 = smov 128   ;;  %s11460_s10 = smov 8  }
 0x504   : > { %11287 = dma.vmem_to_hbm [thread:$0]  (%p11531_p8), %s16164_s9, 2048, %s16170_s30, %s10066_s2, %s11459_s27, %s11459_s27, %s11460_s10  }
 0x505 PF: > { %p11293_p5 = scmp.ge.s32.totalorder %s11455_s13, 2  ;;  %s10096_s28 = sand.u32 1, %s11427_s6  }
 0x506   : > { %s10097_s29 = scalar_lea.sflag [#allocation4], %s10096_s28 }
 0x507   : > { %p11290_p6 = pnand %p11293_p5, %p11535_p9 }
 0x509   : > { %11422 = dma.done.wait (!%p11290_p6), %s10097_s29, 2048  }
 0x50a   : > { %11424 = vsyncadd (!%p11290_p6), %s10097_s29, 4294965248  ;;  %s14_s13 = sadd.s32 1, %s11455_s13   ;;  %s16230_s6 = smov %s11431_s7 }
 0x50b   : > { %p11_p7 = scmp.ge.s32.totalorder %s14_s13, 6   ;;  %s16231_s7 = smov %s11435_s8 }
 0x50c   : > { %s16232_s8 = smov %s11543_s25  ;;  %s16233_s9 = smov %s11447_s11 }
 0x50d   : > { %s16234_s10 = smov %s11451_s12  ;;  %s16235_s11 = smov %s16238_s16 }
 0x50e   : > { %s16236_s12 = smov %s16242_s17  ;;  %13 = sbr.rel (!%p11_p7) target bundleno = 5 (0x5), region = 106 }
 0x515   :  { %10102 = vsyncpa [#allocation4], 1 }
 0x516   :  { %10104 = vsyncpa [#allocation4 + $0x1], 1 }

</bundles_post_ra>
